<compile_context>
chip_gen: v5e
topology: v5e:2x2
jax: 0.10.0
libtpu: 0.0.40
codegen_flags: <defaults>
</compile_context>

<pallas_src>
import functools

import jax
import jax.numpy as jnp
from jax.experimental import pallas as pl
from jax.experimental.pallas import tpu as pltpu


def _make_aspp_kernel(rates, P, H, W, c_in, c_out):
    """Builds the fused ASPP kernel body (one batch element per grid step)."""
    n_rates = len(rates)
    HW = H * W

    def kernel(x_ref, w0_ref, b0_ref, *args):
        # args layout: [w_r_t, b_r] * n_rates, wp_t, bp, o_ref, xpad_ref
        rate_refs = args[: 2 * n_rates]
        wp_ref, bp_ref, o_ref, xpad_ref = args[2 * n_rates:]

        # Zero-padded activation tile lives only in VMEM (no padded HBM copy).
        xpad_ref[...] = jnp.zeros_like(xpad_ref)
        xpad_ref[P:P + H, P:P + W, :] = x_ref[0]

        def cdot(w_t, act):
            # (Cout, K) x (M, K) -> (Cout, M): channel-major, lane-dense out.
            return jax.lax.dot_general(
                w_t, act,
                dimension_numbers=(((1,), (1,)), ((), ())),
                preferred_element_type=jnp.float32)

        # ---- stage c0: 1x1 conv (BN scale pre-folded) + bias + ReLU -------
        center = x_ref[0].reshape(HW, c_in)                  # (HW, Cin) bf16
        y0 = cdot(w0_ref[...], center)                       # (Cout, HW) f32
        o_ref[0, 0:c_out, :] = jnp.maximum(y0 + b0_ref[...], 0.0)

        # ---- stages c1..cN: dilated 3x3 conv via one im2col matmul --------
        for i, r in enumerate(rates):
            w_ref, b_ref = rate_refs[2 * i], rate_refs[2 * i + 1]
            taps = []
            for kh in range(3):
                for kw in range(3):
                    hs = P + (kh - 1) * r                    # static offsets
                    ws = P + (kw - 1) * r
                    # Ref-side static slice (view), then cheap leading-dim
                    # collapse to (HW, Cin).
                    taps.append(
                        xpad_ref[hs:hs + H, ws:ws + W, :].reshape(HW, c_in))
            col = jnp.concatenate(taps, axis=-1)             # (HW, 9*Cin)
            y = cdot(w_ref[...], col)                        # (Cout, HW) f32
            lo = (i + 1) * c_out
            o_ref[0, lo:lo + c_out, :] = jnp.maximum(y + b_ref[...], 0.0)

        # ---- image-pool branch: global mean -> 1x1 conv -> ReLU -> bcast --
        # Kept in f32 (tiny); bilinear upsample from 1x1 == constant bcast.
        m = jnp.mean(center.astype(jnp.float32), axis=0, keepdims=True)
        yp = jnp.sum(wp_ref[...] * m, axis=1, keepdims=True)  # (Cout, 1) f32
        yp = jnp.maximum(yp + bp_ref[...], 0.0)
        lo = (1 + n_rates) * c_out
        o_ref[0, lo:lo + c_out, :] = jnp.broadcast_to(yp, (c_out, HW))

    return kernel


def aspp_forward(x_nchw, params, rates):
    """Runs the fused ASPP Pallas kernel. Input/output are NCHW (PyTorch)."""
    N, c_in, H, W = x_nchw.shape
    c_out = params["w0"].shape[-1]
    n_stages = 2 + len(rates)
    c_tot = c_out * n_stages
    P = max(rates) if rates else 0
    Hp, Wp = H + 2 * P, W + 2 * P
    HW = H * W

    # NHWC, bf16 activations for the MXU (accumulation stays f32 in-kernel).
    x = jnp.transpose(x_nchw, (0, 2, 3, 1)).astype(jnp.bfloat16)

    # Channel-major weight orientation: (Cout, K). BN scale already folded.
    w0_t = params["w0"].T                                      # (Cout, Cin) bf16
    b0 = params["b0"].reshape(c_out, 1)                        # f32
    wr_t = [w.reshape(9 * c_in, c_out).T for w in params["wr"]]  # (Cout, 9Cin)
    br = [b.reshape(c_out, 1) for b in params["br"]]
    wp_t = params["wp"].T                                      # (Cout, Cin) f32
    bp = params["bp"].reshape(c_out, 1)

    kernel = _make_aspp_kernel(tuple(rates), P, H, W, c_in, c_out)

    # Full-array blocks with constant index maps for weights / biases.
    # TODO(synk): single-buffer these (pl.Buffered(1) / persistent scratch)
    # once weights are production-sized; at toy sizes the 2x footprint is noise.
    full = lambda a: pl.BlockSpec(a.shape, lambda n: (0,) * a.ndim)

    operands = [x, w0_t, b0]
    in_specs = [pl.BlockSpec((1, H, W, c_in), lambda n: (n, 0, 0, 0)),
                full(w0_t), full(b0)]
    for i in range(len(rates)):
        operands += [wr_t[i], br[i]]
        in_specs += [full(wr_t[i]), full(br[i])]
    operands += [wp_t, bp]
    in_specs += [full(wp_t), full(bp)]

    out = pl.pallas_call(
        kernel,
        out_shape=jax.ShapeDtypeStruct((N, c_tot, HW), jnp.float32),
        grid=(N,),
        in_specs=in_specs,
        out_specs=pl.BlockSpec((1, c_tot, HW), lambda n: (n, 0, 0)),
        scratch_shapes=[pltpu.VMEM((Hp, Wp, c_in), jnp.bfloat16)],
        compiler_params=pltpu.CompilerParams(
            dimension_semantics=("parallel",),
            vmem_limit_bytes=32 * 1024 * 1024),
    )(*operands)

    # Channel-major kernel output: (N, c_tot, H*W) -> NCHW is a pure reshape.
    return out.reshape(N, c_tot, H, W)


# ----------------------------- parameter setup ------------------------------

def _fold_bn(w, gamma, beta, mean, var, eps=1e-5):
    """Folds inference-mode BN into the conv: w*scale (per Cout), plus bias."""
    scale = gamma / jnp.sqrt(var + eps)          # (Cout,)
    bias = beta - mean * scale                   # (Cout,)
    return w * scale, bias                       # scale broadcasts on last dim


def init_params(key, c_in, c_out, rates):
    n_stages = 2 + len(rates)
    keys = jax.random.split(key, 5 * n_stages)
    ki = iter(range(len(keys)))

    def bn_stats():
        gamma = 0.5 + jax.random.uniform(keys[next(ki)], (c_out,))
        beta = 0.1 * jax.random.normal(keys[next(ki)], (c_out,))
        mean = 0.1 * jax.random.normal(keys[next(ki)], (c_out,))
        var = 0.5 + jax.random.uniform(keys[next(ki)], (c_out,))
        return gamma, beta, mean, var

    p = {}
    # stage c0: 1x1 conv, weights (Cin, Cout); BN scale folded in, then bf16.
    w0 = 0.1 * jax.random.normal(keys[next(ki)], (c_in, c_out))
    w0, b0 = _fold_bn(w0, *bn_stats())
    p["w0"], p["b0"] = w0.astype(jnp.bfloat16), b0.astype(jnp.float32)
    # dilated 3x3 stages, weights HWIO (3, 3, Cin, Cout).
    p["wr"], p["br"] = [], []
    for _ in rates:
        w = 0.1 * jax.random.normal(keys[next(ki)], (3, 3, c_in, c_out))
        w, b = _fold_bn(w, *bn_stats())
        p["wr"].append(w.astype(jnp.bfloat16))
        p["br"].append(b.astype(jnp.float32))
    # image-pool 1x1 conv (tiny; kept f32).
    wp = 0.1 * jax.random.normal(keys[next(ki)], (c_in, c_out))
    wp, bp = _fold_bn(wp, *bn_stats())
    p["wp"], p["bp"] = wp.astype(jnp.float32), bp.astype(jnp.float32)
    return p


# ------------------------------ pure-JAX reference ---------------------------

def ref_aspp(x_nchw, params, rates):
    """Straightforward conv/pool/concat reference on the same folded params."""
    x = jnp.transpose(x_nchw, (0, 2, 3, 1)).astype(jnp.bfloat16)
    N, H, W, _ = x.shape
    relu = lambda y, b: jnp.maximum(y + b.reshape(1, 1, 1, -1), 0.0)

    outs = [relu(jnp.einsum("nhwc,cd->nhwd", x, params["w0"],
                            preferred_element_type=jnp.float32), params["b0"])]
    for i, r in enumerate(rates):
        y = jax.lax.conv_general_dilated(
            x, params["wr"][i], window_strides=(1, 1),
            padding=((r, r), (r, r)), rhs_dilation=(r, r),
            dimension_numbers=("NHWC", "HWIO", "NHWC"),
            preferred_element_type=jnp.float32)
        outs.append(relu(y, params["br"][i]))
    m = jnp.mean(x.astype(jnp.float32), axis=(1, 2), keepdims=True)
    yp = relu(jnp.einsum("nhwc,cd->nhwd", m, params["wp"],
                         preferred_element_type=jnp.float32), params["bp"])
    # bilinear upsample from 1x1 (align_corners=False) == constant broadcast
    outs.append(jnp.broadcast_to(yp, (N, H, W, yp.shape[-1])))
    return jnp.transpose(jnp.concatenate(outs, axis=-1), (0, 3, 1, 2))


# ----------------------------------- main ------------------------------------

if __name__ == "__main__":
    key = jax.random.PRNGKey(0)
    kx, kp = jax.random.split(key)

    N, c_in, H, W = 2, 8, 16, 16
    c_out = 8
    rates = (2, 4)

    x = jax.random.normal(kx, (N, c_in, H, W), dtype=jnp.float32)
    params = init_params(kp, c_in, c_out, rates)

    run = jax.jit(functools.partial(aspp_forward, rates=rates))
    out = jax.block_until_ready(run(x, params))

    expected = jax.block_until_ready(ref_aspp(x, params, rates))
    assert out.shape == (N, c_out * (2 + len(rates)), H, W), out.shape
    max_err = float(jnp.max(jnp.abs(out - expected)))
    assert jnp.allclose(out, expected, rtol=1e-4, atol=1e-4), max_err

    print("KERNEL_OK")
</pallas_src>

<mosaic_0001>
module attributes {stable_mosaic.version = 11 : i64} {
  func.func @kernel(%arg0: i32, %arg1: memref<1x16x16x8xbf16, #tpu.memory_space<vmem>>, %arg2: memref<8x8xbf16, #tpu.memory_space<vmem>>, %arg3: memref<8x1xf32, #tpu.memory_space<vmem>>, %arg4: memref<8x72xbf16, #tpu.memory_space<vmem>>, %arg5: memref<8x1xf32, #tpu.memory_space<vmem>>, %arg6: memref<8x72xbf16, #tpu.memory_space<vmem>>, %arg7: memref<8x1xf32, #tpu.memory_space<vmem>>, %arg8: memref<8x8xf32, #tpu.memory_space<vmem>>, %arg9: memref<8x1xf32, #tpu.memory_space<vmem>>, %arg10: memref<1x32x256xf32, #tpu.memory_space<vmem>>, %arg11: memref<24x24x8xbf16, #tpu.memory_space<vmem>>) attributes {dimension_semantics = [#tpu.dimension_semantics<parallel>], iteration_bounds = array<i64: 2>, scalar_prefetch = 0 : i64, scratch_operands = 1 : i64, tpu.core_type = #tpu.core_type<tc>, window_params = [{transform_indices = @transform_0, window_bounds = array<i64: 1, 16, 16, 8>}, {pipeline_mode = #tpu.pipeline_mode<synchronous>, transform_indices = @transform_1, window_bounds = array<i64: 8, 8>}, {pipeline_mode = #tpu.pipeline_mode<synchronous>, transform_indices = @transform_2, window_bounds = array<i64: 8, 1>}, {pipeline_mode = #tpu.pipeline_mode<synchronous>, transform_indices = @transform_3, window_bounds = array<i64: 8, 72>}, {pipeline_mode = #tpu.pipeline_mode<synchronous>, transform_indices = @transform_4, window_bounds = array<i64: 8, 1>}, {pipeline_mode = #tpu.pipeline_mode<synchronous>, transform_indices = @transform_5, window_bounds = array<i64: 8, 72>}, {pipeline_mode = #tpu.pipeline_mode<synchronous>, transform_indices = @transform_6, window_bounds = array<i64: 8, 1>}, {pipeline_mode = #tpu.pipeline_mode<synchronous>, transform_indices = @transform_7, window_bounds = array<i64: 8, 8>}, {pipeline_mode = #tpu.pipeline_mode<synchronous>, transform_indices = @transform_8, window_bounds = array<i64: 8, 1>}, {transform_indices = @transform_9, window_bounds = array<i64: 1, 32, 256>}]} {
    %cst = arith.constant 0.000000e+00 : bf16
    %0 = vector.broadcast %cst : bf16 to vector<24x24x8xbf16>
    %c0 = arith.constant 0 : index
    %c0_0 = arith.constant 0 : index
    %c0_1 = arith.constant 0 : index
    %1 = vector.load %arg11[%c0, %c0_0, %c0_1] : memref<24x24x8xbf16, #tpu.memory_space<vmem>>, vector<24x24x8xbf16>
    tpu.vector_store %arg11[%c0, %c0_0, %c0_1], %0 {strides = array<i32>} : memref<24x24x8xbf16, #tpu.memory_space<vmem>>, vector<24x24x8xbf16>,
    %c0_2 = arith.constant 0 : index
    %c0_3 = arith.constant 0 : index
    %c0_4 = arith.constant 0 : index
    %c0_5 = arith.constant 0 : index
    %2 = vector.load %arg1[%c0_2, %c0_3, %c0_4, %c0_5] : memref<1x16x16x8xbf16, #tpu.memory_space<vmem>>, vector<1x16x16x8xbf16>
    %3 = vector.shape_cast %2 : vector<1x16x16x8xbf16> to vector<16x16x8xbf16>
    %c4 = arith.constant 4 : index
    %c4_6 = arith.constant 4 : index
    %c0_7 = arith.constant 0 : index
    %4 = vector.load %arg11[%c4, %c4_6, %c0_7] : memref<24x24x8xbf16, #tpu.memory_space<vmem>>, vector<16x16x8xbf16>
    tpu.vector_store %arg11[%c4, %c4_6, %c0_7], %3 {strides = array<i32>} : memref<24x24x8xbf16, #tpu.memory_space<vmem>>, vector<16x16x8xbf16>,
    %c0_8 = arith.constant 0 : index
    %c0_9 = arith.constant 0 : index
    %c0_10 = arith.constant 0 : index
    %c0_11 = arith.constant 0 : index
    %5 = vector.load %arg1[%c0_8, %c0_9, %c0_10, %c0_11] : memref<1x16x16x8xbf16, #tpu.memory_space<vmem>>, vector<1x16x16x8xbf16>
    %6 = vector.shape_cast %5 : vector<1x16x16x8xbf16> to vector<16x16x8xbf16>
    %7 = vector.shape_cast %6 : vector<16x16x8xbf16> to vector<256x8xbf16>
    %c0_12 = arith.constant 0 : index
    %c0_13 = arith.constant 0 : index
    %8 = vector.load %arg2[%c0_12, %c0_13] : memref<8x8xbf16, #tpu.memory_space<vmem>>, vector<8x8xbf16>
    %cst_14 = arith.constant dense<0.000000e+00> : vector<8x256xf32>
    %9 = tpu.matmul %8, %7, %cst_14 {dimension_numbers = #tpu.dot_dimension_numbers<[1], [1], [0], [0], [0, 0, 1, 0], [], []>} : vector<8x8xbf16>, vector<256x8xbf16>, vector<8x256xf32> -> vector<8x256xf32>
    %c0_15 = arith.constant 0 : index
    %c0_16 = arith.constant 0 : index
    %10 = vector.load %arg3[%c0_15, %c0_16] : memref<8x1xf32, #tpu.memory_space<vmem>>, vector<8x1xf32>
    %11 = vector.broadcast %10 : vector<8x1xf32> to vector<8x256xf32>
    %12 = arith.addf %9, %11 : vector<8x256xf32>
    %cst_17 = arith.constant 0.000000e+00 : f32
    %13 = vector.broadcast %cst_17 : f32 to vector<8x256xf32>
    %14 = arith.maximumf %12, %13 : vector<8x256xf32>
    %c0_18 = arith.constant 0 : index
    %c0_19 = arith.constant 0 : index
    %c0_20 = arith.constant 0 : index
    %15 = vector.load %arg10[%c0_18, %c0_19, %c0_20] : memref<1x32x256xf32, #tpu.memory_space<vmem>>, vector<1x8x256xf32>
    %16 = vector.shape_cast %15 : vector<1x8x256xf32> to vector<8x256xf32>
    %17 = vector.shape_cast %14 : vector<8x256xf32> to vector<1x8x256xf32>
    tpu.vector_store %arg10[%c0_18, %c0_19, %c0_20], %17 {strides = array<i32>} : memref<1x32x256xf32, #tpu.memory_space<vmem>>, vector<1x8x256xf32>,
    %c2 = arith.constant 2 : index
    %c2_21 = arith.constant 2 : index
    %c0_22 = arith.constant 0 : index
    %18 = vector.load %arg11[%c2, %c2_21, %c0_22] : memref<24x24x8xbf16, #tpu.memory_space<vmem>>, vector<16x16x8xbf16>
    %19 = vector.shape_cast %18 : vector<16x16x8xbf16> to vector<256x8xbf16>
    %c2_23 = arith.constant 2 : index
    %c4_24 = arith.constant 4 : index
    %c0_25 = arith.constant 0 : index
    %20 = vector.load %arg11[%c2_23, %c4_24, %c0_25] : memref<24x24x8xbf16, #tpu.memory_space<vmem>>, vector<16x16x8xbf16>
    %21 = vector.shape_cast %20 : vector<16x16x8xbf16> to vector<256x8xbf16>
    %c2_26 = arith.constant 2 : index
    %c6 = arith.constant 6 : index
    %c0_27 = arith.constant 0 : index
    %22 = vector.load %arg11[%c2_26, %c6, %c0_27] : memref<24x24x8xbf16, #tpu.memory_space<vmem>>, vector<16x16x8xbf16>
    %23 = vector.shape_cast %22 : vector<16x16x8xbf16> to vector<256x8xbf16>
    %c4_28 = arith.constant 4 : index
    %c2_29 = arith.constant 2 : index
    %c0_30 = arith.constant 0 : index
    %24 = vector.load %arg11[%c4_28, %c2_29, %c0_30] : memref<24x24x8xbf16, #tpu.memory_space<vmem>>, vector<16x16x8xbf16>
    %25 = vector.shape_cast %24 : vector<16x16x8xbf16> to vector<256x8xbf16>
    %c4_31 = arith.constant 4 : index
    %c4_32 = arith.constant 4 : index
    %c0_33 = arith.constant 0 : index
    %26 = vector.load %arg11[%c4_31, %c4_32, %c0_33] : memref<24x24x8xbf16, #tpu.memory_space<vmem>>, vector<16x16x8xbf16>
    %27 = vector.shape_cast %26 : vector<16x16x8xbf16> to vector<256x8xbf16>
    %c4_34 = arith.constant 4 : index
    %c6_35 = arith.constant 6 : index
    %c0_36 = arith.constant 0 : index
    %28 = vector.load %arg11[%c4_34, %c6_35, %c0_36] : memref<24x24x8xbf16, #tpu.memory_space<vmem>>, vector<16x16x8xbf16>
    %29 = vector.shape_cast %28 : vector<16x16x8xbf16> to vector<256x8xbf16>
    %c6_37 = arith.constant 6 : index
    %c2_38 = arith.constant 2 : index
    %c0_39 = arith.constant 0 : index
    %30 = vector.load %arg11[%c6_37, %c2_38, %c0_39] : memref<24x24x8xbf16, #tpu.memory_space<vmem>>, vector<16x16x8xbf16>
    %31 = vector.shape_cast %30 : vector<16x16x8xbf16> to vector<256x8xbf16>
    %c6_40 = arith.constant 6 : index
    %c4_41 = arith.constant 4 : index
    %c0_42 = arith.constant 0 : index
    %32 = vector.load %arg11[%c6_40, %c4_41, %c0_42] : memref<24x24x8xbf16, #tpu.memory_space<vmem>>, vector<16x16x8xbf16>
    %33 = vector.shape_cast %32 : vector<16x16x8xbf16> to vector<256x8xbf16>
    %c6_43 = arith.constant 6 : index
    %c6_44 = arith.constant 6 : index
    %c0_45 = arith.constant 0 : index
    %34 = vector.load %arg11[%c6_43, %c6_44, %c0_45] : memref<24x24x8xbf16, #tpu.memory_space<vmem>>, vector<16x16x8xbf16>
    %35 = vector.shape_cast %34 : vector<16x16x8xbf16> to vector<256x8xbf16>
    %36 = tpu.concatenate %19, %21, %23, %25, %27, %29, %31, %33, %35 in 1 : vector<256x8xbf16>, vector<256x8xbf16>, vector<256x8xbf16>, vector<256x8xbf16>, vector<256x8xbf16>, vector<256x8xbf16>, vector<256x8xbf16>, vector<256x8xbf16>, vector<256x8xbf16> -> vector<256x72xbf16>
    %c0_46 = arith.constant 0 : index
    %c0_47 = arith.constant 0 : index
    %37 = vector.load %arg4[%c0_46, %c0_47] : memref<8x72xbf16, #tpu.memory_space<vmem>>, vector<8x72xbf16>
    %cst_48 = arith.constant dense<0.000000e+00> : vector<8x256xf32>
    %38 = tpu.matmul %37, %36, %cst_48 {dimension_numbers = #tpu.dot_dimension_numbers<[1], [1], [0], [0], [0, 0, 1, 0], [], []>} : vector<8x72xbf16>, vector<256x72xbf16>, vector<8x256xf32> -> vector<8x256xf32>
    %c0_49 = arith.constant 0 : index
    %c0_50 = arith.constant 0 : index
    %39 = vector.load %arg5[%c0_49, %c0_50] : memref<8x1xf32, #tpu.memory_space<vmem>>, vector<8x1xf32>
    %40 = vector.broadcast %39 : vector<8x1xf32> to vector<8x256xf32>
    %41 = arith.addf %38, %40 : vector<8x256xf32>
    %cst_51 = arith.constant 0.000000e+00 : f32
    %42 = vector.broadcast %cst_51 : f32 to vector<8x256xf32>
    %43 = arith.maximumf %41, %42 : vector<8x256xf32>
    %c0_52 = arith.constant 0 : index
    %c8 = arith.constant 8 : index
    %c0_53 = arith.constant 0 : index
    %44 = vector.load %arg10[%c0_52, %c8, %c0_53] : memref<1x32x256xf32, #tpu.memory_space<vmem>>, vector<1x8x256xf32>
    %45 = vector.shape_cast %44 : vector<1x8x256xf32> to vector<8x256xf32>
    %46 = vector.shape_cast %43 : vector<8x256xf32> to vector<1x8x256xf32>
    tpu.vector_store %arg10[%c0_52, %c8, %c0_53], %46 {strides = array<i32>} : memref<1x32x256xf32, #tpu.memory_space<vmem>>, vector<1x8x256xf32>,
    %c0_54 = arith.constant 0 : index
    %c0_55 = arith.constant 0 : index
    %c0_56 = arith.constant 0 : index
    %47 = vector.load %arg11[%c0_54, %c0_55, %c0_56] : memref<24x24x8xbf16, #tpu.memory_space<vmem>>, vector<16x16x8xbf16>
    %48 = vector.shape_cast %47 : vector<16x16x8xbf16> to vector<256x8xbf16>
    %c0_57 = arith.constant 0 : index
    %c4_58 = arith.constant 4 : index
    %c0_59 = arith.constant 0 : index
    %49 = vector.load %arg11[%c0_57, %c4_58, %c0_59] : memref<24x24x8xbf16, #tpu.memory_space<vmem>>, vector<16x16x8xbf16>
    %50 = vector.shape_cast %49 : vector<16x16x8xbf16> to vector<256x8xbf16>
    %c0_60 = arith.constant 0 : index
    %c8_61 = arith.constant 8 : index
    %c0_62 = arith.constant 0 : index
    %51 = vector.load %arg11[%c0_60, %c8_61, %c0_62] : memref<24x24x8xbf16, #tpu.memory_space<vmem>>, vector<16x16x8xbf16>
    %52 = vector.shape_cast %51 : vector<16x16x8xbf16> to vector<256x8xbf16>
    %c4_63 = arith.constant 4 : index
    %c0_64 = arith.constant 0 : index
    %c0_65 = arith.constant 0 : index
    %53 = vector.load %arg11[%c4_63, %c0_64, %c0_65] : memref<24x24x8xbf16, #tpu.memory_space<vmem>>, vector<16x16x8xbf16>
    %54 = vector.shape_cast %53 : vector<16x16x8xbf16> to vector<256x8xbf16>
    %c4_66 = arith.constant 4 : index
    %c4_67 = arith.constant 4 : index
    %c0_68 = arith.constant 0 : index
    %55 = vector.load %arg11[%c4_66, %c4_67, %c0_68] : memref<24x24x8xbf16, #tpu.memory_space<vmem>>, vector<16x16x8xbf16>
    %56 = vector.shape_cast %55 : vector<16x16x8xbf16> to vector<256x8xbf16>
    %c4_69 = arith.constant 4 : index
    %c8_70 = arith.constant 8 : index
    %c0_71 = arith.constant 0 : index
    %57 = vector.load %arg11[%c4_69, %c8_70, %c0_71] : memref<24x24x8xbf16, #tpu.memory_space<vmem>>, vector<16x16x8xbf16>
    %58 = vector.shape_cast %57 : vector<16x16x8xbf16> to vector<256x8xbf16>
    %c8_72 = arith.constant 8 : index
    %c0_73 = arith.constant 0 : index
    %c0_74 = arith.constant 0 : index
    %59 = vector.load %arg11[%c8_72, %c0_73, %c0_74] : memref<24x24x8xbf16, #tpu.memory_space<vmem>>, vector<16x16x8xbf16>
    %60 = vector.shape_cast %59 : vector<16x16x8xbf16> to vector<256x8xbf16>
    %c8_75 = arith.constant 8 : index
    %c4_76 = arith.constant 4 : index
    %c0_77 = arith.constant 0 : index
    %61 = vector.load %arg11[%c8_75, %c4_76, %c0_77] : memref<24x24x8xbf16, #tpu.memory_space<vmem>>, vector<16x16x8xbf16>
    %62 = vector.shape_cast %61 : vector<16x16x8xbf16> to vector<256x8xbf16>
    %c8_78 = arith.constant 8 : index
    %c8_79 = arith.constant 8 : index
    %c0_80 = arith.constant 0 : index
    %63 = vector.load %arg11[%c8_78, %c8_79, %c0_80] : memref<24x24x8xbf16, #tpu.memory_space<vmem>>, vector<16x16x8xbf16>
    %64 = vector.shape_cast %63 : vector<16x16x8xbf16> to vector<256x8xbf16>
    %65 = tpu.concatenate %48, %50, %52, %54, %56, %58, %60, %62, %64 in 1 : vector<256x8xbf16>, vector<256x8xbf16>, vector<256x8xbf16>, vector<256x8xbf16>, vector<256x8xbf16>, vector<256x8xbf16>, vector<256x8xbf16>, vector<256x8xbf16>, vector<256x8xbf16> -> vector<256x72xbf16>
    %c0_81 = arith.constant 0 : index
    %c0_82 = arith.constant 0 : index
    %66 = vector.load %arg6[%c0_81, %c0_82] : memref<8x72xbf16, #tpu.memory_space<vmem>>, vector<8x72xbf16>
    %cst_83 = arith.constant dense<0.000000e+00> : vector<8x256xf32>
    %67 = tpu.matmul %66, %65, %cst_83 {dimension_numbers = #tpu.dot_dimension_numbers<[1], [1], [0], [0], [0, 0, 1, 0], [], []>} : vector<8x72xbf16>, vector<256x72xbf16>, vector<8x256xf32> -> vector<8x256xf32>
    %c0_84 = arith.constant 0 : index
    %c0_85 = arith.constant 0 : index
    %68 = vector.load %arg7[%c0_84, %c0_85] : memref<8x1xf32, #tpu.memory_space<vmem>>, vector<8x1xf32>
    %69 = vector.broadcast %68 : vector<8x1xf32> to vector<8x256xf32>
    %70 = arith.addf %67, %69 : vector<8x256xf32>
    %cst_86 = arith.constant 0.000000e+00 : f32
    %71 = vector.broadcast %cst_86 : f32 to vector<8x256xf32>
    %72 = arith.maximumf %70, %71 : vector<8x256xf32>
    %c0_87 = arith.constant 0 : index
    %c16 = arith.constant 16 : index
    %c0_88 = arith.constant 0 : index
    %73 = vector.load %arg10[%c0_87, %c16, %c0_88] : memref<1x32x256xf32, #tpu.memory_space<vmem>>, vector<1x8x256xf32>
    %74 = vector.shape_cast %73 : vector<1x8x256xf32> to vector<8x256xf32>
    %75 = vector.shape_cast %72 : vector<8x256xf32> to vector<1x8x256xf32>
    tpu.vector_store %arg10[%c0_87, %c16, %c0_88], %75 {strides = array<i32>} : memref<1x32x256xf32, #tpu.memory_space<vmem>>, vector<1x8x256xf32>,
    %76 = arith.extf %7 : vector<256x8xbf16> to vector<256x8xf32>
    %cst_89 = arith.constant dense<0.000000e+00> : vector<8xf32>
    %77 = vector.multi_reduction <add>, %76, %cst_89 [0] : vector<256x8xf32> to vector<8xf32>
    %78 = vector.shape_cast %77 : vector<8xf32> to vector<1x8xf32>
    %cst_90 = arith.constant 2.560000e+02 : f32
    %79 = vector.broadcast %cst_90 : f32 to vector<1x8xf32>
    %80 = arith.divf %78, %79 : vector<1x8xf32>
    %c0_91 = arith.constant 0 : index
    %c0_92 = arith.constant 0 : index
    %81 = vector.load %arg8[%c0_91, %c0_92] : memref<8x8xf32, #tpu.memory_space<vmem>>, vector<8x8xf32>
    %82 = vector.broadcast %80 : vector<1x8xf32> to vector<8x8xf32>
    %83 = arith.mulf %81, %82 : vector<8x8xf32>
    %cst_93 = arith.constant dense<0.000000e+00> : vector<8xf32>
    %84 = vector.multi_reduction <add>, %83, %cst_93 [1] : vector<8x8xf32> to vector<8xf32>
    %85 = vector.shape_cast %84 : vector<8xf32> to vector<8x1xf32>
    %c0_94 = arith.constant 0 : index
    %c0_95 = arith.constant 0 : index
    %86 = vector.load %arg9[%c0_94, %c0_95] : memref<8x1xf32, #tpu.memory_space<vmem>>, vector<8x1xf32>
    %87 = arith.addf %85, %86 : vector<8x1xf32>
    %cst_96 = arith.constant 0.000000e+00 : f32
    %88 = vector.broadcast %cst_96 : f32 to vector<8x1xf32>
    %89 = arith.maximumf %87, %88 : vector<8x1xf32>
    %90 = vector.shape_cast %89 : vector<8x1xf32> to vector<8x1xf32>
    %91 = vector.broadcast %90 : vector<8x1xf32> to vector<8x256xf32>
    %c0_97 = arith.constant 0 : index
    %c24 = arith.constant 24 : index
    %c0_98 = arith.constant 0 : index
    %92 = vector.load %arg10[%c0_97, %c24, %c0_98] : memref<1x32x256xf32, #tpu.memory_space<vmem>>, vector<1x8x256xf32>
    %93 = vector.shape_cast %92 : vector<1x8x256xf32> to vector<8x256xf32>
    %94 = vector.shape_cast %91 : vector<8x256xf32> to vector<1x8x256xf32>
    tpu.vector_store %arg10[%c0_97, %c24, %c0_98], %94 {strides = array<i32>} : memref<1x32x256xf32, #tpu.memory_space<vmem>>, vector<1x8x256xf32>,
    return
  }
  func.func @transform_0(%arg0: i32) -> (i32, i32, i32, i32) {
    %c0_i32 = arith.constant 0 : i32
    %c0_i32_0 = arith.constant 0 : i32
    %c0_i32_1 = arith.constant 0 : i32
    %c0_i32_2 = arith.constant 0 : i32
    return %arg0, %c0_i32, %c0_i32_0, %c0_i32_1 : i32, i32, i32, i32
  }
  func.func @transform_1(%arg0: i32) -> (i32, i32) {
    %c0_i32 = arith.constant 0 : i32
    %c0_i32_0 = arith.constant 0 : i32
    %c0_i32_1 = arith.constant 0 : i32
    return %c0_i32, %c0_i32_0 : i32, i32
  }
  func.func @transform_2(%arg0: i32) -> (i32, i32) {
    %c0_i32 = arith.constant 0 : i32
    %c0_i32_0 = arith.constant 0 : i32
    %c0_i32_1 = arith.constant 0 : i32
    return %c0_i32, %c0_i32_0 : i32, i32
  }
  func.func @transform_3(%arg0: i32) -> (i32, i32) {
    %c0_i32 = arith.constant 0 : i32
    %c0_i32_0 = arith.constant 0 : i32
    %c0_i32_1 = arith.constant 0 : i32
    return %c0_i32, %c0_i32_0 : i32, i32
  }
  func.func @transform_4(%arg0: i32) -> (i32, i32) {
    %c0_i32 = arith.constant 0 : i32
    %c0_i32_0 = arith.constant 0 : i32
    %c0_i32_1 = arith.constant 0 : i32
    return %c0_i32, %c0_i32_0 : i32, i32
  }
  func.func @transform_5(%arg0: i32) -> (i32, i32) {
    %c0_i32 = arith.constant 0 : i32
    %c0_i32_0 = arith.constant 0 : i32
    %c0_i32_1 = arith.constant 0 : i32
    return %c0_i32, %c0_i32_0 : i32, i32
  }
  func.func @transform_6(%arg0: i32) -> (i32, i32) {
    %c0_i32 = arith.constant 0 : i32
    %c0_i32_0 = arith.constant 0 : i32
    %c0_i32_1 = arith.constant 0 : i32
    return %c0_i32, %c0_i32_0 : i32, i32
  }
  func.func @transform_7(%arg0: i32) -> (i32, i32) {
    %c0_i32 = arith.constant 0 : i32
    %c0_i32_0 = arith.constant 0 : i32
    %c0_i32_1 = arith.constant 0 : i32
    return %c0_i32, %c0_i32_0 : i32, i32
  }
  func.func @transform_8(%arg0: i32) -> (i32, i32) {
    %c0_i32 = arith.constant 0 : i32
    %c0_i32_0 = arith.constant 0 : i32
    %c0_i32_1 = arith.constant 0 : i32
    return %c0_i32, %c0_i32_0 : i32, i32
  }
  func.func @transform_9(%arg0: i32) -> (i32, i32, i32) {
    %c0_i32 = arith.constant 0 : i32
    %c0_i32_0 = arith.constant 0 : i32
    %c0_i32_1 = arith.constant 0 : i32
    return %arg0, %c0_i32, %c0_i32_0 : i32, i32, i32
  }
}

</mosaic_0001>

<bundles_post_ra>
// kernel: aspp_forward.1
= control target key start
LH: loop header
LB: loop body
LE: loop exit
PB: predicated region body
PF: predicated region fallthrough
CT: control target
= control target key end

     0   :  { %s5966_s30 = smov 0   ;;  %s9561_s0 = inlined_call_operand.vmem [shape: bf16[2,16,16,8], index: 0, kind: input, shape index: {}]   ;;  %s9562_s1 = inlined_call_operand.vmem [shape: bf16[8,8], index: 1, kind: input, shape index: {}]   ;;  %s9563_s2 = inlined_call_operand.vmem [shape: f32[8,1], index: 2, kind: input, shape index: {}]   ;;  %s9564_s3 = inlined_call_operand.vmem [shape: bf16[8,72], index: 3, kind: input, shape index: {}]   ;;  %s9565_s4 = inlined_call_operand.vmem [shape: f32[8,1], index: 4, kind: input, shape index: {}]   ;;  %s9566_s5 = inlined_call_operand.vmem [shape: bf16[8,72], index: 5, kind: input, shape index: {}]   ;;  %s9567_s6 = inlined_call_operand.vmem [shape: f32[8,1], index: 6, kind: input, shape index: {}]   ;;  %s9568_s7 = inlined_call_operand.vmem [shape: f32[8,8], index: 7, kind: input, shape index: {}]   ;;  %s9569_s8 = inlined_call_operand.vmem [shape: f32[8,1], index: 8, kind: input, shape index: {}]   ;;  %s9570_s9 = inlined_call_operand.vmem [shape: f32[2,32,256], index: 9, kind: output, shape index: {}]  }
   0x1 LB: > { %s5562_s10 = sadd.s32 4294967295, %s5904_s30   ;;  %p5566_p0 = scmp.ge.s32.totalorder %s5904_s30, 1  ;;  %s5904_s30 = sphi %s5966_s30, %s19_s30  }
   0x2   : > { %p287_p1 = scmp.lt.s32.totalorder %s5904_s30, 3 }
   0x4   : > { %p288_p2 = pnand %p5566_p0, %p287_p1 }
   0x6   : > { %291 = sbr.rel (%p288_p2) target bundleno = 1061 (0x425), region = 56 }
   0xb   : > { %p323_p3 = scmp.lt.s32.totalorder %s5562_s10, 1  ;;  %v686_v0 = vld [vmem:[%s9563_s2] sm:$0xff]  ;;  %vm334_vm0 = vcmask 60416   ;;  %v5906_v1 = vmov 0   ;;  %vm772_vm1 = vcmask 64512   ;;  %vm471_vm2 = vcmask 1041408  }
   0xc   : > { %5871 = vset.pattern.permute.xlu0 %v5906_v1  ;;  %344 = vst.msk [vmem:[#allocation2 + $0x24] sm:$0xf] %vm334_vm0, %v5906_v1  ;;  %5872 = vset.pattern.permute.xlu1 %v5906_v1  ;;  %vm472_vm3 = vcmask 1045508   ;;  %v9629_v13 = vmov 0  ;;  %s5907_s17 = smov 8   ;;  %vm603_vm5 = vcmask 60418  }
   0xd   : > { %s9988_s10 = smov (!%p323_p3, %s5562_s10), 1  ;;  %689 = vperm.xlu0 %5871, %v686_v0   ;;  %345 = vst.msk [vmem:[#allocation2 + $0x28] sm:$0xf] %vm334_vm0, %v5906_v1  ;;  %5873 = vset.pattern.permute.xlu2 %v5906_v1  ;;  %vm6015_vm4 = vmor %vm471_vm2, %vm472_vm3  ;;  %vm606_vm6 = vcmask 58368   ;;  %vm1306_vm7 = vcmask 1040384   ;;  %vm1307_vm8 = vcmask 1044484  }
   0xe   : > { %346 = vst.msk [vmem:[#allocation2 + $0x2c] sm:$0xf] %vm334_vm0, %v5906_v1  ;;  %s5835_s13 = sshll.u32 %s9988_s10, 7  ;;  %v9630_v13 = vsel %vm6015_vm4, 4294967295, %v9629_v13  ;;  %vm6615_vm9 = vmor %vm1306_vm7, %vm1307_vm8  ;;  %s5908_s20 = smov 16   ;;  %vm951_vm10 = vcmask 1042432  }
   0xf   : > { %335 = vst.msk [vmem:[#allocation2] sm:$0xf] %vm334_vm0, %v5906_v1  ;;  %s5994_s16 = scalar_lea.vmem %s9561_s0, %s5835_s13  ;;  %vm952_vm11 = vcmask 1046532   ;;  %s5909_s21 = smov 24   ;;  %vm3278_vm13 = vcmask 130048   ;;  %vm3311_vm14 = vcmask 195584  }
  0x10   : > { %336 = vst.msk [vmem:[#allocation2 + $0x4] sm:$0xf] %vm334_vm0, %v5906_v1  ;;  %v5844_v2 = vld [vmem:[%s5994_s16 + $0x38] sm:$0xff]  ;;  %v5843_v7 = vld [vmem:[%s5994_s16 + $0x30] sm:$0xff]  ;;  %v5842_v24 = vld [vmem:[%s5994_s16 + $0x28] sm:$0xff]  ;;  %s5910_s22 = smov 32  }
  0x11   : > { %v5852_v3 = vld [vmem:[%s5994_s16 + $0x78] sm:$0xff]  ;;  %337 = vst.msk [vmem:[#allocation2 + $0x8] sm:$0xf] %vm334_vm0, %v5906_v1  ;;  %v798_v4 = vsel %vm772_vm1, %v5844_v2, 0  ;;  %v5851_v10 = vld [vmem:[%s5994_s16 + $0x70] sm:$0xff]  ;;  %v795_v18 = vsel %vm772_vm1, %v5843_v7, 0  ;;  %vm6762_vm12 = vmor %vm951_vm10, %vm952_vm11 }
  0x12   : > { %338 = vst.msk [vmem:[#allocation2 + $0xc] sm:$0xf] %vm334_vm0, %v5906_v1  ;;  %v822_v5 = vsel %vm772_vm1, %v5852_v3, 0  ;;  %824 = vmatpush.bf16.xpose.msra.mxu0 %v798_v4  ;;  %v819_v19 = vsel %vm772_vm1, %v5851_v10, 0  ;;  %v5850_v25 = vld [vmem:[%s5994_s16 + $0x68] sm:$0xff]  ;;  %v792_v33 = vsel %vm772_vm1, %v5842_v24, 0 }
  0x13   : > { %v1068_v6 = vld [vmem:[#allocation2 + $0x24] sm:$0xc]  ;;  %837 = vmatpush.bf16.xpose.msra.mxu1 %v822_v5  ;;  %339 = vst.msk [vmem:[#allocation2 + $0x10] sm:$0xf] %vm334_vm0, %v5906_v1  ;;  %v816_v34 = vsel %vm772_vm1, %v5850_v25, 0  ;;  %s5911_s23 = smov 40  }
  0x14   : > { %v6007_v8 = vld [vmem:[#allocation2 + $0x28] sm:$0xf]  ;;  %v5654_v9 = vrot.slane %v1068_v6, 10  ;;  %340 = vst.msk [vmem:[#allocation2 + $0x14] sm:$0xf] %vm334_vm0, %v5906_v1  ;;  %s5836_s24 = sshll.u32 %s9988_s10, 6 }
  0x15   : > { %v1069_v11 = vld [vmem:[#allocation2 + $0x2c] sm:$0x3]  ;;  %v1139_v12 = vrot.slane %v6007_v8, 6  ;;  %9631 = vst [vmem:[#allocation3_spill] sm:$0xff] %v9630_v13  ;;  %v6119_v39 = vld [vmem:[%s5994_s16 + $0x18] sm:$0xf]  ;;  %s7120_s27 = scalar_lea.vmem %s9570_s9, %s5836_s24 }
  0x16   : > { %v1142_v14 = vrot.slane %v1069_v11, 6  ;;  %341 = vst.msk [vmem:[#allocation2 + $0x18] sm:$0xf] %vm334_vm0, %v5906_v1  ;;  %v6122_v40 = vld [vmem:[%s5994_s16 + $0x1c] sm:$0xf]  ;;  %v489_v41 = vrot.slane %v6119_v39, 6 }
  0x17   : > { %v1140_v15 = vsel %vm6015_vm4, %v5654_v9, %v1139_v12  ;;  %v1141_v16 = vrot.slane %v1139_v12, 4  ;;  %342 = vst.msk [vmem:[#allocation2 + $0x1c] sm:$0xf] %vm334_vm0, %v5906_v1  ;;  %v491_v42 = vrot.slane %v6122_v40, 6  ;;  %v6135_v43 = vld [vmem:[%s5994_s16 + $0x8] sm:$0xf] }
  0x18   : > { %v2592_v17 = vunpack.c.l.b16 %v1140_v15  ;;  %343 = vst.msk [vmem:[#allocation2 + $0x20] sm:$0xf] %vm334_vm0, %v5906_v1  ;;  %v6138_v44 = vld [vmem:[%s5994_s16 + $0xc] sm:$0xf]  ;;  %v6143_v45 = vld [vmem:[%s5994_s16] sm:$0xf] }
  0x19   : > { %v1143_v20 = vsel %vm6015_vm4, %v1141_v16, %v1142_v14  ;;  %347 = vst.msk [vmem:[#allocation2 + $0x30] sm:$0xf] %vm334_vm0, %v5906_v1  ;;  %v6146_v46 = vld [vmem:[%s5994_s16 + $0x4] sm:$0xf]  ;;  %v6151_v47 = vld [vmem:[%s5994_s16 + $0x30] sm:$0xf] }
  0x1a   : > { %v2593_v21 = vunpack.c.l.b16 %v1143_v20  ;;  %348 = vst.msk [vmem:[#allocation2 + $0x34] sm:$0xf] %vm334_vm0, %v5906_v1  ;;  %825 = vmatpush.bf16.xpose.msra.mxu0 %v795_v18  ;;  %v6154_v48 = vld [vmem:[%s5994_s16 + $0x10] sm:$0xf]  ;;  %v6162_v49 = vrot.slane %v489_v41, 4  ;;  %v6166_v50 = vrot.slane %v491_v42, 4 }
  0x1b   : > { %349 = vst.msk [vmem:[#allocation2 + $0x38] sm:$0xf] %vm334_vm0, %v5906_v1  ;;  %838 = vmatpush.bf16.xpose.msra.mxu1 %v819_v19  ;;  %v479_v51 = vrot.slane %v6135_v43, 6  ;;  %v481_v52 = vrot.slane %v6138_v44, 6  ;;  %v474_v53 = vrot.slane %v6143_v45, 6  ;;  %v476_v54 = vrot.slane %v6146_v46, 6 }
  0x1c   : > { %v2623_v22 = vpack.c.b16 %v2593_v21, %v2592_v17  ;;  %350 = vst.msk [vmem:[#allocation2 + $0x3c] sm:$0xf] %vm334_vm0, %v5906_v1  ;;  %v504_v55 = vrot.slane %v6151_v47, 6  ;;  %v484_v56 = vrot.slane %v6154_v48, 6  ;;  %v6179_v57 = vld [vmem:[%s5994_s16 + $0x34] sm:$0xf] }
  0x1d   : > { %351 = vst.msk [vmem:[#allocation2 + $0x40] sm:$0xf] %vm334_vm0, %v5906_v1  ;;  %v1066_v23 = vld [vmem:[#allocation2 + $0x18] sm:$0xc]  ;;  %v6182_v58 = vld [vmem:[%s5994_s16 + $0x20] sm:$0xf] }
  0x1e   : > { %2640 = vrot.lane.b32.xlu1 %v2623_v22, %s5907_s17  ;;  %352 = vst.msk [vmem:[#allocation2 + $0x44] sm:$0xf] %vm334_vm0, %v5906_v1  ;;  %v6046_v26 = vld [vmem:[#allocation2 + $0x1c] sm:$0xf]  ;;  %v5653_v27 = vrot.slane %v1066_v23, 10  ;;  %v480_v63 = vrot.slane %v479_v51, 4 }
  0x1f   : > { %353 = vst.msk [vmem:[#allocation2 + $0x48] sm:$0xf] %vm334_vm0, %v5906_v1  ;;  %v1067_v28 = vld [vmem:[#allocation2 + $0x20] sm:$0x3]  ;;  %v1132_v29 = vrot.slane %v6046_v26, 6  ;;  %v6206_v0 = vrot.slane %v481_v52, 4 }
  0x20   : > { %354 = vst.msk [vmem:[#allocation2 + $0x4c] sm:$0xf] %vm334_vm0, %v5906_v1  ;;  %v1135_v30 = vrot.slane %v1067_v28, 6  ;;  %v6187_v59 = vld [vmem:[%s5994_s16 + $0x14] sm:$0xf]  ;;  %v6210_v2 = vrot.slane %v474_v53, 4 }
  0x21   : > { %355 = vst.msk [vmem:[#allocation2 + $0x50] sm:$0xf] %vm334_vm0, %v5906_v1  ;;  %v1133_v31 = vsel %vm6015_vm4, %v5653_v27, %v1132_v29  ;;  %v1134_v32 = vrot.slane %v1132_v29, 4  ;;  %v6190_v60 = vld [vmem:[%s5994_s16 + $0x24] sm:$0xf]  ;;  %v6214_v3 = vrot.slane %v476_v54, 4 }
  0x22   : > { %356 = vst.msk [vmem:[#allocation2 + $0x54] sm:$0xf] %vm334_vm0, %v5906_v1  ;;  %v2590_v35 = vunpack.c.l.b16 %v1133_v31  ;;  %826 = vmatpush.bf16.xpose.msra.mxu0 %v792_v33  ;;  %v6195_v61 = vld [vmem:[%s5994_s16 + $0x48] sm:$0xf]  ;;  %v6220_v4 = vrot.slane %v504_v55, 4  ;;  %v506_v5 = vrot.slane %v6179_v57, 6  ;;  %v477_v43 = vsel %vm6015_vm4, %v6210_v2, %v476_v54 }
  0x23   : > { %357 = vst.msk [vmem:[#allocation2 + $0x58] sm:$0xf] %vm334_vm0, %v5906_v1  ;;  %v1136_v36 = vsel %vm6015_vm4, %v1134_v32, %v1135_v30  ;;  %839 = vmatpush.bf16.xpose.msra.mxu1 %v816_v34  ;;  %v6198_v62 = vld [vmem:[%s5994_s16 + $0x28] sm:$0xf]  ;;  %v6225_v6 = vrot.slane %v484_v56, 4  ;;  %v486_v7 = vrot.slane %v6187_v59, 6  ;;  %v492_v34 = vsel %vm6015_vm4, %v6162_v49, %v491_v42 }
  0x24   : > { %358 = vst.msk [vmem:[#allocation2 + $0x5c] sm:$0xf] %vm334_vm0, %v5906_v1  ;;  %v2591_v37 = vunpack.c.l.b16 %v1136_v36  ;;  %v494_v9 = vrot.slane %v6182_v58, 6  ;;  %v496_v10 = vrot.slane %v6190_v60, 6  ;;  %v519_v11 = vrot.slane %v6195_v61, 6  ;;  %v5841_v14 = vld [vmem:[%s5994_s16 + $0x20] sm:$0xff] }
  0x25   : > { %359 = vst.msk [vmem:[#allocation2 + $0x60] sm:$0xf] %vm334_vm0, %v5906_v1  ;;  %v499_v12 = vrot.slane %v6198_v62, 6  ;;  %v5849_v15 = vld [vmem:[%s5994_s16 + $0x60] sm:$0xff]  ;;  %v6239_v16 = vld [vmem:[%s5994_s16 + $0x38] sm:$0xf]  ;;  %v507_v45 = vsel %vm6015_vm4, %v6220_v4, %v506_v5 }
  0x26   : > { %360 = vst.msk [vmem:[#allocation2 + $0x64] sm:$0xf] %vm334_vm0, %v5906_v1  ;;  %v2622_v38 = vpack.c.b16 %v2591_v37, %v2590_v35  ;;  %v6244_v17 = vld [vmem:[%s5994_s16 + $0x4c] sm:$0xf]  ;;  %v789_v19 = vsel %vm772_vm1, %v5841_v14, 0  ;;  %v813_v20 = vsel %vm772_vm1, %v5849_v15, 0 }
  0x27   : > { %361 = vst.msk [vmem:[#allocation2 + $0x68] sm:$0xf] %vm334_vm0, %v5906_v1  ;;  %v6247_v18 = vld [vmem:[%s5994_s16 + $0x2c] sm:$0xf]  ;;  %v6254_v21 = vld [vmem:[%s5994_s16 + $0x3c] sm:$0xf] }
  0x28   : > { %362 = vst.msk [vmem:[#allocation2 + $0x6c] sm:$0xf] %vm334_vm0, %v5906_v1  ;;  %2638 = vrot.lane.b32.xlu0 %v2622_v38, %s5907_s17  ;;  %v6260_v22 = vrot.slane %v506_v5, 4  ;;  %v6264_v23 = vrot.slane %v486_v7, 4  ;;  %v6268_v24 = vrot.slane %v494_v9, 4  ;;  %v6272_v25 = vrot.slane %v496_v10, 4 }
  0x29   : > { %363 = vst.msk [vmem:[#allocation2 + $0x70] sm:$0xf] %vm334_vm0, %v5906_v1  ;;  %v6278_v27 = vrot.slane %v519_v11, 4  ;;  %v521_v28 = vrot.slane %v6244_v17, 6  ;;  %v6283_v29 = vrot.slane %v499_v12, 4  ;;  %v501_v30 = vrot.slane %v6247_v18, 6 }
  0x2a   : > { %364 = vst.msk [vmem:[#allocation2 + $0x74] sm:$0xf] %vm334_vm0, %v5906_v1  ;;  %827 = vmatpush.bf16.xpose.msra.mxu0 %v789_v19  ;;  %v9571_v31 = vrot.slane %v6239_v16, 6  ;;  %v511_v32 = vrot.slane %v6254_v21, 6  ;;  %v6291_v33 = vld [vmem:[%s5994_s16 + $0x60] sm:$0xf]  ;;  %v497_v48 = vsel %vm6015_vm4, %v6268_v24, %v496_v10 }
  0x2b   : > { %365 = vst.msk [vmem:[#allocation2 + $0x78] sm:$0xf] %vm334_vm0, %v5906_v1  ;;  %840 = vmatpush.bf16.xpose.msra.mxu1 %v813_v20  ;;  %v6301_v35 = vld [vmem:[%s5994_s16 + $0x64] sm:$0xf]  ;;  %v6304_v36 = vld [vmem:[%s5994_s16 + $0x40] sm:$0xf]  ;;  %v522_v10 = vsel %vm6015_vm4, %v6278_v27, %v521_v28 }
  0x2c   : > { %366 = vst.msk [vmem:[#allocation2 + $0x7c] sm:$0xf] %vm334_vm0, %v5906_v1  ;;  %v6309_v37 = vld [vmem:[%s5994_s16 + $0x44] sm:$0xf]  ;;  %v6312_v38 = vld [vmem:[%s5994_s16 + $0x50] sm:$0xf] }
  0x2d   : > { %367 = vst.msk [vmem:[#allocation2 + $0x80] sm:$0xf] %vm334_vm0, %v5906_v1  ;;  %v6319_v40 = vrot.slane %v521_v28, 4  ;;  %v9576_v42 = vrot.slane %v6291_v33, 6  ;;  %v6323_v49 = vld [vmem:[%s5994_s16 + $0x54] sm:$0xf] }
  0x2e   : > { %368 = vst.msk [vmem:[#allocation2 + $0x84] sm:$0xf] %vm334_vm0, %v5906_v1  ;;  %v5840_v14 = vld [vmem:[%s5994_s16 + $0x18] sm:$0xff]  ;;  %v9578_v39 = vrot.slane %v6301_v35, 6  ;;  %v6338_v19 = vrot.slane %v501_v30, 4  ;;  %v6342_v44 = vrot.slane %v9571_v31, 4 }
  0x2f   : > { %369 = vst.msk [vmem:[#allocation2 + $0x88] sm:$0xf] %vm334_vm0, %v5906_v1  ;;  %v5848_v15 = vld [vmem:[%s5994_s16 + $0x58] sm:$0xff]  ;;  %v786_v20 = vsel %vm772_vm1, %v5840_v14, 0  ;;  %v9575_v31 = vrot.slane %v6323_v49, 6  ;;  %v5847_v24 = vld [vmem:[%s5994_s16 + $0x50] sm:$0xff] }
  0x30   : > { %370 = vst.msk [vmem:[#allocation2 + $0x8c] sm:$0xf] %vm334_vm0, %v5906_v1  ;;  %v6366_v14 = vld [vmem:[%s5994_s16 + $0x68] sm:$0xf]  ;;  %v6376_v46 = vrot.slane %v9578_v39, 4  ;;  %s5912_s28 = smov 48  }
  0x31   : > { %371 = vst.msk [vmem:[#allocation2 + $0x90] sm:$0xf] %vm334_vm0, %v5906_v1  ;;  %v5838_v61 = vld [vmem:[%s5994_s16 + $0x8] sm:$0xff]  ;;  %s5913_s29 = smov 56   ;;  %s5914_s10 = smov 64   ;;  %vm3344_vm15 = vcmask 261120  }
  0x32   : > { %372 = vst.msk [vmem:[#allocation2 + $0x94] sm:$0xf] %vm334_vm0, %v5906_v1  ;;  %828 = vmatpush.bf16.xpose.msra.mxu0 %v786_v20  ;;  %v6395_v20 = vld [vmem:[%s5994_s16 + $0x5c] sm:$0xf]  ;;  %v5846_v62 = vld [vmem:[%s5994_s16 + $0x48] sm:$0xff]  ;;  %vm3410_vm2 = vcmask 392192  }
  0x33   : > { %373 = vst.msk [vmem:[#allocation2 + $0x98] sm:$0xf] %vm334_vm0, %v5906_v1  ;;  %vm3443_vm3 = vcmask 457728  }
  0x34   : > { %374 = vst.msk [vmem:[#allocation2 + $0x9c] sm:$0xf] %vm334_vm0, %v5906_v1 }
  0x35   : > { %375 = vst.msk [vmem:[#allocation2 + $0xa0] sm:$0xf] %vm334_vm0, %v5906_v1 }
  0x36   : > { %376 = vst.msk [vmem:[#allocation2 + $0xa4] sm:$0xf] %vm334_vm0, %v5906_v1 }
  0x37   : > { %377 = vst.msk [vmem:[#allocation2 + $0xa8] sm:$0xf] %vm334_vm0, %v5906_v1 }
  0x38   : > { %378 = vst.msk [vmem:[#allocation2 + $0xac] sm:$0xf] %vm334_vm0, %v5906_v1 }
  0x39   : > { %379 = vst.msk [vmem:[#allocation2 + $0xb0] sm:$0xf] %vm334_vm0, %v5906_v1 }
  0x3a   : > { %380 = vst.msk [vmem:[#allocation2 + $0xb4] sm:$0xf] %vm334_vm0, %v5906_v1 }
  0x3b   : > { %381 = vst.msk [vmem:[#allocation2 + $0xb8] sm:$0xf] %vm334_vm0, %v5906_v1 }
  0x3c   : > { %382 = vst.msk [vmem:[#allocation2 + $0xbc] sm:$0xf] %vm334_vm0, %v5906_v1 }
  0x3d   : > { %383 = vst.msk [vmem:[#allocation2 + $0xc0] sm:$0xf] %vm334_vm0, %v5906_v1 }
  0x3e   : > { %384 = vst.msk [vmem:[#allocation2 + $0xc4] sm:$0xf] %vm334_vm0, %v5906_v1 }
  0x3f   : > { %385 = vst.msk [vmem:[#allocation2 + $0xc8] sm:$0xf] %vm334_vm0, %v5906_v1 }
  0x40   : > { %386 = vst.msk [vmem:[#allocation2 + $0xcc] sm:$0xf] %vm334_vm0, %v5906_v1 }
  0x41   : > { %387 = vst.msk [vmem:[#allocation2 + $0xd0] sm:$0xf] %vm334_vm0, %v5906_v1 }
  0x42   : > { %388 = vst.msk [vmem:[#allocation2 + $0xd4] sm:$0xf] %vm334_vm0, %v5906_v1 }
  0x43   : > { %389 = vst.msk [vmem:[#allocation2 + $0xd8] sm:$0xf] %vm334_vm0, %v5906_v1 }
  0x44   : > { %390 = vst.msk [vmem:[#allocation2 + $0xdc] sm:$0xf] %vm334_vm0, %v5906_v1 }
  0x45   : > { %391 = vst.msk [vmem:[#allocation2 + $0xe0] sm:$0xf] %vm334_vm0, %v5906_v1 }
  0x46   : > { %392 = vst.msk [vmem:[#allocation2 + $0xe4] sm:$0xf] %vm334_vm0, %v5906_v1 }
  0x47   : > { %393 = vst.msk [vmem:[#allocation2 + $0xe8] sm:$0xf] %vm334_vm0, %v5906_v1 }
  0x48   : > { %394 = vst.msk [vmem:[#allocation2 + $0xec] sm:$0xf] %vm334_vm0, %v5906_v1 }
  0x49   : > { %395 = vst.msk [vmem:[#allocation2 + $0xf0] sm:$0xf] %vm334_vm0, %v5906_v1 }
  0x4a   : > { %396 = vst.msk [vmem:[#allocation2 + $0xf4] sm:$0xf] %vm334_vm0, %v5906_v1 }
  0x4b   : > { %397 = vst.msk [vmem:[#allocation2 + $0xf8] sm:$0xf] %vm334_vm0, %v5906_v1 }
  0x4c   : > { %398 = vst.msk [vmem:[#allocation2 + $0xfc] sm:$0xf] %vm334_vm0, %v5906_v1 }
  0x4d   : > { %399 = vst.msk [vmem:[#allocation2 + $0x100] sm:$0xf] %vm334_vm0, %v5906_v1 }
  0x4e   : > { %400 = vst.msk [vmem:[#allocation2 + $0x104] sm:$0xf] %vm334_vm0, %v5906_v1 }
  0x4f   : > { %401 = vst.msk [vmem:[#allocation2 + $0x108] sm:$0xf] %vm334_vm0, %v5906_v1 }
  0x50   : > { %402 = vst.msk [vmem:[#allocation2 + $0x10c] sm:$0xf] %vm334_vm0, %v5906_v1 }
  0x51   : > { %403 = vst.msk [vmem:[#allocation2 + $0x110] sm:$0xf] %vm334_vm0, %v5906_v1 }
  0x52   : > { %404 = vst.msk [vmem:[#allocation2 + $0x114] sm:$0xf] %vm334_vm0, %v5906_v1 }
  0x53   : > { %405 = vst.msk [vmem:[#allocation2 + $0x118] sm:$0xf] %vm334_vm0, %v5906_v1 }
  0x54   : > { %406 = vst.msk [vmem:[#allocation2 + $0x11c] sm:$0xf] %vm334_vm0, %v5906_v1  ;;  %v482_v1 = vsel %vm6015_vm4, %v480_v63, %v481_v52  ;;  %v9574_v52 = vrot.slane %v6309_v37, 6  ;;  %v9573_v63 = vrot.slane %v6312_v38, 6 }
  0x55   : > { %614 = vst.msk [vmem:[#allocation2 + $0x54] sm:$0xc] %vm603_vm5, %v489_v41  ;;  %v9572_v41 = vrot.slane %v6304_v36, 6 }
  0x56   : > { %615 = vst.msk [vmem:[#allocation2 + $0x58] sm:$0xf] %vm334_vm0, %v492_v34  ;;  %v6353_v34 = vrot.slane %v511_v32, 4 }
  0x57   : > { %616 = vst.msk [vmem:[#allocation2 + $0x5c] sm:$0x3] %vm606_vm6, %v6166_v50  ;;  %v810_v50 = vsel %vm772_vm1, %v5848_v15, 0  ;;  %v6372_v15 = vrot.slane %v9576_v42, 4  ;;  %v6380_v54 = vrot.slane %v9572_v41, 4  ;;  %v9579_v41 = vrot.slane %v6366_v14, 6 }
  0x58   : > { %608 = vst.msk [vmem:[#allocation2 + $0x3c] sm:$0xc] %vm603_vm5, %v479_v51  ;;  %841 = vmatpush.bf16.xpose.msra.mxu1 %v810_v50  ;;  %v6363_v51 = vld [vmem:[%s5994_s16 + $0x58] sm:$0xf] }
  0x59   : > { %609 = vst.msk [vmem:[#allocation2 + $0x40] sm:$0xf] %vm334_vm0, %v482_v1  ;;  %v9577_v2 = vrot.slane %v6363_v51, 6  ;;  %v6392_v1 = vrot.slane %v9573_v63, 4 }
  0x5a   : > { %610 = vst.msk [vmem:[#allocation2 + $0x44] sm:$0x3] %vm606_vm6, %v6206_v0  ;;  %v6388_v0 = vrot.slane %v9574_v52, 4 }
  0x5b   : > { %604 = vst.msk [vmem:[#allocation2 + $0x30] sm:$0xc] %vm603_vm5, %v474_v53  ;;  %v6405_v53 = vrot.slane %v9575_v31, 4  ;;  %v6414_v57 = vrot.slane %v9577_v2, 4 }
  0x5c   : > { %v1076_v50 = vld [vmem:[#allocation2 + $0x54] sm:$0xc]  ;;  %605 = vst.msk [vmem:[#allocation2 + $0x34] sm:$0xf] %vm334_vm0, %v477_v43 }
  0x5d   : > { %v6408_v63 = vld [vmem:[#allocation2 + $0x58] sm:$0xf]  ;;  %v5658_v52 = vrot.slane %v1076_v50, 10  ;;  %607 = vst.msk [vmem:[#allocation2 + $0x38] sm:$0x3] %vm606_vm6, %v6214_v3  ;;  %v487_v3 = vsel %vm6015_vm4, %v6225_v6, %v486_v7  ;;  %v5839_v50 = vld [vmem:[%s5994_s16 + $0x10] sm:$0xff] }
  0x5e   : > { %v1077_v43 = vld [vmem:[#allocation2 + $0x5c] sm:$0x3]  ;;  %v1167_v4 = vrot.slane %v6408_v63, 6  ;;  %623 = vst.msk [vmem:[#allocation2 + $0x78] sm:$0xc] %vm603_vm5, %v504_v55  ;;  %v6443_v6 = vrot.slane %v9579_v41, 4 }
  0x5f   : > { %v1170_v31 = vrot.slane %v1077_v43, 6  ;;  %v1072_v42 = vld [vmem:[#allocation2 + $0x3c] sm:$0xc]  ;;  %624 = vst.msk [vmem:[#allocation2 + $0x7c] sm:$0xf] %vm334_vm0, %v507_v45 }
  0x60   : > { %v1168_v2 = vsel %vm6015_vm4, %v5658_v52, %v1167_v4  ;;  %v1169_v39 = vrot.slane %v1167_v4, 4  ;;  %v6430_v47 = vld [vmem:[#allocation2 + $0x40] sm:$0xf]  ;;  %v5656_v55 = vrot.slane %v1072_v42, 10  ;;  %625 = vst.msk [vmem:[#allocation2 + $0x80] sm:$0x3] %vm606_vm6, %v6260_v22 }
  0x61   : > { %v6435_v43 = vld [vmem:[%s5994_s16 + $0x6c] sm:$0xf]  ;;  %v2600_v45 = vunpack.c.l.b16 %v1168_v2  ;;  %v1073_v5 = vld [vmem:[#allocation2 + $0x44] sm:$0x3]  ;;  %v1153_v59 = vrot.slane %v6430_v47, 6 }
  0x62   : > { %611 = vst.msk [vmem:[#allocation2 + $0x48] sm:$0xc] %vm603_vm5, %v484_v56  ;;  %v1171_v7 = vsel %vm6015_vm4, %v1169_v39, %v1170_v31  ;;  %v1156_v42 = vrot.slane %v1073_v5, 6  ;;  %v1070_v52 = vld [vmem:[#allocation2 + $0x30] sm:$0xc]  ;;  %v783_v56 = vsel %vm772_vm1, %v5839_v50, 0 }
  0x63   : > { %612 = vst.msk [vmem:[#allocation2 + $0x4c] sm:$0xf] %vm334_vm0, %v487_v3  ;;  %v2601_v22 = vunpack.c.l.b16 %v1171_v7  ;;  %v1154_v2 = vsel %vm6015_vm4, %v5656_v55, %v1153_v59  ;;  %v1155_v4 = vrot.slane %v1153_v59, 4  ;;  %v6456_v41 = vld [vmem:[#allocation2 + $0x34] sm:$0xf]  ;;  %v5655_v31 = vrot.slane %v1070_v52, 10  ;;  %829 = vmatpush.bf16.xpose.msra.mxu0 %v783_v56 }
  0x64   : > { %613 = vst.msk [vmem:[#allocation2 + $0x50] sm:$0x3] %vm606_vm6, %v6264_v23  ;;  %v2596_v39 = vunpack.c.l.b16 %v1154_v2  ;;  %v1071_v60 = vld [vmem:[#allocation2 + $0x38] sm:$0x3]  ;;  %v1146_v5 = vrot.slane %v6456_v41, 6  ;;  %v541_v59 = vrot.slane %v6435_v43, 6 }
  0x65   : > { %617 = vst.msk [vmem:[#allocation2 + $0x60] sm:$0xc] %vm603_vm5, %v494_v9  ;;  %v2627_v3 = vpack.c.b16 %v2601_v22, %v2600_v45  ;;  %v1157_v23 = vsel %vm6015_vm4, %v1155_v4, %v1156_v42  ;;  %v1149_v50 = vrot.slane %v1071_v60, 6  ;;  %v1082_v55 = vld [vmem:[#allocation2 + $0x78] sm:$0xc]  ;;  %v807_v52 = vsel %vm772_vm1, %v5847_v24, 0 }
  0x66   : > { %618 = vst.msk [vmem:[#allocation2 + $0x64] sm:$0xf] %vm334_vm0, %v497_v48  ;;  %v2597_v58 = vunpack.c.l.b16 %v1157_v23  ;;  %v1147_v9 = vsel %vm6015_vm4, %v5655_v31, %v1146_v5  ;;  %v1148_v17 = vrot.slane %v1146_v5, 4  ;;  %v6476_v7 = vld [vmem:[#allocation2 + $0x7c] sm:$0xf]  ;;  %v5661_v27 = vrot.slane %v1082_v55, 10  ;;  %842 = vmatpush.bf16.xpose.msra.mxu1 %v807_v52 }
  0x67   : > { %619 = vst.msk [vmem:[#allocation2 + $0x68] sm:$0x3] %vm606_vm6, %v6272_v25  ;;  %2648 = vrot.lane.b32.xlu0 %v2627_v3, %s5907_s17  ;;  %v2594_v28 = vunpack.c.l.b16 %v1147_v9  ;;  %v1083_v45 = vld [vmem:[#allocation2 + $0x80] sm:$0x3]  ;;  %v1188_v42 = vrot.slane %v6476_v7, 6  ;;  %v502_v25 = vsel %vm6015_vm4, %v6283_v29, %v501_v30  ;;  %v780_v30 = vsel %vm772_vm1, %v5838_v61, 0 }
  0x68   : > { %632 = vst.msk [vmem:[#allocation2 + $0x9c] sm:$0xc] %vm603_vm5, %v519_v11  ;;  %v2625_v48 = vpack.c.b16 %v2597_v58, %v2596_v39  ;;  %v1150_v56 = vsel %vm6015_vm4, %v1148_v17, %v1149_v50  ;;  %v1191_v22 = vrot.slane %v1083_v45, 6  ;;  %v804_v45 = vsel %vm772_vm1, %v5846_v62, 0 }
  0x69   : > { %v1074_v2 = vld [vmem:[#allocation2 + $0x48] sm:$0xc]  ;;  %633 = vst.msk [vmem:[#allocation2 + $0xa0] sm:$0xf] %vm334_vm0, %v522_v10  ;;  %v2595_v4 = vunpack.c.l.b16 %v1150_v56  ;;  %v1189_v11 = vsel %vm6015_vm4, %v5661_v27, %v1188_v42  ;;  %v1190_v31 = vrot.slane %v1188_v42, 4 }
  0x6a   : > { %v6497_v39 = vld [vmem:[#allocation2 + $0x4c] sm:$0xf]  ;;  %v5657_v60 = vrot.slane %v1074_v2, 10  ;;  %634 = vst.msk [vmem:[#allocation2 + $0xa4] sm:$0x3] %vm606_vm6, %v6319_v40  ;;  %2644 = vrot.lane.b32.xlu2 %v2625_v48, %s5907_s17  ;;  %v2606_v18 = vunpack.c.l.b16 %v1189_v11  ;;  %v512_v40 = vsel %vm6015_vm4, %v6342_v44, %v511_v32  ;;  %v9632_v32 = vrot.slane %v6239_v16, 6 }
  0x6b   : > { %v1075_v5 = vld [vmem:[#allocation2 + $0x50] sm:$0x3]  ;;  %v1160_v29 = vrot.slane %v6497_v39, 6  ;;  %620 = vst.msk [vmem:[#allocation2 + $0x6c] sm:$0xc] %vm603_vm5, %v499_v12  ;;  %v2624_v10 = vpack.c.b16 %v2595_v4, %v2594_v28  ;;  %v1192_v24 = vsel %vm6015_vm4, %v1190_v31, %v1191_v22  ;;  %830 = vmatpush.bf16.xpose.msra.mxu0 %v780_v30  ;;  %v9633_v44 = vrot.slane %v6301_v35, 6 }
  0x6c   : > { %v1163_v3 = vrot.slane %v1075_v5, 6  ;;  %v1078_v23 = vld [vmem:[#allocation2 + $0x60] sm:$0xc]  ;;  %621 = vst.msk [vmem:[#allocation2 + $0x70] sm:$0xf] %vm334_vm0, %v502_v25  ;;  %v2607_v50 = vunpack.c.l.b16 %v1192_v24  ;;  %v9634_v16 = vrot.slane %v6395_v20, 6 }
  0x6d   : > { %v1161_v12 = vsel %vm6015_vm4, %v5657_v60, %v1160_v29  ;;  %v1162_v55 = vrot.slane %v1160_v29, 4  ;;  %v6518_v58 = vld [vmem:[#allocation2 + $0x64] sm:$0xf]  ;;  %v5659_v9 = vrot.slane %v1078_v23, 10  ;;  %622 = vst.msk [vmem:[#allocation2 + $0x74] sm:$0x3] %vm606_vm6, %v6338_v19  ;;  %2642 = vrot.lane.b32.xlu1 %v2624_v10, %s5907_s17  ;;  %v537_v28 = vsel %vm6015_vm4, %v6372_v15, %v9633_v44 }
  0x6e   : > { %v2598_v21 = vunpack.c.l.b16 %v1161_v12  ;;  %v1079_v17 = vld [vmem:[#allocation2 + $0x68] sm:$0x3]  ;;  %v1174_v27 = vrot.slane %v6518_v58, 6  ;;  %626 = vst.msk [vmem:[#allocation2 + $0x84] sm:$0xc] %vm603_vm5, %v9632_v32  ;;  %v2630_v42 = vpack.c.b16 %v2607_v50, %v2606_v18  ;;  %v6538_v56 = vrot.slane %v9634_v16, 4  ;;  %843 = vmatpush.bf16.xpose.msra.mxu1 %v804_v45 }
  0x6f   : > { %v1164_v19 = vsel %vm6015_vm4, %v1162_v55, %v1163_v3  ;;  %v1177_v52 = vrot.slane %v1079_v17, 6  ;;  %v1088_v48 = vld [vmem:[#allocation2 + $0x9c] sm:$0xc]  ;;  %627 = vst.msk [vmem:[#allocation2 + $0x88] sm:$0xf] %vm334_vm0, %v512_v40  ;;  %v9635_v31 = vrot.slane %v6291_v33, 6 }
  0x70   : > { %v2599_v22 = vunpack.c.l.b16 %v1164_v19  ;;  %v1175_v35 = vsel %vm6015_vm4, %v5659_v9, %v1174_v27  ;;  %v1176_v2 = vrot.slane %v1174_v27, 4  ;;  %v6542_v15 = vld [vmem:[#allocation2 + $0xa0] sm:$0xf]  ;;  %v5664_v25 = vrot.slane %v1088_v48, 10  ;;  %628 = vst.msk [vmem:[#allocation2 + $0x8c] sm:$0x3] %vm606_vm6, %v6353_v34  ;;  %2654 = vrot.lane.b32.xlu0 %v2630_v42, %s5907_s17 }
  0x71   : > { %v2602_v61 = vunpack.c.l.b16 %v1175_v35  ;;  %v1089_v4 = vld [vmem:[#allocation2 + $0xa4] sm:$0x3]  ;;  %v1209_v11 = vrot.slane %v6542_v15, 6  ;;  %641 = vst.msk [vmem:[#allocation2 + $0xc0] sm:$0xc] %vm603_vm5, %v9635_v31  ;;  %v9636_v60 = vrot.slane %v6309_v37, 6 }
  0x72   : > { %v2626_v5 = vpack.c.b16 %v2599_v22, %v2598_v21  ;;  %v1178_v34 = vsel %vm6015_vm4, %v1176_v2, %v1177_v52  ;;  %v1212_v29 = vrot.slane %v1089_v4, 6  ;;  %v1080_v30 = vld [vmem:[#allocation2 + $0x6c] sm:$0xc]  ;;  %642 = vst.msk [vmem:[#allocation2 + $0xc4] sm:$0xf] %vm334_vm0, %v537_v28  ;;  %v1318_v33 = vrot.slane %v6007_v8, 7 }
  0x73   : > { %v517_v18 = vsel %vm6015_vm4, %v6380_v54, %v9636_v60  ;;  %v2603_v10 = vunpack.c.l.b16 %v1178_v34  ;;  %v1210_v37 = vsel %vm6015_vm4, %v5664_v25, %v1209_v11  ;;  %v1211_v24 = vrot.slane %v1209_v11, 4  ;;  %v6562_v3 = vld [vmem:[#allocation2 + $0x70] sm:$0xf]  ;;  %643 = vst.msk [vmem:[#allocation2 + $0xc8] sm:$0x3] %vm606_vm6, %v6376_v46 }
  0x74   : > { %v5660_v54 = vrot.slane %v1080_v30, 10  ;;  %2646 = vrot.lane.b32.xlu2 %v2626_v5, %s5907_s17  ;;  %v2612_v23 = vunpack.c.l.b16 %v1210_v37  ;;  %v1081_v40 = vld [vmem:[#allocation2 + $0x74] sm:$0x3]  ;;  %v1181_v62 = vrot.slane %v6562_v3, 6  ;;  %v9637_v50 = vrot.slane %v6304_v36, 6  ;;  %v3510_v5 = vld [vmem:[%s9565_s4] sm:$0xff] }
  0x75   : > { %v9638_v12 = vrot.slane %v6323_v49, 6  ;;  %v2628_v9 = vpack.c.b16 %v2603_v10, %v2602_v61  ;;  %v1213_v46 = vsel %vm6015_vm4, %v1211_v24, %v1212_v29  ;;  %v1184_v21 = vrot.slane %v1081_v40, 6  ;;  %v1084_v17 = vld [vmem:[#allocation2 + $0x84] sm:$0xc]  ;;  %630 = vst.msk [vmem:[#allocation2 + $0x94] sm:$0xf] %vm334_vm0, %v517_v18 }
  0x76   : > { %629 = vst.msk [vmem:[#allocation2 + $0x90] sm:$0xc] %vm603_vm5, %v9637_v50  ;;  %v6581_v36 = vrot.slane %v1318_v33, 4  ;;  %v2613_v27 = vunpack.c.l.b16 %v1213_v46  ;;  %v1182_v49 = vsel %vm6015_vm4, %v5660_v54, %v1181_v62  ;;  %v1183_v32 = vrot.slane %v1181_v62, 4  ;;  %v1244_v18 = vld [vmem:[#allocation2 + $0x24] sm:$0x8] }
  0x77   : > { %v527_v55 = vsel %vm6015_vm4, %v6392_v1, %v9638_v12  ;;  %v6585_v1 = vld [vmem:[#allocation2 + $0x88] sm:$0xf]  ;;  %v5662_v44 = vrot.slane %v1084_v17, 10  ;;  %631 = vst.msk [vmem:[#allocation2 + $0x98] sm:$0x3] %vm606_vm6, %v6388_v0  ;;  %2650 = vrot.lane.b32.xlu1 %v2628_v9, %s5907_s17  ;;  %v2604_v28 = vunpack.c.l.b16 %v1182_v49  ;;  %v9639_v19 = vrot.slane %v6312_v38, 6 }
  0x78   : > { %v1085_v45 = vld [vmem:[#allocation2 + $0x8c] sm:$0x3]  ;;  %v1195_v42 = vrot.slane %v6585_v1, 6  ;;  %v9640_v52 = vmov %v9634_v16  ;;  %v5837_v16 = vld [vmem:[%s5994_s16] sm:$0xff]  ;;  %v2633_v22 = vpack.c.b16 %v2613_v27, %v2612_v23  ;;  %v1185_v0 = vsel %vm6015_vm4, %v1183_v32, %v1184_v21  ;;  %636 = vst.msk [vmem:[#allocation2 + $0xac] sm:$0xf] %vm334_vm0, %v527_v55 }
  0x79   : > { %635 = vst.msk [vmem:[#allocation2 + $0xa8] sm:$0xc] %vm603_vm5, %v9639_v19  ;;  %v532_v48 = vsel %vm6015_vm4, %v6414_v57, %v9640_v52  ;;  %v1198_v35 = vrot.slane %v1085_v45, 6  ;;  %v1094_v2 = vld [vmem:[#allocation2 + $0xc0] sm:$0xc]  ;;  %v543_v38 = vrot.slane %v541_v59, 4  ;;  %v2605_v25 = vunpack.c.l.b16 %v1185_v0 }
  0x7a   : > { %v1196_v20 = vsel %vm6015_vm4, %v5662_v44, %v1195_v42  ;;  %v1197_v61 = vrot.slane %v1195_v42, 4  ;;  %v6607_v4 = vld [vmem:[#allocation2 + $0xc4] sm:$0xf]  ;;  %v5667_v57 = vrot.slane %v1094_v2, 10  ;;  %637 = vst.msk [vmem:[#allocation2 + $0xb0] sm:$0x3] %vm606_vm6, %v6405_v53  ;;  %2660 = vrot.lane.b32.xlu0 %v2633_v22, %s5907_s17  ;;  %v542_v34 = vsel %vm6015_vm4, %v6443_v6, %v541_v59 }
  0x7b   : > { %v2608_v11 = vunpack.c.l.b16 %v1196_v20  ;;  %v1095_v31 = vld [vmem:[#allocation2 + $0xc8] sm:$0x3]  ;;  %v1230_v60 = vrot.slane %v6607_v4, 6  ;;  %v777_v53 = vsel %vm772_vm1, %v5837_v16, 0  ;;  %v5845_v29 = vld [vmem:[%s5994_s16 + $0x40] sm:$0xff]  ;;  %v2629_v30 = vpack.c.b16 %v2605_v25, %v2604_v28 }
  0x7c   : > { %v1199_v10 = vsel %vm6015_vm4, %v1197_v61, %v1198_v35  ;;  %v1233_v37 = vrot.slane %v1095_v31, 6  ;;  %v1245_v54 = vld [vmem:[#allocation2 + $0x2c] sm:$0x7]  ;;  %v5670_v23 = vrot.slane %v1244_v18, 11  ;;  %831 = vmatpush.bf16.xpose.msra.mxu0 %v777_v53  ;;  %v6630_v50 = vld [vmem:[#allocation2 + $0x94] sm:$0xf] }
  0x7d   : > { %v1086_v24 = vld [vmem:[#allocation2 + $0x90] sm:$0xc]  ;;  %v2609_v40 = vunpack.c.l.b16 %v1199_v10  ;;  %v1231_v43 = vsel %vm6015_vm4, %v5667_v57, %v1230_v60  ;;  %v1232_v62 = vrot.slane %v1230_v60, 4  ;;  %v9643_v59 = vrot.slane %v6363_v51, 6  ;;  %2652 = vrot.lane.b32.xlu2 %v2629_v30, %s5907_s17  ;;  %639 = vst.msk [vmem:[#allocation2 + $0xb8] sm:$0xf] %vm334_vm0, %v532_v48 }
  0x7e   : > { %v5663_v6 = vrot.slane %v1086_v24, 10  ;;  %v2618_v12 = vunpack.c.l.b16 %v1231_v43  ;;  %v1087_v55 = vld [vmem:[#allocation2 + $0x98] sm:$0x3]  ;;  %v1202_v9 = vrot.slane %v6630_v50, 6  ;;  %v1319_v46 = vsel %vm6615_vm9, %v5670_v23, %v1318_v33  ;;  %640 = vst.msk [vmem:[#allocation2 + $0xbc] sm:$0x3] %vm606_vm6, %v6538_v56 }
  0x7f   : > { %638 = vst.msk [vmem:[#allocation2 + $0xb4] sm:$0xc] %vm603_vm5, %v9643_v59  ;;  %v1321_v21 = vrot.slane %v1245_v54, 7  ;;  %v2631_v17 = vpack.c.b16 %v2609_v40, %v2608_v11  ;;  %v1234_v51 = vsel %vm6015_vm4, %v1232_v62, %v1233_v37  ;;  %v1205_v27 = vrot.slane %v1087_v55, 6  ;;  %v6648_v45 = vld [vmem:[#allocation2 + $0xac] sm:$0xf] }
  0x80   : > { %v1090_v49 = vld [vmem:[#allocation2 + $0xa8] sm:$0xc]  ;;  %v2672_v32 = vunpack.c.l.b16 %v1319_v46  ;;  %v2619_v44 = vunpack.c.l.b16 %v1234_v51  ;;  %v1203_v8 = vsel %vm6015_vm4, %v5663_v6, %v1202_v9  ;;  %v1204_v28 = vrot.slane %v1202_v9, 4  ;;  %645 = vst.msk [vmem:[#allocation2 + $0xd0] sm:$0xf] %vm334_vm0, %v542_v34 }
  0x81   : > { %v5665_v33 = vrot.slane %v1090_v49, 10  ;;  %v9644_v42 = vrot.slane %v6366_v14, 6  ;;  %2656 = vrot.lane.b32.xlu1 %v2631_v17, %s5907_s17  ;;  %v2610_v19 = vunpack.c.l.b16 %v1203_v8  ;;  %v1091_v52 = vld [vmem:[#allocation2 + $0xb0] sm:$0x3]  ;;  %v1216_v48 = vrot.slane %v6648_v45, 6 }
  0x82   : > { %v1322_v56 = vsel %vm6615_vm9, %v6581_v36, %v1321_v21  ;;  %v801_v16 = vsel %vm772_vm1, %v5845_v29, 0  ;;  %v2636_v22 = vpack.c.b16 %v2619_v44, %v2618_v12  ;;  %v1206_v14 = vsel %vm6015_vm4, %v1204_v28, %v1205_v27  ;;  %646 = vst.msk [vmem:[#allocation2 + $0xd4] sm:$0x3] %vm606_vm6, %v543_v38  ;;  %v1250_v2 = vld [vmem:[#allocation2 + $0x48] sm:$0x8] }
  0x83   : > { %644 = vst.msk [vmem:[#allocation2 + $0xcc] sm:$0xc] %vm603_vm5, %v9644_v42  ;;  %v1219_v0 = vrot.slane %v1091_v52, 6  ;;  %v2673_v35 = vunpack.c.l.b16 %v1322_v56  ;;  %844 = vmatpush.bf16.xpose.msra.mxu1 %v801_v16  ;;  %v2611_v25 = vunpack.c.l.b16 %v1206_v14  ;;  %v1217_v20 = vsel %vm6015_vm4, %v5665_v33, %v1216_v48  ;;  %v1251_v36 = vld [vmem:[#allocation2 + $0x50] sm:$0x7] }
  0x84   : > { %v1218_v61 = vrot.slane %v1216_v48, 4  ;;  %v5673_v57 = vrot.slane %v1250_v2, 11  ;;  %v1242_v11 = vld [vmem:[#allocation2 + $0x18] sm:$0x8]  ;;  %2666 = vrot.lane.b32.xlu0 %v2636_v22, %s5907_s17  ;;  %v2614_v31 = vunpack.c.l.b16 %v1217_v20  ;;  %v1339_v34 = vrot.slane %v6497_v39, 7 }
  0x85   : > { %v2703_v60 = vpack.c.b16 %v2673_v35, %v2672_v32  ;;  %v1243_v53 = vld [vmem:[#allocation2 + $0x20] sm:$0x7]  ;;  %v2632_v29 = vpack.c.b16 %v2611_v25, %v2610_v19  ;;  %v6669_v30 = vld [vmem:[#allocation2 + $0xb8] sm:$0xf]  ;;  %v1342_v37 = vrot.slane %v1251_v36, 7  ;;  %v5669_v43 = vrot.slane %v1242_v11, 11 }
  0x86   : > { %v1092_v18 = vld [vmem:[#allocation2 + $0xb4] sm:$0xc]  ;;  %v1220_v38 = vsel %vm6015_vm4, %v1218_v61, %v1219_v0  ;;  %v1093_v54 = vld [vmem:[#allocation2 + $0xbc] sm:$0x3]  ;;  %v1223_v23 = vrot.slane %v6669_v30, 6  ;;  %v1341_v40 = vrot.slane %v1339_v34, 4  ;;  %v1340_v39 = vsel %vm6615_vm9, %v5673_v57, %v1339_v34 }
  0x87   : > { %v5666_v10 = vrot.slane %v1092_v18, 10  ;;  %v2615_v24 = vunpack.c.l.b16 %v1220_v38  ;;  %2658 = vrot.lane.b32.xlu2 %v2632_v29, %s5907_s17  ;;  %v1226_v62 = vrot.slane %v1093_v54, 6  ;;  %v1311_v59 = vrot.slane %v6046_v26, 7  ;;  %v6678_v21 = vld [vmem:[#allocation2 + $0xd0] sm:$0xf] }
  0x88   : > { %v1314_v12 = vrot.slane %v1243_v53, 7  ;;  %v1225_v46 = vrot.slane %v1223_v23, 4  ;;  %v685_v51 = vld [vmem:[%s9562_s1] sm:$0xf]  ;;  %v1237_v32 = vrot.slane %v6678_v21, 6  ;;  %v1343_v26 = vsel %vm6615_vm9, %v1341_v40, %v1342_v37 }
  0x89   : > { %v2634_v55 = vpack.c.b16 %v2615_v24, %v2614_v31  ;;  %v1224_v9 = vsel %vm6015_vm4, %v5666_v10, %v1223_v23  ;;  %v1097_v49 = vld [vmem:[#allocation2 + $0xd4] sm:$0x3]  ;;  %v1246_v44 = vld [vmem:[#allocation2 + $0x30] sm:$0x8]  ;;  %5635 = vmatmul.msk.bf16.vlgmr.msra.gmra.mxu0 %vm772_vm1, %v685_v51  ;;  %v1312_v33 = vsel %vm6615_vm9, %v5669_v43, %v1311_v59  ;;  %v1313_v42 = vrot.slane %v1311_v59, 4 }
  0x8a   : > { %v1096_v6 = vld [vmem:[#allocation2 + $0xcc] sm:$0xc]  ;;  %v2616_v27 = vunpack.c.l.b16 %v1224_v9  ;;  %5636 = vmatmul.msk.bf16.vlgmr.msra.gmra.mxu1 %vm772_vm1, %v685_v51  ;;  %v1227_v8 = vsel %vm6015_vm4, %v1225_v46, %v1226_v62  ;;  %v1240_v28 = vrot.slane %v1097_v49, 6  ;;  %v1239_v48 = vrot.slane %v1237_v32, 4  ;;  %v1247_v16 = vld [vmem:[#allocation2 + $0x38] sm:$0x7] }
  0x8b   : > { %v5668_v17 = vrot.slane %v1096_v6, 10  ;;  %2662 = vrot.lane.b32.xlu1 %v2634_v55, %s5907_s17  ;;  %v2617_v19 = vunpack.c.l.b16 %v1227_v8  ;;  %v2678_v56 = vunpack.c.l.b16 %v1340_v39  ;;  %v1256_v22 = vld [vmem:[#allocation2 + $0x6c] sm:$0x8]  ;;  %v2679_v0 = vunpack.c.l.b16 %v1343_v26  ;;  %v1257_v25 = vld [vmem:[#allocation2 + $0x74] sm:$0x7] }
  0x8c   : > { %2720 = vrot.lane.b32.xlu0 %v2703_v60, %s5908_s20  ;;  %v1315_v35 = vsel %vm6615_vm9, %v1313_v42, %v1314_v12  ;;  %v5671_v2 = vrot.slane %v1246_v44, 11  ;;  %v1241_v61 = vsel %vm6015_vm4, %v1239_v48, %v1240_v28  ;;  %v2670_v36 = vunpack.c.l.b16 %v1312_v33  ;;  %v1248_v60 = vld [vmem:[#allocation2 + $0x3c] sm:$0x8]  ;;  %v1249_v37 = vld [vmem:[#allocation2 + $0x44] sm:$0x7] }
  0x8d   : > { %v1238_v52 = vsel %vm6015_vm4, %v5668_v17, %v1237_v32  ;;  %v2635_v20 = vpack.c.b16 %v2617_v19, %v2616_v27  ;;  %v1325_v57 = vrot.slane %v6456_v41, 7  ;;  %v2621_v11 = vunpack.c.l.b16 %v1241_v61  ;;  %v1252_v24 = vld [vmem:[#allocation2 + $0x54] sm:$0x8]  ;;  %v1253_v39 = vld [vmem:[#allocation2 + $0x5c] sm:$0x7] }
  0x8e   : > { %v2620_v14 = vunpack.c.l.b16 %v1238_v52  ;;  %v1328_v31 = vrot.slane %v1247_v16, 7  ;;  %v5676_v18 = vrot.slane %v1256_v22, 11  ;;  %v1360_v34 = vrot.slane %v6562_v3, 7  ;;  %v1262_v59 = vld [vmem:[#allocation2 + $0x90] sm:$0x8] }
  0x8f   : > { %2664 = vrot.lane.b32.xlu2 %v2635_v20, %s5907_s17  ;;  %v2671_v53 = vunpack.c.l.b16 %v1315_v35  ;;  %v1326_v29 = vsel %vm6615_vm9, %v5671_v2, %v1325_v57  ;;  %v1327_v38 = vrot.slane %v1325_v57, 4  ;;  %v1363_v10 = vrot.slane %v1257_v25, 7  ;;  %v1263_v32 = vld [vmem:[#allocation2 + $0x98] sm:$0x7]  ;;  %v1254_v28 = vld [vmem:[#allocation2 + $0x60] sm:$0x8] }
  0x90   : > { %v2637_v54 = vpack.c.b16 %v2621_v11, %v2620_v14  ;;  %v2706_v23 = vpack.c.b16 %v2679_v0, %v2678_v56  ;;  %v2674_v40 = vunpack.c.l.b16 %v1326_v29  ;;  %v1362_v41 = vrot.slane %v1360_v34, 4  ;;  %v1255_v33 = vld [vmem:[#allocation2 + $0x68] sm:$0x7]  ;;  %v1258_v14 = vld [vmem:[#allocation2 + $0x78] sm:$0x8] }
  0x91   : > { %v1329_v43 = vsel %vm6615_vm9, %v1327_v38, %v1328_v31  ;;  %v1361_v3 = vsel %vm6615_vm9, %v5676_v18, %v1360_v34  ;;  %v5672_v62 = vrot.slane %v1248_v60, 11  ;;  %v1332_v6 = vrot.slane %v6430_v47, 7  ;;  %v1259_v11 = vld [vmem:[#allocation2 + $0x80] sm:$0x7]  ;;  %v1268_v31 = vld [vmem:[#allocation2 + $0xb4] sm:$0x8] }
  0x92   : > { %v2675_v12 = vunpack.c.l.b16 %v1329_v43  ;;  %v1364_v55 = vsel %vm6615_vm9, %v1362_v41, %v1363_v10  ;;  %v1335_v9 = vrot.slane %v1249_v37, 7  ;;  %v5674_v46 = vrot.slane %v1252_v24, 11  ;;  %v1269_v10 = vld [vmem:[#allocation2 + $0xbc] sm:$0x7] }
  0x93   : > { %2668 = vrot.lane.b32.xlu1 %v2637_v54, %s5907_s17  ;;  %v2702_v17 = vpack.c.b16 %v2671_v53, %v2670_v36  ;;  %v1333_v51 = vsel %vm6615_vm9, %v5672_v62, %v1332_v6  ;;  %v1334_v27 = vrot.slane %v1332_v6, 4  ;;  %v1346_v49 = vrot.slane %v6408_v63, 7 }
  0x94   : > { %2726 = vrot.lane.b32.xlu0 %v2706_v23, %s5908_s20  ;;  %v2684_v47 = vunpack.c.l.b16 %v1361_v3  ;;  %v2685_v26 = vunpack.c.l.b16 %v1364_v55  ;;  %v1349_v44 = vrot.slane %v1253_v39, 7  ;;  %v5679_v8 = vrot.slane %v1262_v59, 11  ;;  %v1260_v3 = vld [vmem:[#allocation2 + $0x84] sm:$0x8] }
  0x95   : > { %v1336_v42 = vsel %vm6615_vm9, %v1334_v27, %v1335_v9  ;;  %v2676_v19 = vunpack.c.l.b16 %v1333_v51  ;;  %v1347_v52 = vsel %vm6615_vm9, %v5674_v46, %v1346_v49  ;;  %v1348_v48 = vrot.slane %v1346_v49, 4  ;;  %v1264_v46 = vld [vmem:[#allocation2 + $0x9c] sm:$0x8] }
  0x96   : > { %v2704_v56 = vpack.c.b16 %v2675_v12, %v2674_v40  ;;  %v2677_v16 = vunpack.c.l.b16 %v1336_v42  ;;  %v1381_v63 = vrot.slane %v6630_v50, 7  ;;  %v1384_v22 = vrot.slane %v1263_v32, 7 }
  0x97   : > { %2718 = vrot.lane.b32.xlu2 %v2702_v17, %s5908_s20  ;;  %v1350_v0 = vsel %vm6615_vm9, %v1348_v48, %v1349_v44  ;;  %v5675_v35 = vrot.slane %v1254_v28, 11  ;;  %v1353_v2 = vrot.slane %v6518_v58, 7  ;;  %v1356_v25 = vrot.slane %v1255_v33, 7  ;;  %v1265_v17 = vld [vmem:[#allocation2 + $0xa4] sm:$0x7] }
  0x98   : > { %v2709_v20 = vpack.c.b16 %v2685_v26, %v2684_v47  ;;  %v2680_v61 = vunpack.c.l.b16 %v1347_v52  ;;  %v1382_v36 = vsel %vm6615_vm9, %v5679_v8, %v1381_v63  ;;  %v1383_v57 = vrot.slane %v1381_v63, 4  ;;  %v1267_v52 = vld [vmem:[#allocation2 + $0xb0] sm:$0x7] }
  0x99   : > { %v2705_v50 = vpack.c.b16 %v2677_v16, %v2676_v19  ;;  %v2681_v18 = vunpack.c.l.b16 %v1350_v0  ;;  %v1355_v34 = vrot.slane %v1353_v2, 4  ;;  %v5677_v60 = vrot.slane %v1258_v14, 11  ;;  %v1266_v19 = vld [vmem:[#allocation2 + $0xa8] sm:$0x8]  ;;  %v1421_v63 = vld [vmem:[#allocation2 + $0x30] sm:$0xe] }
  0x9a   : > { %v1385_v53 = vsel %vm6615_vm9, %v1383_v57, %v1384_v22  ;;  %v2690_v29 = vunpack.c.l.b16 %v1382_v36  ;;  %v1354_v58 = vsel %vm6615_vm9, %v5675_v35, %v1353_v2  ;;  %v1367_v38 = vrot.slane %v6476_v7, 7  ;;  %v1261_v7 = vld [vmem:[#allocation2 + $0x8c] sm:$0x7]  ;;  %v6751_v22 = vld [vmem:[#allocation2 + $0x34] sm:$0xf] }
  0x9b   : > { %2722 = vrot.lane.b32.xlu1 %v2704_v56, %s5908_s20  ;;  %v2691_v37 = vunpack.c.l.b16 %v1385_v53  ;;  %v1357_v24 = vsel %vm6615_vm9, %v1355_v34, %v1356_v25  ;;  %v1370_v54 = vrot.slane %v1259_v11, 7  ;;  %v5682_v23 = vrot.slane %v1268_v31, 11  ;;  %v1423_v35 = vld [vmem:[#allocation2 + $0x38] sm:$0x1] }
  0x9c   : > { %2732 = vrot.lane.b32.xlu0 %v2709_v20, %s5908_s20  ;;  %v1368_v40 = vsel %vm6615_vm9, %v5677_v60, %v1367_v38  ;;  %v1369_v41 = vrot.slane %v1367_v38, 4  ;;  %v1402_v43 = vrot.slane %v6669_v30, 7  ;;  %v2707_v62 = vpack.c.b16 %v2681_v18, %v2680_v61  ;;  %v1270_v60 = vld [vmem:[#allocation2 + $0xc0] sm:$0x8]  ;;  %v1271_v38 = vld [vmem:[#allocation2 + $0xc8] sm:$0x7] }
  0x9d   : > { %v2682_v6 = vunpack.c.l.b16 %v1354_v58  ;;  %v1405_v39 = vrot.slane %v1269_v10, 7  ;;  %v2712_v59 = vpack.c.b16 %v2691_v37, %v2690_v29  ;;  %v2683_v12 = vunpack.c.l.b16 %v1357_v24 }
  0x9e   : > { %v1371_v55 = vsel %vm6615_vm9, %v1369_v41, %v1370_v54  ;;  %v1404_v9 = vrot.slane %v1402_v43, 4  ;;  %v2686_v51 = vunpack.c.l.b16 %v1368_v40  ;;  %v1403_v27 = vsel %vm6615_vm9, %v5682_v23, %v1402_v43  ;;  %v6773_v54 = vld [vmem:[#allocation2 + $0x58] sm:$0xf] }
  0x9f   : > { %2724 = vrot.lane.b32.xlu2 %v2705_v50, %s5908_s20  ;;  %v5678_v30 = vrot.slane %v1260_v3, 11  ;;  %v1374_v49 = vrot.slane %v6585_v1, 7  ;;  %v2687_v32 = vunpack.c.l.b16 %v1371_v55  ;;  %v1377_v26 = vrot.slane %v1261_v7, 7  ;;  %v1432_v3 = vld [vmem:[#allocation2 + $0x5c] sm:$0x1] }
  0xa0   : > { %v1406_v47 = vsel %vm6615_vm9, %v1404_v9, %v1405_v39  ;;  %v1388_v44 = vrot.slane %v6542_v15, 7  ;;  %v5680_v28 = vrot.slane %v1264_v46, 11  ;;  %v1391_v33 = vrot.slane %v1265_v17, 7  ;;  %v1272_v7 = vld [vmem:[#allocation2 + $0xcc] sm:$0x8] }
  0xa1   : > { %v1376_v8 = vrot.slane %v1374_v49, 4  ;;  %v2708_v48 = vpack.c.b16 %v2683_v12, %v2682_v6  ;;  %v2696_v56 = vunpack.c.l.b16 %v1403_v27  ;;  %v2697_v16 = vunpack.c.l.b16 %v1406_v47  ;;  %v6782_v17 = vld [vmem:[#allocation2 + $0x40] sm:$0xf] }
  0xa2   : > { %v1390_v42 = vrot.slane %v1388_v44, 4  ;;  %v1395_v1 = vrot.slane %v6648_v45, 7  ;;  %v2710_v14 = vpack.c.b16 %v2687_v32, %v2686_v51  ;;  %v1375_v15 = vsel %vm6615_vm9, %v5678_v30, %v1374_v49 }
  0xa3   : > { %2728 = vrot.lane.b32.xlu1 %v2707_v62, %s5908_s20  ;;  %v1378_v0 = vsel %vm6615_vm9, %v1376_v8, %v1377_v26  ;;  %v1389_v2 = vsel %vm6615_vm9, %v5680_v28, %v1388_v44  ;;  %v5681_v25 = vrot.slane %v1266_v19, 11  ;;  %v1398_v61 = vrot.slane %v1267_v52, 7  ;;  %v1424_v28 = vld [vmem:[#allocation2 + $0x3c] sm:$0xe]  ;;  %v1426_v19 = vld [vmem:[#allocation2 + $0x44] sm:$0x1] }
  0xa4   : > { %2738 = vrot.lane.b32.xlu0 %v2712_v59, %s5908_s20  ;;  %v1392_v45 = vsel %vm6615_vm9, %v1390_v42, %v1391_v33  ;;  %v1397_v20 = vrot.slane %v1395_v1, 4  ;;  %v5685_v57 = vrot.slane %v1421_v63, 9  ;;  %v1519_v11 = vrot.slane %v6751_v22, 5  ;;  %v1273_v59 = vld [vmem:[#allocation2 + $0xd4] sm:$0x7] }
  0xa5   : > { %v2715_v31 = vpack.c.b16 %v2697_v16, %v2696_v56  ;;  %v2688_v50 = vunpack.c.l.b16 %v1375_v15  ;;  %v2689_v18 = vunpack.c.l.b16 %v1378_v0  ;;  %v1522_v34 = vrot.slane %v1423_v35, 5  ;;  %v6791_v52 = vld [vmem:[#allocation2 + $0x4c] sm:$0xf] }
  0xa6   : > { %v2692_v53 = vunpack.c.l.b16 %v1389_v2  ;;  %v2693_v29 = vunpack.c.l.b16 %v1392_v45  ;;  %v1521_v58 = vrot.slane %v1519_v11, 4  ;;  %v1409_v10 = vrot.slane %v6607_v4, 7  ;;  %v1430_v4 = vld [vmem:[#allocation2 + $0x54] sm:$0xe]  ;;  %v1439_v2 = vld [vmem:[#allocation2 + $0x78] sm:$0xe] }
  0xa7   : > { %2730 = vrot.lane.b32.xlu2 %v2708_v48, %s5908_s20  ;;  %v1396_v37 = vsel %vm6615_vm9, %v5681_v25, %v1395_v1  ;;  %v1520_v24 = vsel %vm6762_vm12, %v5685_v57, %v1519_v11  ;;  %v1399_v23 = vsel %vm6615_vm9, %v1397_v20, %v1398_v61  ;;  %v5683_v41 = vrot.slane %v1270_v60, 11  ;;  %v6793_v48 = vld [vmem:[#allocation2 + $0x7c] sm:$0xf]  ;;  %v1441_v45 = vld [vmem:[#allocation2 + $0x80] sm:$0x1] }
  0xa8   : > { %v1523_v40 = vsel %vm6762_vm12, %v1521_v58, %v1522_v34  ;;  %v1416_v43 = vrot.slane %v6678_v21, 7  ;;  %v2711_v62 = vpack.c.b16 %v2689_v18, %v2688_v50  ;;  %v1411_v6 = vrot.slane %v1409_v10, 4  ;;  %v1427_v61 = vld [vmem:[#allocation2 + $0x48] sm:$0xe]  ;;  %v1429_v18 = vld [vmem:[#allocation2 + $0x50] sm:$0x1] }
  0xa9   : > { %v1412_v39 = vrot.slane %v1271_v38, 7  ;;  %v2713_v12 = vpack.c.b16 %v2693_v29, %v2692_v53  ;;  %v2694_v55 = vunpack.c.l.b16 %v1396_v37  ;;  %v2750_v9 = vunpack.c.l.b16 %v1520_v24  ;;  %v6807_v34 = vld [vmem:[#allocation2 + $0x64] sm:$0xf] }
  0xaa   : > { %v2751_v46 = vunpack.c.l.b16 %v1523_v40  ;;  %v2695_v51 = vunpack.c.l.b16 %v1399_v23  ;;  %v5688_v27 = vrot.slane %v1430_v4, 9  ;;  %v1540_v30 = vrot.slane %v6773_v54, 5 }
  0xab   : > { %2734 = vrot.lane.b32.xlu1 %v2710_v14, %s5908_s20  ;;  %v1543_v21 = vrot.slane %v1432_v3, 5  ;;  %v1410_v49 = vsel %vm6615_vm9, %v5683_v41, %v1409_v10  ;;  %v5684_v32 = vrot.slane %v1272_v7, 11  ;;  %v1418_v47 = vrot.slane %v1416_v43, 4  ;;  %v1433_v3 = vld [vmem:[#allocation2 + $0x60] sm:$0xe] }
  0xac   : > { %2744 = vrot.lane.b32.xlu0 %v2715_v31, %s5908_s20  ;;  %v1419_v26 = vrot.slane %v1273_v59, 7  ;;  %v1413_v44 = vsel %vm6615_vm9, %v1411_v6, %v1412_v39  ;;  %v1542_v8 = vrot.slane %v1540_v30, 4  ;;  %v1526_v33 = vrot.slane %v6782_v17, 5  ;;  %v6819_v7 = vld [vmem:[#allocation2 + $0x70] sm:$0xf] }
  0xad   : > { %v2782_v42 = vpack.c.b16 %v2751_v46, %v2750_v9  ;;  %v2714_v56 = vpack.c.b16 %v2695_v51, %v2694_v55  ;;  %v2698_v16 = vunpack.c.l.b16 %v1410_v49  ;;  %v1541_v1 = vsel %vm6762_vm12, %v5688_v27, %v1540_v30  ;;  %v6821_v59 = vld [vmem:[#allocation2 + $0xa0] sm:$0xf]  ;;  %v1448_v51 = vld [vmem:[#allocation2 + $0x9c] sm:$0xe]  ;;  %v1450_v27 = vld [vmem:[#allocation2 + $0xa4] sm:$0x1] }
  0xae   : > { %v1544_v63 = vsel %vm6762_vm12, %v1542_v8, %v1543_v21  ;;  %v2699_v14 = vunpack.c.l.b16 %v1413_v44  ;;  %v1417_v15 = vsel %vm6615_vm9, %v5684_v32, %v1416_v43  ;;  %v1420_v0 = vsel %vm6615_vm9, %v1418_v47, %v1419_v26  ;;  %v1436_v44 = vld [vmem:[#allocation2 + $0x6c] sm:$0xe] }
  0xaf   : > { %2736 = vrot.lane.b32.xlu2 %v2711_v62, %s5908_s20  ;;  %v5686_v35 = vrot.slane %v1424_v28, 9  ;;  %v1528_v25 = vrot.slane %v1526_v33, 4  ;;  %v1529_v20 = vrot.slane %v1426_v19, 5  ;;  %v1533_v57 = vrot.slane %v6791_v52, 5  ;;  %v1435_v62 = vld [vmem:[#allocation2 + $0x68] sm:$0x1] }
  0xb0   : > { %v1561_v11 = vrot.slane %v6793_v48, 5  ;;  %v2756_v31 = vunpack.c.l.b16 %v1541_v1  ;;  %v2757_v50 = vunpack.c.l.b16 %v1544_v63  ;;  %v2700_v60 = vunpack.c.l.b16 %v1417_v15 }
  0xb1   : > { %v5691_v53 = vrot.slane %v1439_v2, 9  ;;  %v1564_v58 = vrot.slane %v1441_v45, 5  ;;  %v2716_v38 = vpack.c.b16 %v2699_v14, %v2698_v16  ;;  %v2701_v10 = vunpack.c.l.b16 %v1420_v0  ;;  %v1442_v2 = vld [vmem:[#allocation2 + $0x84] sm:$0xe] }
  0xb2   : > { %v1563_v29 = vrot.slane %v1561_v11, 4  ;;  %v1527_v37 = vsel %vm6762_vm12, %v5686_v35, %v1526_v33  ;;  %v5687_v24 = vrot.slane %v1427_v61, 9  ;;  %v1530_v23 = vsel %vm6762_vm12, %v1528_v25, %v1529_v20  ;;  %v6831_v33 = vld [vmem:[#allocation2 + $0x88] sm:$0xf] }
  0xb3   : > { %2740 = vrot.lane.b32.xlu1 %v2713_v12, %s5908_s20  ;;  %v1535_v40 = vrot.slane %v1533_v57, 4  ;;  %v1536_v41 = vrot.slane %v1429_v18, 5  ;;  %v1547_v43 = vrot.slane %v6807_v34, 5  ;;  %v2785_v4 = vpack.c.b16 %v2757_v50, %v2756_v31  ;;  %v6843_v50 = vld [vmem:[#allocation2 + $0x94] sm:$0xf] }
  0xb4   : > { %2798 = vrot.lane.b32.xlu0 %v2782_v42, %s5909_s21  ;;  %v1562_v6 = vsel %vm6762_vm12, %v5691_v53, %v1561_v11  ;;  %v1565_v39 = vsel %vm6762_vm12, %v1563_v29, %v1564_v58  ;;  %v2717_v12 = vpack.c.b16 %v2701_v10, %v2700_v60  ;;  %v2752_v55 = vunpack.c.l.b16 %v1527_v37  ;;  %v1438_v42 = vld [vmem:[#allocation2 + $0x74] sm:$0x1]  ;;  %v1457_v29 = vld [vmem:[#allocation2 + $0xc0] sm:$0xe]  ;;  %v6846_v58 = vld [vmem:[#allocation2 + $0xc4] sm:$0xf] }
  0xb5   : > { %v2753_v9 = vunpack.c.l.b16 %v1530_v23  ;;  %v1534_v46 = vsel %vm6762_vm12, %v5687_v24, %v1533_v57  ;;  %v1537_v30 = vsel %vm6762_vm12, %v1535_v40, %v1536_v41  ;;  %v5689_v21 = vrot.slane %v1433_v3, 9  ;;  %v1444_v57 = vld [vmem:[#allocation2 + $0x8c] sm:$0x1]  ;;  %v1459_v23 = vld [vmem:[#allocation2 + $0xc8] sm:$0x1] }
  0xb6   : > { %v1549_v49 = vrot.slane %v1547_v43, 4  ;;  %v1550_v32 = vrot.slane %v1435_v62, 5  ;;  %v2762_v47 = vunpack.c.l.b16 %v1562_v6  ;;  %v2763_v26 = vunpack.c.l.b16 %v1565_v39  ;;  %v1447_v62 = vld [vmem:[#allocation2 + $0x98] sm:$0x1] }
  0xb7   : > { %2742 = vrot.lane.b32.xlu2 %v2714_v56, %s5908_s20  ;;  %v1554_v8 = vrot.slane %v6819_v7, 5  ;;  %v1582_v28 = vrot.slane %v6821_v59, 5  ;;  %v5694_v19 = vrot.slane %v1448_v51, 9  ;;  %v1585_v56 = vrot.slane %v1450_v27, 5 }
  0xb8   : > { %v2783_v16 = vpack.c.b16 %v2753_v9, %v2752_v55  ;;  %v2754_v1 = vunpack.c.l.b16 %v1534_v46  ;;  %v2755_v63 = vunpack.c.l.b16 %v1537_v30  ;;  %v1548_v15 = vsel %vm6762_vm12, %v5689_v21, %v1547_v43 }
  0xb9   : > { %v1584_v14 = vrot.slane %v1582_v28, 4  ;;  %v1551_v0 = vsel %vm6762_vm12, %v1549_v49, %v1550_v32  ;;  %v5690_v35 = vrot.slane %v1436_v44, 9  ;;  %v1568_v45 = vrot.slane %v6831_v33, 5  ;;  %v6864_v49 = vpop.permute.xlu0 %689 }
  0xba   : > { %v2788_v25 = vpack.c.b16 %v2763_v26, %v2762_v47  ;;  %v1556_v20 = vrot.slane %v1554_v8, 4  ;;  %v1557_v61 = vrot.slane %v1438_v42, 5  ;;  %v1583_v11 = vsel %vm6762_vm12, %v5694_v19, %v1582_v28  ;;  %v1451_v26 = vld [vmem:[#allocation2 + $0xa8] sm:$0xe]  ;;  %v1453_v42 = vld [vmem:[#allocation2 + $0xb0] sm:$0x1] }
  0xbb   : > { %2746 = vrot.lane.b32.xlu1 %v2716_v38, %s5908_s20  ;;  %v1586_v31 = vsel %vm6762_vm12, %v1584_v14, %v1585_v56  ;;  %v2758_v18 = vunpack.c.l.b16 %v1548_v15  ;;  %v2759_v60 = vunpack.c.l.b16 %v1551_v0  ;;  %v5692_v53 = vrot.slane %v1442_v2, 9 }
  0xbc   : > { %2804 = vrot.lane.b32.xlu0 %v2785_v4, %s5909_s21  ;;  %v2784_v38 = vpack.c.b16 %v2755_v63, %v2754_v1  ;;  %v1555_v10 = vsel %vm6762_vm12, %v5690_v35, %v1554_v8  ;;  %v1570_v37 = vrot.slane %v1568_v45, 4  ;;  %v1571_v24 = vrot.slane %v1444_v57, 5  ;;  %v1445_v4 = vld [vmem:[#allocation2 + $0x90] sm:$0xe] }
  0xbd   : > { %v1558_v40 = vsel %vm6762_vm12, %v1556_v20, %v1557_v61  ;;  %v2768_v41 = vunpack.c.l.b16 %v1583_v11  ;;  %v2769_v43 = vunpack.c.l.b16 %v1586_v31  ;;  %v1575_v3 = vrot.slane %v6843_v50, 5  ;;  %v1454_v61 = vld [vmem:[#allocation2 + $0xb4] sm:$0xe]  ;;  %v6879_v31 = vld [vmem:[#allocation2 + $0xb8] sm:$0xf] }
  0xbe   : > { %v5697_v6 = vrot.slane %v1457_v29, 9  ;;  %v1603_v39 = vrot.slane %v6846_v58, 5  ;;  %v2786_v55 = vpack.c.b16 %v2759_v60, %v2758_v18  ;;  %v2760_v46 = vunpack.c.l.b16 %v1555_v10  ;;  %v437_v10 = vld [vmem:[%s5994_s16 + $0x78] sm:$0xf] }
  0xbf   : > { %2748 = vrot.lane.b32.xlu2 %v2717_v12, %s5908_s20  ;;  %v6855_v12 = vld [vmem:[#allocation2 + $0xac] sm:$0xf]  ;;  %v1569_v51 = vsel %vm6762_vm12, %v5692_v53, %v1568_v45  ;;  %v1606_v27 = vrot.slane %v1459_v23, 5  ;;  %v2761_v30 = vunpack.c.l.b16 %v1558_v40  ;;  %v1572_v21 = vsel %vm6762_vm12, %v1570_v37, %v1571_v24  ;;  %v438_v37 = vld [vmem:[%s5994_s16 + $0x7c] sm:$0xf] }
  0xc0   : > { %v5693_v32 = vrot.slane %v1445_v4, 9  ;;  %v1605_v47 = vrot.slane %v1603_v39, 4  ;;  %v2791_v44 = vpack.c.b16 %v2769_v43, %v2768_v41  ;;  %v1577_v8 = vrot.slane %v1575_v3, 4  ;;  %v1460_v40 = vld [vmem:[#allocation2 + $0xcc] sm:$0xe] }
  0xc1   : > { %v1578_v28 = vrot.slane %v1447_v62, 5  ;;  %v1589_v19 = vrot.slane %v6855_v12, 5  ;;  %v1604_v56 = vsel %vm6762_vm12, %v5697_v6, %v1603_v39  ;;  %v2764_v1 = vunpack.c.l.b16 %v1569_v51  ;;  %v6888_v43 = vpop.permute.xlu0 %2638 }
  0xc2   : > { %v2765_v63 = vunpack.c.l.b16 %v1572_v21  ;;  %v5695_v14 = vrot.slane %v1451_v26, 9  ;;  %v2787_v15 = vpack.c.b16 %v2761_v30, %v2760_v46  ;;  %v1592_v35 = vrot.slane %v1453_v42, 5  ;;  %v1462_v46 = vld [vmem:[#allocation2 + $0xd4] sm:$0x1] }
  0xc3   : > { %2800 = vrot.lane.b32.xlu1 %v2783_v16, %s5909_s21  ;;  %v1607_v16 = vsel %vm6762_vm12, %v1605_v47, %v1606_v27  ;;  %v1591_v0 = vrot.slane %v1589_v19, 4  ;;  %v1576_v2 = vsel %vm6762_vm12, %v5693_v32, %v1575_v3  ;;  %v1579_v45 = vsel %vm6762_vm12, %v1577_v8, %v1578_v28  ;;  %v6891_v3 = vld [vmem:[#allocation2 + $0xd0] sm:$0xf] }
  0xc4   : > { %2810 = vrot.lane.b32.xlu0 %v2788_v25, %s5909_s21  ;;  %v6857_v9 = vpop.permute.xlu2 %2644  ;;  %v2774_v25 = vunpack.c.l.b16 %v1604_v56  ;;  %v2775_v20 = vunpack.c.l.b16 %v1607_v16  ;;  %v2789_v57 = vpack.c.b16 %v2765_v63, %v2764_v1  ;;  %v1590_v11 = vsel %vm6762_vm12, %v5695_v14, %v1589_v19  ;;  %v6904_v19 = vpop.permute.xlu1 %2640 }
  0xc5   : > { %v2766_v60 = vunpack.c.l.b16 %v1576_v2  ;;  %v2767_v53 = vunpack.c.l.b16 %v1579_v45  ;;  %v1593_v29 = vsel %vm6762_vm12, %v1591_v0, %v1592_v35  ;;  %v5696_v23 = vrot.slane %v1454_v61, 9  ;;  %v435_v2 = vld [vmem:[%s5994_s16 + $0x70] sm:$0xf]  ;;  %v436_v45 = vld [vmem:[%s5994_s16 + $0x74] sm:$0xf] }
  0xc6   : > { %v2794_v24 = vpack.c.b16 %v2775_v20, %v2774_v25  ;;  %v2770_v41 = vunpack.c.l.b16 %v1590_v11  ;;  %v1596_v4 = vrot.slane %v6879_v31, 5  ;;  %v2771_v62 = vunpack.c.l.b16 %v1593_v29 }
  0xc7   : > { %2802 = vrot.lane.b32.xlu2 %v2784_v38, %s5909_s21  ;;  %v1456_v38 = vld [vmem:[#allocation2 + $0xbc] sm:$0x1]  ;;  %v549_v39 = vrot.slane %v437_v10, 6  ;;  %v2790_v51 = vpack.c.b16 %v2767_v53, %v2766_v60  ;;  %v5698_v30 = vrot.slane %v1460_v40, 9  ;;  %v1613_v8 = vrot.slane %v1462_v46, 5 }
  0xc8   : > { %v1599_v6 = vrot.slane %v1456_v38, 5  ;;  %v1598_v27 = vrot.slane %v1596_v4, 4  ;;  %v1597_v21 = vsel %vm6762_vm12, %v5696_v23, %v1596_v4  ;;  %v2792_v28 = vpack.c.b16 %v2771_v62, %v2770_v41  ;;  %v1633_v53 = vld [vmem:[#allocation2 + $0x48] sm:$0xc]  ;;  %v1634_v41 = vld [vmem:[#allocation2 + $0x50] sm:$0x3] }
  0xc9   : > { %v550_v32 = vrot.slane %v549_v39, 4  ;;  %650 = vst.msk [vmem:[#allocation2 + $0xe4] sm:$0xc] %vm603_vm5, %v549_v39  ;;  %v2772_v56 = vunpack.c.l.b16 %v1597_v21  ;;  %v544_v11 = vrot.slane %v435_v2, 6  ;;  %v546_v60 = vrot.slane %v436_v45, 6 }
  0xca   : > { %v1600_v47 = vsel %vm6762_vm12, %v1598_v27, %v1599_v6  ;;  %v1709_v23 = vrot.slane %v6791_v52, 6  ;;  %v5703_v4 = vrot.slane %v1633_v53, 10  ;;  %v1630_v21 = vld [vmem:[#allocation2 + $0x38] sm:$0x3] }
  0xcb   : > { %2806 = vrot.lane.b32.xlu1 %v2786_v55, %s5909_s21  ;;  %v551_v55 = vrot.slane %v438_v37, 6  ;;  %v2773_v16 = vunpack.c.l.b16 %v1600_v47  ;;  %647 = vst.msk [vmem:[#allocation2 + $0xd8] sm:$0xc] %vm603_vm5, %v544_v11  ;;  %vm3476_vm5 = vcmask 523264  }
  0xcc   : > { %2816 = vrot.lane.b32.xlu0 %v2791_v44, %s5909_s21  ;;  %v1610_v44 = vrot.slane %v6891_v3, 5  ;;  %v1711_v47 = vrot.slane %v1709_v23, 4 }
  0xcd   : > { %v553_v26 = vrot.slane %v551_v55, 4  ;;  %v552_v42 = vsel %vm6015_vm4, %v550_v32, %v551_v55  ;;  %v2793_v25 = vpack.c.b16 %v2773_v16, %v2772_v56  ;;  %v1695_v16 = vrot.slane %v6751_v22, 6 }
  0xce   : > { %v6882_v18 = vpop.permute.xlu2 %2646  ;;  %651 = vst.msk [vmem:[#allocation2 + $0xe8] sm:$0xf] %vm334_vm0, %v552_v42  ;;  %v1611_v1 = vsel %vm6762_vm12, %v5698_v30, %v1610_v44  ;;  %v1612_v63 = vrot.slane %v1610_v44, 4  ;;  %v548_v30 = vrot.slane %v546_v60, 4 }
  0xcf   : > { %2808 = vrot.lane.b32.xlu2 %v2787_v15, %s5909_s21  ;;  %652 = vst.msk [vmem:[#allocation2 + $0xec] sm:$0x3] %vm606_vm6, %v553_v26  ;;  %v2776_v0 = vunpack.c.l.b16 %v1611_v1  ;;  %v1712_v26 = vrot.slane %v1634_v41, 6  ;;  %v1698_v1 = vrot.slane %v1630_v21, 6  ;;  %v1697_v45 = vrot.slane %v1695_v16, 4 }
  0xd0   : > { %v1614_v15 = vsel %vm6762_vm12, %v1612_v63, %v1613_v8  ;;  %v1466_v20 = vld [vmem:[#allocation2 + $0xe4] sm:$0xe]  ;;  %649 = vst.msk [vmem:[#allocation2 + $0xe0] sm:$0x3] %vm606_vm6, %v548_v30  ;;  %v1710_v8 = vsel %vm6015_vm4, %v5703_v4, %v1709_v23  ;;  %v1640_v21 = vld [vmem:[#allocation2 + $0x74] sm:$0x3] }
  0xd1   : > { %v2777_v35 = vunpack.c.l.b16 %v1614_v15  ;;  %v1713_v56 = vsel %vm6015_vm4, %v1711_v47, %v1712_v26  ;;  %v1702_v47 = vrot.slane %v6782_v17, 6  ;;  %vm3516_vm6 = vcmask 588800  }
  0xd2   : > { %v1463_v15 = vld [vmem:[#allocation2 + $0xd8] sm:$0xe] }
  0xd3   : > { %2812 = vrot.lane.b32.xlu1 %v2789_v57, %s5909_s21  ;;  %v5700_v57 = vrot.slane %v1466_v20, 9  ;;  %v2795_v38 = vpack.c.b16 %v2777_v35, %v2776_v0  ;;  %v2834_v0 = vunpack.c.l.b16 %v1710_v8  ;;  %v2835_v35 = vunpack.c.l.b16 %v1713_v56  ;;  %v1636_v56 = vld [vmem:[#allocation2 + $0x5c] sm:$0x3] }
  0xd4   : > { %2822 = vrot.lane.b32.xlu0 %v2794_v24, %s5909_s21  ;;  %v545_v24 = vrot.slane %v544_v11, 4  ;;  %v1699_v11 = vsel %vm6015_vm4, %v1697_v45, %v1698_v1 }
  0xd5   : > { %v6919_v29 = vld [vmem:[#allocation2 + $0xe8] sm:$0xf]  ;;  %v2831_v53 = vunpack.c.l.b16 %v1699_v11  ;;  %v1719_v11 = vrot.slane %v1636_v56, 6 }
  0xd6   : > { %v1468_v10 = vld [vmem:[#allocation2 + $0xec] sm:$0x1]  ;;  %v1624_v37 = vrot.slane %v6919_v29, 5  ;;  %v547_v46 = vsel %vm6015_vm4, %v545_v24, %v546_v60 }
  0xd7   : > { %2814 = vrot.lane.b32.xlu2 %v2790_v51, %s5909_s21  ;;  %v6909_v14 = vpop.permute.xlu2 %2652  ;;  %v1627_v40 = vrot.slane %v1468_v10, 5  ;;  %v1629_v51 = vld [vmem:[#allocation2 + $0x30] sm:$0xc]  ;;  %648 = vst.msk [vmem:[#allocation2 + $0xdc] sm:$0xf] %vm334_vm0, %v547_v46  ;;  %vm3377_vm0 = vcmask 326656  }
  0xd8   : > { %v1625_v62 = vsel %vm6762_vm12, %v5700_v57, %v1624_v37  ;;  %v1626_v6 = vrot.slane %v1624_v37, 4  ;;  %v1465_v10 = vld [vmem:[#allocation2 + $0xe0] sm:$0x1]  ;;  %v2864_v37 = vpack.c.b16 %v2835_v35, %v2834_v0  ;;  %v1730_v0 = vrot.slane %v6819_v7, 6 }
  0xd9   : > { %v6917_v61 = vpop.permute.xlu0 %2648  ;;  %v2780_v27 = vunpack.c.l.b16 %v1625_v62  ;;  %v1631_v62 = vld [vmem:[#allocation2 + $0x3c] sm:$0xc]  ;;  %v1733_v35 = vrot.slane %v1640_v21, 6 }
  0xda   : > { %v1628_v32 = vsel %vm6762_vm12, %v1626_v6, %v1627_v40  ;;  %v1620_v40 = vrot.slane %v1465_v10, 5  ;;  %v1632_v6 = vld [vmem:[#allocation2 + $0x44] sm:$0x3]  ;;  %v1732_v10 = vrot.slane %v1730_v0, 4 }
  0xdb   : > { %2818 = vrot.lane.b32.xlu1 %v2792_v28, %s5909_s21  ;;  %v2781_v44 = vunpack.c.l.b16 %v1628_v32  ;;  %v5701_v28 = vrot.slane %v1629_v51, 10  ;;  %v5702_v32 = vrot.slane %v1631_v62, 10  ;;  %v1705_v26 = vrot.slane %v1632_v6, 6 }
  0xdd   : > { %v2797_v63 = vpack.c.b16 %v2781_v44, %v2780_v27  ;;  %v1696_v2 = vsel %vm6015_vm4, %v5701_v28, %v1695_v16  ;;  %v1639_v27 = vld [vmem:[#allocation2 + $0x6c] sm:$0xc]  ;;  %v1635_v44 = vld [vmem:[#allocation2 + $0x54] sm:$0xc]  ;;  %v1703_v1 = vsel %vm6015_vm4, %v5702_v32, %v1702_v47  ;;  %v1638_v32 = vld [vmem:[#allocation2 + $0x68] sm:$0x3] }
  0xde   : > { %v2830_v20 = vunpack.c.l.b16 %v1696_v2  ;;  %v6948_v57 = vld [vmem:[#allocation2 + $0xdc] sm:$0xf]  ;;  %v5706_v28 = vrot.slane %v1639_v27, 10  ;;  %v5704_v2 = vrot.slane %v1635_v44, 10  ;;  %v1726_v56 = vrot.slane %v1638_v32, 6 }
  0xdf   : > { %2820 = vrot.lane.b32.xlu2 %v2793_v25, %s5909_s21  ;;  %v6929_v55 = vpop.permute.xlu1 %2642  ;;  %2828 = vrot.lane.b32.xlu0 %v2797_v63, %s5909_s21  ;;  %v5699_v25 = vrot.slane %v1463_v15, 9  ;;  %v1617_v22 = vrot.slane %v6948_v57, 5  ;;  %v1704_v63 = vrot.slane %v1702_v47, 4  ;;  %v2832_v15 = vunpack.c.l.b16 %v1703_v1  ;;  %v1645_v47 = vld [vmem:[#allocation2 + $0x90] sm:$0xc] }
  0xe0   : > { %v2862_v41 = vpack.c.b16 %v2831_v53, %v2830_v20  ;;  %v1716_v20 = vrot.slane %v6773_v54, 6  ;;  %v1731_v53 = vsel %vm6015_vm4, %v5706_v28, %v1730_v0  ;;  %v1646_v1 = vld [vmem:[#allocation2 + $0x98] sm:$0x3] }
  0xe1   : > { %v6927_v39 = vpop.permute.xlu2 %2658  ;;  %v1618_v24 = vsel %vm6762_vm12, %v5699_v25, %v1617_v22  ;;  %v1619_v23 = vrot.slane %v1617_v22, 4  ;;  %v1706_v25 = vsel %vm6015_vm4, %v1704_v63, %v1705_v26  ;;  %v5709_v63 = vrot.slane %v1645_v47, 10  ;;  %v1643_v47 = vld [vmem:[#allocation2 + $0x84] sm:$0xc] }
  0xe2   : > { %v6940_v42 = vpop.permute.xlu0 %2654  ;;  %v2778_v4 = vunpack.c.l.b16 %v1618_v24  ;;  %v2833_v22 = vunpack.c.l.b16 %v1706_v25  ;;  %v1717_v24 = vsel %vm6015_vm4, %v5704_v2, %v1716_v20  ;;  %v1641_v2 = vld [vmem:[#allocation2 + $0x78] sm:$0xc] }
  0xe3   : > { %2824 = vrot.lane.b32.xlu1 %v2795_v38, %s5909_s21  ;;  %9647 = vst [vmem:[#allocation4_spill] sm:$0xff] %v6940_v42  ;;  %v1621_v51 = vsel %vm6762_vm12, %v1619_v23, %v1620_v40  ;;  %v1718_v23 = vrot.slane %v1716_v20, 4  ;;  %v2836_v62 = vunpack.c.l.b16 %v1717_v24 }
  0xe4   : > { %v2779_v30 = vunpack.c.l.b16 %v1621_v51  ;;  %v1637_v51 = vld [vmem:[#allocation2 + $0x60] sm:$0xc] }
  0xe5   : > { %v1720_v54 = vsel %vm6015_vm4, %v1718_v23, %v1719_v11  ;;  %v5705_v44 = vrot.slane %v1637_v51, 10 }
  0xe6   : > { %v2796_v8 = vpack.c.b16 %v2779_v30, %v2778_v4  ;;  %v1734_v4 = vsel %vm6015_vm4, %v1732_v10, %v1733_v35  ;;  %v2837_v27 = vunpack.c.l.b16 %v1720_v54 }
  0xe7   : > { %2882 = vrot.lane.b32.xlu0 %v2864_v37, %s5910_s22  ;;  %v2840_v37 = vunpack.c.l.b16 %v1731_v53  ;;  %v2841_v6 = vunpack.c.l.b16 %v1734_v4  ;;  %v1642_v53 = vld [vmem:[#allocation2 + $0x80] sm:$0x3]  ;;  %v1737_v4 = vrot.slane %v6793_v48, 6  ;;  %v1644_v48 = vld [vmem:[#allocation2 + $0x8c] sm:$0x3] }
  0xe8   : > { %2826 = vrot.lane.b32.xlu2 %v2796_v8, %s5909_s21  ;;  %v2865_v26 = vpack.c.b16 %v2837_v27, %v2836_v62  ;;  %v1723_v8 = vrot.slane %v6807_v34, 6  ;;  %v1740_v54 = vrot.slane %v1642_v53, 6 }
  0xe9   : > { %v6952_v60 = vpop.permute.xlu2 %2664  ;;  %v6955_v38 = vpop.permute.xlu1 %2650  ;;  %v2867_v21 = vpack.c.b16 %v2841_v6, %v2840_v37  ;;  %v1754_v37 = vrot.slane %v1646_v1, 6  ;;  %v1739_v32 = vrot.slane %v1737_v4, 4 }
  0xea   : > { %9648 = vst [vmem:[#allocation5_spill] sm:$0xff] %v6955_v38  ;;  %v1724_v0 = vsel %vm6015_vm4, %v5705_v44, %v1723_v8  ;;  %v1725_v35 = vrot.slane %v1723_v8, 4 }
  0xeb   : > { %2878 = vrot.lane.b32.xlu1 %v2862_v41, %s5910_s22  ;;  %v2863_v41 = vpack.c.b16 %v2833_v22, %v2832_v15  ;;  %v1751_v15 = vrot.slane %v6843_v50, 6  ;;  %v2838_v20 = vunpack.c.l.b16 %v1724_v0  ;;  %v1744_v0 = vrot.slane %v6831_v33, 6 }
  0xec   : > { %v6959_v46 = vpop.permute.xlu0 %2660  ;;  %v1727_v10 = vsel %vm6015_vm4, %v1725_v35, %v1726_v56  ;;  %v1741_v56 = vsel %vm6015_vm4, %v1739_v32, %v1740_v54  ;;  %v1651_v35 = vld [vmem:[#allocation2 + $0xb4] sm:$0xc] }
  0xed   : > { %9649 = vst [vmem:[#allocation6_spill] sm:$0xff] %v6959_v46  ;;  %v1752_v11 = vsel %vm6015_vm4, %v5709_v63, %v1751_v15  ;;  %v1753_v22 = vrot.slane %v1751_v15, 4  ;;  %v2839_v24 = vunpack.c.l.b16 %v1727_v10  ;;  %v2843_v63 = vunpack.c.l.b16 %v1741_v56  ;;  %v1647_v10 = vld [vmem:[#allocation2 + $0x9c] sm:$0xc] }
  0xee   : > { %v2846_v23 = vunpack.c.l.b16 %v1752_v11  ;;  %v5708_v15 = vrot.slane %v1643_v47, 10  ;;  %v1746_v53 = vrot.slane %v1744_v0, 4 }
  0xef   : > { %2888 = vrot.lane.b32.xlu0 %v2867_v21, %s5910_s22  ;;  %v1755_v6 = vsel %vm6015_vm4, %v1753_v22, %v1754_v37  ;;  %v2866_v51 = vpack.c.b16 %v2839_v24, %v2838_v20  ;;  %v1652_v20 = vld [vmem:[#allocation2 + $0xbc] sm:$0x3] }
  0xf0   : > { %2880 = vrot.lane.b32.xlu2 %v2863_v41, %s5910_s22  ;;  %v5707_v41 = vrot.slane %v1641_v2, 10  ;;  %v2847_v27 = vunpack.c.l.b16 %v1755_v6  ;;  %v1747_v2 = vrot.slane %v1644_v48, 6  ;;  %v1745_v22 = vsel %vm6015_vm4, %v5708_v15, %v1744_v0  ;;  %v1649_v0 = vld [vmem:[#allocation2 + $0xa8] sm:$0xc] }
  0xf1   : > { %v6966_v16 = vpop.permute.xlu2 %2718  ;;  %v2844_v24 = vunpack.c.l.b16 %v1745_v22  ;;  %v1772_v6 = vrot.slane %v6879_v31, 6  ;;  %v1775_v54 = vrot.slane %v1652_v20, 6  ;;  %v1650_v20 = vld [vmem:[#allocation2 + $0xb0] sm:$0x3] }
  0xf2   : > { %9650 = vst [vmem:[#allocation7_spill] sm:$0xff] %v6966_v16  ;;  %v1738_v21 = vsel %vm6015_vm4, %v5707_v41, %v1737_v4  ;;  %v2870_v44 = vpack.c.b16 %v2847_v27, %v2846_v23  ;;  %v5712_v23 = vrot.slane %v1651_v35, 10  ;;  %v1648_v41 = vld [vmem:[#allocation2 + $0xa4] sm:$0x3]  ;;  %v1748_v4 = vsel %vm6015_vm4, %v1746_v53, %v1747_v2 }
  0xf3   : > { %v6972_v45 = vpop.permute.xlu1 %2656  ;;  %2884 = vrot.lane.b32.xlu1 %v2865_v26, %s5910_s22  ;;  %v2842_v8 = vunpack.c.l.b16 %v1738_v21  ;;  %v5710_v27 = vrot.slane %v1647_v10, 10  ;;  %v1758_v21 = vrot.slane %v6821_v59, 6 }
  0xf4   : > { %9651 = vst [vmem:[#allocation8_spill] sm:$0xff] %v6972_v45  ;;  %v1773_v47 = vsel %vm6015_vm4, %v5712_v23, %v1772_v6  ;;  %v3628_v45 = vld [vmem:[#allocation2 + $0x54] sm:$0xc] }
  0xf5   : > { %v2868_v11 = vpack.c.b16 %v2843_v63, %v2842_v8  ;;  %v1761_v8 = vrot.slane %v1648_v41, 6  ;;  %v2852_v56 = vunpack.c.l.b16 %v1773_v47  ;;  %v1759_v63 = vsel %vm6015_vm4, %v5710_v27, %v1758_v21 }
  0xf6   : > { %v6981_v40 = vpop.permute.xlu0 %2666  ;;  %v1760_v15 = vrot.slane %v1758_v21, 4  ;;  %v2848_v59 = vunpack.c.l.b16 %v1759_v63  ;;  %v5711_v41 = vrot.slane %v1649_v0, 10  ;;  %v1768_v27 = vrot.slane %v1650_v20, 6  ;;  %v1654_v0 = vld [vmem:[#allocation2 + $0xc8] sm:$0x3] }
  0xf7   : > { %9652 = vst [vmem:[#allocation9_spill] sm:$0xff] %v6981_v40  ;;  %2894 = vrot.lane.b32.xlu0 %v2870_v44, %s5910_s22  ;;  %v1774_v44 = vrot.slane %v1772_v6, 4 }
  0xf8   : > { %2886 = vrot.lane.b32.xlu2 %v2866_v51, %s5910_s22  ;;  %v2845_v51 = vunpack.c.l.b16 %v1748_v4  ;;  %v1762_v53 = vsel %vm6015_vm4, %v1760_v15, %v1761_v8  ;;  %v1658_v4 = vld [vmem:[#allocation2 + $0xe0] sm:$0x3] }
  0xf9   : > { %v6987_v30 = vpop.permute.xlu2 %2724  ;;  %v1776_v2 = vsel %vm6015_vm4, %v1774_v44, %v1775_v54  ;;  %v2849_v23 = vunpack.c.l.b16 %v1762_v53  ;;  %v1765_v54 = vrot.slane %v6855_v12, 6  ;;  %v1793_v44 = vrot.slane %v6948_v57, 6 }
  0xfa   : > { %9653 = vst [vmem:[#allocation10_spill] sm:$0xff] %v6987_v30  ;;  %v2869_v48 = vpack.c.b16 %v2845_v51, %v2844_v24  ;;  %v2853_v22 = vunpack.c.l.b16 %v1776_v2  ;;  %v1796_v15 = vrot.slane %v1658_v4, 6  ;;  %v1779_v4 = vrot.slane %v6846_v58, 6  ;;  %v1660_v58 = vld [vmem:[#allocation2 + $0xec] sm:$0x3] }
  0xfb   : > { %2890 = vrot.lane.b32.xlu1 %v2868_v11, %s5910_s22  ;;  %v1657_v11 = vld [vmem:[#allocation2 + $0xd8] sm:$0xc]  ;;  %v2871_v47 = vpack.c.b16 %v2849_v23, %v2848_v59  ;;  %v1766_v8 = vsel %vm6015_vm4, %v5711_v41, %v1765_v54  ;;  %v1767_v63 = vrot.slane %v1765_v54, 4  ;;  %v1795_v59 = vrot.slane %v1793_v44, 4  ;;  %v1655_v54 = vld [vmem:[#allocation2 + $0xcc] sm:$0xc] }
  0xfc   : > { %v2873_v51 = vpack.c.b16 %v2853_v22, %v2852_v56  ;;  %v5715_v21 = vrot.slane %v1657_v11, 10  ;;  %v2850_v56 = vunpack.c.l.b16 %v1766_v8  ;;  %v1656_v8 = vld [vmem:[#allocation2 + $0xd4] sm:$0x3] }
  0xfd   : > { %v6992_v28 = vpop.permute.xlu1 %2662  ;;  %v1769_v11 = vsel %vm6015_vm4, %v1767_v63, %v1768_v27  ;;  %v1797_v41 = vsel %vm6015_vm4, %v1795_v59, %v1796_v15  ;;  %v1808_v63 = vld [vmem:[#allocation2 + $0x44] sm:$0x7]  ;;  %v5714_v59 = vrot.slane %v1655_v54, 10 }
  0xfe   : > { %9654 = vst [vmem:[#allocation11_spill] sm:$0xff] %v6992_v28  ;;  %v6998_v25 = vpop.permute.xlu0 %2720  ;;  %v1794_v20 = vsel %vm6015_vm4, %v5715_v21, %v1793_v44  ;;  %v2851_v23 = vunpack.c.l.b16 %v1769_v11 }
  0xff   : > { %9655 = vst [vmem:[#allocation12_spill] sm:$0xff] %v6998_v25  ;;  %2900 = vrot.lane.b32.xlu0 %v2873_v51, %s5910_s22  ;;  %v2858_v22 = vunpack.c.l.b16 %v1794_v20  ;;  %v1782_v51 = vrot.slane %v1654_v0, 6  ;;  %v1659_v20 = vld [vmem:[#allocation2 + $0xe4] sm:$0xc] }
 0x100   : > { %2892 = vrot.lane.b32.xlu2 %v2869_v48, %s5910_s22  ;;  %v1653_v48 = vld [vmem:[#allocation2 + $0xc0] sm:$0xc] }
 0x101   : > { %v7005_v62 = vpop.permute.xlu2 %2730  ;;  %v5713_v53 = vrot.slane %v1653_v48, 10  ;;  %v1781_v48 = vrot.slane %v1779_v4, 4 }
 0x102   : > { %9656 = vst [vmem:[#allocation13_spill] sm:$0xff] %v7005_v62  ;;  %v2191_v62 = vld [vmem:[#allocation2 + $0x50] sm:$0x3] }
 0x103   : > { %2896 = vrot.lane.b32.xlu1 %v2871_v47, %s5910_s22  ;;  %v2859_v47 = vunpack.c.l.b16 %v1797_v41  ;;  %v1780_v27 = vsel %vm6015_vm4, %v5713_v53, %v1779_v4  ;;  %v1783_v0 = vsel %vm6015_vm4, %v1781_v48, %v1782_v51  ;;  %v1786_v41 = vrot.slane %v6891_v3, 6 }
 0x104   : > { %v2854_v15 = vunpack.c.l.b16 %v1780_v27  ;;  %v2855_v53 = vunpack.c.l.b16 %v1783_v0  ;;  %v5716_v4 = vrot.slane %v1659_v20, 10  ;;  %v1800_v51 = vrot.slane %v6919_v29, 6 }
 0x105   : > { %v7011_v26 = vpop.permute.xlu1 %2668  ;;  %v2876_v11 = vpack.c.b16 %v2859_v47, %v2858_v22  ;;  %v1881_v22 = vrot.slane %v1808_v63, 7  ;;  %v1788_v47 = vrot.slane %v1786_v41, 4  ;;  %v1803_v27 = vrot.slane %v1660_v58, 6 }
 0x106   : > { %9657 = vst [vmem:[#allocation14_spill] sm:$0xff] %v7011_v26  ;;  %v7016_v1 = vpop.permute.xlu0 %2726  ;;  %v7042_v10 = vpop.f32.mrf.mxu0  ;;  %v1801_v20 = vsel %vm6015_vm4, %v5716_v4, %v1800_v51  ;;  %v1802_v0 = vrot.slane %v1800_v51, 4  ;;  %v5876_v4 = vld [vmem:[#allocation2 + $0x34] sm:$0xf] }
 0x107   : > { %9658 = vst [vmem:[#allocation15_spill] sm:$0xff] %v7016_v1  ;;  %v7044_v24 = vpop.f32.mrf.mxu1  ;;  %2906 = vrot.lane.b32.xlu0 %v2876_v11, %s5910_s22  ;;  %v2860_v58 = vunpack.c.l.b16 %v1801_v20  ;;  %v1871_v51 = vrot.slane %v5876_v4, 7  ;;  %v1810_v20 = vld [vmem:[#allocation2 + $0x50] sm:$0x7]  ;;  %v1811_v4 = vld [vmem:[#allocation2 + $0x54] sm:$0x8] }
 0x109   : > { %v7022_v37 = vpop.permute.xlu2 %2736 }
 0x10a   : > { %9659 = vst [vmem:[#allocation16_spill] sm:$0xff] %v7022_v37 }
 0x10d   : > { %v7029_v32 = vpop.permute.xlu1 %2722 }
 0x10e   : > { %9660 = vst [vmem:[#allocation17_spill] sm:$0xff] %v7029_v32  ;;  %v7035_v35 = vpop.permute.xlu0 %2732  ;;  %v835_v21 = vpop.f32.mrf.mxu0 }
 0x10f   : > { %9661 = vst [vmem:[#allocation18_spill] sm:$0xff] %v7035_v35  ;;  %v848_v44 = vpop.f32.mrf.mxu1  ;;  %v1789_v21 = vrot.slane %v1656_v8, 6  ;;  %v2874_v8 = vpack.c.b16 %v2855_v53, %v2854_v15  ;;  %v1813_v53 = vld [vmem:[#allocation2 + $0x60] sm:$0x8] }
 0x111   : > { %v7046_v6 = vpop.permute.xlu2 %2742  ;;  %2902 = vrot.lane.b32.xlu1 %v2874_v8, %s5910_s22 }
 0x112   : > { %9662 = vst [vmem:[#allocation19_spill] sm:$0xff] %v7046_v6  ;;  %v2872_v6 = vpack.c.b16 %v2851_v23, %v2850_v56  ;;  %v1878_v23 = vrot.slane %v6782_v17, 7  ;;  %v1790_v17 = vsel %vm6015_vm4, %v1788_v47, %v1789_v21  ;;  %v1814_v21 = vld [vmem:[#allocation2 + $0x68] sm:$0x7] }
 0x114   : > { %2898 = vrot.lane.b32.xlu2 %v2872_v6, %s5910_s22  ;;  %v1787_v6 = vsel %vm6015_vm4, %v5714_v59, %v1786_v41  ;;  %v1880_v11 = vrot.slane %v1878_v23, 4  ;;  %v2857_v59 = vunpack.c.l.b16 %v1790_v17  ;;  %v1806_v41 = vld [vmem:[#allocation2 + $0x38] sm:$0x7] }
 0x115   : > { %v7053_v2 = vpop.permute.xlu1 %2728  ;;  %v1874_v17 = vrot.slane %v1806_v41, 7 }
 0x116   : > { %9663 = vst [vmem:[#allocation20_spill] sm:$0xff] %v7053_v2  ;;  %v7063_v42 = vpop.permute.xlu0 %2738  ;;  %v1807_v2 = vld [vmem:[#allocation2 + $0x3c] sm:$0x8]  ;;  %v1882_v15 = vsel %vm6615_vm9, %v1880_v11, %v1881_v22  ;;  %v5721_v22 = vrot.slane %v1813_v53, 11  ;;  %v1899_v11 = vrot.slane %v6807_v34, 7 }
 0x117   : > { %9664 = vst [vmem:[#allocation21_spill] sm:$0xff] %v7063_v42  ;;  %v5718_v44 = vrot.slane %v1807_v2, 11  ;;  %v2856_v2 = vunpack.c.l.b16 %v1787_v6 }
 0x118   : > { %v1901_v41 = vrot.slane %v1899_v11, 4 }
 0x119   : > { %v7071_v56 = vpop.permute.xlu2 %2748  ;;  %v1879_v48 = vsel %vm6615_vm9, %v5718_v44, %v1878_v23  ;;  %v2913_v44 = vunpack.c.l.b16 %v1882_v15  ;;  %v1804_v23 = vsel %vm6015_vm4, %v1802_v0, %v1803_v27  ;;  %v2875_v6 = vpack.c.b16 %v2857_v59, %v2856_v2 }
 0x11a   : > { %9665 = vst [vmem:[#allocation22_spill] sm:$0xff] %v7071_v56  ;;  %v2912_v63 = vunpack.c.l.b16 %v1879_v48  ;;  %v2861_v47 = vunpack.c.l.b16 %v1804_v23  ;;  %v1809_v56 = vld [vmem:[#allocation2 + $0x48] sm:$0x8]  ;;  %v1873_v2 = vrot.slane %v1871_v51, 4  ;;  %v1900_v59 = vsel %vm6615_vm9, %v5721_v22, %v1899_v11  ;;  %v1819_v22 = vld [vmem:[#allocation2 + $0x84] sm:$0x8] }
 0x11b   : > { %v5719_v34 = vrot.slane %v1809_v56, 11  ;;  %v1885_v23 = vrot.slane %v6791_v52, 7  ;;  %v847_v56 = vadd.f32 %v7044_v24, %v6864_v49  ;;  %v1812_v52 = vld [vmem:[#allocation2 + $0x5c] sm:$0x7] }
 0x11c   : > { %v2943_v8 = vpack.c.b16 %v2913_v44, %v2912_v63  ;;  %2904 = vrot.lane.b32.xlu2 %v2875_v6, %s5910_s22  ;;  %v2877_v15 = vpack.c.b16 %v2861_v47, %v2860_v58  ;;  %v1875_v58 = vsel %vm6615_vm9, %v1873_v2, %v1874_v17  ;;  %v2918_v44 = vunpack.c.l.b16 %v1900_v59 }
 0x11d   : > { %v7075_v54 = vpop.permute.xlu1 %2734  ;;  %v2911_v6 = vunpack.c.l.b16 %v1875_v58  ;;  %v1887_v17 = vrot.slane %v1885_v23, 4  ;;  %v851_v24 = vmax.f32 %v847_v56, 0.0  ;;  %v5720_v59 = vrot.slane %v1811_v4, 11 }
 0x11e   : > { %9666 = vst [vmem:[#allocation23_spill] sm:$0xff] %v7075_v54  ;;  %v1805_v54 = vld [vmem:[#allocation2 + $0x30] sm:$0x8]  ;;  %v7091_v42 = vpop.permute.xlu0 %2744  ;;  %2960 = vrot.lane.b32.xlu0 %v2943_v8, %s5911_s23  ;;  %2908 = vrot.lane.b32.xlu1 %v2877_v15, %s5910_s22  ;;  %v1886_v8 = vsel %vm6615_vm9, %v5719_v34, %v1885_v23  ;;  %v1815_v15 = vld [vmem:[#allocation2 + $0x6c] sm:$0x8]  ;;  %v1895_v58 = vrot.slane %v1812_v52, 7 }
 0x11f   : > { %v5717_v48 = vrot.slane %v1805_v54, 11  ;;  %9667 = vst [vmem:[#allocation24_spill] sm:$0xff] %v7091_v42  ;;  %v1902_v54 = vrot.slane %v1814_v21, 7  ;;  %v1888_v21 = vrot.slane %v1810_v20, 7  ;;  %v2914_v11 = vunpack.c.l.b16 %v1886_v8  ;;  %v1820_v20 = vld [vmem:[#allocation2 + $0x8c] sm:$0x7] }
 0x120   : > { %v1816_v23 = vld [vmem:[#allocation2 + $0x74] sm:$0x7]  ;;  %853 = vst [vmem:[%s7120_s27 + $0x8] sm:$0xff] %v851_v24 }
 0x121   : > { %v1872_v27 = vsel %vm6615_vm9, %v5717_v48, %v1871_v51  ;;  %v7103_v53 = vpop.permute.xlu2 %2802  ;;  %v1903_v47 = vsel %vm6615_vm9, %v1901_v41, %v1902_v54  ;;  %v834_v48 = vadd.f32 %v7042_v10, %v6864_v49  ;;  %v1889_v2 = vsel %vm6615_vm9, %v1887_v17, %v1888_v21  ;;  %v5877_v41 = vld [vmem:[#allocation2 + $0x58] sm:$0xf] }
 0x122   : > { %v2910_v63 = vunpack.c.l.b16 %v1872_v27  ;;  %9669 = vst [vmem:[#allocation26_spill] sm:$0xff] %v7103_v53  ;;  %v2919_v51 = vunpack.c.l.b16 %v1903_v47  ;;  %v2915_v54 = vunpack.c.l.b16 %v1889_v2  ;;  %v1892_v34 = vrot.slane %v5877_v41, 7 }
 0x123   : > { %v850_v49 = vmax.f32 %v834_v48, 0.0  ;;  %v1923_v47 = vrot.slane %v1820_v20, 7  ;;  %v5722_v48 = vrot.slane %v1815_v15, 11  ;;  %v1817_v20 = vld [vmem:[#allocation2 + $0x78] sm:$0x8] }
 0x124   : > { %v2942_v10 = vpack.c.b16 %v2911_v6, %v2910_v63  ;;  %v2946_v27 = vpack.c.b16 %v2919_v51, %v2918_v44  ;;  %v5724_v63 = vrot.slane %v1819_v22, 11  ;;  %v1920_v6 = vrot.slane %v6831_v33, 7 }
 0x125   : > { %v7097_v0 = vpop.permute.xlu1 %2740  ;;  %852 = vst [vmem:[%s7120_s27] sm:$0xff] %v850_v49  ;;  %v2944_v44 = vpack.c.b16 %v2915_v54, %v2914_v11  ;;  %v1893_v21 = vsel %vm6615_vm9, %v5720_v59, %v1892_v34  ;;  %v1894_v4 = vrot.slane %v1892_v34, 4  ;;  %v1906_v51 = vrot.slane %v6819_v7, 7  ;;  %v1818_v54 = vld [vmem:[#allocation2 + $0x80] sm:$0x7]  ;;  %v1825_v59 = vld [vmem:[#allocation2 + $0xa8] sm:$0x8] }
 0x126   : > { %9668 = vst [vmem:[#allocation25_spill] sm:$0xff] %v7097_v0  ;;  %2958 = vrot.lane.b32.xlu2 %v2942_v10, %s5911_s23  ;;  %v7128_v56 = vpop.permute.xlu0 %2798  ;;  %2966 = vrot.lane.b32.xlu0 %v2946_v27, %s5911_s23  ;;  %v2916_v8 = vunpack.c.l.b16 %v1893_v21  ;;  %v1921_v17 = vsel %vm6615_vm9, %v5724_v63, %v1920_v6  ;;  %v1922_v52 = vrot.slane %v1920_v6, 4  ;;  %v1909_v22 = vrot.slane %v1816_v23, 7  ;;  %v1821_v23 = vld [vmem:[#allocation2 + $0x90] sm:$0x8] }
 0x127   : > { %9670 = vst [vmem:[#allocation27_spill] sm:$0xff] %v7128_v56  ;;  %v1896_v10 = vsel %vm6615_vm9, %v1894_v4, %v1895_v58  ;;  %v2924_v49 = vunpack.c.l.b16 %v1921_v17  ;;  %v1907_v11 = vsel %vm6615_vm9, %v5722_v48, %v1906_v51  ;;  %v1908_v24 = vrot.slane %v1906_v51, 4  ;;  %2962 = vrot.lane.b32.xlu1 %v2944_v44, %s5911_s23  ;;  %v1826_v58 = vld [vmem:[#allocation2 + $0xb0] sm:$0x7]  ;;  %v1822_v21 = vld [vmem:[#allocation2 + $0x98] sm:$0x7] }
 0x128   : > { %v2917_v7 = vunpack.c.l.b16 %v1896_v10  ;;  %v1924_v27 = vsel %vm6615_vm9, %v1922_v52, %v1923_v47  ;;  %v2920_v2 = vunpack.c.l.b16 %v1907_v11  ;;  %v5723_v48 = vrot.slane %v1817_v20, 11  ;;  %v5878_v51 = vld [vmem:[#allocation2 + $0x7c] sm:$0xf]  ;;  %v2006_v56 = vld [vmem:[#allocation2 + $0xa8] sm:$0xe] }
 0x129   : > { %v7142_v15 = vpop.permute.xlu2 %2808  ;;  %v2925_v41 = vunpack.c.l.b16 %v1924_v27  ;;  %v1910_v34 = vsel %vm6615_vm9, %v1908_v24, %v1909_v22  ;;  %v1913_v44 = vrot.slane %v5878_v51, 7  ;;  %v1916_v17 = vrot.slane %v1818_v54, 7 }
 0x12a   : > { %9672 = vst [vmem:[#allocation29_spill] sm:$0xff] %v7142_v15  ;;  %v2945_v63 = vpack.c.b16 %v2917_v7, %v2916_v8  ;;  %v2921_v6 = vunpack.c.l.b16 %v1910_v34  ;;  %v5727_v10 = vrot.slane %v1825_v59, 11  ;;  %v1941_v52 = vrot.slane %v6855_v12, 7  ;;  %v1823_v59 = vld [vmem:[#allocation2 + $0x9c] sm:$0x8] }
 0x12b   : > { %v2949_v4 = vpack.c.b16 %v2925_v41, %v2924_v49  ;;  %v1944_v11 = vrot.slane %v1826_v58, 7  ;;  %v5725_v27 = vrot.slane %v1821_v23, 11  ;;  %v1914_v8 = vsel %vm6615_vm9, %v5723_v48, %v1913_v44  ;;  %v1824_v23 = vld [vmem:[#allocation2 + $0xa4] sm:$0x7]  ;;  %v1831_v48 = vld [vmem:[#allocation2 + $0xcc] sm:$0x8] }
 0x12c   : > { %v2947_v47 = vpack.c.b16 %v2921_v6, %v2920_v2  ;;  %v1915_v22 = vrot.slane %v1913_v44, 4  ;;  %v1927_v24 = vrot.slane %v6843_v50, 7  ;;  %v1930_v49 = vrot.slane %v1822_v21, 7  ;;  %v1832_v21 = vld [vmem:[#allocation2 + $0xd4] sm:$0x7] }
 0x12d   : > { %v7136_v33 = vpop.permute.xlu1 %2746  ;;  %v2922_v20 = vunpack.c.l.b16 %v1914_v8  ;;  %v1942_v7 = vsel %vm6615_vm9, %v5727_v10, %v1941_v52  ;;  %v1943_v54 = vrot.slane %v1941_v52, 4  ;;  %v1827_v10 = vld [vmem:[#allocation2 + $0xb4] sm:$0x8]  ;;  %v2012_v15 = vld [vmem:[#allocation2 + $0xc0] sm:$0xe] }
 0x12e   : > { %9671 = vst [vmem:[#allocation28_spill] sm:$0xff] %v7136_v33  ;;  %2964 = vrot.lane.b32.xlu2 %v2945_v63, %s5911_s23  ;;  %2972 = vrot.lane.b32.xlu0 %v2949_v4, %s5911_s23  ;;  %v7157_v2 = vpop.permute.xlu0 %2804  ;;  %v1917_v12 = vsel %vm6615_vm9, %v1915_v22, %v1916_v17  ;;  %v2930_v41 = vunpack.c.l.b16 %v1942_v7  ;;  %v1928_v34 = vsel %vm6615_vm9, %v5725_v27, %v1927_v24  ;;  %v1929_v58 = vrot.slane %v1927_v24, 4  ;;  %v2005_v33 = vld [vmem:[#allocation2 + $0xa4] sm:$0x1] }
 0x12f   : > { %9673 = vst [vmem:[#allocation30_spill] sm:$0xff] %v7157_v2  ;;  %2968 = vrot.lane.b32.xlu1 %v2947_v47, %s5911_s23  ;;  %v2923_v50 = vunpack.c.l.b16 %v1917_v12  ;;  %v1945_v63 = vsel %vm6615_vm9, %v1943_v54, %v1944_v11  ;;  %v2926_v6 = vunpack.c.l.b16 %v1928_v34  ;;  %v5726_v17 = vrot.slane %v1823_v59, 11  ;;  %v5879_v47 = vld [vmem:[#allocation2 + $0xa0] sm:$0xf]  ;;  %v1828_v34 = vld [vmem:[#allocation2 + $0xbc] sm:$0x7] }
 0x130   : > { %v2931_v51 = vunpack.c.l.b16 %v1945_v63  ;;  %v1931_v44 = vsel %vm6615_vm9, %v1929_v58, %v1930_v49  ;;  %v1934_v22 = vrot.slane %v5879_v47, 7  ;;  %v1937_v24 = vrot.slane %v1824_v23, 7 }
 0x131   : > { %v7170_v52 = vpop.permute.xlu2 %2814  ;;  %v2948_v27 = vpack.c.b16 %v2923_v50, %v2922_v20  ;;  %v2927_v8 = vunpack.c.l.b16 %v1931_v44  ;;  %v5730_v11 = vrot.slane %v1831_v48, 11  ;;  %v1962_v54 = vrot.slane %v6891_v3, 7 }
 0x132   : > { %9675 = vst [vmem:[#allocation32_spill] sm:$0xff] %v7170_v52  ;;  %v2952_v7 = vpack.c.b16 %v2931_v51, %v2930_v41  ;;  %v1965_v12 = vrot.slane %v1832_v21, 7  ;;  %v1935_v49 = vsel %vm6615_vm9, %v5726_v17, %v1934_v22  ;;  %v1936_v59 = vrot.slane %v1934_v22, 4  ;;  %v7187_v22 = vld [vmem:[#allocation2 + $0x4c] sm:$0xf] }
 0x133   : > { %v2950_v63 = vpack.c.b16 %v2927_v8, %v2926_v6  ;;  %v5728_v58 = vrot.slane %v1827_v10, 11  ;;  %v2928_v20 = vunpack.c.l.b16 %v1935_v49  ;;  %v1963_v23 = vsel %vm6615_vm9, %v5730_v11, %v1962_v54  ;;  %v1829_v6 = vld [vmem:[#allocation2 + $0xc0] sm:$0x8]  ;;  %v1982_v8 = vld [vmem:[#allocation2 + $0x48] sm:$0xe] }
 0x134   : > { %v1964_v41 = vrot.slane %v1962_v54, 4  ;;  %v1948_v50 = vrot.slane %v6879_v31, 7  ;;  %v1938_v3 = vsel %vm6615_vm9, %v1936_v59, %v1937_v24  ;;  %v2936_v48 = vunpack.c.l.b16 %v1963_v23  ;;  %v1984_v24 = vld [vmem:[#allocation2 + $0x50] sm:$0x1]  ;;  %v1833_v59 = vld [vmem:[#allocation2 + $0xd8] sm:$0x8] }
 0x135   : > { %v7166_v4 = vpop.permute.xlu1 %2800  ;;  %v1951_v21 = vrot.slane %v1828_v34, 7  ;;  %v2929_v51 = vunpack.c.l.b16 %v1938_v3  ;;  %v5880_v34 = vld [vmem:[#allocation2 + $0xc4] sm:$0xf] }
 0x136   : > { %9674 = vst [vmem:[#allocation31_spill] sm:$0xff] %v7166_v4  ;;  %2970 = vrot.lane.b32.xlu2 %v2948_v27, %s5911_s23  ;;  %2978 = vrot.lane.b32.xlu0 %v2952_v7, %s5911_s23  ;;  %v1966_v44 = vsel %vm6615_vm9, %v1964_v41, %v1965_v12  ;;  %v1949_v17 = vsel %vm6615_vm9, %v5728_v58, %v1948_v50  ;;  %v1950_v10 = vrot.slane %v1948_v50, 4  ;;  %v1830_v27 = vld [vmem:[#allocation2 + $0xc8] sm:$0x7]  ;;  %v7189_v7 = vpop.permute.xlu0 %2810  ;;  %v5729_v12 = vrot.slane %v1829_v6, 11 }
 0x137   : > { %2974 = vrot.lane.b32.xlu1 %v2950_v63, %s5911_s23  ;;  %v2937_v47 = vunpack.c.l.b16 %v1966_v44  ;;  %v2932_v31 = vunpack.c.l.b16 %v1949_v17  ;;  %9676 = vst [vmem:[#allocation33_spill] sm:$0xff] %v7189_v7  ;;  %v2951_v11 = vpack.c.b16 %v2929_v51, %v2928_v20  ;;  %v1955_v49 = vrot.slane %v5880_v34, 7  ;;  %v1834_v63 = vld [vmem:[#allocation2 + $0xe0] sm:$0x7]  ;;  %v1835_v34 = vld [vmem:[#allocation2 + $0xe4] sm:$0x8] }
 0x138   : > { %v1952_v54 = vsel %vm6615_vm9, %v1950_v10, %v1951_v21  ;;  %v1958_v41 = vrot.slane %v1830_v27, 7  ;;  %v5733_v50 = vrot.slane %v1982_v8, 9  ;;  %v2080_v20 = vrot.slane %v7187_v22, 5  ;;  %v1987_v7 = vld [vmem:[#allocation2 + $0x5c] sm:$0x1] }
 0x139   : > { %v2955_v58 = vpack.c.b16 %v2937_v47, %v2936_v48  ;;  %v2933_v23 = vunpack.c.l.b16 %v1952_v54  ;;  %v1956_v44 = vsel %vm6615_vm9, %v5729_v12, %v1955_v49  ;;  %v1957_v17 = vrot.slane %v1955_v49, 4  ;;  %v7198_v52 = vpop.permute.xlu2 %2820  ;;  %v1836_v49 = vld [vmem:[#allocation2 + $0xec] sm:$0x7] }
 0x13a   : > { %v2083_v51 = vrot.slane %v1984_v24, 5  ;;  %9678 = vst [vmem:[#allocation35_spill] sm:$0xff] %v7198_v52  ;;  %v2934_v6 = vunpack.c.l.b16 %v1956_v44  ;;  %v5731_v48 = vrot.slane %v1833_v59, 11  ;;  %v1969_v10 = vrot.slane %v6948_v57, 7 }
 0x13b   : > { %v2953_v21 = vpack.c.b16 %v2933_v23, %v2932_v31  ;;  %v1959_v27 = vsel %vm6615_vm9, %v1957_v17, %v1958_v41  ;;  %v2081_v8 = vsel %vm6762_vm12, %v5733_v50, %v2080_v20  ;;  %v2082_v47 = vrot.slane %v2080_v20, 4  ;;  %v7211_v23 = vld [vmem:[#allocation2 + $0x70] sm:$0xf]  ;;  %v1993_v41 = vld [vmem:[#allocation2 + $0x74] sm:$0x1] }
 0x13c   : > { %v1972_v54 = vrot.slane %v1834_v63, 7  ;;  %v2935_v24 = vunpack.c.l.b16 %v1959_v27  ;;  %v2990_v12 = vunpack.c.l.b16 %v2081_v8  ;;  %v1971_v31 = vrot.slane %v1969_v10, 4  ;;  %v1985_v17 = vld [vmem:[#allocation2 + $0x54] sm:$0xe]  ;;  %v7217_v8 = vld [vmem:[#allocation2 + $0x58] sm:$0xf] }
 0x13d   : > { %v7193_v3 = vpop.permute.xlu1 %2806  ;;  %v2084_v57 = vsel %vm6762_vm12, %v2082_v47, %v2083_v51  ;;  %v1979_v27 = vrot.slane %v1836_v49, 7  ;;  %v2087_v49 = vrot.slane %v7217_v8, 5 }
 0x13e   : > { %9677 = vst [vmem:[#allocation34_spill] sm:$0xff] %v7193_v3  ;;  %2976 = vrot.lane.b32.xlu2 %v2951_v11, %s5911_s23  ;;  %2984 = vrot.lane.b32.xlu0 %v2955_v58, %s5911_s23  ;;  %v1970_v11 = vsel %vm6615_vm9, %v5731_v48, %v1969_v10  ;;  %v1991_v58 = vld [vmem:[#allocation2 + $0x6c] sm:$0xe]  ;;  %v2954_v50 = vpack.c.b16 %v2935_v24, %v2934_v6  ;;  %v2991_v63 = vunpack.c.l.b16 %v2084_v57  ;;  %v5732_v48 = vrot.slane %v1835_v34, 11 }
 0x13f   : > { %v2938_v59 = vunpack.c.l.b16 %v1970_v11  ;;  %2980 = vrot.lane.b32.xlu1 %v2953_v21, %s5911_s23  ;;  %v1973_v44 = vsel %vm6615_vm9, %v1971_v31, %v1972_v54  ;;  %v1976_v10 = vrot.slane %v6919_v29, 7  ;;  %v5736_v47 = vrot.slane %v1991_v58, 9  ;;  %v7220_v21 = vpop.permute.xlu0 %2816 }
 0x140   : > { %v2939_v20 = vunpack.c.l.b16 %v1973_v44  ;;  %v3022_v51 = vpack.c.b16 %v2991_v63, %v2990_v12  ;;  %v2101_v11 = vrot.slane %v7211_v23, 5  ;;  %v2104_v3 = vrot.slane %v1993_v41, 5  ;;  %9679 = vst [vmem:[#allocation36_spill] sm:$0xff] %v7220_v21  ;;  %v7235_v44 = vld [vmem:[#allocation2 + $0x64] sm:$0xf] }
 0x141   : > { %v1977_v54 = vsel %vm6615_vm9, %v5732_v48, %v1976_v10  ;;  %v1978_v24 = vrot.slane %v1976_v10, 4  ;;  %v5734_v31 = vrot.slane %v1985_v17, 9  ;;  %v2090_v41 = vrot.slane %v1987_v7, 5  ;;  %v2002_v7 = vld [vmem:[#allocation2 + $0x98] sm:$0x1] }
 0x142   : > { %v2956_v6 = vpack.c.b16 %v2939_v20, %v2938_v59  ;;  %v2940_v29 = vunpack.c.l.b16 %v1977_v54  ;;  %v2102_v34 = vsel %vm6762_vm12, %v5736_v47, %v2101_v11  ;;  %v2103_v12 = vrot.slane %v2101_v11, 4  ;;  %v7233_v63 = vpop.permute.xlu2 %2826  ;;  %v1990_v47 = vld [vmem:[#allocation2 + $0x68] sm:$0x1]  ;;  %v7247_v21 = vld [vmem:[#allocation2 + $0x7c] sm:$0xf] }
 0x143   : > { %v1980_v59 = vsel %vm6615_vm9, %v1978_v24, %v1979_v27  ;;  %v2996_v58 = vunpack.c.l.b16 %v2102_v34  ;;  %9681 = vst [vmem:[#allocation38_spill] sm:$0xff] %v7233_v63  ;;  %v2088_v48 = vsel %vm6762_vm12, %v5734_v31, %v2087_v49  ;;  %v2089_v10 = vrot.slane %v2087_v49, 4  ;;  %v7241_v27 = vld [vmem:[#allocation2 + $0x94] sm:$0xf] }
 0x144   : > { %v2941_v17 = vunpack.c.l.b16 %v1980_v59  ;;  %v2105_v20 = vsel %vm6762_vm12, %v2103_v12, %v2104_v3  ;;  %v2992_v54 = vunpack.c.l.b16 %v2088_v48  ;;  %v2094_v3 = vrot.slane %v7235_v44, 5  ;;  %v1994_v12 = vld [vmem:[#allocation2 + $0x78] sm:$0xe]  ;;  %v1996_v48 = vld [vmem:[#allocation2 + $0x80] sm:$0x1] }
 0x145   : > { %v7228_v57 = vpop.permute.xlu1 %2812  ;;  %v2997_v11 = vunpack.c.l.b16 %v2105_v20  ;;  %v2091_v34 = vsel %vm6762_vm12, %v2089_v10, %v2090_v41  ;;  %v2108_v10 = vrot.slane %v7247_v21, 5 }
 0x146   : > { %2982 = vrot.lane.b32.xlu2 %v2954_v50, %s5911_s23  ;;  %9680 = vst [vmem:[#allocation37_spill] sm:$0xff] %v7228_v57  ;;  %3038 = vrot.lane.b32.xlu0 %v3022_v51, %s5912_s28  ;;  %v1988_v50 = vld [vmem:[#allocation2 + $0x60] sm:$0xe]  ;;  %v2000_v51 = vld [vmem:[#allocation2 + $0x90] sm:$0xe]  ;;  %v2957_v24 = vpack.c.b16 %v2941_v17, %v2940_v29  ;;  %v2993_v49 = vunpack.c.l.b16 %v2091_v34  ;;  %v2097_v57 = vrot.slane %v1990_v47, 5 }
 0x147   : > { %2986 = vrot.lane.b32.xlu1 %v2956_v6, %s5911_s23  ;;  %v5735_v59 = vrot.slane %v1988_v50, 9  ;;  %v3025_v31 = vpack.c.b16 %v2997_v11, %v2996_v58  ;;  %v5739_v20 = vrot.slane %v2000_v51, 9  ;;  %v2096_v52 = vrot.slane %v2094_v3, 4  ;;  %v7258_v34 = vpop.permute.xlu0 %2822 }
 0x148   : > { %v2122_v6 = vrot.slane %v7241_v27, 5  ;;  %v2125_v29 = vrot.slane %v2002_v7, 5  ;;  %v3023_v17 = vpack.c.b16 %v2993_v49, %v2992_v54  ;;  %v5737_v50 = vrot.slane %v1994_v12, 9  ;;  %9682 = vst [vmem:[#allocation39_spill] sm:$0xff] %v7258_v34  ;;  %v1999_v49 = vld [vmem:[#allocation2 + $0x8c] sm:$0x1] }
 0x149   : > { %v2095_v63 = vsel %vm6762_vm12, %v5735_v59, %v2094_v3  ;;  %v2098_v58 = vsel %vm6762_vm12, %v2096_v52, %v2097_v57  ;;  %v2111_v11 = vrot.slane %v1996_v48, 5  ;;  %v2110_v59 = vrot.slane %v2108_v10, 4  ;;  %v1997_v3 = vld [vmem:[#allocation2 + $0x84] sm:$0xe]  ;;  %v7269_v48 = vld [vmem:[#allocation2 + $0xb8] sm:$0xf] }
 0x14a   : > { %v2994_v41 = vunpack.c.l.b16 %v2095_v63  ;;  %v2123_v47 = vsel %vm6762_vm12, %v5739_v20, %v2122_v6  ;;  %v2124_v51 = vrot.slane %v2122_v6, 4  ;;  %v2995_v7 = vunpack.c.l.b16 %v2098_v58  ;;  %v2009_v20 = vld [vmem:[#allocation2 + $0xb4] sm:$0xe]  ;;  %v7273_v58 = vpop.permute.xlu2 %2880 }
 0x14b   : > { %v3002_v54 = vunpack.c.l.b16 %v2123_v47  ;;  %v2109_v63 = vsel %vm6762_vm12, %v5737_v50, %v2108_v10  ;;  %v2112_v6 = vsel %vm6762_vm12, %v2110_v59, %v2111_v11  ;;  %9684 = vst [vmem:[#allocation41_spill] sm:$0xff] %v7273_v58  ;;  %v2011_v50 = vld [vmem:[#allocation2 + $0xbc] sm:$0x1]  ;;  %v5738_v34 = vrot.slane %v1997_v3, 9 }
 0x14c   : > { %v2126_v52 = vsel %vm6762_vm12, %v2124_v51, %v2125_v29  ;;  %v2998_v57 = vunpack.c.l.b16 %v2109_v63  ;;  %v3024_v10 = vpack.c.b16 %v2995_v7, %v2994_v41  ;;  %v2999_v47 = vunpack.c.l.b16 %v2112_v6  ;;  %v2003_v51 = vld [vmem:[#allocation2 + $0x9c] sm:$0xe]  ;;  %v7277_v63 = vld [vmem:[#allocation2 + $0xa0] sm:$0xf] }
 0x14d   : > { %v7267_v12 = vpop.permute.xlu1 %2818  ;;  %v2118_v4 = vrot.slane %v1999_v49, 5  ;;  %v5742_v2 = vrot.slane %v2009_v20, 9  ;;  %v5740_v6 = vrot.slane %v2003_v51, 9  ;;  %v2132_v20 = vrot.slane %v2005_v33, 5  ;;  %v7299_v33 = vld [vmem:[#allocation2 + $0xc4] sm:$0xf] }
 0x14e   : > { %2988 = vrot.lane.b32.xlu2 %v2957_v24, %s5911_s23  ;;  %3044 = vrot.lane.b32.xlu0 %v3025_v31, %s5912_s28  ;;  %v7263_v24 = vld [vmem:[#allocation2 + $0x88] sm:$0xf]  ;;  %9683 = vst [vmem:[#allocation40_spill] sm:$0xff] %v7267_v12  ;;  %v3003_v31 = vunpack.c.l.b16 %v2126_v52  ;;  %v2143_v52 = vrot.slane %v7269_v48, 5  ;;  %v3026_v11 = vpack.c.b16 %v2999_v47, %v2998_v57  ;;  %v2129_v57 = vrot.slane %v7277_v63, 5 }
 0x14f   : > { %3040 = vrot.lane.b32.xlu1 %v3023_v17, %s5912_s28  ;;  %v2115_v29 = vrot.slane %v7263_v24, 5  ;;  %v2146_v17 = vrot.slane %v2011_v50, 5  ;;  %v2018_v47 = vld [vmem:[#allocation2 + $0xd8] sm:$0xe] }
 0x150   : > { %v3028_v12 = vpack.c.b16 %v3003_v31, %v3002_v54  ;;  %v2144_v7 = vsel %vm6762_vm12, %v5742_v2, %v2143_v52  ;;  %v2145_v3 = vrot.slane %v2143_v52, 4  ;;  %v7288_v31 = vld [vmem:[#allocation2 + $0xac] sm:$0xf]  ;;  %v2131_v51 = vrot.slane %v2129_v57, 4  ;;  %v7297_v52 = vld [vmem:[#allocation2 + $0xdc] sm:$0xf] }
 0x151   : > { %v2116_v59 = vsel %vm6762_vm12, %v5738_v34, %v2115_v29  ;;  %v2117_v58 = vrot.slane %v2115_v29, 4  ;;  %v3008_v49 = vunpack.c.l.b16 %v2144_v7  ;;  %v2008_v34 = vld [vmem:[#allocation2 + $0xb0] sm:$0x1] }
 0x152   : > { %v3000_v41 = vunpack.c.l.b16 %v2116_v59  ;;  %v2147_v2 = vsel %vm6762_vm12, %v2145_v3, %v2146_v17  ;;  %v2139_v7 = vrot.slane %v2008_v34, 5  ;;  %v2164_v34 = vrot.slane %v7297_v52, 5 }
 0x153   : > { %v2119_v54 = vsel %vm6762_vm12, %v2117_v58, %v2118_v4  ;;  %v3009_v29 = vunpack.c.l.b16 %v2147_v2  ;;  %v7295_v4 = vpop.permute.xlu0 %2828  ;;  %v5741_v58 = vrot.slane %v2006_v56, 9  ;;  %v5745_v56 = vrot.slane %v2018_v47, 9 }
 0x154   : > { %v3001_v50 = vunpack.c.l.b16 %v2119_v54  ;;  %9685 = vst [vmem:[#allocation42_spill] sm:$0xff] %v7295_v4  ;;  %v2020_v54 = vld [vmem:[#allocation2 + $0xe0] sm:$0x1]  ;;  %v7307_v4 = vpop.permute.xlu2 %2886 }
 0x155   : > { %v3031_v3 = vpack.c.b16 %v3009_v29, %v3008_v49  ;;  %9687 = vst [vmem:[#allocation44_spill] sm:$0xff] %v7307_v4  ;;  %v2167_v42 = vrot.slane %v2020_v54, 5  ;;  %v2150_v49 = vrot.slane %v7299_v33, 5  ;;  %v2165_v47 = vsel %vm6762_vm12, %v5745_v56, %v2164_v34  ;;  %v7325_v56 = vld [vmem:[#allocation2 + $0x100] sm:$0xf] }
 0x156   : > { %3042 = vrot.lane.b32.xlu2 %v3024_v10, %s5912_s28  ;;  %3050 = vrot.lane.b32.xlu0 %v3028_v12, %s5912_s28  ;;  %v2130_v10 = vsel %vm6762_vm12, %v5740_v6, %v2129_v57  ;;  %v2136_v12 = vrot.slane %v7288_v31, 5  ;;  %v3027_v17 = vpack.c.b16 %v3001_v50, %v3000_v41  ;;  %v2133_v6 = vsel %vm6762_vm12, %v2131_v51, %v2132_v20  ;;  %v7305_v57 = vpop.permute.xlu1 %2824  ;;  %v2015_v51 = vld [vmem:[#allocation2 + $0xcc] sm:$0xe]  ;;  %v7327_v4 = vld [vmem:[#allocation2 + $0xe8] sm:$0xf] }
 0x157   : > { %v3004_v59 = vunpack.c.l.b16 %v2130_v10  ;;  %3046 = vrot.lane.b32.xlu1 %v3026_v11, %s5912_s28  ;;  %9686 = vst [vmem:[#allocation43_spill] sm:$0xff] %v7305_v57  ;;  %v3005_v2 = vunpack.c.l.b16 %v2133_v6  ;;  %v2014_v11 = vld [vmem:[#allocation2 + $0xc8] sm:$0x1]  ;;  %v5743_v41 = vrot.slane %v2012_v15, 9  ;;  %v2166_v29 = vrot.slane %v2164_v34, 4 }
 0x158   : > { %v2137_v10 = vsel %vm6762_vm12, %v5741_v58, %v2136_v12  ;;  %v2138_v0 = vrot.slane %v2136_v12, 4  ;;  %v7317_v6 = vld [vmem:[#allocation2 + $0xd0] sm:$0xf]  ;;  %v3014_v12 = vunpack.c.l.b16 %v2165_v47  ;;  %v2152_v54 = vrot.slane %v2150_v49, 4  ;;  %v2021_v47 = vld [vmem:[#allocation2 + $0xe4] sm:$0xe] }
 0x159   : > { %v3006_v53 = vunpack.c.l.b16 %v2137_v10  ;;  %v3029_v50 = vpack.c.b16 %v3005_v2, %v3004_v59  ;;  %v2151_v15 = vsel %vm6762_vm12, %v5743_v41, %v2150_v49  ;;  %v2017_v10 = vld [vmem:[#allocation2 + $0xd4] sm:$0x1]  ;;  %v2027_v59 = vld [vmem:[#allocation2 + $0xfc] sm:$0xe]  ;;  %v2029_v2 = vld [vmem:[#allocation2 + $0x104] sm:$0x1] }
 0x15a   : > { %v2140_v20 = vsel %vm6762_vm12, %v2138_v0, %v2139_v7  ;;  %v2168_v0 = vsel %vm6762_vm12, %v2166_v29, %v2167_v42  ;;  %v2153_v7 = vrot.slane %v2014_v11, 5  ;;  %v2157_v49 = vrot.slane %v7317_v6, 5 }
 0x15b   : > { %v3007_v58 = vunpack.c.l.b16 %v2140_v20  ;;  %v3015_v57 = vunpack.c.l.b16 %v2168_v0  ;;  %v5744_v20 = vrot.slane %v2015_v51, 9  ;;  %v5748_v35 = vrot.slane %v2027_v59, 9  ;;  %v7333_v29 = vpop.permute.xlu0 %2882  ;;  %v2023_v0 = vld [vmem:[#allocation2 + $0xec] sm:$0x1] }
 0x15c   : > { %v2154_v41 = vsel %vm6762_vm12, %v2152_v54, %v2153_v7  ;;  %9688 = vst [vmem:[#allocation45_spill] sm:$0xff] %v7333_v29  ;;  %v5746_v32 = vrot.slane %v2021_v47, 9  ;;  %v2171_v54 = vrot.slane %v7327_v4, 5  ;;  %v2194_v29 = vld [vmem:[#allocation2 + $0x60] sm:$0xc]  ;;  %v2174_v37 = vrot.slane %v2023_v0, 5 }
 0x15d   : > { %v3030_v34 = vpack.c.b16 %v3007_v58, %v3006_v53  ;;  %v3034_v42 = vpack.c.b16 %v3015_v57, %v3014_v12  ;;  %v3011_v11 = vunpack.c.l.b16 %v2154_v41  ;;  %v2185_v53 = vrot.slane %v7325_v56, 5  ;;  %v2024_v12 = vld [vmem:[#allocation2 + $0xf0] sm:$0xe]  ;;  %v7345_v41 = vpop.permute.xlu2 %2892 }
 0x15e   : > { %3048 = vrot.lane.b32.xlu2 %v3027_v17, %s5912_s28  ;;  %3056 = vrot.lane.b32.xlu0 %v3031_v3, %s5912_s28  ;;  %v3010_v17 = vunpack.c.l.b16 %v2151_v15  ;;  %v2160_v3 = vrot.slane %v2017_v10, 5  ;;  %v2188_v58 = vrot.slane %v2029_v2, 5  ;;  %v2158_v51 = vsel %vm6762_vm12, %v5744_v20, %v2157_v49  ;;  %v7339_v7 = vpop.permute.xlu1 %2878  ;;  %v7343_v10 = vld [vmem:[#allocation2 + $0xf4] sm:$0xf]  ;;  %9690 = vst [vmem:[#allocation47_spill] sm:$0xff] %v7345_v41 }
 0x15f   : > { %3052 = vrot.lane.b32.xlu1 %v3029_v50, %s5912_s28  ;;  %v2159_v15 = vrot.slane %v2157_v49, 4  ;;  %9689 = vst [vmem:[#allocation46_spill] sm:$0xff] %v7339_v7  ;;  %v2186_v50 = vsel %vm6762_vm12, %v5748_v35, %v2185_v53  ;;  %v2187_v57 = vrot.slane %v2185_v53, 4  ;;  %v3012_v20 = vunpack.c.l.b16 %v2158_v51  ;;  %v2026_v49 = vld [vmem:[#allocation2 + $0xf8] sm:$0x1] }
 0x160   : > { %v3032_v59 = vpack.c.b16 %v3011_v11, %v3010_v17  ;;  %v2172_v47 = vsel %vm6762_vm12, %v5746_v32, %v2171_v54  ;;  %v2173_v53 = vrot.slane %v2171_v54, 4  ;;  %v3020_v17 = vunpack.c.l.b16 %v2186_v50 }
 0x161   : > { %v2161_v2 = vsel %vm6762_vm12, %v2159_v15, %v2160_v3  ;;  %v2189_v35 = vsel %vm6762_vm12, %v2187_v57, %v2188_v58  ;;  %v5747_v41 = vrot.slane %v2024_v12, 9  ;;  %v2178_v3 = vrot.slane %v7343_v10, 5  ;;  %v2195_v15 = vld [vmem:[#allocation2 + $0x68] sm:$0x3] }
 0x162   : > { %v3013_v7 = vunpack.c.l.b16 %v2161_v2  ;;  %v3021_v11 = vunpack.c.l.b16 %v2189_v35  ;;  %v2175_v32 = vsel %vm6762_vm12, %v2173_v53, %v2174_v37  ;;  %v2181_v51 = vrot.slane %v2026_v49, 5  ;;  %v2192_v49 = vld [vmem:[#allocation2 + $0x54] sm:$0xc] }
 0x163   : > { %v5751_v26 = vrot.slane %v2194_v29, 10  ;;  %v3016_v2 = vunpack.c.l.b16 %v2172_v47  ;;  %v3017_v1 = vunpack.c.l.b16 %v2175_v32  ;;  %v2180_v0 = vrot.slane %v2178_v3, 4  ;;  %v7363_v29 = vpop.permute.xlu0 %2888 }
 0x164   : > { %v3033_v58 = vpack.c.b16 %v3013_v7, %v3012_v20  ;;  %v2270_v54 = vrot.slane %v7235_v44, 6  ;;  %v3037_v50 = vpack.c.b16 %v3021_v11, %v3020_v17  ;;  %v2273_v57 = vrot.slane %v2195_v15, 6  ;;  %9691 = vst [vmem:[#allocation48_spill] sm:$0xff] %v7363_v29  ;;  %v2199_v29 = vld [vmem:[#allocation2 + $0x80] sm:$0x3] }
 0x165   : > { %v2256_v37 = vrot.slane %v7187_v22, 6  ;;  %v2182_v47 = vsel %vm6762_vm12, %v2180_v0, %v2181_v51  ;;  %v2259_v20 = vrot.slane %v2191_v62, 6  ;;  %v3035_v35 = vpack.c.b16 %v3017_v1, %v3016_v2  ;;  %v2201_v0 = vld [vmem:[#allocation2 + $0x8c] sm:$0x3] }
 0x166   : > { %3054 = vrot.lane.b32.xlu2 %v3030_v34, %s5912_s28  ;;  %3062 = vrot.lane.b32.xlu0 %v3034_v42, %s5912_s28  ;;  %v2190_v34 = vld [vmem:[#allocation2 + $0x48] sm:$0xc]  ;;  %v2179_v42 = vsel %vm6762_vm12, %v5747_v41, %v2178_v3  ;;  %v2271_v7 = vsel %vm6015_vm4, %v5751_v26, %v2270_v54  ;;  %v2193_v41 = vld [vmem:[#allocation2 + $0x5c] sm:$0x3]  ;;  %v7372_v3 = vpop.permute.xlu1 %2884  ;;  %v3019_v32 = vunpack.c.l.b16 %v2182_v47  ;;  %v5750_v15 = vrot.slane %v2192_v49, 10 }
 0x167   : > { %3058 = vrot.lane.b32.xlu1 %v3032_v59, %s5912_s28  ;;  %v5749_v12 = vrot.slane %v2190_v34, 10  ;;  %v2272_v59 = vrot.slane %v2270_v54, 4  ;;  %v3018_v53 = vunpack.c.l.b16 %v2179_v42  ;;  %v2258_v11 = vrot.slane %v2256_v37, 4  ;;  %9692 = vst [vmem:[#allocation49_spill] sm:$0xff] %v7372_v3  ;;  %v2200_v34 = vld [vmem:[#allocation2 + $0x84] sm:$0xc] }
 0x168   : > { %v2263_v26 = vrot.slane %v7217_v8, 6  ;;  %v3074_v1 = vunpack.c.l.b16 %v2271_v7  ;;  %v2196_v54 = vld [vmem:[#allocation2 + $0x6c] sm:$0xc]  ;;  %v5754_v49 = vrot.slane %v2200_v34, 10  ;;  %v2277_v3 = vrot.slane %v7211_v23, 6 }
 0x169   : > { %v2257_v17 = vsel %vm6015_vm4, %v5749_v12, %v2256_v37  ;;  %v2274_v51 = vsel %vm6015_vm4, %v2272_v59, %v2273_v57  ;;  %v2260_v42 = vsel %vm6015_vm4, %v2258_v11, %v2259_v20  ;;  %v2291_v59 = vrot.slane %v7263_v24, 6 }
 0x16a   : > { %v3075_v2 = vunpack.c.l.b16 %v2274_v51  ;;  %v3070_v12 = vunpack.c.l.b16 %v2257_v17  ;;  %v3071_v37 = vunpack.c.l.b16 %v2260_v42  ;;  %v2265_v47 = vrot.slane %v2263_v26, 4 }
 0x16b   : > { %v2264_v57 = vsel %vm6015_vm4, %v5750_v15, %v2263_v26  ;;  %v3036_v7 = vpack.c.b16 %v3019_v32, %v3018_v53  ;;  %v2294_v20 = vrot.slane %v2201_v0, 6  ;;  %v2292_v17 = vsel %vm6015_vm4, %v5754_v49, %v2291_v59  ;;  %v2198_v15 = vld [vmem:[#allocation2 + $0x78] sm:$0xc] }
 0x16c   : > { %v3104_v11 = vpack.c.b16 %v3075_v2, %v3074_v1  ;;  %v2293_v42 = vrot.slane %v2291_v59, 4  ;;  %v3102_v26 = vpack.c.b16 %v3071_v37, %v3070_v12  ;;  %v3072_v34 = vunpack.c.l.b16 %v2264_v57  ;;  %v7394_v1 = vpop.permute.xlu0 %2894  ;;  %v2207_v57 = vld [vmem:[#allocation2 + $0xb0] sm:$0x3] }
 0x16d   : > { %v3080_v53 = vunpack.c.l.b16 %v2292_v17  ;;  %v2279_v32 = vrot.slane %v2277_v3, 4  ;;  %9694 = vst [vmem:[#allocation51_spill] sm:$0xff] %v7394_v1  ;;  %v2284_v12 = vrot.slane %v7247_v21, 6  ;;  %v2312_v49 = vrot.slane %v7288_v31, 6 }
 0x16e   : > { %3060 = vrot.lane.b32.xlu2 %v3033_v58, %s5912_s28  ;;  %3068 = vrot.lane.b32.xlu0 %v3037_v50, %s5912_s28  ;;  %v7378_v62 = vpop.permute.xlu2 %2898  ;;  %v2266_v58 = vrot.slane %v2193_v41, 6  ;;  %v2197_v50 = vld [vmem:[#allocation2 + $0x74] sm:$0x3]  ;;  %v5752_v41 = vrot.slane %v2196_v54, 10  ;;  %v5753_v54 = vrot.slane %v2198_v15, 10 }
 0x16f   : > { %9693 = vst [vmem:[#allocation50_spill] sm:$0xff] %v7378_v62  ;;  %3064 = vrot.lane.b32.xlu1 %v3035_v35, %s5912_s28  ;;  %v2280_v62 = vrot.slane %v2197_v50, 6  ;;  %v2295_v35 = vsel %vm6015_vm4, %v2293_v42, %v2294_v20  ;;  %v7405_v50 = vpop.permute.xlu1 %2890  ;;  %v2286_v42 = vrot.slane %v2284_v12, 4  ;;  %v2204_v15 = vld [vmem:[#allocation2 + $0x9c] sm:$0xc] }
 0x170   : > { %v2267_v51 = vsel %vm6015_vm4, %v2265_v47, %v2266_v58  ;;  %v2206_v58 = vld [vmem:[#allocation2 + $0xa8] sm:$0xc]  ;;  %v3081_v2 = vunpack.c.l.b16 %v2295_v35  ;;  %v2278_v0 = vsel %vm6015_vm4, %v5752_v41, %v2277_v3  ;;  %v2287_v47 = vrot.slane %v2199_v29, 6  ;;  %9696 = vst [vmem:[#allocation53_spill] sm:$0xff] %v7405_v50  ;;  %v2203_v3 = vld [vmem:[#allocation2 + $0x98] sm:$0x3] }
 0x171   : > { %v3073_v25 = vunpack.c.l.b16 %v2267_v51  ;;  %v2281_v37 = vsel %vm6015_vm4, %v2279_v32, %v2280_v62  ;;  %v2202_v51 = vld [vmem:[#allocation2 + $0x90] sm:$0xc]  ;;  %v3076_v17 = vunpack.c.l.b16 %v2278_v0  ;;  %v2285_v29 = vsel %vm6015_vm4, %v5753_v54, %v2284_v12 }
 0x172   : > { %v3107_v41 = vpack.c.b16 %v3081_v2, %v3080_v53  ;;  %v2314_v62 = vrot.slane %v2312_v49, 4  ;;  %v2315_v35 = vrot.slane %v2207_v57, 6  ;;  %v2288_v32 = vsel %vm6015_vm4, %v2286_v42, %v2287_v47  ;;  %v2213_v57 = vld [vmem:[#allocation2 + $0xd4] sm:$0x3] }
 0x173   : > { %v3103_v20 = vpack.c.b16 %v3073_v25, %v3072_v34  ;;  %v5755_v1 = vrot.slane %v2202_v51, 10  ;;  %v2301_v50 = vrot.slane %v2203_v3, 6  ;;  %v2205_v25 = vld [vmem:[#allocation2 + $0xa4] sm:$0x3]  ;;  %v5756_v53 = vrot.slane %v2204_v15, 10 }
 0x174   : > { %v2305_v2 = vrot.slane %v7277_v63, 6  ;;  %v3078_v0 = vunpack.c.l.b16 %v2285_v29  ;;  %v3079_v54 = vunpack.c.l.b16 %v2288_v32  ;;  %v2308_v42 = vrot.slane %v2205_v25, 6  ;;  %v2208_v29 = vld [vmem:[#allocation2 + $0xb4] sm:$0xc]  ;;  %v2209_v32 = vld [vmem:[#allocation2 + $0xbc] sm:$0x3] }
 0x175   : > { %v2210_v25 = vld [vmem:[#allocation2 + $0xc0] sm:$0xc] }
 0x176   : > { %3066 = vrot.lane.b32.xlu2 %v3036_v7, %s5912_s28  ;;  %3122 = vrot.lane.b32.xlu0 %v3104_v11, %s5913_s29  ;;  %v7403_v59 = vpop.permute.xlu2 %2904  ;;  %v5757_v7 = vrot.slane %v2206_v58, 10  ;;  %v3077_v11 = vunpack.c.l.b16 %v2281_v37  ;;  %v2298_v58 = vrot.slane %v7241_v27, 6  ;;  %v2212_v37 = vld [vmem:[#allocation2 + $0xcc] sm:$0xc]  ;;  %v2307_v3 = vrot.slane %v2305_v2, 4 }
 0x177   : > { %9695 = vst [vmem:[#allocation52_spill] sm:$0xff] %v7403_v59  ;;  %3118 = vrot.lane.b32.xlu1 %v3102_v26, %s5913_s29  ;;  %v2316_v26 = vsel %vm6015_vm4, %v2314_v62, %v2315_v35  ;;  %v7426_v35 = vpop.permute.xlu0 %2900  ;;  %v2322_v59 = vrot.slane %v2209_v32, 6 }
 0x178   : > { %v2313_v34 = vsel %vm6015_vm4, %v5757_v7, %v2312_v49  ;;  %v2300_v12 = vrot.slane %v2298_v58, 4  ;;  %v3105_v47 = vpack.c.b16 %v3077_v11, %v3076_v17  ;;  %v2299_v51 = vsel %vm6015_vm4, %v5755_v1, %v2298_v58  ;;  %9698 = vst [vmem:[#allocation55_spill] sm:$0xff] %v7426_v35 }
 0x179   : > { %v3086_v49 = vunpack.c.l.b16 %v2313_v34  ;;  %v3087_v7 = vunpack.c.l.b16 %v2316_v26  ;;  %v5760_v17 = vrot.slane %v2212_v37, 10  ;;  %v2333_v1 = vrot.slane %v7317_v6, 6  ;;  %v7432_v34 = vpop.permute.xlu1 %2896 }
 0x17a   : > { %v2302_v15 = vsel %vm6015_vm4, %v2300_v12, %v2301_v50  ;;  %v2336_v11 = vrot.slane %v2213_v57, 6  ;;  %v3106_v58 = vpack.c.b16 %v3079_v54, %v3078_v0  ;;  %9699 = vst [vmem:[#allocation56_spill] sm:$0xff] %v7432_v34  ;;  %v2309_v26 = vsel %vm6015_vm4, %v2307_v3, %v2308_v42 }
 0x17b   : > { %v3083_v50 = vunpack.c.l.b16 %v2302_v15  ;;  %v2335_v12 = vrot.slane %v2333_v1, 4  ;;  %v5758_v35 = vrot.slane %v2208_v29, 10  ;;  %v2319_v57 = vrot.slane %v7269_v48, 6  ;;  %v2219_v15 = vld [vmem:[#allocation2 + $0xf8] sm:$0x3] }
 0x17c   : > { %v2334_v0 = vsel %vm6015_vm4, %v5760_v17, %v2333_v1  ;;  %v3085_v3 = vunpack.c.l.b16 %v2309_v26  ;;  %v2354_v17 = vrot.slane %v7343_v10, 6  ;;  %v2214_v26 = vld [vmem:[#allocation2 + $0xd8] sm:$0xc] }
 0x17d   : > { %v2337_v54 = vsel %vm6015_vm4, %v2335_v12, %v2336_v11  ;;  %v2321_v42 = vrot.slane %v2319_v57, 4  ;;  %v3092_v1 = vunpack.c.l.b16 %v2334_v0 }
 0x17e   : > { %3120 = vrot.lane.b32.xlu2 %v3103_v20, %s5913_s29  ;;  %3128 = vrot.lane.b32.xlu0 %v3107_v41, %s5913_s29  ;;  %v2306_v20 = vsel %vm6015_vm4, %v5756_v53, %v2305_v2  ;;  %v3082_v41 = vunpack.c.l.b16 %v2299_v51  ;;  %v2218_v53 = vld [vmem:[#allocation2 + $0xf0] sm:$0xc]  ;;  %v3110_v2 = vpack.c.b16 %v3087_v7, %v3086_v49  ;;  %v2326_v51 = vrot.slane %v7299_v33, 6 }
 0x17f   : > { %3124 = vrot.lane.b32.xlu1 %v3105_v47, %s5913_s29  ;;  %v3084_v37 = vunpack.c.l.b16 %v2306_v20  ;;  %v5759_v47 = vrot.slane %v2210_v25, 10  ;;  %v5763_v34 = vrot.slane %v2218_v53, 10  ;;  %v2320_v7 = vsel %vm6015_vm4, %v5758_v35, %v2319_v57  ;;  %v7451_v12 = vpop.permute.xlu0 %2906 }
 0x180   : > { %v7424_v62 = vpop.permute.xlu2 %2958  ;;  %v3108_v49 = vpack.c.b16 %v3083_v50, %v3082_v41  ;;  %v2328_v20 = vrot.slane %v2326_v51, 4  ;;  %v3093_v11 = vunpack.c.l.b16 %v2337_v54  ;;  %v2323_v32 = vsel %vm6015_vm4, %v2321_v42, %v2322_v59  ;;  %9701 = vst [vmem:[#allocation58_spill] sm:$0xff] %v7451_v12  ;;  %v2215_v41 = vld [vmem:[#allocation2 + $0xe0] sm:$0x3]  ;;  %v2368_v12 = vld [vmem:[#allocation2 + $0x54] sm:$0x8] }
 0x181   : > { %9697 = vst [vmem:[#allocation54_spill] sm:$0xff] %v7424_v62  ;;  %v2211_v62 = vld [vmem:[#allocation2 + $0xc8] sm:$0x3]  ;;  %v2357_v25 = vrot.slane %v2219_v15, 6  ;;  %v2356_v35 = vrot.slane %v2354_v17, 4  ;;  %v3088_v50 = vunpack.c.l.b16 %v2320_v7  ;;  %v3089_v53 = vunpack.c.l.b16 %v2323_v32 }
 0x182   : > { %v2329_v29 = vrot.slane %v2211_v62, 6  ;;  %v2355_v57 = vsel %vm6015_vm4, %v5763_v34, %v2354_v17  ;;  %v3109_v59 = vpack.c.b16 %v3085_v3, %v3084_v37  ;;  %v5761_v54 = vrot.slane %v2214_v26, 10  ;;  %v2217_v32 = vld [vmem:[#allocation2 + $0xec] sm:$0x3]  ;;  %v2369_v37 = vld [vmem:[#allocation2 + $0x5c] sm:$0x7] }
 0x183   : > { %v2358_v0 = vsel %vm6015_vm4, %v2356_v35, %v2357_v25  ;;  %v2340_v15 = vrot.slane %v7297_v52, 6  ;;  %v2343_v7 = vrot.slane %v2215_v41, 6  ;;  %v2220_v3 = vld [vmem:[#allocation2 + $0xfc] sm:$0xc]  ;;  %v3111_v17 = vpack.c.b16 %v3089_v53, %v3088_v50 }
 0x184   : > { %v3099_v25 = vunpack.c.l.b16 %v2358_v0  ;;  %v2439_v41 = vrot.slane %v7217_v8, 7  ;;  %v2221_v0 = vld [vmem:[#allocation2 + $0x104] sm:$0x3] }
 0x185   : > { %v2342_v34 = vrot.slane %v2340_v15, 4  ;;  %v2341_v26 = vsel %vm6015_vm4, %v5761_v54, %v2340_v15  ;;  %v2361_v54 = vrot.slane %v7325_v56, 6 }
 0x186   : > { %3126 = vrot.lane.b32.xlu2 %v3106_v58, %s5913_s29  ;;  %3134 = vrot.lane.b32.xlu0 %v3110_v2, %s5913_s29  ;;  %v2327_v58 = vsel %vm6015_vm4, %v5759_v47, %v2326_v51  ;;  %v2330_v2 = vsel %vm6015_vm4, %v2328_v20, %v2329_v29  ;;  %v2216_v47 = vld [vmem:[#allocation2 + $0xe4] sm:$0xc]  ;;  %v3113_v51 = vpack.c.b16 %v3093_v11, %v3092_v1  ;;  %v3098_v20 = vunpack.c.l.b16 %v2355_v57 }
 0x187   : > { %3130 = vrot.lane.b32.xlu1 %v3108_v49, %s5913_s29  ;;  %v3090_v42 = vunpack.c.l.b16 %v2327_v58  ;;  %v3091_v29 = vunpack.c.l.b16 %v2330_v2  ;;  %v2347_v49 = vrot.slane %v7327_v4, 6  ;;  %v5762_v35 = vrot.slane %v2216_v47, 10 }
 0x188   : > { %v7449_v62 = vpop.permute.xlu2 %2964  ;;  %v2344_v1 = vsel %vm6015_vm4, %v2342_v34, %v2343_v7  ;;  %v2350_v58 = vrot.slane %v2217_v32, 6  ;;  %v5766_v2 = vrot.slane %v2368_v12, 11  ;;  %v2442_v57 = vrot.slane %v2369_v37, 7  ;;  %v2366_v34 = vld [vmem:[#allocation2 + $0x48] sm:$0x8] }
 0x189   : > { %9700 = vst [vmem:[#allocation57_spill] sm:$0xff] %v7449_v62  ;;  %v7463_v62 = vpop.permute.xlu1 %2902  ;;  %v2349_v11 = vrot.slane %v2347_v49, 4  ;;  %v2441_v53 = vrot.slane %v2439_v41, 4  ;;  %v3094_v47 = vunpack.c.l.b16 %v2341_v26  ;;  %v3095_v7 = vunpack.c.l.b16 %v2344_v1 }
 0x18a   : > { %9702 = vst [vmem:[#allocation59_spill] sm:$0xff] %v7463_v62  ;;  %v5764_v62 = vrot.slane %v2220_v3, 10  ;;  %v3116_v8 = vpack.c.b16 %v3099_v25, %v3098_v20  ;;  %v2348_v12 = vsel %vm6015_vm4, %v5762_v35, %v2347_v49  ;;  %v2363_v32 = vrot.slane %v2361_v54, 4  ;;  %v2367_v20 = vld [vmem:[#allocation2 + $0x50] sm:$0x7] }
 0x18b   : > { %v2440_v37 = vsel %vm6615_vm9, %v5766_v2, %v2439_v41  ;;  %v2443_v3 = vsel %vm6615_vm9, %v2441_v53, %v2442_v57  ;;  %v2432_v49 = vrot.slane %v7187_v22, 7  ;;  %v2374_v25 = vld [vmem:[#allocation2 + $0x78] sm:$0x8]  ;;  %v3114_v35 = vpack.c.b16 %v3095_v7, %v3094_v47 }
 0x18c   : > { %v3096_v1 = vunpack.c.l.b16 %v2348_v12  ;;  %v2460_v41 = vrot.slane %v7247_v21, 7  ;;  %v3153_v57 = vunpack.c.l.b16 %v2443_v3  ;;  %v2435_v47 = vrot.slane %v2367_v20, 7  ;;  %v2373_v20 = vld [vmem:[#allocation2 + $0x74] sm:$0x7] }
 0x18d   : > { %v5769_v7 = vrot.slane %v2374_v25, 11 }
 0x18e   : > { %3132 = vrot.lane.b32.xlu2 %v3109_v59, %s5913_s29  ;;  %3140 = vrot.lane.b32.xlu0 %v3113_v51, %s5913_s29  ;;  %v3112_v59 = vpack.c.b16 %v3091_v29, %v3090_v42  ;;  %v2351_v51 = vsel %vm6015_vm4, %v2349_v11, %v2350_v58  ;;  %v2362_v42 = vsel %vm6015_vm4, %v5764_v62, %v2361_v54  ;;  %v2364_v29 = vrot.slane %v2221_v0, 6  ;;  %v2375_v58 = vld [vmem:[#allocation2 + $0x80] sm:$0x7]  ;;  %v2370_v0 = vld [vmem:[#allocation2 + $0x60] sm:$0x8] }
 0x18f   : > { %3136 = vrot.lane.b32.xlu1 %v3111_v17, %s5913_s29  ;;  %v5765_v17 = vrot.slane %v2366_v34, 11  ;;  %v3097_v2 = vunpack.c.l.b16 %v2351_v51  ;;  %v3152_v62 = vunpack.c.l.b16 %v2440_v37  ;;  %v3100_v53 = vunpack.c.l.b16 %v2362_v42  ;;  %v2371_v54 = vld [vmem:[#allocation2 + $0x68] sm:$0x7]  ;;  %v2372_v42 = vld [vmem:[#allocation2 + $0x6c] sm:$0x8] }
 0x190   : > { %v7473_v50 = vpop.permute.xlu2 %2970  ;;  %v7476_v15 = vpop.permute.xlu0 %2960  ;;  %v2365_v11 = vsel %vm6015_vm4, %v2363_v32, %v2364_v29  ;;  %v2434_v34 = vrot.slane %v2432_v49, 4  ;;  %v2462_v21 = vrot.slane %v2460_v41, 4  ;;  %v2463_v29 = vrot.slane %v2375_v58, 7  ;;  %v2381_v58 = vld [vmem:[#allocation2 + $0xa4] sm:$0x7] }
 0x191   : > { %9703 = vst [vmem:[#allocation60_spill] sm:$0xff] %v7473_v50  ;;  %v7489_v26 = vpop.permute.xlu1 %2908  ;;  %v3101_v22 = vunpack.c.l.b16 %v2365_v11  ;;  %v2433_v32 = vsel %vm6615_vm9, %v5765_v17, %v2432_v49  ;;  %v5767_v37 = vrot.slane %v2370_v0, 11  ;;  %v2449_v3 = vrot.slane %v2371_v54, 7  ;;  %v2380_v49 = vld [vmem:[#allocation2 + $0x9c] sm:$0x8] }
 0x192   : > { %9704 = vst [vmem:[#allocation61_spill] sm:$0xff] %v7476_v15  ;;  %v3183_v25 = vpack.c.b16 %v3153_v57, %v3152_v62  ;;  %v3150_v15 = vunpack.c.l.b16 %v2433_v32  ;;  %v2453_v17 = vrot.slane %v7211_v23, 7  ;;  %v2461_v0 = vsel %vm6615_vm9, %v5769_v7, %v2460_v41  ;;  %v2376_v54 = vld [vmem:[#allocation2 + $0x84] sm:$0x8]  ;;  %v3627_v50 = vld [vmem:[#allocation2 + $0x50] sm:$0x3] }
 0x193   : > { %9705 = vst [vmem:[#allocation62_spill] sm:$0xff] %v7489_v26  ;;  %v2456_v23 = vrot.slane %v2373_v20, 7  ;;  %v2484_v41 = vrot.slane %v2381_v58, 7  ;;  %v3158_v7 = vunpack.c.l.b16 %v2461_v0  ;;  %v2378_v58 = vld [vmem:[#allocation2 + $0x90] sm:$0x8] }
 0x194   : > { %v2455_v57 = vrot.slane %v2453_v17, 4  ;;  %v2379_v0 = vld [vmem:[#allocation2 + $0x98] sm:$0x7] }
 0x195   : > { %v7723_v26 = vld [vmem:[#allocation2 + $0x58] sm:$0xf] }
 0x196   : > { %3138 = vrot.lane.b32.xlu2 %v3112_v59, %s5913_s29  ;;  %3146 = vrot.lane.b32.xlu0 %v3116_v8, %s5913_s29  ;;  %v2446_v59 = vrot.slane %v7235_v44, 7  ;;  %v3115_v8 = vpack.c.b16 %v3097_v2, %v3096_v1  ;;  %v5768_v1 = vrot.slane %v2372_v42, 11 }
 0x197   : > { %3142 = vrot.lane.b32.xlu1 %v3114_v35, %s5913_s29  ;;  %v2464_v35 = vsel %vm6615_vm9, %v2462_v21, %v2463_v29  ;;  %v2467_v21 = vrot.slane %v7263_v24, 7 }
 0x198   : > { %v7497_v12 = vpop.permute.xlu2 %2976  ;;  %v7502_v51 = vpop.permute.xlu0 %2966  ;;  %v2448_v11 = vrot.slane %v2446_v59, 4  ;;  %v2447_v2 = vsel %vm6615_vm9, %v5767_v37, %v2446_v59  ;;  %v3159_v32 = vunpack.c.l.b16 %v2464_v35  ;;  %v2474_v35 = vrot.slane %v7241_v27, 7 }
 0x199   : > { %9706 = vst [vmem:[#allocation63_spill] sm:$0xff] %v7497_v12  ;;  %v2436_v12 = vsel %vm6615_vm9, %v2434_v34, %v2435_v47  ;;  %v7508_v44 = vpop.permute.xlu1 %2962  ;;  %v2377_v47 = vld [vmem:[#allocation2 + $0x8c] sm:$0x7]  ;;  %v3154_v59 = vunpack.c.l.b16 %v2447_v2  ;;  %v5771_v27 = vrot.slane %v2378_v58, 11 }
 0x19a   : > { %9707 = vst [vmem:[#allocation64_spill] sm:$0xff] %v7502_v51  ;;  %v3117_v51 = vpack.c.b16 %v3101_v22, %v3100_v53  ;;  %v2450_v62 = vsel %vm6615_vm9, %v2448_v11, %v2449_v3  ;;  %v3151_v34 = vunpack.c.l.b16 %v2436_v12  ;;  %v5772_v53 = vrot.slane %v2380_v49, 11 }
 0x19b   : > { %9708 = vst [vmem:[#allocation65_spill] sm:$0xff] %v7508_v44  ;;  %v2481_v22 = vrot.slane %v7277_v63, 7  ;;  %v3155_v37 = vunpack.c.l.b16 %v2450_v62  ;;  %v2454_v3 = vsel %vm6615_vm9, %v5768_v1, %v2453_v17  ;;  %v2457_v63 = vsel %vm6615_vm9, %v2455_v57, %v2456_v23  ;;  %v2386_v1 = vld [vmem:[#allocation2 + $0xc0] sm:$0x8]  ;;  %v3626_v44 = vld [vmem:[#allocation2 + $0x48] sm:$0xc] }
 0x19c   : > { %v2469_v11 = vrot.slane %v2467_v21, 4  ;;  %v2470_v20 = vrot.slane %v2377_v47, 7  ;;  %v3186_v17 = vpack.c.b16 %v3159_v32, %v3158_v7  ;;  %v3156_v57 = vunpack.c.l.b16 %v2454_v3  ;;  %v2383_v3 = vld [vmem:[#allocation2 + $0xb0] sm:$0x7] }
 0x19d   : > { %v2483_v12 = vrot.slane %v2481_v22, 4  ;;  %v2482_v24 = vsel %vm6615_vm9, %v5772_v53, %v2481_v22  ;;  %v3184_v62 = vpack.c.b16 %v3155_v37, %v3154_v59  ;;  %v3157_v23 = vunpack.c.l.b16 %v2457_v63  ;;  %v2382_v37 = vld [vmem:[#allocation2 + $0xa8] sm:$0x8] }
 0x19e   : > { %3144 = vrot.lane.b32.xlu2 %v3115_v8, %s5913_s29  ;;  %3200 = vrot.lane.b32.xlu0 %v3183_v25, %s5914_s10  ;;  %v5770_v8 = vrot.slane %v2376_v54, 11  ;;  %v3182_v25 = vpack.c.b16 %v3151_v34, %v3150_v15  ;;  %v2387_v54 = vld [vmem:[#allocation2 + $0xc8] sm:$0x7]  ;;  %v2502_v15 = vrot.slane %v7299_v33, 7  ;;  %v2471_v22 = vsel %vm6615_vm9, %v2469_v11, %v2470_v20 }
 0x19f   : > { %3148 = vrot.lane.b32.xlu1 %v3117_v51, %s5913_s29  ;;  %v2485_v49 = vsel %vm6615_vm9, %v2483_v12, %v2484_v41  ;;  %v3164_v51 = vunpack.c.l.b16 %v2482_v24  ;;  %v2476_v41 = vrot.slane %v2474_v35, 4  ;;  %v2477_v47 = vrot.slane %v2379_v0, 7 }
 0x1a0   : > { %v7522_v29 = vpop.permute.xlu2 %2982  ;;  %v7526_v42 = vpop.permute.xlu0 %2972  ;;  %v3165_v34 = vunpack.c.l.b16 %v2485_v49  ;;  %v2468_v53 = vsel %vm6615_vm9, %v5770_v8, %v2467_v21  ;;  %v5775_v7 = vrot.slane %v2386_v1, 11  ;;  %v2504_v32 = vrot.slane %v2502_v15, 4 }
 0x1a1   : > { %9709 = vst [vmem:[#allocation66_spill] sm:$0xff] %v7522_v29  ;;  %v7536_v2 = vpop.permute.xlu1 %2968  ;;  %v2505_v59 = vrot.slane %v2387_v54, 7  ;;  %v2488_v12 = vrot.slane %v7288_v31, 7  ;;  %v3185_v63 = vpack.c.b16 %v3157_v23, %v3156_v57  ;;  %v3160_v11 = vunpack.c.l.b16 %v2468_v53  ;;  %v2385_v57 = vld [vmem:[#allocation2 + $0xbc] sm:$0x7] }
 0x1a2   : > { %9710 = vst [vmem:[#allocation67_spill] sm:$0xff] %v7526_v42  ;;  %v3189_v8 = vpack.c.b16 %v3165_v34, %v3164_v51  ;;  %v3161_v20 = vunpack.c.l.b16 %v2471_v22  ;;  %v2478_v24 = vsel %vm6615_vm9, %v2476_v41, %v2477_v47  ;;  %v2503_v49 = vsel %vm6615_vm9, %v5775_v7, %v2502_v15  ;;  %v864_v54 = vld [vmem:[#allocation2 + $0x3c] sm:$0xe]  ;;  %v5882_v15 = vld [vmem:[#allocation2 + $0x40] sm:$0xf] }
 0x1a3   : > { %9711 = vst [vmem:[#allocation68_spill] sm:$0xff] %v7536_v2  ;;  %v5773_v58 = vrot.slane %v2382_v37, 11  ;;  %v2506_v31 = vsel %vm6615_vm9, %v2504_v32, %v2505_v59  ;;  %v2490_v0 = vrot.slane %v2488_v12, 4  ;;  %v2491_v1 = vrot.slane %v2383_v3, 7  ;;  %v2392_v47 = vld [vmem:[#allocation2 + $0xe4] sm:$0x8] }
 0x1a4   : > { %v2495_v23 = vrot.slane %v7269_v48, 7  ;;  %v2523_v34 = vrot.slane %v7327_v4, 7  ;;  %v977_v53 = vrot.slane %v5882_v15, 5  ;;  %v3187_v22 = vpack.c.b16 %v3161_v20, %v3160_v11  ;;  %v2393_v7 = vld [vmem:[#allocation2 + $0xec] sm:$0x7] }
 0x1a5   : > { %v3163_v32 = vunpack.c.l.b16 %v2478_v24  ;;  %v3170_v48 = vunpack.c.l.b16 %v2503_v49  ;;  %v3171_v59 = vunpack.c.l.b16 %v2506_v31  ;;  %v2498_v37 = vrot.slane %v2385_v57, 7  ;;  %v2388_v3 = vld [vmem:[#allocation2 + $0xcc] sm:$0x8]  ;;  %v3620_v29 = vld [vmem:[#allocation2 + $0x24] sm:$0xc] }
 0x1a6   : > { %3198 = vrot.lane.b32.xlu2 %v3182_v25, %s5914_s10  ;;  %3206 = vrot.lane.b32.xlu0 %v3186_v17, %s5914_s10  ;;  %v2475_v25 = vsel %vm6615_vm9, %v5771_v27, %v2474_v35  ;;  %v2384_v17 = vld [vmem:[#allocation2 + $0xb4] sm:$0x8]  ;;  %v2389_v35 = vld [vmem:[#allocation2 + $0xd4] sm:$0x7]  ;;  %v2489_v4 = vsel %vm6615_vm9, %v5773_v58, %v2488_v12  ;;  %v2492_v11 = vsel %vm6615_vm9, %v2490_v0, %v2491_v1  ;;  %v2497_v20 = vrot.slane %v2495_v23, 4 }
 0x1a7   : > { %3202 = vrot.lane.b32.xlu1 %v3184_v62, %s5914_s10  ;;  %v7560_v62 = vld [vmem:[#allocation2 + $0x28] sm:$0xf]  ;;  %v3162_v27 = vunpack.c.l.b16 %v2475_v25  ;;  %v5774_v41 = vrot.slane %v2384_v17, 11  ;;  %v2509_v25 = vrot.slane %v7317_v6, 7  ;;  %v866_v17 = vld [vmem:[#allocation2 + $0x44] sm:$0x1]  ;;  %v3166_v1 = vunpack.c.l.b16 %v2489_v4 }
 0x1a8   : > { %v7545_v33 = vpop.permute.xlu2 %2988  ;;  %v7548_v21 = vpop.permute.xlu0 %2978  ;;  %v5640_v15 = vrot.slane %v864_v54, 9  ;;  %v5778_v24 = vrot.slane %v2392_v47, 11  ;;  %v2525_v49 = vrot.slane %v2523_v34, 4  ;;  %v2526_v31 = vrot.slane %v2393_v7, 7 }
 0x1a9   : > { %9712 = vst [vmem:[#allocation69_spill] sm:$0xff] %v7545_v33  ;;  %v7563_v51 = vpop.permute.xlu1 %2974  ;;  %v2511_v12 = vrot.slane %v2509_v25, 4  ;;  %v2512_v58 = vrot.slane %v2389_v35, 7  ;;  %v3188_v0 = vpack.c.b16 %v3163_v32, %v3162_v27  ;;  %v3167_v6 = vunpack.c.l.b16 %v2492_v11  ;;  %v867_v35 = vld [vmem:[#allocation2 + $0x48] sm:$0xe] }
 0x1aa   : > { %9713 = vst [vmem:[#allocation70_spill] sm:$0xff] %v7548_v21  ;;  %v2390_v21 = vld [vmem:[#allocation2 + $0xd8] sm:$0x8]  ;;  %v2516_v54 = vrot.slane %v7297_v52, 7  ;;  %v979_v47 = vrot.slane %v977_v53, 4  ;;  %v3192_v2 = vpack.c.b16 %v3171_v59, %v3170_v48  ;;  %v2499_v7 = vsel %vm6615_vm9, %v2497_v20, %v2498_v37 }
 0x1ab   : > { %9714 = vst [vmem:[#allocation71_spill] sm:$0xff] %v7563_v51  ;;  %v5776_v51 = vrot.slane %v2388_v3, 11  ;;  %v2524_v27 = vsel %vm6615_vm9, %v5778_v24, %v2523_v34  ;;  %v2527_v52 = vsel %vm6615_vm9, %v2525_v49, %v2526_v31  ;;  %v2513_v48 = vsel %vm6615_vm9, %v2511_v12, %v2512_v58  ;;  %v2394_v37 = vld [vmem:[#allocation2 + $0xf0] sm:$0x8]  ;;  %v2395_v34 = vld [vmem:[#allocation2 + $0xf8] sm:$0x7] }
 0x1ac   : > { %v5777_v59 = vrot.slane %v2390_v21, 11  ;;  %v3190_v3 = vpack.c.b16 %v3167_v6, %v3166_v1  ;;  %v3169_v4 = vunpack.c.l.b16 %v2499_v7  ;;  %v2518_v11 = vrot.slane %v2516_v54, 4  ;;  %v7602_v24 = vld [vmem:[#allocation2 + $0x1c] sm:$0xf]  ;;  %v869_v21 = vld [vmem:[#allocation2 + $0x50] sm:$0x1] }
 0x1ad   : > { %v2510_v32 = vsel %vm6615_vm9, %v5776_v51, %v2509_v25  ;;  %v3176_v51 = vunpack.c.l.b16 %v2524_v27  ;;  %v3177_v25 = vunpack.c.l.b16 %v2527_v52  ;;  %9718 = vst [vmem:[#allocation75_spill] sm:$0xff] %v7602_v24  ;;  %v5883_v49 = vld [vmem:[#allocation2 + $0x4c] sm:$0xf]  ;;  %v3173_v12 = vunpack.c.l.b16 %v2513_v48  ;;  %v2396_v7 = vld [vmem:[#allocation2 + $0xfc] sm:$0x8] }
 0x1ae   : > { %3204 = vrot.lane.b32.xlu2 %v3185_v63, %s5914_s10  ;;  %3212 = vrot.lane.b32.xlu0 %v3189_v8, %s5914_s10  ;;  %v2496_v8 = vsel %vm6615_vm9, %v5774_v41, %v2495_v23  ;;  %v7585_v23 = vsel %vm6762_vm12, %v5640_v15, %v977_v53  ;;  %v2530_v53 = vrot.slane %v7343_v10, 7  ;;  %v5641_v15 = vrot.slane %v867_v35, 9  ;;  %v3618_v27 = vld [vmem:[#allocation2 + $0x18] sm:$0xc] }
 0x1af   : > { %3208 = vrot.lane.b32.xlu1 %v3187_v22, %s5914_s10  ;;  %v3168_v22 = vunpack.c.l.b16 %v2496_v8  ;;  %v984_v10 = vrot.slane %v5883_v49, 5  ;;  %v3172_v8 = vunpack.c.l.b16 %v2510_v32  ;;  %v5779_v58 = vrot.slane %v2394_v37, 11  ;;  %v3619_v37 = vld [vmem:[#allocation2 + $0x20] sm:$0x3] }
 0x1b0   : > { %v7573_v63 = vpop.permute.xlu2 %3042  ;;  %v7575_v57 = vpop.permute.xlu0 %2984  ;;  %v2533_v1 = vrot.slane %v2395_v34, 7  ;;  %v2537_v35 = vrot.slane %v7325_v56, 7  ;;  %v3710_v52 = vrot.slane %v7602_v24, 6  ;;  %v3195_v48 = vpack.c.b16 %v3177_v25, %v3176_v51 }
 0x1b1   : > { %9715 = vst [vmem:[#allocation72_spill] sm:$0xff] %v7573_v63  ;;  %v980_v63 = vrot.slane %v866_v17, 5  ;;  %v7587_v41 = vpop.permute.xlu1 %2980  ;;  %v3191_v6 = vpack.c.b16 %v3169_v4, %v3168_v22  ;;  %v7618_v32 = vsel %vm6762_vm12, %v5641_v15, %v984_v10  ;;  %v3193_v4 = vpack.c.b16 %v3173_v12, %v3172_v8  ;;  %v3614_v8 = vld [vmem:[#allocation2] sm:$0xc]  ;;  %v7633_v12 = vld [vmem:[#allocation2 + $0x10] sm:$0xf] }
 0x1b2   : > { %9716 = vst [vmem:[#allocation73_spill] sm:$0xff] %v7575_v57  ;;  %v2391_v57 = vld [vmem:[#allocation2 + $0xe0] sm:$0x7]  ;;  %v2531_v56 = vsel %vm6615_vm9, %v5779_v58, %v2530_v53  ;;  %v5780_v15 = vrot.slane %v2396_v7, 11  ;;  %v5785_v49 = vrot.slane %v3618_v27, 10  ;;  %v2539_v51 = vrot.slane %v2537_v35, 4 }
 0x1b3   : > { %9717 = vst [vmem:[#allocation74_spill] sm:$0xff] %v7587_v41  ;;  %v2519_v20 = vrot.slane %v2391_v57, 7  ;;  %v981_v17 = vsel %vm6762_vm12, %v979_v47, %v980_v63  ;;  %v2548_v57 = vunpack.c.l.b16 %v7585_v23  ;;  %v2517_v63 = vsel %vm6615_vm9, %v5777_v59, %v2516_v54  ;;  %v2397_v59 = vld [vmem:[#allocation2 + $0x104] sm:$0x7]  ;;  %v3615_v7 = vld [vmem:[#allocation2 + $0x8] sm:$0x3] }
 0x1b4   : > { %v2549_v23 = vunpack.c.l.b16 %v981_v17  ;;  %v987_v54 = vrot.slane %v869_v21, 5  ;;  %v2540_v25 = vrot.slane %v2397_v59, 7  ;;  %v3712_v21 = vrot.slane %v3710_v52, 4 }
 0x1b5   : > { %v2520_v47 = vsel %vm6615_vm9, %v2518_v11, %v2519_v20  ;;  %v3174_v11 = vunpack.c.l.b16 %v2517_v63  ;;  %v7624_v20 = vld [vmem:[#allocation2 + $0x4] sm:$0xf]  ;;  %v2550_v63 = vunpack.c.l.b16 %v7618_v32  ;;  %v9725_v27 = vrot.slane %v7560_v62, 5 }
 0x1b6   : > { %3210 = vrot.lane.b32.xlu2 %v3188_v0, %s5914_s10  ;;  %3218 = vrot.lane.b32.xlu0 %v3192_v2, %s5914_s10  ;;  %v2532_v2 = vrot.slane %v2530_v53, 4  ;;  %9722 = vst [vmem:[#allocation79_spill] sm:$0xff] %v7624_v20  ;;  %v3175_v34 = vunpack.c.l.b16 %v2520_v47  ;;  %v3696_v53 = vrot.slane %v7624_v20, 6  ;;  %v3711_v32 = vsel %vm6015_vm4, %v5785_v49, %v3710_v52 }
 0x1b7   : > { %3214 = vrot.lane.b32.xlu1 %v3190_v3, %s5914_s10  ;;  %v986_v3 = vrot.slane %v984_v10, 4  ;;  %v3713_v10 = vrot.slane %v3619_v37, 6 }
 0x1b8   : > { %v7604_v31 = vpop.permute.xlu2 %3048  ;;  %v7607_v0 = vpop.permute.xlu0 %3038  ;;  %v2534_v17 = vsel %vm6615_vm9, %v2532_v2, %v2533_v1  ;;  %v860_v2 = vld [vmem:[#allocation2 + $0x2c] sm:$0x1]  ;;  %v3194_v37 = vpack.c.b16 %v3175_v34, %v3174_v11  ;;  %v3698_v34 = vrot.slane %v3696_v53, 4 }
 0x1b9   : > { %9719 = vst [vmem:[#allocation76_spill] sm:$0xff] %v7604_v31  ;;  %v7620_v22 = vpop.permute.xlu1 %2986  ;;  %v988_v58 = vsel %vm6762_vm12, %v986_v3, %v987_v54  ;;  %v3179_v47 = vunpack.c.l.b16 %v2534_v17  ;;  %v2538_v54 = vsel %vm6615_vm9, %v5780_v15, %v2537_v35  ;;  %v2541_v3 = vsel %vm6615_vm9, %v2539_v51, %v2540_v25  ;;  %v3624_v35 = vld [vmem:[#allocation2 + $0x3c] sm:$0xc] }
 0x1ba   : > { %9720 = vst [vmem:[#allocation77_spill] sm:$0xff] %v7607_v0  ;;  %v5783_v17 = vrot.slane %v3614_v8, 10  ;;  %v966_v11 = vrot.slane %v860_v2, 5  ;;  %v3699_v0 = vrot.slane %v3615_v7, 6  ;;  %v2551_v52 = vunpack.c.l.b16 %v988_v58 }
 0x1bb   : > { %9721 = vst [vmem:[#allocation78_spill] sm:$0xff] %v7620_v22  ;;  %v7629_v22 = vpack.c.b16 %v2549_v23, %v2548_v57  ;;  %v7640_v57 = vld [vmem:[#allocation2 + $0x40] sm:$0xf]  ;;  %v965_v23 = vrot.slane %v9725_v27, 4  ;;  %v3616_v27 = vld [vmem:[#allocation2 + $0xc] sm:$0xc]  ;;  %v3180_v25 = vunpack.c.l.b16 %v2538_v54  ;;  %v3181_v8 = vunpack.c.l.b16 %v2541_v3 }
 0x1bc   : > { %9724 = vst [vmem:[#allocation81_spill] sm:$0xff] %v7640_v57  ;;  %v3731_v15 = vrot.slane %v7640_v57, 6  ;;  %v4371_v2 = vunpack.c.l.b16 %v3711_v32  ;;  %v5784_v7 = vrot.slane %v3616_v27, 10  ;;  %v3697_v58 = vsel %vm6015_vm4, %v5783_v17, %v3696_v53  ;;  %v3621_v27 = vld [vmem:[#allocation2 + $0x2c] sm:$0x3] }
 0x1bd   : > { %v5788_v41 = vrot.slane %v3624_v35, 10  ;;  %v7670_v32 = vpack.c.b16 %v2551_v52, %v2550_v63  ;;  %v9729_v53 = vrot.slane %v7560_v62, 5  ;;  %v7689_v63 = vld [vmem:[#allocation2 + $0x20] sm:$0x1]  ;;  %v4367_v62 = vunpack.c.l.b16 %v3697_v58 }
 0x1be   : > { %3216 = vrot.lane.b32.xlu2 %v3191_v6, %s5914_s10  ;;  %3224 = vrot.lane.b32.xlu0 %v3195_v48, %s5914_s10  ;;  %v3178_v6 = vunpack.c.l.b16 %v2531_v56  ;;  %v858_v48 = vld [vmem:[#allocation2 + $0x24] sm:$0xe]  ;;  %v3714_v56 = vsel %vm6015_vm4, %v3712_v21, %v3713_v10  ;;  %v7662_v10 = vld [vmem:[#allocation2 + $0x28] sm:$0xf] }
 0x1bf   : > { %3220 = vrot.lane.b32.xlu1 %v3193_v4, %s5914_s10  ;;  %v5638_v49 = vrot.slane %v858_v48, 9  ;;  %v3625_v21 = vld [vmem:[#allocation2 + $0x44] sm:$0x3]  ;;  %9728 = vst [vmem:[#allocation84_spill] sm:$0xff] %v7662_v10  ;;  %v4372_v31 = vunpack.c.l.b16 %v3714_v56  ;;  %v3717_v3 = vrot.slane %v7662_v10, 6 }
 0x1c0   : > { %v7638_v1 = vpop.permute.xlu2 %3054  ;;  %v7644_v59 = vpop.permute.xlu0 %3044  ;;  %v3196_v51 = vpack.c.b16 %v3179_v47, %v3178_v6  ;;  %v3700_v6 = vsel %vm6015_vm4, %v3698_v34, %v3699_v0  ;;  %v3733_v47 = vrot.slane %v3731_v15, 4  ;;  %v3734_v54 = vrot.slane %v3625_v21, 6  ;;  %v7682_v56 = vld [vmem:[#allocation2 + $0x1c] sm:$0xf]  ;;  %v7687_v34 = vld [vmem:[#allocation2 + $0x34] sm:$0xf] }
 0x1c1   : > { %9723 = vst [vmem:[#allocation80_spill] sm:$0xff] %v7638_v1  ;;  %v3617_v1 = vld [vmem:[#allocation2 + $0x14] sm:$0x3]  ;;  %v7657_v4 = vpop.permute.xlu1 %3040  ;;  %v5786_v0 = vrot.slane %v3620_v29, 10  ;;  %v3630_v29 = vld [vmem:[#allocation2 + $0x60] sm:$0xc] }
 0x1c2   : > { %9726 = vst [vmem:[#allocation82_spill] sm:$0xff] %v7644_v59  ;;  %v3703_v59 = vrot.slane %v7633_v12, 6 }
 0x1c3   : > { %9727 = vst [vmem:[#allocation83_spill] sm:$0xff] %v7657_v4  ;;  %v3706_v4 = vrot.slane %v3617_v1, 6  ;;  %v7680_v1 = vsel %vm6762_vm12, %v5638_v49, %v9729_v53  ;;  %v7695_v49 = vld [vmem:[#allocation2 + $0x64] sm:$0xf]  ;;  %v3732_v53 = vsel %vm6015_vm4, %v5788_v41, %v3731_v15  ;;  %v3623_v41 = vld [vmem:[#allocation2 + $0x38] sm:$0x3]  ;;  %v3718_v33 = vsel %vm6015_vm4, %v5786_v0, %v3717_v3 }
 0x1c4   : > { %v3705_v48 = vrot.slane %v3703_v59, 4  ;;  %9731 = vst [vmem:[#allocation86_spill] sm:$0xff] %v7687_v34  ;;  %v3704_v52 = vsel %vm6015_vm4, %v5784_v7, %v3703_v59  ;;  %v3622_v59 = vld [vmem:[#allocation2 + $0x30] sm:$0xc]  ;;  %v3752_v15 = vrot.slane %v7695_v49, 6  ;;  %v4377_v7 = vunpack.c.l.b16 %v3732_v53 }
 0x1c5   : > { %9733 = vst [vmem:[#allocation88_spill] sm:$0xff] %v7695_v49  ;;  %v3727_v28 = vrot.slane %v3623_v41, 6  ;;  %v4373_v41 = vunpack.c.l.b16 %v3718_v33 }
 0x1c6   : > { %3222 = vrot.lane.b32.xlu2 %v3194_v37, %s5914_s10  ;;  %3513 = vperm.xlu0 %5871, %v3510_v5   ;;  %v7674_v37 = vsel %vm6762_vm12, %v965_v23, %v966_v11  ;;  %v3197_v23 = vpack.c.b16 %v3181_v8, %v3180_v25  ;;  %v4401_v11 = vpack.c.b16 %v4372_v31, %v4371_v2  ;;  %v4368_v5 = vunpack.c.l.b16 %v3700_v6 }
 0x1c7   : > { %3226 = vrot.lane.b32.xlu1 %v3196_v51, %s5914_s10  ;;  %v3707_v21 = vsel %vm6015_vm4, %v3705_v48, %v3706_v4  ;;  %v3735_v31 = vsel %vm6015_vm4, %v3733_v47, %v3734_v54  ;;  %v3719_v25 = vrot.slane %v3717_v3, 4  ;;  %v3720_v8 = vrot.slane %v3621_v27, 6  ;;  %v3631_v27 = vld [vmem:[#allocation2 + $0x68] sm:$0x3] }
 0x1c8   : > { %v7685_v17 = vpop.permute.xlu2 %3060  ;;  %v7691_v35 = vpop.permute.xlu0 %3050  ;;  %v3724_v2 = vrot.slane %v7687_v34, 6  ;;  %v9736_v48 = vrot.slane %v7682_v56, 5  ;;  %v4369_v47 = vunpack.c.l.b16 %v3704_v52  ;;  %v4370_v54 = vunpack.c.l.b16 %v3707_v21  ;;  %v7732_v3 = vld [vmem:[#allocation2 + $0x88] sm:$0xf] }
 0x1c9   : > { %9730 = vst [vmem:[#allocation85_spill] sm:$0xff] %v7685_v17  ;;  %v7702_v17 = vld [vmem:[#allocation2 + $0x4c] sm:$0xf]  ;;  %v7710_v58 = vpop.permute.xlu1 %3046  ;;  %v4399_v4 = vpack.c.b16 %v4368_v5, %v4367_v62  ;;  %v3721_v52 = vsel %vm6015_vm4, %v3719_v25, %v3720_v8  ;;  %v5787_v21 = vrot.slane %v3622_v59, 10  ;;  %v5791_v62 = vrot.slane %v3630_v29, 10 }
 0x1ca   : > { %9732 = vst [vmem:[#allocation87_spill] sm:$0xff] %v7691_v35  ;;  %v7715_v6 = vrot.slane %v9736_v48, 4  ;;  %v3738_v51 = vrot.slane %v7702_v17, 6  ;;  %v7718_v35 = vld [vmem:[#allocation2 + $0x18] sm:$0xe]  ;;  %v3726_v42 = vrot.slane %v3724_v2, 4  ;;  %v4400_v59 = vpack.c.b16 %v4370_v54, %v4369_v47 }
 0x1cb   : > { %9734 = vst [vmem:[#allocation89_spill] sm:$0xff] %v7702_v17  ;;  %v7725_v48 = vld [vmem:[#allocation2 + $0x6c] sm:$0xe]  ;;  %v3754_v5 = vrot.slane %v3752_v15, 4  ;;  %v3755_v53 = vrot.slane %v3631_v27, 6  ;;  %v3745_v25 = vrot.slane %v7723_v26, 6  ;;  %v4374_v29 = vunpack.c.l.b16 %v3721_v52 }
 0x1cc   : > { %9735 = vst [vmem:[#allocation90_spill] sm:$0xff] %v7710_v58  ;;  %v4378_v58 = vunpack.c.l.b16 %v3735_v31  ;;  %v5789_v31 = vrot.slane %v3626_v44, 10  ;;  %v3740_v40 = vrot.slane %v3738_v51, 4  ;;  %v3629_v27 = vld [vmem:[#allocation2 + $0x5c] sm:$0x3]  ;;  %v3725_v0 = vsel %vm6015_vm4, %v5787_v21, %v3724_v2 }
 0x1cd   : > { %9738 = vst [vmem:[#allocation92_spill] sm:$0xff] %v7732_v3  ;;  %v7740_v44 = vld [vmem:[#allocation2 + $0x70] sm:$0xf]  ;;  %v3773_v16 = vrot.slane %v7732_v3, 6  ;;  %v3756_v33 = vsel %vm6015_vm4, %v3754_v5, %v3755_v53  ;;  %v3637_v47 = vld [vmem:[#allocation2 + $0x8c] sm:$0x3]  ;;  %v4402_v52 = vpack.c.b16 %v4374_v29, %v4373_v41  ;;  %v4375_v21 = vunpack.c.l.b16 %v3725_v0 }
 0x1ce   : > { %3228 = vrot.lane.b32.xlu2 %v3197_v23, %s5914_s10  ;;  %4419 = vrot.lane.b32.xlu0 %v4401_v11, %s5907_s17  ;;  %v3741_v11 = vrot.slane %v3627_v50, 6  ;;  %9740 = vst [vmem:[#allocation94_spill] sm:$0xff] %v7740_v44  ;;  %v3728_v50 = vsel %vm6015_vm4, %v3726_v42, %v3727_v28  ;;  %v3747_v28 = vrot.slane %v3745_v25, 4  ;;  %v3748_v42 = vrot.slane %v3629_v27, 6  ;;  %v3632_v8 = vld [vmem:[#allocation2 + $0x6c] sm:$0xc] }
 0x1cf   : > { %4415 = vrot.lane.b32.xlu1 %v4399_v4, %s5907_s17  ;;  %v3753_v4 = vsel %vm6015_vm4, %v5791_v62, %v3752_v15  ;;  %v3759_v54 = vrot.slane %v7740_v44, 6  ;;  %v4376_v15 = vunpack.c.l.b16 %v3728_v50  ;;  %v3633_v5 = vld [vmem:[#allocation2 + $0x74] sm:$0x3]  ;;  %v7764_v27 = vld [vmem:[#allocation2 + $0x70] sm:$0xf] }
 0x1d0   : > { %v7730_v23 = vpop.permute.xlu2 %3066  ;;  %v7735_v30 = vpop.permute.xlu0 %3056  ;;  %v3742_v2 = vsel %vm6015_vm4, %v3740_v40, %v3741_v11  ;;  %v7759_v53 = vld [vmem:[#allocation2 + $0x74] sm:$0x1]  ;;  %v3776_v40 = vrot.slane %v3637_v47, 6  ;;  %v7762_v11 = vld [vmem:[#allocation2 + $0x7c] sm:$0xf] }
 0x1d1   : > { %9737 = vst [vmem:[#allocation91_spill] sm:$0xff] %v7730_v23  ;;  %v4404_v23 = vpack.c.b16 %v4378_v58, %v4377_v7  ;;  %v7747_v46 = vpop.permute.xlu1 %3052  ;;  %v3739_v7 = vsel %vm6015_vm4, %v5789_v31, %v3738_v51  ;;  %v5790_v58 = vrot.slane %v3628_v45, 10  ;;  %v4383_v45 = vunpack.c.l.b16 %v3753_v4  ;;  %v7771_v50 = vld [vmem:[#allocation2 + $0xac] sm:$0xf] }
 0x1d2   : > { %9739 = vst [vmem:[#allocation93_spill] sm:$0xff] %v7735_v30  ;;  %v3636_v30 = vld [vmem:[#allocation2 + $0x84] sm:$0xc]  ;;  %v4384_v51 = vunpack.c.l.b16 %v3756_v33  ;;  %v3775_v31 = vrot.slane %v3773_v16, 4  ;;  %v4379_v0 = vunpack.c.l.b16 %v3739_v7  ;;  %v3749_v4 = vsel %vm6015_vm4, %v3747_v28, %v3748_v42  ;;  %v3635_v42 = vld [vmem:[#allocation2 + $0x80] sm:$0x3] }
 0x1d3   : > { %9741 = vst [vmem:[#allocation95_spill] sm:$0xff] %v7747_v46  ;;  %v5794_v62 = vrot.slane %v3636_v30, 10  ;;  %v4380_v30 = vunpack.c.l.b16 %v3742_v2  ;;  %v3746_v29 = vsel %vm6015_vm4, %v5790_v58, %v3745_v25  ;;  %v5792_v33 = vrot.slane %v3632_v8, 10  ;;  %v3634_v2 = vld [vmem:[#allocation2 + $0x78] sm:$0xc] }
 0x1d4   : > { %9743 = vst [vmem:[#allocation97_spill] sm:$0xff] %v7771_v50  ;;  %v3761_v47 = vrot.slane %v3759_v54, 4  ;;  %v3762_v46 = vrot.slane %v3633_v5, 6  ;;  %v3766_v25 = vrot.slane %v7762_v11, 6  ;;  %v9745_v58 = vunpack.c.l.b16 %v7680_v1  ;;  %v3642_v5 = vld [vmem:[#allocation2 + $0xa8] sm:$0xc] }
 0x1d5   : > { %v3774_v7 = vsel %vm6015_vm4, %v5794_v62, %v3773_v16  ;;  %v4407_v8 = vpack.c.b16 %v4384_v51, %v4383_v45  ;;  %v3777_v28 = vsel %vm6015_vm4, %v3775_v31, %v3776_v40  ;;  %v4382_v62 = vunpack.c.l.b16 %v3749_v4  ;;  %v3643_v45 = vld [vmem:[#allocation2 + $0xb0] sm:$0x3]  ;;  %v7800_v51 = vld [vmem:[#allocation2 + $0x94] sm:$0xf] }
 0x1d6   : > { %4417 = vrot.lane.b32.xlu2 %v4400_v59, %s5907_s17  ;;  %4425 = vrot.lane.b32.xlu0 %v4404_v23, %s5907_s17  ;;  %v4403_v59 = vpack.c.b16 %v4376_v15, %v4375_v21  ;;  %v9747_v21 = vrot.slane %v7689_v63, 5  ;;  %v4381_v15 = vunpack.c.l.b16 %v3746_v29  ;;  %9749 = vst [vmem:[#allocation100_spill] sm:$0xff] %v7800_v51  ;;  %v7802_v31 = vld [vmem:[#allocation2 + $0x54] sm:$0xe]  ;;  %v4389_v40 = vunpack.c.l.b16 %v3774_v7 }
 0x1d7   : > { %4421 = vrot.lane.b32.xlu1 %v4402_v52, %s5907_s17  ;;  %v3794_v52 = vrot.slane %v7771_v50, 6  ;;  %v3763_v63 = vsel %vm6015_vm4, %v3761_v47, %v3762_v46  ;;  %v9750_v29 = vrot.slane %v7764_v27, 5  ;;  %v3797_v7 = vrot.slane %v3643_v45, 6  ;;  %v7825_v45 = vld [vmem:[#allocation2 + $0xa0] sm:$0xf] }
 0x1d8   : > { %v7767_v41 = vpop.permute.xlu2 %3120  ;;  %v7773_v23 = vpop.permute.xlu0 %3062  ;;  %v7796_v16 = vsel %vm6762_vm12, %v7715_v6, %v9747_v21  ;;  %v4390_v6 = vunpack.c.l.b16 %v3777_v28  ;;  %v3768_v21 = vrot.slane %v3766_v25, 4  ;;  %v9751_v46 = vrot.slane %v7682_v56, 5  ;;  %v5886_v28 = vld [vmem:[#allocation2 + $0x58] sm:$0xf] }
 0x1d9   : > { %9742 = vst [vmem:[#allocation96_spill] sm:$0xff] %v7767_v41  ;;  %v7798_v1 = vpop.permute.xlu1 %3058  ;;  %v1007_v4 = vrot.slane %v9750_v29, 4  ;;  %v3796_v3 = vrot.slane %v3794_v52, 4  ;;  %v872_v29 = vld [vmem:[#allocation2 + $0x5c] sm:$0x1] }
 0x1da   : > { %9744 = vst [vmem:[#allocation98_spill] sm:$0xff] %v7773_v23  ;;  %v9746_v23 = vunpack.c.l.b16 %v7674_v37  ;;  %v4405_v37 = vpack.c.b16 %v4380_v30, %v4379_v0  ;;  %v3769_v0 = vrot.slane %v3635_v42, 6  ;;  %v5797_v30 = vrot.slane %v3642_v5, 10  ;;  %v3639_v5 = vld [vmem:[#allocation2 + $0x98] sm:$0x3] }
 0x1db   : > { %9748 = vst [vmem:[#allocation99_spill] sm:$0xff] %v7798_v1  ;;  %v3638_v1 = vld [vmem:[#allocation2 + $0x90] sm:$0xc]  ;;  %v991_v42 = vrot.slane %v5886_v28, 5 }
 0x1dc   : > { %v7786_v41 = vpack.c.b16 %v9746_v23, %v9745_v58  ;;  %v3760_v23 = vsel %vm6015_vm4, %v5792_v33, %v3759_v54  ;;  %v5793_v58 = vrot.slane %v3634_v2, 10  ;;  %v3780_v54 = vrot.slane %v7800_v51, 6 }
 0x1dd   : > { %v5642_v2 = vrot.slane %v7802_v31, 9  ;;  %v4406_v33 = vpack.c.b16 %v4382_v62, %v4381_v15  ;;  %v4385_v56 = vunpack.c.l.b16 %v3760_v23  ;;  %v4386_v51 = vunpack.c.l.b16 %v3763_v63  ;;  %v3640_v62 = vld [vmem:[#allocation2 + $0x9c] sm:$0xc] }
 0x1de   : > { %4423 = vrot.lane.b32.xlu2 %v4403_v59, %s5907_s17  ;;  %4431 = vrot.lane.b32.xlu0 %v4407_v8, %s5907_s17  ;;  %v9752_v59 = vrot.slane %v7718_v35, 9  ;;  %v3767_v35 = vsel %vm6015_vm4, %v5793_v58, %v3766_v25  ;;  %v3770_v31 = vsel %vm6015_vm4, %v3768_v21, %v3769_v0  ;;  %v5795_v28 = vrot.slane %v3638_v1, 10  ;;  %v5887_v1 = vld [vmem:[#allocation2 + $0x94] sm:$0xf]  ;;  %v7850_v21 = vld [vmem:[#allocation2 + $0xb8] sm:$0xf] }
 0x1df   : > { %4427 = vrot.lane.b32.xlu1 %v4405_v37, %s5907_s17  ;;  %v3783_v15 = vrot.slane %v3639_v5, 6  ;;  %v3787_v23 = vrot.slane %v7825_v45, 6  ;;  %v9755_v37 = vrot.slane %v7764_v27, 5  ;;  %v1026_v58 = vrot.slane %v5887_v1, 5  ;;  %9758 = vst [vmem:[#allocation104_spill] sm:$0xff] %v7850_v21 }
 0x1e0   : > { %v7820_v47 = vsel %vm6762_vm12, %v9752_v59, %v9751_v46  ;;  %v7823_v8 = vpop.permute.xlu2 %3126  ;;  %v7827_v50 = vpop.permute.xlu0 %3068  ;;  %v4410_v46 = vpack.c.b16 %v4390_v6, %v4389_v40  ;;  %v3795_v59 = vsel %vm6015_vm4, %v5797_v30, %v3794_v52  ;;  %v9756_v40 = vrot.slane %v7725_v48, 9  ;;  %v885_v30 = vld [vmem:[#allocation2 + $0x90] sm:$0xe]  ;;  %v887_v27 = vld [vmem:[#allocation2 + $0x98] sm:$0x1] }
 0x1e1   : > { %9753 = vst [vmem:[#allocation101_spill] sm:$0xff] %v7823_v8  ;;  %v3798_v8 = vsel %vm6015_vm4, %v3796_v3, %v3797_v7  ;;  %v994_v52 = vrot.slane %v872_v29, 5  ;;  %v7848_v6 = vpop.permute.xlu1 %3064  ;;  %v3641_v3 = vld [vmem:[#allocation2 + $0xa4] sm:$0x3]  ;;  %v993_v0 = vrot.slane %v991_v42, 4  ;;  %v4408_v7 = vpack.c.b16 %v4386_v51, %v4385_v56 }
 0x1e2   : > { %9754 = vst [vmem:[#allocation102_spill] sm:$0xff] %v7827_v50  ;;  %v3782_v50 = vrot.slane %v3780_v54, 4  ;;  %v7846_v63 = vsel %vm6762_vm12, %v9756_v40, %v9755_v37  ;;  %v4387_v5 = vunpack.c.l.b16 %v3767_v35  ;;  %v4388_v25 = vunpack.c.l.b16 %v3770_v31 }
 0x1e3   : > { %9757 = vst [vmem:[#allocation103_spill] sm:$0xff] %v7848_v6  ;;  %v4395_v48 = vunpack.c.l.b16 %v3795_v59  ;;  %v4396_v38 = vunpack.c.l.b16 %v3798_v8  ;;  %v3781_v29 = vsel %vm6015_vm4, %v5795_v28, %v3780_v54  ;;  %v5796_v37 = vrot.slane %v3640_v62, 10  ;;  %v3645_v59 = vld [vmem:[#allocation2 + $0xbc] sm:$0x3] }
 0x1e4   : > { %v3784_v40 = vsel %vm6015_vm4, %v3782_v50, %v3783_v15  ;;  %v3789_v1 = vrot.slane %v3787_v23, 4  ;;  %v3790_v6 = vrot.slane %v3641_v3, 6  ;;  %v3801_v51 = vrot.slane %v7850_v21, 6  ;;  %v5888_v15 = vld [vmem:[#allocation2 + $0x34] sm:$0xf] }
 0x1e5   : > { %v9759_v56 = vrot.slane %v7759_v53, 5  ;;  %v7865_v8 = vsel %vm6762_vm12, %v5642_v2, %v991_v42  ;;  %v5647_v54 = vrot.slane %v885_v30, 9  ;;  %v1028_v35 = vrot.slane %v1026_v58, 4 }
 0x1e6   : > { %4429 = vrot.lane.b32.xlu2 %v4406_v33, %s5907_s17  ;;  %4437 = vrot.lane.b32.xlu0 %v4410_v46, %s5907_s17  ;;  %v3644_v46 = vld [vmem:[#allocation2 + $0xb4] sm:$0xc]  ;;  %v995_v50 = vsel %vm6762_vm12, %v993_v0, %v994_v52  ;;  %v1029_v28 = vrot.slane %v887_v27, 5  ;;  %v970_v62 = vrot.slane %v5888_v15, 5  ;;  %v4409_v3 = vpack.c.b16 %v4388_v25, %v4387_v5 }
 0x1e7   : > { %v1009_v33 = vsel %vm6762_vm12, %v1007_v4, %v9759_v56  ;;  %v861_v4 = vld [vmem:[#allocation2 + $0x30] sm:$0xe]  ;;  %v863_v56 = vld [vmem:[#allocation2 + $0x38] sm:$0x1]  ;;  %4433 = vrot.lane.b32.xlu1 %v4408_v7, %s5907_s17  ;;  %v4413_v2 = vpack.c.b16 %v4396_v38, %v4395_v48  ;;  %v4391_v42 = vunpack.c.l.b16 %v3781_v29  ;;  %v4392_v30 = vunpack.c.l.b16 %v3784_v40  ;;  %v3807_v5 = vld [vmem:[#allocation2 + $0x14] sm:$0xf] }
 0x1e8   : > { %v7867_v31 = vpop.permute.xlu2 %3132  ;;  %v7871_v53 = vpop.permute.xlu0 %3122  ;;  %v3791_v21 = vsel %vm6015_vm4, %v3789_v1, %v3790_v6  ;;  %v5798_v52 = vrot.slane %v3644_v46, 10  ;;  %v3803_v0 = vrot.slane %v3801_v51, 4  ;;  %v3804_v27 = vrot.slane %v3645_v59, 6 }
 0x1e9   : > { %9760 = vst [vmem:[#allocation105_spill] sm:$0xff] %v7867_v31  ;;  %v3788_v31 = vsel %vm6015_vm4, %v5796_v37, %v3787_v23  ;;  %v2556_v15 = vunpack.c.l.b16 %v7846_v63  ;;  %v2552_v25 = vunpack.c.l.b16 %v7865_v8  ;;  %v1027_v7 = vsel %vm6762_vm12, %v5647_v54, %v1026_v58  ;;  %v7882_v38 = vpop.permute.xlu1 %3118 }
 0x1ea   : > { %9761 = vst [vmem:[#allocation106_spill] sm:$0xff] %v7871_v53  ;;  %v2557_v53 = vunpack.c.l.b16 %v1009_v33  ;;  %v1030_v23 = vsel %vm6762_vm12, %v1028_v35, %v1029_v28  ;;  %v5639_v48 = vrot.slane %v861_v4, 9  ;;  %v973_v29 = vrot.slane %v863_v56, 5  ;;  %v894_v4 = vld [vmem:[#allocation2 + $0xb4] sm:$0xe] }
 0x1eb   : > { %9762 = vst [vmem:[#allocation107_spill] sm:$0xff] %v7882_v38  ;;  %v972_v6 = vrot.slane %v970_v62, 4  ;;  %v2553_v37 = vunpack.c.l.b16 %v995_v50  ;;  %v4411_v40 = vpack.c.b16 %v4392_v30, %v4391_v42  ;;  %v4393_v63 = vunpack.c.l.b16 %v3788_v31  ;;  %v5889_v56 = vld [vmem:[#allocation2 + $0xb8] sm:$0xf]  ;;  %v896_v42 = vld [vmem:[#allocation2 + $0xbc] sm:$0x1] }
 0x1ec   : > { %v4394_v1 = vunpack.c.l.b16 %v3791_v21  ;;  %v9589_v33 = vunpack.c.l.b16 %v7633_v12  ;;  %v4464_v58 = vunpack.c.l.b16 %v3807_v5  ;;  %v3802_v8 = vsel %vm6015_vm4, %v5798_v52, %v3801_v51 }
 0x1ed   : > { %v3805_v54 = vsel %vm6015_vm4, %v3803_v0, %v3804_v27  ;;  %v7896_v35 = vsel %vm772_vm1, %v7629_v22, %v6857_v9  ;;  %v2562_v46 = vunpack.c.l.b16 %v1027_v7  ;;  %v2563_v59 = vunpack.c.l.b16 %v1030_v23  ;;  %v7923_v27 = vld [vmem:[#allocation2 + $0x8] sm:$0xff]  }
 0x1ee   : > { %4435 = vrot.lane.b32.xlu2 %v4409_v3, %s5907_s17  ;;  %4443 = vrot.lane.b32.xlu0 %v4413_v2, %s5907_s17  ;;  %v9764_v21 = vunpack.c.l.b16 %v7820_v47  ;;  %v9765_v50 = vunpack.c.l.b16 %v7796_v16  ;;  %v971_v51 = vsel %vm6762_vm12, %v5639_v48, %v970_v62  ;;  %v974_v3 = vsel %vm6762_vm12, %v972_v6, %v973_v29  ;;  %v7927_v29 = vld [vmem:[#allocation2 + $0x38] sm:$0xff]  }
 0x1ef   : > { %v1047_v2 = vrot.slane %v5889_v56, 5  ;;  %v2581_v22 = vpack.c.b16 %v2557_v53, %v2556_v15  ;;  %4439 = vrot.lane.b32.xlu1 %v4411_v40, %s5907_s17  ;;  %v4412_v30 = vpack.c.b16 %v4394_v1, %v4393_v63  ;;  %v4397_v47 = vunpack.c.l.b16 %v3802_v8  ;;  %v875_v40 = vld [vmem:[#allocation2 + $0x68] sm:$0x1]  ;;  %v7944_v8 = vld [vmem:[#allocation2 + $0x78] sm:$0xe] }
 0x1f0   : > { %v7898_v31 = vpop.permute.xlu2 %3138  ;;  %v2574_v28 = vpack.c.b16 %v9765_v50, %v9764_v21  ;;  %v7908_v9 = vpop.permute.xlu0 %3128  ;;  %v4398_v52 = vunpack.c.l.b16 %v3805_v54  ;;  %v7914_v16 = vsel %vm772_vm1, %v7670_v32, %v6882_v18  ;;  %v7919_v62 = vsel %vm772_vm1, %v7786_v41, %v6904_v19  ;;  %v873_v41 = vld [vmem:[#allocation2 + $0x60] sm:$0xe]  ;;  %v7946_v54 = vld [vmem:[#allocation2 + $0x7c] sm:$0xf] }
 0x1f1   : > { %9763 = vst [vmem:[#allocation108_spill] sm:$0xff] %v7898_v31  ;;  %v2579_v0 = vpack.c.b16 %v2553_v37, %v2552_v25  ;;  %v4480_v53 = vpack.c.b16 %v4464_v58, %v9589_v33  ;;  %v2584_v15 = vpack.c.b16 %v2563_v59, %v2562_v46  ;;  %v2546_v7 = vunpack.c.l.b16 %v971_v51  ;;  %v7925_v48 = vpop.permute.xlu1 %3124  ;;  %v5890_v25 = vld [vmem:[#allocation2 + $0x64] sm:$0xf]  ;;  %v3808_v21 = vld [vmem:[#allocation2 + $0x20] sm:$0xf] }
 0x1f2   : > { %9766 = vst [vmem:[#allocation109_spill] sm:$0xff] %v7908_v9  ;;  %v2547_v5 = vunpack.c.l.b16 %v974_v3  ;;  %v5650_v23 = vrot.slane %v894_v4, 9  ;;  %v7931_v18 = vsel %vm772_vm1, %v2574_v28, %v6888_v43  ;;  %v1049_v19 = vrot.slane %v1047_v2, 4  ;;  %v897_v33 = vld [vmem:[#allocation2 + $0xc0] sm:$0xe] }
 0x1f3   : > { %9767 = vst [vmem:[#allocation110_spill] sm:$0xff] %v7925_v48  ;;  %v1050_v32 = vrot.slane %v896_v42, 5  ;;  %v998_v6 = vrot.slane %v5890_v25, 5  ;;  %v7935_v37 = vsel %vm772_vm1, %v2581_v22, %v6909_v14  ;;  %v4414_v63 = vpack.c.b16 %v4398_v52, %v4397_v47  ;;  %v5894_v52 = vld [vmem:[#allocation2 + $0xc4] sm:$0xf] }
 0x1f4   : > { %v9588_v1 = vunpack.c.l.b16 %v7624_v20  ;;  %v4463_v58 = vunpack.c.l.b16 %v7923_v27  ;;  %v7942_v43 = vsel %vm772_vm1, %v2579_v0, %v6917_v61  ;;  %v9590_v46 = vrot.slane %v7946_v54, 5  ;;  %v7958_v61 = vld [vmem:[#allocation2 + $0x80] sm:$0x1]  ;;  %v888_v0 = vld [vmem:[#allocation2 + $0x9c] sm:$0xe] }
 0x1f5   : > { %v9591_v14 = vunpack.c.l.b16 %v7687_v34  ;;  %v4467_v59 = vunpack.c.l.b16 %v7927_v29  ;;  %v7954_v50 = vsel %vm772_vm1, %v2584_v15, %v6927_v39  ;;  %v7956_v28 = vpack.c.b16 %v2547_v5, %v2546_v7  ;;  %v902_v9 = vld [vmem:[#allocation2 + $0xd4] sm:$0x1] }
 0x1f6   : > { %4441 = vrot.lane.b32.xlu2 %v4412_v30, %s5907_s17  ;;  %4497 = vrot.lane.b32.xlu0 %v4480_v53, %s5908_s20  ;;  %v7962_v51 = vsel %vm6762_vm12, %v5650_v23, %v1047_v2  ;;  %v5643_v3 = vrot.slane %v873_v41, 9  ;;  %v7968_v56 = vsel %vm6762_vm12, %v1049_v19, %v1050_v32  ;;  %v1000_v22 = vrot.slane %v998_v6, 4  ;;  %v7970_v30 = vld [vmem:[#allocation2 + $0xa0] sm:$0xf]  ;;  %v890_v2 = vld [vmem:[#allocation2 + $0xa4] sm:$0x1] }
 0x1f7   : > { %v1001_v42 = vrot.slane %v875_v40, 5  ;;  %v9595_v39 = vrot.slane %v7970_v30, 5  ;;  %v7976_v53 = vld [vmem:[#allocation2 + $0x84] sm:$0xe]  ;;  %4445 = vrot.lane.b32.xlu1 %v4414_v63, %s5907_s17  ;;  %v4479_v15 = vpack.c.b16 %v4463_v58, %v9588_v1  ;;  %v4465_v5 = vunpack.c.l.b16 %v3808_v21  ;;  %v884_v41 = vld [vmem:[#allocation2 + $0x8c] sm:$0x1] }
 0x1f8   : > { %v7964_v4 = vpop.permute.xlu2 %3144  ;;  %v7973_v47 = vpop.permute.xlu0 %3134  ;;  %v7984_v23 = vrot.slane %v9590_v46, 4  ;;  %v4483_v25 = vpack.c.b16 %v4467_v59, %v9591_v14  ;;  %v7990_v40 = vld [vmem:[#allocation2 + $0x2c] sm:$0xff]   ;;  %v7995_v58 = vsel %vm6762_vm12, %v5643_v3, %v998_v6  ;;  %v5893_v21 = vld [vmem:[#allocation2 + $0x88] sm:$0xf]  ;;  %v1054_v46 = vrot.slane %v5894_v52, 5  ;;  %v7999_v32 = vld [vmem:[#allocation2 + $0x5c] sm:$0xff]  }
 0x1f9   : > { %9768 = vst [vmem:[#allocation111_spill] sm:$0xff] %v7964_v4  ;;  %v1019_v1 = vrot.slane %v5893_v21, 5  ;;  %v7997_v19 = vpop.permute.xlu1 %3130  ;;  %v8003_v59 = vsel %vm6762_vm12, %v1000_v22, %v1001_v42  ;;  %v5648_v14 = vrot.slane %v888_v0, 9  ;;  %v1035_v63 = vrot.slane %v9595_v39, 4  ;;  %v899_v6 = vld [vmem:[#allocation2 + $0xc8] sm:$0x1] }
 0x1fa   : > { %9769 = vst [vmem:[#allocation112_spill] sm:$0xff] %v7973_v47  ;;  %v1036_v7 = vrot.slane %v890_v2, 5  ;;  %v891_v3 = vld [vmem:[#allocation2 + $0xa8] sm:$0xe]  ;;  %v893_v47 = vld [vmem:[#allocation2 + $0xb0] sm:$0x1]  ;;  %v9772_v52 = vunpack.c.l.b16 %v7602_v24  ;;  %v4466_v22 = vunpack.c.l.b16 %v7990_v40  ;;  %v4470_v39 = vunpack.c.l.b16 %v7999_v32 }
 0x1fb   : > { %9770 = vst [vmem:[#allocation113_spill] sm:$0xff] %v7997_v19  ;;  %v5895_v21 = vld [vmem:[#allocation2 + $0xac] sm:$0xf]  ;;  %v5646_v42 = vrot.slane %v7976_v53, 9  ;;  %v1022_v0 = vrot.slane %v884_v41, 5  ;;  %v8016_v4 = vld [vmem:[#allocation2 + $0x44] sm:$0xff]  }
 0x1fc   : > { %9771 = vst [vmem:[#allocation114_spill] sm:$0xff] %v7999_v32  ;;  %v1040_v31 = vrot.slane %v5895_v21, 5  ;;  %v4481_v13 = vpack.c.b16 %v4465_v5, %v9772_v52  ;;  %v1021_v21 = vrot.slane %v1019_v1, 4  ;;  %v1056_v34 = vrot.slane %v1054_v46, 4  ;;  %v5896_v53 = vld [vmem:[#allocation2 + $0xd0] sm:$0xf] }
 0x1fd   : > { %v1057_v24 = vrot.slane %v899_v6, 5  ;;  %v2554_v52 = vunpack.c.l.b16 %v7995_v58  ;;  %v5649_v20 = vrot.slane %v891_v3, 9  ;;  %v1043_v48 = vrot.slane %v893_v47, 5  ;;  %v900_v2 = vld [vmem:[#allocation2 + $0xcc] sm:$0xe]  ;;  %v8037_v19 = vld [vmem:[#allocation2 + $0x50] sm:$0xff]  }
 0x1fe   : > { %4495 = vrot.lane.b32.xlu2 %v4479_v15, %s5908_s20  ;;  %4503 = vrot.lane.b32.xlu0 %v4483_v25, %s5908_s20  ;;  %v5651_v15 = vrot.slane %v897_v33, 9  ;;  %v1061_v41 = vrot.slane %v5896_v53, 5  ;;  %v1042_v25 = vrot.slane %v1040_v31, 4  ;;  %v9775_v32 = vunpack.c.l.b16 %v7662_v10 }
 0x1ff   : > { %4499 = vrot.lane.b32.xlu1 %v4481_v13, %s5908_s20  ;;  %v9599_v6 = vunpack.c.l.b16 %v7640_v57  ;;  %v2555_v58 = vunpack.c.l.b16 %v8003_v59  ;;  %v9776_v47 = vrot.slane %v7970_v30, 5  ;;  %v1037_v53 = vsel %vm6762_vm12, %v1035_v63, %v1036_v7  ;;  %v8049_v7 = vld [vmem:[#allocation2 + $0x80] sm:$0xff]  }
 0x200   : > { %v8018_v5 = vpop.permute.xlu2 %3198  ;;  %v8021_v38 = vpop.permute.xlu0 %3140  ;;  %v4482_v33 = vpack.c.b16 %v4466_v22, %v9775_v32  ;;  %v1020_v32 = vsel %vm6762_vm12, %v5646_v42, %v1019_v1  ;;  %v1023_v22 = vsel %vm6762_vm12, %v1021_v21, %v1022_v0  ;;  %v1055_v30 = vsel %vm6762_vm12, %v5651_v15, %v1054_v46  ;;  %v9827_v57 = vld [vmem:[#allocation47_spill] sm:$0xff] }
 0x201   : > { %9773 = vst [vmem:[#allocation115_spill] sm:$0xff] %v8018_v5  ;;  %v4468_v5 = vunpack.c.l.b16 %v8016_v4  ;;  %v1034_v3 = vsel %vm6762_vm12, %v5648_v14, %v9776_v47  ;;  %v1058_v14 = vsel %vm6762_vm12, %v1056_v34, %v1057_v24  ;;  %v8047_v59 = vpop.permute.xlu1 %3136  ;;  %v1063_v63 = vrot.slane %v1061_v41, 4 }
 0x202   : > { %9774 = vst [vmem:[#allocation116_spill] sm:$0xff] %v8021_v38  ;;  %v9777_v38 = vunpack.c.l.b16 %v7723_v26  ;;  %v1064_v47 = vrot.slane %v902_v9, 5  ;;  %v1044_v1 = vsel %vm6762_vm12, %v1042_v25, %v1043_v48  ;;  %v9602_v24 = vunpack.c.l.b16 %v7702_v17  ;;  %v8063_v9 = vld [vmem:[#allocation2 + $0x68] sm:$0xff]  }
 0x203   : > { %9778 = vst [vmem:[#allocation117_spill] sm:$0xff] %v8047_v59  ;;  %v4484_v46 = vpack.c.b16 %v4468_v5, %v9599_v6  ;;  %v4469_v34 = vunpack.c.l.b16 %v8037_v19  ;;  %v2564_v42 = vunpack.c.l.b16 %v1034_v3  ;;  %v2565_v0 = vunpack.c.l.b16 %v1037_v53  ;;  %v3859_v59 = vld [vmem:[#allocation2 + $0x50] sm:$0x3] }
 0x204   : > { %v4486_v13 = vpack.c.b16 %v4470_v39, %v9777_v38  ;;  %v1041_v38 = vsel %vm6762_vm12, %v5649_v20, %v1040_v31  ;;  %v5652_v39 = vrot.slane %v900_v2, 9  ;;  %v9605_v20 = vunpack.c.l.b16 %v7762_v11 }
 0x205   : > { %v4473_v31 = vunpack.c.l.b16 %v8049_v7  ;;  %v2560_v48 = vunpack.c.l.b16 %v1020_v32  ;;  %v2561_v2 = vunpack.c.l.b16 %v1023_v22  ;;  %v2570_v21 = vunpack.c.l.b16 %v1055_v30 }
 0x206   : > { %4501 = vrot.lane.b32.xlu2 %v4482_v33, %s5908_s20  ;;  %4509 = vrot.lane.b32.xlu0 %v4486_v13, %s5908_s20  ;;  %v2571_v15 = vunpack.c.l.b16 %v1058_v14  ;;  %v2566_v5 = vunpack.c.l.b16 %v1041_v38  ;;  %v2567_v33 = vunpack.c.l.b16 %v1044_v1  ;;  %v1062_v3 = vsel %vm6762_vm12, %v5652_v39, %v1061_v41 }
 0x207   : > { %v1065_v53 = vsel %vm6762_vm12, %v1063_v63, %v1064_v47  ;;  %v3238_v6 = vsel %vm772_vm1, %v7956_v28, %v6929_v55  ;;  %4505 = vrot.lane.b32.xlu1 %v4484_v46, %s5908_s20  ;;  %v4485_v32 = vpack.c.b16 %v4469_v34, %v9602_v24  ;;  %v9600_v22 = vunpack.c.l.b16 %v7695_v49 }
 0x208   : > { %v8065_v25 = vpop.permute.xlu2 %3204  ;;  %v8071_v13 = vpop.permute.xlu0 %3146  ;;  %v4471_v30 = vunpack.c.l.b16 %v8063_v9  ;;  %v9779_v41 = vrot.slane %v7946_v54, 5  ;;  %v9780_v14 = vrot.slane %v7944_v8, 9  ;;  %v9781_v39 = vrot.slane %v7958_v61, 5  ;;  %v8102_v8 = vld [vmem:[#allocation2 + $0x74] sm:$0xff]  }
 0x209   : > { %v9782_v28 = vunpack.c.l.b16 %v7962_v51  ;;  %v9783_v63 = vunpack.c.l.b16 %v7968_v56  ;;  %v4489_v54 = vpack.c.b16 %v4473_v31, %v9605_v20  ;;  %v2580_v1 = vpack.c.b16 %v2555_v58, %v2554_v52  ;;  %v8104_v61 = vpop.permute.xlu1 %3142  ;;  %v9808_v56 = vld [vmem:[#allocation29_spill] sm:$0xff] }
 0x20a   : > { %v8087_v38 = vsel %vm6762_vm12, %v9780_v14, %v9779_v41  ;;  %v8094_v55 = vsel %vm6762_vm12, %v7984_v23, %v9781_v39  ;;  %v2585_v46 = vpack.c.b16 %v2565_v0, %v2564_v42  ;;  %v2572_v34 = vunpack.c.l.b16 %v1062_v3  ;;  %v8106_v14 = vld [vmem:[#allocation2 + $0xa4] sm:$0xff]  }
 0x20b   : > { %v2587_v47 = vpack.c.b16 %v9783_v63, %v9782_v28  ;;  %v2573_v41 = vunpack.c.l.b16 %v1065_v53  ;;  %v2583_v36 = vpack.c.b16 %v2561_v2, %v2560_v48  ;;  %v2588_v23 = vpack.c.b16 %v2571_v15, %v2570_v21  ;;  %v8120_v21 = vld [vmem:[#allocation2 + $0x8c] sm:$0xff]   ;;  %v9786_v53 = vld [vmem:[#allocation7_spill] sm:$0xff] }
 0x20c   : > { %v2586_v51 = vpack.c.b16 %v2567_v33, %v2566_v5  ;;  %v4487_v31 = vpack.c.b16 %v4471_v30, %v9600_v22  ;;  %v9601_v52 = vunpack.c.l.b16 %v7740_v44  ;;  %v4472_v58 = vunpack.c.l.b16 %v8102_v8  ;;  %v9784_v15 = vld [vmem:[#allocation5_spill] sm:$0xff]  ;;  %v9785_v33 = vld [vmem:[#allocation6_spill] sm:$0xff]  ;;  %v9787_v39 = vld [vmem:[#allocation8_spill] sm:$0xff] }
 0x20d   : > { %v3271_v0 = vsel %vm772_vm1, %v2587_v47, %v6952_v60  ;;  %v9604_v48 = vunpack.c.l.b16 %v7825_v45  ;;  %v4476_v2 = vunpack.c.l.b16 %v8106_v14  ;;  %v3250_v5 = vsel %vm772_vm1, %v2580_v1, %v9784_v15  ;;  %v9788_v63 = vld [vmem:[#allocation9_spill] sm:$0xff]  ;;  %v9790_v15 = vld [vmem:[#allocation11_spill] sm:$0xff] }
 0x20e   : > { %4507 = vrot.lane.b32.xlu2 %v4485_v32, %s5908_s20  ;;  %4515 = vrot.lane.b32.xlu0 %v4489_v54, %s5908_s20  ;;  %v3265_v3 = vsel %vm772_vm1, %v2585_v46, %v9785_v33  ;;  %v3280_v32 = vsel %vm3278_vm13, %v7931_v18, %v9786_v53  ;;  %v2589_v30 = vpack.c.b16 %v2573_v41, %v2572_v34  ;;  %v9789_v54 = vld [vmem:[#allocation10_spill] sm:$0xff]  ;;  %v9791_v34 = vld [vmem:[#allocation92_spill] sm:$0xff]  ;;  %v3953_v10 = vrot.slane %v3859_v59, 6 }
 0x20f   : > { %v3259_v28 = vsel %vm772_vm1, %v2583_v36, %v9787_v39  ;;  %v3274_v47 = vsel %vm772_vm1, %v2588_v23, %v9788_v63  ;;  %v3286_v1 = vsel %vm3278_vm13, %v7896_v35, %v9789_v54  ;;  %v3268_v46 = vsel %vm772_vm1, %v2586_v51, %v9790_v15  ;;  %4511 = vrot.lane.b32.xlu1 %v4487_v31, %s5908_s20  ;;  %v9792_v53 = vld [vmem:[#allocation12_spill] sm:$0xff]  ;;  %v9793_v39 = vld [vmem:[#allocation13_spill] sm:$0xff]  ;;  %v9794_v63 = vld [vmem:[#allocation15_spill] sm:$0xff] }
 0x210   : > { %v8129_v60 = vpop.permute.xlu2 %3210  ;;  %v8140_v33 = vpop.permute.xlu0 %3200  ;;  %v4488_v18 = vpack.c.b16 %v4472_v58, %v9601_v52  ;;  %v9603_v41 = vunpack.c.l.b16 %v9791_v34  ;;  %v4474_v36 = vunpack.c.l.b16 %v8120_v21  ;;  %v4321_v23 = vunpack.c.h.b16 %v7923_v27  ;;  %v8158_v54 = vld [vmem:[#allocation2 + $0x98] sm:$0xff]   ;;  %v9796_v27 = vld [vmem:[#allocation16_spill] sm:$0xff] }
 0x211   : > { %v3282_v35 = vsel %vm3278_vm13, %v7919_v62, %v9792_v53  ;;  %v3292_v51 = vsel %vm3278_vm13, %v3250_v5, %v9793_v39  ;;  %v3288_v31 = vsel %vm3278_vm13, %v7914_v16, %v9794_v63  ;;  %v4492_v58 = vpack.c.b16 %v4476_v2, %v9604_v48  ;;  %v9795_v15 = vld [vmem:[#allocation14_spill] sm:$0xff]  ;;  %v9797_v62 = vld [vmem:[#allocation17_spill] sm:$0xff]  ;;  %v8168_v5 = vpop.permute.xlu1 %3148  ;;  %v9908_v59 = vld [vmem:[#allocation116_spill] sm:$0xff] }
 0x212   : > { %v3277_v22 = vsel %vm772_vm1, %v2589_v30, %v9795_v15  ;;  %v8164_v52 = vsel %vm3278_vm13, %v3259_v28, %v9796_v27  ;;  %v3284_v53 = vsel %vm3278_vm13, %v3238_v6, %v9797_v62  ;;  %v8170_v39 = vld [vmem:[#allocation2 + $0x34] sm:$0xf]  ;;  %v9798_v16 = vunpack.c.l.b16 %v7633_v12  ;;  %v9799_v2 = vld [vmem:[#allocation18_spill] sm:$0xff]  ;;  %v9800_v30 = vld [vmem:[#allocation19_spill] sm:$0xff] }
 0x213   : > { %v3294_v24 = vsel %vm3278_vm13, %v7935_v37, %v9799_v2  ;;  %v3304_v15 = vsel %vm3278_vm13, %v3268_v46, %v9800_v30  ;;  %v9801_v28 = vld [vmem:[#allocation20_spill] sm:$0xff]  ;;  %v9802_v6 = vld [vmem:[#allocation21_spill] sm:$0xff]  ;;  %v4490_v12 = vpack.c.b16 %v4474_v36, %v9603_v41  ;;  %v4475_v37 = vunpack.c.l.b16 %v8158_v54  ;;  %v9804_v2 = vld [vmem:[#allocation22_spill] sm:$0xff] }
 0x214   : > { %v8174_v63 = vpack.c.b16 %v9798_v16, %v4321_v23  ;;  %v3290_v27 = vsel %vm3278_vm13, %v7942_v43, %v9801_v28  ;;  %v3300_v62 = vsel %vm3278_vm13, %v7954_v50, %v9802_v6  ;;  %v9803_v23 = vld [vmem:[#allocation100_spill] sm:$0xff]  ;;  %v3310_v46 = vsel %vm3278_vm13, %v3277_v22, %v9804_v2  ;;  %v9806_v6 = vld [vmem:[#allocation26_spill] sm:$0xff]  ;;  %v9807_v41 = vld [vmem:[#allocation25_spill] sm:$0xff] }
 0x215   : > { %v9606_v16 = vunpack.c.l.b16 %v9803_v23  ;;  %v9805_v30 = vld [vmem:[#allocation24_spill] sm:$0xff]  ;;  %v4543_v28 = vunpack.c.h.b16 %v7990_v40  ;;  %v3317_v36 = vsel %vm3311_vm14, %v3284_v53, %v9806_v6  ;;  %v3302_v42 = vsel %vm3278_vm13, %v3265_v3, %v9807_v41  ;;  %v9809_v2 = vld [vmem:[#allocation27_spill] sm:$0xff]  ;;  %v9812_v48 = vld [vmem:[#allocation30_spill] sm:$0xff] }
 0x216   : > { %4513 = vrot.lane.b32.xlu2 %v4488_v18, %s5908_s20  ;;  %v3306_v43 = vsel %vm3278_vm13, %v3271_v0, %v9805_v30  ;;  %4521 = vrot.lane.b32.xlu0 %v4492_v58, %s5908_s20  ;;  %v8199_v18 = vld [vmem:[#allocation2 + $0xb0] sm:$0xff]   ;;  %v3323_v22 = vsel %vm3311_vm14, %v3290_v27, %v9808_v56  ;;  %v3313_v0 = vsel %vm3311_vm14, %v3280_v32, %v9809_v2  ;;  %v9811_v58 = vld [vmem:[#allocation28_spill] sm:$0xff]  ;;  %v9813_v50 = vld [vmem:[#allocation31_spill] sm:$0xff] }
 0x217   : > { %v3308_v40 = vsel %vm3278_vm13, %v3274_v47, %v9811_v58  ;;  %v3319_v20 = vsel %vm3311_vm14, %v3286_v1, %v9812_v48  ;;  %v3315_v53 = vsel %vm3311_vm14, %v3282_v35, %v9813_v50  ;;  %v9814_v3 = vld [vmem:[#allocation35_spill] sm:$0xff]  ;;  %4517 = vrot.lane.b32.xlu1 %v4490_v12, %s5908_s20  ;;  %v4491_v32 = vpack.c.b16 %v4475_v37, %v9606_v16  ;;  %v9815_v41 = vld [vmem:[#allocation97_spill] sm:$0xff]  ;;  %v9817_v1 = vld [vmem:[#allocation34_spill] sm:$0xff] }
 0x218   : > { %v8209_v30 = vpop.permute.xlu2 %3216  ;;  %v8217_v6 = vpop.permute.xlu0 %3206  ;;  %v3335_v56 = vsel %vm3311_vm14, %v3302_v42, %v9814_v3  ;;  %v4477_v47 = vunpack.c.l.b16 %v8199_v18  ;;  %v9816_v2 = vld [vmem:[#allocation33_spill] sm:$0xff]  ;;  %v3321_v35 = vsel %vm3311_vm14, %v3288_v31, %v9817_v1  ;;  %v9818_v50 = vld [vmem:[#allocation38_spill] sm:$0xff]  ;;  %v9819_v42 = vunpack.c.l.b16 %v8170_v39  ;;  %v9823_v31 = vld [vmem:[#allocation40_spill] sm:$0xff] }
 0x219   : > { %9810 = vst [vmem:[#allocation5_spill] sm:$0xff] %v8209_v30  ;;  %v3325_v48 = vsel %vm3311_vm14, %v3292_v51, %v9816_v2  ;;  %v8232_v58 = vsel %vm3311_vm14, %v3308_v40, %v9818_v50  ;;  %v8236_v3 = vld [vmem:[#allocation2 + $0xbc] sm:$0xff]   ;;  %v9820_v37 = vld [vmem:[#allocation37_spill] sm:$0xff]  ;;  %v3333_v40 = vsel %vm3311_vm14, %v3300_v62, %v9823_v31  ;;  %v8250_v1 = vpop.permute.xlu1 %3202  ;;  %v8252_v50 = vld [vmem:[#allocation2 + $0x58] sm:$0xf]  ;;  %v9828_v62 = vunpack.c.l.b16 %v9815_v41 }
 0x21a   : > { %v4575_v12 = vpack.c.b16 %v9819_v42, %v4543_v28  ;;  %v3327_v16 = vsel %vm3311_vm14, %v3294_v24, %v9820_v37  ;;  %v9821_v27 = vld [vmem:[#allocation41_spill] sm:$0xff]  ;;  %v9822_v51 = vld [vmem:[#allocation39_spill] sm:$0xff]  ;;  %v9824_v28 = vld [vmem:[#allocation44_spill] sm:$0xff]  ;;  %v9839_v41 = vunpack.c.l.b16 %v8252_v50 }
 0x21b   : > { %v8242_v49 = vsel %vm3344_vm15, %v3315_v53, %v9821_v27  ;;  %v8246_v2 = vsel %vm3311_vm14, %v3304_v15, %v9822_v51  ;;  %v8256_v42 = vsel %vm3344_vm15, %v3321_v35, %v9824_v28  ;;  %v9825_v24 = vld [vmem:[#allocation42_spill] sm:$0xff]  ;;  %v9826_v53 = vld [vmem:[#allocation43_spill] sm:$0xff]  ;;  %v3360_v15 = vsel %vm3344_vm15, %v3327_v16, %v9827_v57  ;;  %v9829_v31 = vld [vmem:[#allocation104_spill] sm:$0xff] }
 0x21c   : > { %v3343_v37 = vsel %vm3311_vm14, %v3310_v46, %v9825_v24  ;;  %v3339_v27 = vsel %vm3311_vm14, %v3306_v43, %v9826_v53  ;;  %v4493_v51 = vpack.c.b16 %v4477_v47, %v9828_v62  ;;  %v4478_v35 = vunpack.c.l.b16 %v8236_v3  ;;  %v9830_v28 = vld [vmem:[#allocation67_spill] sm:$0xff]  ;;  %v9831_v43 = vld [vmem:[#allocation45_spill] sm:$0xff]  ;;  %v9832_v47 = vld [vmem:[#allocation46_spill] sm:$0xff] }
 0x21d   : > { %v3393_v17 = vsel %vm3377_vm0, %v3360_v15, %v9830_v28  ;;  %v4549_v46 = vunpack.c.h.b16 %v8037_v19  ;;  %v8274_v16 = vld [vmem:[#allocation2 + $0x40] sm:$0xf]  ;;  %v3346_v24 = vsel %vm3344_vm15, %v3313_v0, %v9832_v47  ;;  %v9834_v28 = vld [vmem:[#allocation48_spill] sm:$0xff]  ;;  %v9835_v19 = vld [vmem:[#allocation105_spill] sm:$0xff]  ;;  %v9836_v0 = vunpack.c.l.b16 %v9829_v31 }
 0x21e   : > { %4519 = vrot.lane.b32.xlu2 %v4491_v32, %s5908_s20  ;;  %4591 = vrot.lane.b32.xlu0 %v4575_v12, %s5909_s21  ;;  %v3350_v32 = vsel %vm3344_vm15, %v3317_v36, %v9831_v43  ;;  %v9833_v53 = vld [vmem:[#allocation95_spill] sm:$0xff]  ;;  %v3356_v12 = vsel %vm3344_vm15, %v3323_v22, %v9834_v28  ;;  %v9838_v28 = vld [vmem:[#allocation49_spill] sm:$0xff]  ;;  %v8301_v30 = vld [vmem:[#allocation2 + $0x4c] sm:$0xf]  ;;  %v4547_v31 = vunpack.c.h.b16 %v8016_v4 }
 0x21f   : > { %v3426_v62 = vsel %vm3410_vm2, %v3393_v17, %v9833_v53  ;;  %4523 = vrot.lane.b32.xlu1 %v4493_v51, %s5908_s20  ;;  %v4494_v43 = vpack.c.b16 %v4478_v35, %v9836_v0  ;;  %v4545_v17 = vunpack.c.h.b16 %v7927_v29  ;;  %v9837_v53 = vld [vmem:[#allocation50_spill] sm:$0xff]  ;;  %v4578_v51 = vpack.c.b16 %v9839_v41, %v4549_v46  ;;  %9840 = vst [vmem:[#allocation6_spill] sm:$0xff] %v8301_v30  ;;  %v9845_v41 = vld [vmem:[#allocation55_spill] sm:$0xff] }
 0x220   : > { %v8282_v15 = vpop.permute.xlu2 %3222  ;;  %v3459_v57 = vsel %vm3443_vm3, %v3426_v62, %v9835_v19  ;;  %v3213_v44 = vpop.permute.xlu0 %3212  ;;  %v3366_v22 = vsel %vm3344_vm15, %v3333_v40, %v9837_v53  ;;  %v3352_v62 = vsel %vm3344_vm15, %v3319_v20, %v9838_v28  ;;  %v9843_v0 = vld [vmem:[#allocation54_spill] sm:$0xff]  ;;  %v3368_v46 = vsel %vm3344_vm15, %v3335_v56, %v9845_v41  ;;  %v9846_v28 = vld [vmem:[#allocation57_spill] sm:$0xff] }
 0x221   : > { %v3492_v36 = vsel %vm3476_vm5, %v3459_v57, %v3213_v44  ;;  %v9841_v44 = vld [vmem:[#allocation52_spill] sm:$0xff]  ;;  %v9842_v57 = vld [vmem:[#allocation53_spill] sm:$0xff]  ;;  %v3379_v47 = vsel %vm3377_vm0, %v3346_v24, %v9843_v0  ;;  %v9844_v40 = vld [vmem:[#allocation62_spill] sm:$0xff]  ;;  %v8311_v20 = vpop.permute.xlu1 %3208  ;;  %v9613_v56 = vunpack.c.l.b16 %v8301_v30 }
 0x222   : > { %v3534_v19 = vsel %vm3516_vm6, %v3492_v36, 0  ;;  %v3372_v35 = vsel %vm3344_vm15, %v3339_v27, %v9841_v44  ;;  %v3358_v29 = vsel %vm3344_vm15, %v3325_v48, %v9842_v57  ;;  %v3376_v53 = vsel %vm3344_vm15, %v3343_v37, %v9844_v40  ;;  %v8313_v36 = vld [vmem:[#allocation2 + $0x7c] sm:$0xf]  ;;  %v9847_v44 = vld [vmem:[#allocation60_spill] sm:$0xff]  ;;  %v9848_v57 = vld [vmem:[#allocation69_spill] sm:$0xff] }
 0x223   : > { %3552 = vmatpush.bf16.xpose.msra.mxu2 %v3534_v19  ;;  %v3385_v27 = vsel %vm3377_vm0, %v3352_v62, %v9846_v28  ;;  %v3391_v48 = vsel %vm3377_vm0, %v3358_v29, %v9847_v44  ;;  %v3409_v24 = vsel %vm3377_vm0, %v3376_v53, %v9848_v57  ;;  %v9849_v0 = vld [vmem:[#allocation87_spill] sm:$0xff]  ;;  %v9850_v19 = vunpack.c.l.b16 %v8274_v16  ;;  %v9851_v41 = vld [vmem:[#allocation102_spill] sm:$0xff]  ;;  %v9852_v28 = vld [vmem:[#allocation113_spill] sm:$0xff] }
 0x224   : > { %v3424_v37 = vsel %vm3410_vm2, %v3391_v48, %v9849_v0  ;;  %v3442_v62 = vsel %vm3410_vm2, %v3409_v24, %v9851_v41  ;;  %v4555_v53 = vunpack.c.h.b16 %v8102_v8  ;;  %v9615_v44 = vunpack.c.l.b16 %v8313_v36  ;;  %v9853_v48 = vld [vmem:[#allocation58_spill] sm:$0xff]  ;;  %v9855_v8 = vld [vmem:[#allocation61_spill] sm:$0xff] }
 0x225   : > { %v4576_v40 = vpack.c.b16 %v9850_v19, %v4545_v17  ;;  %v3457_v29 = vsel %vm3443_vm3, %v3424_v37, %v9852_v28  ;;  %v3374_v4 = vsel %vm3344_vm15, %v8232_v58, %v9853_v48  ;;  %v9854_v17 = vld [vmem:[#allocation59_spill] sm:$0xff]  ;;  %v3475_v24 = vsel %vm3443_vm3, %v3442_v62, %v8168_v5  ;;  %v9856_v19 = vld [vmem:[#allocation64_spill] sm:$0xff]  ;;  %v9857_v58 = vld [vmem:[#allocation65_spill] sm:$0xff] }
 0x226   : > { %4525 = vrot.lane.b32.xlu2 %v4494_v43, %s5908_s20  ;;  %4597 = vrot.lane.b32.xlu0 %v4578_v51, %s5909_s21  ;;  %v8337_v43 = vld [vmem:[#allocation2 + $0x64] sm:$0xf]  ;;  %v3370_v57 = vsel %vm3344_vm15, %v8246_v2, %v9854_v17  ;;  %v3490_v51 = vsel %vm3476_vm5, %v3457_v29, %v8129_v60  ;;  %v3381_v37 = vsel %vm3377_vm0, %v8242_v49, %v9855_v8  ;;  %v9859_v62 = vld [vmem:[#allocation114_spill] sm:$0xff]  ;;  %v9861_v8 = vld [vmem:[#allocation68_spill] sm:$0xff] }
 0x227   : > { %v3387_v41 = vsel %vm3377_vm0, %v8256_v42, %v9856_v19  ;;  %v3383_v28 = vsel %vm3377_vm0, %v3350_v32, %v9857_v58  ;;  %4593 = vrot.lane.b32.xlu1 %v4576_v40, %s5909_s21  ;;  %v4577_v60 = vpack.c.b16 %v9613_v56, %v4547_v31  ;;  %v4551_v49 = vunpack.c.h.b16 %v9859_v62  ;;  %v9860_v17 = vld [vmem:[#allocation66_spill] sm:$0xff]  ;;  %v9863_v58 = vld [vmem:[#allocation72_spill] sm:$0xff]  ;;  %v9864_v62 = vld [vmem:[#allocation73_spill] sm:$0xff] }
 0x228   : > { %v3229_v0 = vpop.permute.xlu2 %3228  ;;  %v8357_v48 = vpop.permute.xlu0 %3218  ;;  %v9614_v29 = vunpack.c.l.b16 %v8337_v43  ;;  %v3403_v42 = vsel %vm3377_vm0, %v3370_v57, %v9860_v17  ;;  %v3389_v32 = vsel %vm3377_vm0, %v3356_v12, %v9861_v8  ;;  %v3532_v19 = vsel %vm3516_vm6, %v3490_v51, 0  ;;  %v9865_v17 = vld [vmem:[#allocation74_spill] sm:$0xff]  ;;  %v8385_v51 = vld [vmem:[#allocation2 + $0xa0] sm:$0xf]  ;;  %v9868_v56 = vld [vmem:[#allocation77_spill] sm:$0xff] }
 0x229   : > { %9858 = vst [vmem:[#allocation7_spill] sm:$0xff] %v8357_v48  ;;  %v3508_v2 = vsel %vm3476_vm5, %v3475_v24, %v3229_v0  ;;  %v4581_v40 = vpack.c.b16 %v9615_v44, %v4555_v53  ;;  %v8373_v24 = vld [vmem:[#allocation2 + $0x70] sm:$0xf]  ;;  %v9862_v0 = vld [vmem:[#allocation70_spill] sm:$0xff]  ;;  %v3405_v57 = vsel %vm3377_vm0, %v3372_v35, %v9864_v62  ;;  %v3401_v12 = vsel %vm3377_vm0, %v3368_v46, %v9865_v17  ;;  %v8383_v8 = vpop.permute.xlu1 %3214  ;;  %v9867_v53 = vld [vmem:[#allocation76_spill] sm:$0xff] }
 0x22a   : > { %v3550_v5 = vsel %vm3516_vm6, %v3508_v2, 0  ;;  %v3399_v31 = vsel %vm3377_vm0, %v3366_v22, %v9862_v0  ;;  %v3416_v2 = vsel %vm3410_vm2, %v3383_v28, %v9863_v58  ;;  %9866 = vst [vmem:[#allocation8_spill] sm:$0xff] %v8383_v8  ;;  %v3412_v22 = vsel %vm3410_vm2, %v3379_v47, %v9868_v56  ;;  %v9869_v0 = vld [vmem:[#allocation78_spill] sm:$0xff]  ;;  %v9871_v62 = vld [vmem:[#allocation83_spill] sm:$0xff]  ;;  %v9872_v47 = vld [vmem:[#allocation85_spill] sm:$0xff] }
 0x22b   : > { %3565 = vmatpush.bf16.xpose.msra.mxu3 %v3550_v5  ;;  %3553 = vmatpush.bf16.xpose.msra.mxu2 %v3532_v19  ;;  %v3422_v5 = vsel %vm3410_vm2, %v3389_v32, %v9867_v53  ;;  %v3407_v28 = vsel %vm3377_vm0, %v3374_v4, %v9869_v0  ;;  %v9870_v58 = vld [vmem:[#allocation82_spill] sm:$0xff]  ;;  %v3414_v46 = vsel %vm3410_vm2, %v3381_v37, %v9871_v62  ;;  %v4553_v17 = vunpack.c.h.b16 %v8063_v9  ;;  %v3590_v53 = vld [vmem:[#allocation2 + $0x30] sm:$0xf]  ;;  %v8411_v0 = vld [vmem:[#allocation2 + $0x88] sm:$0xf] }
 0x22c   : > { %v3418_v35 = vsel %vm3410_vm2, %v3385_v27, %v9870_v58  ;;  %v4579_v19 = vpack.c.b16 %v9614_v29, %v4551_v49  ;;  %v9616_v32 = vunpack.c.l.b16 %v8373_v24  ;;  %v8404_v56 = vsel %vm3410_vm2, %v3401_v12, %v9872_v47  ;;  %v9873_v4 = vld [vmem:[#allocation109_spill] sm:$0xff]  ;;  %v9874_v49 = vld [vmem:[#allocation90_spill] sm:$0xff]  ;;  %v9875_v58 = vld [vmem:[#allocation91_spill] sm:$0xff] }
 0x22d   : > { %v3455_v27 = vsel %vm3443_vm3, %v3422_v5, %v9873_v4  ;;  %v4561_v37 = vunpack.c.h.b16 %v8158_v54  ;;  %v3420_v9 = vsel %vm3410_vm2, %v3387_v41, %v9874_v49  ;;  %v3440_v62 = vsel %vm3410_vm2, %v3407_v28, %v9875_v58  ;;  %v9876_v29 = vld [vmem:[#allocation96_spill] sm:$0xff]  ;;  %v9877_v5 = vld [vmem:[#allocation107_spill] sm:$0xff]  ;;  %v9880_v49 = vld [vmem:[#allocation98_spill] sm:$0xff] }
 0x22e   : > { %4595 = vrot.lane.b32.xlu2 %v4577_v60, %s5909_s21  ;;  %4603 = vrot.lane.b32.xlu0 %v4581_v40, %s5909_s21  ;;  %v9617_v60 = vunpack.c.l.b16 %v8385_v51  ;;  %v8419_v12 = vsel %vm3443_vm3, %v3414_v46, %v9876_v29  ;;  %v3488_v40 = vsel %vm3476_vm5, %v3455_v27, %v8311_v20  ;;  %v3445_v54 = vsel %vm3443_vm3, %v3412_v22, %v9877_v5  ;;  %v9879_v27 = vld [vmem:[#allocation115_spill] sm:$0xff]  ;;  %v9882_v5 = vld [vmem:[#allocation101_spill] sm:$0xff] }
 0x22f   : > { %v9619_v4 = vrot.slane %v8170_v39, 6  ;;  %v4327_v28 = vunpack.c.l.b16 %v3590_v53  ;;  %4599 = vrot.lane.b32.xlu1 %v4579_v19, %s5909_s21  ;;  %v4580_v29 = vpack.c.b16 %v9616_v32, %v4553_v17  ;;  %v4557_v46 = vunpack.c.h.b16 %v8049_v7  ;;  %v9881_v17 = vld [vmem:[#allocation99_spill] sm:$0xff] }
 0x230   : > { %v4418_v47 = vpop.permute.xlu2 %4417  ;;  %v8430_v41 = vpop.permute.xlu0 %3224  ;;  %v9618_v20 = vunpack.c.l.b16 %v8411_v0  ;;  %v3478_v22 = vsel %vm3476_vm5, %v3445_v54, %v9879_v27  ;;  %v8441_v58 = vsel %vm3410_vm2, %v3403_v42, %v9880_v49  ;;  %v3530_v53 = vsel %vm3516_vm6, %v3488_v40, 0  ;;  %v9883_v27 = vld [vmem:[#allocation103_spill] sm:$0xff]  ;;  %v9884_v49 = vld [vmem:[#allocation106_spill] sm:$0xff] }
 0x231   : > { %v8428_v44 = vsel %vm772_vm1, %v8174_v63, %v4418_v47  ;;  %v4584_v19 = vpack.c.b16 %v9617_v60, %v4561_v37  ;;  %v8447_v47 = vld [vmem:[#allocation2 + $0x94] sm:$0xf]  ;;  %v8451_v7 = vsel %vm3410_vm2, %v3399_v31, %v9881_v17  ;;  %v3453_v54 = vsel %vm3443_vm3, %v3420_v9, %v9882_v5  ;;  %v8461_v40 = vpop.permute.xlu1 %3220  ;;  %v8463_v37 = vld [vmem:[#allocation2 + $0xc4] sm:$0xf]  ;;  %v9886_v60 = vld [vmem:[#allocation110_spill] sm:$0xff] }
 0x232   : > { %9878 = vst [vmem:[#allocation9_spill] sm:$0xff] %v8428_v44  ;;  %v3438_v42 = vsel %vm3410_vm2, %v3405_v57, %v9883_v27  ;;  %v8459_v32 = vsel %vm3443_vm3, %v3416_v2, %v9884_v49  ;;  %v3451_v63 = vsel %vm3443_vm3, %v3418_v35, %v9886_v60  ;;  %v8469_v31 = vrot.slane %v9619_v4, 4  ;;  %v9887_v9 = vld [vmem:[#allocation86_spill] sm:$0xff]  ;;  %v8482_v60 = vld [vmem:[#allocation2 + $0xac] sm:$0xf] }
 0x233   : > { %3554 = vmatpush.bf16.xpose.msra.mxu2 %v3530_v53  ;;  %9885 = vst [vmem:[#allocation10_spill] sm:$0xff] %v8463_v37  ;;  %v9888_v17 = vunpack.c.l.b16 %v9887_v9  ;;  %v8474_v57 = vsel %vm3516_vm6, %v3478_v22, 0  ;;  %v4582_v53 = vpack.c.b16 %v9618_v20, %v4557_v46  ;;  %v4559_v27 = vunpack.c.h.b16 %v8120_v21  ;;  %v3596_v49 = vld [vmem:[#allocation2 + $0x54] sm:$0xf]  ;;  %v3586_v46 = vld [vmem:[#allocation2 + $0x18] sm:$0xf] }
 0x234   : > { %9889 = vst [vmem:[#allocation11_spill] sm:$0xff] %v8474_v57  ;;  %v9890_v9 = vrot.slane %v8252_v50, 6  ;;  %v3486_v35 = vsel %vm3476_vm5, %v3453_v54, %v8217_v6  ;;  %v4333_v2 = vunpack.c.l.b16 %v3596_v49  ;;  %v3582_v21 = vld [vmem:[#allocation2] sm:$0xf]  ;;  %v3473_v20 = vsel %vm3443_vm3, %v3440_v62, %v8071_v13  ;;  %v8522_v62 = vld [vmem:[#allocation2 + $0xb8] sm:$0xf] }
 0x235   : > { %v4355_v5 = vpack.c.b16 %v9888_v17, %v4327_v28  ;;  %v9893_v8 = vrot.slane %v8274_v16, 6  ;;  %v9895_v54 = vrot.slane %v8301_v30, 6  ;;  %v9896_v49 = vunpack.c.l.b16 %v8463_v37  ;;  %9897 = vst [vmem:[#allocation13_spill] sm:$0xff] %v8522_v62  ;;  %v9903_v57 = vld [vmem:[#allocation75_spill] sm:$0xff] }
 0x236   : > { %4601 = vrot.lane.b32.xlu2 %v4580_v29, %s5909_s21  ;;  %v8486_v28 = vrot.slane %v9890_v9, 4  ;;  %4609 = vrot.lane.b32.xlu0 %v4584_v19, %s5909_s21  ;;  %v4567_v29 = vunpack.c.h.b16 %v8236_v3  ;;  %v3484_v9 = vsel %vm3476_vm5, %v3451_v63, %v8065_v25  ;;  %v4563_v3 = vunpack.c.h.b16 %v8106_v14 }
 0x237   : > { %v8509_v6 = vrot.slane %v9893_v8, 4  ;;  %4605 = vrot.lane.b32.xlu1 %v4582_v53, %s5909_s21  ;;  %v9894_v25 = vunpack.c.l.b16 %v8447_v47  ;;  %v4323_v63 = vunpack.c.l.b16 %v3586_v46  ;;  %v8516_v14 = vrot.slane %v9895_v54, 4 }
 0x238   : > { %v4424_v4 = vpop.permute.xlu2 %4423  ;;  %v8501_v19 = vpop.permute.xlu0 %3513  ;;  %v4587_v17 = vpack.c.b16 %v9896_v49, %v4567_v29  ;;  %v3526_v13 = vsel %vm3516_vm6, %v3484_v9, 0  ;;  %v9898_v8 = vrot.slane %v8313_v36, 6  ;;  %v4319_v54 = vunpack.c.l.b16 %v3582_v21  ;;  %v9900_v9 = vld [vmem:[#allocation111_spill] sm:$0xff]  ;;  %v3858_v21 = vld [vmem:[#allocation2 + $0x48] sm:$0xc] }
 0x239   : > { %v8499_v22 = vsel %vm772_vm1, %v4355_v5, %v4424_v4  ;;  %9892 = vst [vmem:[#allocation12_spill] sm:$0xff] %v8501_v19  ;;  %v4583_v4 = vpack.c.b16 %v9894_v25, %v4559_v27  ;;  %v3528_v5 = vsel %vm3516_vm6, %v3486_v35, 0  ;;  %v9899_v27 = vrot.slane %v8337_v43, 6  ;;  %v3227_v25 = vpop.permute.xlu1 %3226  ;;  %v3852_v19 = vld [vmem:[#allocation2 + $0xe4] sm:$0xf] }
 0x23a   : > { %9891 = vst [vmem:[#allocation92_spill] sm:$0xff] %v8499_v22  ;;  %v8526_v53 = vrot.slane %v9898_v8, 4  ;;  %v8532_v35 = vld [vmem:[#allocation2 + $0xe8] sm:$0xf]  ;;  %v3480_v29 = vsel %vm3476_vm5, %v8419_v12, %v8140_v33  ;;  %v3471_v49 = vsel %vm3443_vm3, %v3438_v42, %v9900_v9  ;;  %v3506_v8 = vsel %vm3476_vm5, %v3473_v20, %v3227_v25  ;;  %v8550_v25 = vld [vmem:[#allocation2 + $0xd0] sm:$0xf] }
 0x23b   : > { %v8530_v46 = vrot.slane %v9899_v27, 4  ;;  %3555 = vmatpush.bf16.xpose.msra.mxu2 %v3528_v5  ;;  %v9901_v37 = vunpack.c.l.b16 %v8482_v60  ;;  %v9902_v27 = vunpack.c.l.b16 %v7723_v26  ;;  %v3848_v5 = vld [vmem:[#allocation2 + $0xcc] sm:$0xf]  ;;  %v3548_v23 = vsel %vm3516_vm6, %v3506_v8, 0  ;;  %v3854_v9 = vld [vmem:[#allocation2 + $0x30] sm:$0xc] }
 0x23c   : > { %v9904_v33 = vunpack.c.l.b16 %v9903_v57  ;;  %v4565_v42 = vunpack.c.h.b16 %v8199_v18  ;;  %3566 = vmatpush.bf16.xpose.msra.mxu3 %v3548_v23  ;;  %v8556_v57 = vsel %vm3516_vm6, %v3480_v29, 0  ;;  %v9905_v8 = vld [vmem:[#allocation79_spill] sm:$0xff]  ;;  %v5801_v20 = vrot.slane %v3858_v21, 10  ;;  %v3856_v21 = vld [vmem:[#allocation2 + $0x3c] sm:$0xc] }
 0x23d   : > { %v4585_v22 = vpack.c.b16 %v9901_v37, %v4563_v3  ;;  %v4358_v44 = vpack.c.b16 %v9902_v27, %v4333_v2  ;;  %v3602_v37 = vld [vmem:[#allocation2 + $0x78] sm:$0xf]  ;;  %v4573_v2 = vunpack.c.l.b16 %v3852_v19  ;;  %v9906_v27 = vunpack.c.l.b16 %v9905_v8 }
 0x23e   : > { %4607 = vrot.lane.b32.xlu2 %v4583_v4, %s5909_s21  ;;  %v4353_v12 = vpack.c.b16 %v9904_v33, %v4323_v63  ;;  %4615 = vrot.lane.b32.xlu0 %v4587_v17, %s5909_s21  ;;  %v3855_v4 = vld [vmem:[#allocation2 + $0x38] sm:$0x3]  ;;  %v4569_v19 = vunpack.c.l.b16 %v3848_v5  ;;  %v9627_v26 = vunpack.c.l.b16 %v8550_v25  ;;  %v4339_v3 = vunpack.c.l.b16 %v3602_v37 }
 0x23f   : > { %v4351_v33 = vpack.c.b16 %v9906_v27, %v4319_v54  ;;  %4611 = vrot.lane.b32.xlu1 %v4585_v22, %s5909_s21  ;;  %v9907_v18 = vunpack.c.l.b16 %v8522_v62  ;;  %v5799_v8 = vrot.slane %v3854_v9, 10  ;;  %v3939_v54 = vrot.slane %v3855_v4, 6  ;;  %v3857_v9 = vld [vmem:[#allocation2 + $0x44] sm:$0x3] }
 0x240   : > { %v4430_v63 = vpop.permute.xlu2 %4429  ;;  %v4420_v17 = vpop.permute.xlu0 %4419  ;;  %v3469_v5 = vsel %vm3443_vm3, %v8441_v58, %v8104_v61  ;;  %v3504_v22 = vsel %vm3476_vm5, %v3471_v49, %v8430_v41  ;;  %v9910_v4 = vrot.slane %v8373_v24, 6  ;;  %v3954_v41 = vsel %vm6015_vm4, %v8516_v14, %v3953_v10  ;;  %v3608_v49 = vld [vmem:[#allocation2 + $0x9c] sm:$0xf] }
 0x241   : > { %v8562_v23 = vsel %vm772_vm1, %v4358_v44, %v4430_v63  ;;  %v8567_v29 = vsel %vm772_vm1, %v4353_v12, %v4420_v17  ;;  %v4586_v48 = vpack.c.b16 %v9907_v18, %v4565_v42  ;;  %v8574_v44 = vsel %vm3443_vm3, %v8404_v56, %v9908_v59  ;;  %v3850_v63 = vld [vmem:[#allocation2 + $0xd8] sm:$0xf]  ;;  %v8583_v42 = vld [vmem:[#allocation2 + $0xdc] sm:$0xf]  ;;  %v4416_v27 = vpop.permute.xlu1 %4415  ;;  %v3864_v56 = vld [vmem:[#allocation2 + $0x6c] sm:$0xc] }
 0x242   : > { %v9909_v12 = vunpack.c.l.b16 %v8532_v35  ;;  %v3973_v18 = vrot.slane %v9910_v4, 4  ;;  %v9911_v17 = vrot.slane %v8301_v30, 6  ;;  %v4588_v59 = vpack.c.b16 %v9627_v26, %v4569_v19  ;;  %v3865_v30 = vld [vmem:[#allocation2 + $0x74] sm:$0x3]  ;;  %v3592_v26 = vld [vmem:[#allocation2 + $0x3c] sm:$0xf] }
 0x243   : > { %3556 = vmatpush.bf16.xpose.msra.mxu2 %v3526_v13  ;;  %v5800_v13 = vrot.slane %v3856_v21, 10  ;;  %v3546_v62 = vsel %vm3516_vm6, %v3504_v22, 0  ;;  %v4572_v10 = vunpack.c.l.b16 %v8583_v42  ;;  %v3946_v14 = vrot.slane %v3857_v9, 6 }
 0x244   : > { %v4590_v37 = vpack.c.b16 %v9909_v12, %v4573_v2  ;;  %v3951_v58 = vsel %vm6015_vm4, %v5801_v20, %v9911_v17  ;;  %v8596_v2 = vsel %vm772_vm1, %v4351_v33, %v4416_v27  ;;  %v9913_v12 = vunpack.c.l.b16 %v7762_v11  ;;  %v3860_v17 = vld [vmem:[#allocation2 + $0x54] sm:$0xc]  ;;  %v3861_v33 = vld [vmem:[#allocation2 + $0x5c] sm:$0x3]  ;;  %3567 = vmatpush.bf16.xpose.msra.mxu3 %v3546_v62 }
 0x245   : > { %v4571_v20 = vunpack.c.l.b16 %v3850_v63  ;;  %v4627_v19 = vunpack.c.l.b16 %v3951_v58  ;;  %v4628_v27 = vunpack.c.l.b16 %v3954_v41  ;;  %v9914_v11 = vrot.slane %v8170_v39, 6 }
 0x246   : > { %v4361_v4 = vpack.c.b16 %v9913_v12, %v4339_v3  ;;  %4613 = vrot.lane.b32.xlu2 %v4586_v48, %s5909_s21  ;;  %4621 = vrot.lane.b32.xlu0 %v4590_v37, %s5909_s21  ;;  %v3940_v48 = vsel %vm6015_vm4, %v8469_v31, %v3939_v54  ;;  %v3482_v22 = vsel %vm3476_vm5, %v8459_v32, %v8250_v1  ;;  %v4345_v63 = vunpack.c.l.b16 %v3608_v49 }
 0x247   : > { %v3937_v3 = vsel %vm6015_vm4, %v5799_v8, %v9914_v11  ;;  %v5804_v62 = vrot.slane %v3864_v56, 10  ;;  %v3974_v9 = vrot.slane %v3865_v30, 6  ;;  %v9915_v41 = vrot.slane %v8274_v16, 6  ;;  %4617 = vrot.lane.b32.xlu1 %v4588_v59, %s5909_s21  ;;  %v3862_v56 = vld [vmem:[#allocation2 + $0x60] sm:$0xc] }
 0x248   : > { %v4436_v21 = vpop.permute.xlu2 %4435  ;;  %v8619_v58 = vpop.permute.xlu0 %4425  ;;  %v5802_v12 = vrot.slane %v3860_v17, 10  ;;  %v3960_v31 = vrot.slane %v3861_v33, 6  ;;  %v4589_v1 = vpack.c.b16 %v4572_v10, %v4571_v20  ;;  %v4623_v32 = vunpack.c.l.b16 %v3937_v3  ;;  %v3863_v33 = vld [vmem:[#allocation2 + $0x68] sm:$0x3]  ;;  %v3870_v59 = vld [vmem:[#allocation2 + $0x90] sm:$0xc] }
 0x249   : > { %v8617_v37 = vsel %vm772_vm1, %v4361_v4, %v4436_v21  ;;  %v3944_v8 = vsel %vm6015_vm4, %v5800_v13, %v9915_v41  ;;  %v4624_v54 = vunpack.c.l.b16 %v3940_v48  ;;  %v3947_v30 = vsel %vm6015_vm4, %v8509_v6, %v3946_v14  ;;  %v8635_v11 = vpop.permute.xlu1 %4421  ;;  %v8654_v41 = vld [vmem:[#allocation2 + $0x80] sm:$0xff]  }
 0x24a   : > { %v3992_v49 = vrot.slane %v8447_v47, 6  ;;  %v3524_v4 = vsel %vm3516_vm6, %v3482_v22, 0  ;;  %v3502_v13 = vsel %vm3476_vm5, %v3469_v5, %v8282_v15  ;;  %v4657_v17 = vpack.c.b16 %v4628_v27, %v4627_v19  ;;  %v3871_v22 = vld [vmem:[#allocation2 + $0x98] sm:$0x3] }
 0x24b   : > { %3557 = vmatpush.bf16.xpose.msra.mxu2 %v3524_v4  ;;  %v9916_v20 = vunpack.c.l.b16 %v7825_v45  ;;  %v4625_v48 = vunpack.c.l.b16 %v3944_v8  ;;  %v9917_v6 = vrot.slane %v8373_v24, 6  ;;  %v3975_v21 = vsel %vm6015_vm4, %v3973_v18, %v3974_v9 }
 0x24c   : > { %v4626_v15 = vunpack.c.l.b16 %v3947_v30  ;;  %v9918_v5 = vrot.slane %v8252_v50, 6  ;;  %v3961_v45 = vsel %vm6015_vm4, %v8486_v28, %v3960_v31  ;;  %v5803_v27 = vrot.slane %v3862_v56, 10 }
 0x24d   : > { %v4364_v3 = vpack.c.b16 %v9916_v20, %v4345_v63  ;;  %v3972_v14 = vsel %vm6015_vm4, %v5804_v62, %v9917_v6  ;;  %v3544_v63 = vsel %vm3516_vm6, %v3502_v13, 0  ;;  %v4655_v62 = vpack.c.b16 %v4624_v54, %v4623_v32  ;;  %v3866_v20 = vld [vmem:[#allocation2 + $0x78] sm:$0xc]  ;;  %v3867_v6 = vld [vmem:[#allocation2 + $0x80] sm:$0x3] }
 0x24e   : > { %v3958_v19 = vsel %vm6015_vm4, %v5802_v12, %v9918_v5  ;;  %4619 = vrot.lane.b32.xlu2 %v4589_v1, %s5909_s21  ;;  %v3967_v18 = vrot.slane %v3863_v33, 6  ;;  %v5807_v9 = vrot.slane %v3870_v59, 10  ;;  %v3994_v8 = vrot.slane %v3992_v49, 4  ;;  %3568 = vmatpush.bf16.xpose.msra.mxu3 %v3544_v63 }
 0x24f   : > { %4675 = vrot.lane.b32.xlu0 %v4657_v17, %s5910_s22  ;;  %v4633_v30 = vunpack.c.l.b16 %v3972_v14  ;;  %v4634_v12 = vunpack.c.l.b16 %v3975_v21  ;;  %v3995_v4 = vrot.slane %v3871_v22, 6  ;;  %v9919_v28 = vrot.slane %v8411_v0, 6  ;;  %4671 = vrot.lane.b32.xlu1 %v4655_v62, %s5910_s22 }
 0x250   : > { %v4442_v56 = vpop.permute.xlu2 %4441  ;;  %v3500_v1 = vsel %vm3476_vm5, %v8574_v44, %v8461_v40  ;;  %v4629_v32 = vunpack.c.l.b16 %v3958_v19  ;;  %v4630_v54 = vunpack.c.l.b16 %v3961_v45  ;;  %v8667_v17 = vpop.permute.xlu0 %4431  ;;  %v4656_v33 = vpack.c.b16 %v4626_v15, %v4625_v48  ;;  %v3868_v45 = vld [vmem:[#allocation2 + $0x84] sm:$0xc] }
 0x251   : > { %v8659_v31 = vrot.slane %v9919_v28, 4  ;;  %v8665_v13 = vsel %vm772_vm1, %v4364_v3, %v4442_v56  ;;  %v4341_v59 = vunpack.c.h.b16 %v8654_v41  ;;  %v9920_v14 = vrot.slane %v8337_v43, 6 }
 0x252   : > { %v3968_v40 = vsel %vm6015_vm4, %v8530_v46, %v3967_v18  ;;  %v3993_v44 = vsel %vm6015_vm4, %v5807_v9, %v3992_v49  ;;  %v5805_v3 = vrot.slane %v3866_v20, 10  ;;  %v3981_v22 = vrot.slane %v3867_v6, 6  ;;  %v9923_v46 = vld [vmem:[#allocation36_spill] sm:$0xff]  ;;  %v8694_v20 = vpop.permute.xlu1 %4427 }
 0x253   : > { %v3965_v21 = vsel %vm6015_vm4, %v5803_v27, %v9920_v14  ;;  %v4041_v48 = vrot.slane %v8532_v35, 6  ;;  %v3542_v15 = vsel %vm3516_vm6, %v3500_v1, 0  ;;  %v4660_v5 = vpack.c.b16 %v4634_v12, %v4633_v30  ;;  %v9924_v18 = vld [vmem:[#allocation108_spill] sm:$0xff]  ;;  %3558 = vmatpush.bf16.xpose.msra.mxu2 %v8556_v57  ;;  %v3884_v12 = vld [vmem:[#allocation2 + $0xe4] sm:$0xc] }
 0x254   : > { %v3996_v19 = vsel %vm6015_vm4, %v3994_v8, %v3995_v4  ;;  %v9921_v27 = vunpack.c.l.b16 %v8087_v38  ;;  %v9922_v63 = vunpack.c.l.b16 %v8094_v55  ;;  %v3331_v49 = vsel %vm3311_vm14, %v8164_v52, %v9923_v46  ;;  %v3869_v8 = vld [vmem:[#allocation2 + $0x8c] sm:$0x3]  ;;  %v3588_v38 = vld [vmem:[#allocation2 + $0x24] sm:$0xf] }
 0x255   : > { %v3465_v9 = vsel %vm3443_vm3, %v8451_v7, %v9924_v18  ;;  %v4658_v30 = vpack.c.b16 %v4630_v54, %v4629_v32  ;;  %v3885_v4 = vld [vmem:[#allocation2 + $0xec] sm:$0x3]  ;;  %v9925_v55 = vunpack.c.l.b16 %v9791_v34  ;;  %v4631_v28 = vunpack.c.l.b16 %v3965_v21 }
 0x256   : > { %v2582_v62 = vpack.c.b16 %v9922_v63, %v9921_v27  ;;  %v4632_v56 = vunpack.c.l.b16 %v3968_v40  ;;  %v4639_v1 = vunpack.c.l.b16 %v3993_v44  ;;  %4673 = vrot.lane.b32.xlu2 %v4656_v33, %s5910_s22  ;;  %v4640_v52 = vunpack.c.l.b16 %v3996_v19  ;;  %3569 = vmatpush.bf16.xpose.msra.mxu3 %v3542_v15  ;;  %v3872_v40 = vld [vmem:[#allocation2 + $0x9c] sm:$0xc]  ;;  %v9928_v63 = vld [vmem:[#allocation7_spill] sm:$0xff] }
 0x257   : > { %v4362_v6 = vpack.c.b16 %v9925_v55, %v4341_v59  ;;  %v9926_v7 = vrot.slane %v8313_v36, 6  ;;  %v3982_v57 = vsel %vm6015_vm4, %v8526_v53, %v3981_v22  ;;  %v5806_v32 = vrot.slane %v3868_v45, 10  ;;  %4681 = vrot.lane.b32.xlu0 %v4660_v5, %s5910_s22  ;;  %v3873_v53 = vld [vmem:[#allocation2 + $0xa4] sm:$0x3]  ;;  %4677 = vrot.lane.b32.xlu1 %v4658_v30, %s5910_s22 }
 0x258   : > { %v4043_v54 = vrot.slane %v4041_v48, 4  ;;  %v3988_v34 = vrot.slane %v3869_v8, 6  ;;  %v5814_v59 = vrot.slane %v3884_v12, 10  ;;  %v4044_v21 = vrot.slane %v3885_v4, 6  ;;  %v4438_v15 = vpop.permute.xlu0 %4437  ;;  %v8721_v4 = vld [vmem:[#allocation2 + $0x8c] sm:$0xff]  }
 0x259   : > { %v3979_v14 = vsel %vm6015_vm4, %v5805_v3, %v9926_v7  ;;  %v9927_v33 = vrot.slane %v8385_v51, 6  ;;  %v4006_v19 = vrot.slane %v8482_v60, 6  ;;  %v4325_v27 = vunpack.c.l.b16 %v3588_v38  ;;  %v4496_v3 = vpop.permute.xlu2 %4495 }
 0x25a   : > { %v3498_v46 = vsel %vm3476_vm5, %v3465_v9, %v9928_v63  ;;  %v8715_v22 = vsel %vm3278_vm13, %v8596_v2, %v4496_v3  ;;  %v4659_v5 = vpack.c.b16 %v4632_v56, %v4631_v28  ;;  %v4635_v45 = vunpack.c.l.b16 %v3979_v14  ;;  %v9930_v56 = vld [vmem:[#allocation4_spill] sm:$0xff] }
 0x25b   : > { %v4001_v44 = vrot.slane %v9927_v33, 4  ;;  %v4636_v18 = vunpack.c.l.b16 %v3982_v57  ;;  %v8719_v8 = vsel %vm772_vm1, %v4362_v6, %v4438_v15  ;;  %v4663_v12 = vpack.c.b16 %v4640_v52, %v4639_v1  ;;  %v9931_v52 = vld [vmem:[#allocation56_spill] sm:$0xff]  ;;  %v9934_v33 = vld [vmem:[#allocation11_spill] sm:$0xff] }
 0x25c   : > { %v9929_v38 = vrot.slane %v8411_v0, 6  ;;  %v5808_v55 = vrot.slane %v3872_v40, 10  ;;  %v3989_v2 = vsel %vm6015_vm4, %v8659_v31, %v3988_v34  ;;  %v4042_v28 = vsel %vm6015_vm4, %v5814_v59, %v4041_v48  ;;  %v9932_v14 = vld [vmem:[#allocation84_spill] sm:$0xff]  ;;  %v8740_v40 = vpop.permute.xlu1 %4433  ;;  %3559 = vmatpush.bf16.xpose.msra.mxu2 %v9934_v33  ;;  %v3875_v34 = vld [vmem:[#allocation2 + $0xb0] sm:$0x3] }
 0x25d   : > { %v4045_v30 = vsel %vm6015_vm4, %v4043_v54, %v4044_v21  ;;  %v4002_v6 = vrot.slane %v3873_v53, 6  ;;  %v3256_v1 = vsel %vm772_vm1, %v2582_v62, %v9930_v56  ;;  %v3364_v7 = vsel %vm3344_vm15, %v3331_v49, %v9931_v52  ;;  %v3874_v31 = vld [vmem:[#allocation2 + $0xa8] sm:$0xc]  ;;  %v9942_v33 = vld [vmem:[#allocation117_spill] sm:$0xff] }
 0x25e   : > { %v3986_v9 = vsel %vm6015_vm4, %v5806_v32, %v9929_v38  ;;  %v9933_v57 = vunpack.c.l.b16 %v9932_v14  ;;  %v4008_v48 = vrot.slane %v4006_v19, 4  ;;  %v3594_v54 = vld [vmem:[#allocation2 + $0x48] sm:$0xf]  ;;  %v3540_v59 = vsel %vm3516_vm6, %v3498_v46, 0  ;;  %4679 = vrot.lane.b32.xlu2 %v4659_v5, %s5910_s22  ;;  %v9936_v38 = vld [vmem:[#allocation23_spill] sm:$0xff] }
 0x25f   : > { %v4661_v21 = vpack.c.b16 %v4636_v18, %v4635_v45  ;;  %v4343_v62 = vunpack.c.h.b16 %v8721_v4  ;;  %v4637_v49 = vunpack.c.l.b16 %v3986_v9  ;;  %v4638_v3 = vunpack.c.l.b16 %v3989_v2  ;;  %3570 = vmatpush.bf16.xpose.msra.mxu3 %v3540_v59  ;;  %4687 = vrot.lane.b32.xlu0 %v4663_v12, %s5910_s22  ;;  %v9937_v9 = vld [vmem:[#allocation63_spill] sm:$0xff]  ;;  %v9938_v56 = vld [vmem:[#allocation32_spill] sm:$0xff] }
 0x260   : > { %v4354_v32 = vpack.c.b16 %v9933_v57, %v4325_v27  ;;  %v4653_v27 = vunpack.c.l.b16 %v4042_v28  ;;  %v4654_v63 = vunpack.c.l.b16 %v4045_v30  ;;  %v9935_v53 = vrot.slane %v8385_v51, 6  ;;  %v9940_v14 = vld [vmem:[#allocation100_spill] sm:$0xff] }
 0x261   : > { %v4003_v46 = vsel %vm6015_vm4, %v4001_v44, %v4002_v6  ;;  %v5809_v45 = vrot.slane %v3874_v31, 10  ;;  %v4009_v18 = vrot.slane %v3875_v34, 6  ;;  %v3296_v5 = vsel %vm3278_vm13, %v3256_v1, %v9936_v38  ;;  %v4502_v30 = vpop.permute.xlu2 %4501  ;;  %v9939_v6 = vld [vmem:[#allocation93_spill] sm:$0xff]  ;;  %4683 = vrot.lane.b32.xlu1 %v4661_v21, %s5910_s22  ;;  %v3600_v38 = vld [vmem:[#allocation2 + $0x6c] sm:$0xf] }
 0x262   : > { %v4000_v15 = vsel %vm6015_vm4, %v5808_v55, %v9935_v53  ;;  %v3397_v2 = vsel %vm3377_vm0, %v3364_v7, %v9937_v9  ;;  %v5050_v28 = vsel %vm772_vm1, %v4354_v32, %v8635_v11  ;;  %v4331_v12 = vunpack.c.l.b16 %v3594_v54  ;;  %v8764_v55 = vld [vmem:[%s9564_s3] sm:$0xf]  ;;  %v8773_v7 = vpop.permute.xlu0 %4443  ;;  %v8777_v32 = vld [vmem:[#allocation2 + $0x118] sm:$0xf]  ;;  %v8782_v53 = vld [vmem:[#allocation2 + $0xb0] sm:$0xff]  }
 0x263   : > { %v3329_v44 = vsel %vm3311_vm14, %v3296_v5, %v9938_v56  ;;  %v3430_v52 = vsel %vm3410_vm2, %v3397_v2, %v9939_v6  ;;  %v8771_v1 = vsel %vm3278_vm13, %v5050_v28, %v4502_v30  ;;  %v9941_v11 = vunpack.c.l.b16 %v9940_v14  ;;  %5781 = vmatmul.msk.bf16.vlgmr.msra.gmra.mxu2 %vm3516_vm6, %v8764_v55  ;;  %v9943_v5 = vld [vmem:[#allocation5_spill] sm:$0xff]  ;;  %v8798_v6 = vld [vmem:[#allocation2 + $0xb8] sm:$0xf] }
 0x264   : > { %v3463_v31 = vsel %vm3443_vm3, %v3430_v52, %v9942_v33  ;;  %v4662_v34 = vpack.c.b16 %v4638_v3, %v4637_v49  ;;  %v4641_v54 = vunpack.c.l.b16 %v4000_v15  ;;  %v4642_v59 = vunpack.c.l.b16 %v4003_v46  ;;  %v9944_v49 = vld [vmem:[#allocation51_spill] sm:$0xff]  ;;  %v9945_v15 = vld [vmem:[#allocation89_spill] sm:$0xff]  ;;  %v4440_v30 = vpop.permute.xlu1 %4439  ;;  %v9948_v33 = vld [vmem:[#allocation80_spill] sm:$0xff] }
 0x265   : > { %v4363_v57 = vpack.c.b16 %v9941_v11, %v4343_v62  ;;  %v3496_v9 = vsel %vm3476_vm5, %v3463_v31, %v9943_v5  ;;  %v4670_v62 = vpack.c.b16 %v4654_v63, %v4653_v27  ;;  %v4007_v2 = vsel %vm6015_vm4, %v5809_v45, %v4006_v19  ;;  %v4077_v56 = vld [vmem:[#allocation2 + $0xb4] sm:$0xf]  ;;  %v9947_v63 = vld [vmem:[#allocation71_spill] sm:$0xff] }
 0x266   : > { %v4010_v21 = vsel %vm6015_vm4, %v4008_v48, %v4009_v18  ;;  %v3362_v3 = vsel %vm3344_vm15, %v3329_v44, %v9944_v49  ;;  %v9946_v46 = vunpack.c.l.b16 %v9945_v15  ;;  %v4282_v27 = vrot.slane %v8777_v32, 6  ;;  %v4125_v45 = vld [vmem:[#allocation2 + $0x114] sm:$0xc]  ;;  %v4126_v18 = vld [vmem:[#allocation2 + $0x11c] sm:$0x3]  ;;  %4685 = vrot.lane.b32.xlu2 %v4662_v34, %s5910_s22 }
 0x267   : > { %v3395_v52 = vsel %vm3377_vm0, %v3362_v3, %v9947_v63  ;;  %v8804_v19 = vsel %vm772_vm1, %v4363_v57, %v4440_v30  ;;  %v4349_v48 = vunpack.c.h.b16 %v8782_v53  ;;  %v3538_v44 = vsel %vm3516_vm6, %v3496_v9, 0  ;;  %4701 = vrot.lane.b32.xlu0 %v4670_v62, %s5910_s22 }
 0x268   : > { %v4357_v28 = vpack.c.b16 %v9946_v46, %v4331_v12  ;;  %v4664_v12 = vpack.c.b16 %v4642_v59, %v4641_v54  ;;  %v4643_v14 = vunpack.c.l.b16 %v4007_v2  ;;  %v4644_v11 = vunpack.c.l.b16 %v4010_v21  ;;  %3571 = vmatpush.bf16.xpose.msra.mxu3 %v3538_v44  ;;  %v9949_v54 = vld [vmem:[#allocation112_spill] sm:$0xff] }
 0x269   : > { %v3428_v31 = vsel %vm3410_vm2, %v3395_v52, %v9948_v33  ;;  %v4337_v5 = vunpack.c.l.b16 %v3600_v38  ;;  %v4813_v57 = vunpack.c.l.b16 %v4077_v56  ;;  %v4814_v49 = vunpack.c.l.b16 %v8798_v6  ;;  %v4508_v15 = vpop.permute.xlu2 %4507  ;;  %v9950_v21 = vld [vmem:[#allocation104_spill] sm:$0xff]  ;;  %v9952_v56 = vld [vmem:[#allocation9_spill] sm:$0xff] }
 0x26a   : > { %v5059_v3 = vsel %vm772_vm1, %v4357_v28, %v8694_v20  ;;  %v5830_v9 = vrot.slane %v4125_v45, 10  ;;  %v4284_v46 = vrot.slane %v4282_v27, 4  ;;  %v4285_v34 = vrot.slane %v4126_v18, 6  ;;  %v4498_v38 = vpop.permute.xlu0 %4497  ;;  %4689 = vrot.lane.b32.xlu1 %v4664_v12, %s5910_s22  ;;  %v9953_v45 = vld [vmem:[#allocation8_spill] sm:$0xff] }
 0x26b   : > { %v3461_v59 = vsel %vm3443_vm3, %v3428_v31, %v9949_v54  ;;  %v8818_v2 = vsel %vm3278_vm13, %v5059_v3, %v4508_v15  ;;  %v9951_v30 = vunpack.c.l.b16 %v9950_v21  ;;  %v8825_v63 = vsel %vm3278_vm13, %v9952_v56, %v4498_v38  ;;  %v4061_v33 = vld [vmem:[#allocation2 + $0xec] sm:$0xf]  ;;  %v9954_v31 = vld [vmem:[#allocation94_spill] sm:$0xff] }
 0x26c   : > { %v4665_v20 = vpack.c.b16 %v4644_v11, %v4643_v14  ;;  %v4226_v28 = vrot.slane %v8798_v6, 6  ;;  %v4726_v52 = vunpack.c.l.b16 %v8721_v4  ;;  %v3494_v18 = vsel %vm3476_vm5, %v3461_v59, %v9953_v45  ;;  %v4446_v15 = vpop.permute.xlu1 %4445  ;;  %v4109_v4 = vld [vmem:[#allocation2 + $0xb4] sm:$0xc]  ;;  %v4110_v54 = vld [vmem:[#allocation2 + $0xbc] sm:$0x3] }
 0x26d   : > { %v4366_v62 = vpack.c.b16 %v9951_v30, %v4349_v48  ;;  %v4838_v44 = vpack.c.b16 %v4814_v49, %v4813_v57  ;;  %v4034_v48 = vrot.slane %v8583_v42, 6  ;;  %v9955_v12 = vunpack.c.l.b16 %v9954_v31  ;;  %v3882_v38 = vld [vmem:[#allocation2 + $0xd8] sm:$0xc]  ;;  %v3883_v57 = vld [vmem:[#allocation2 + $0xe0] sm:$0x3] }
 0x26e   : > { %v4283_v14 = vsel %vm6015_vm4, %v5830_v9, %v4282_v27  ;;  %v4286_v11 = vsel %vm6015_vm4, %v4284_v46, %v4285_v34  ;;  %v3536_v21 = vsel %vm3516_vm6, %v3494_v18, 0  ;;  %4691 = vrot.lane.b32.xlu2 %v4665_v20, %s5910_s22  ;;  %v4228_v30 = vrot.slane %v4226_v28, 4  ;;  %v8848_v46 = vld [vmem:[#allocation2 + $0x110] sm:$0xff]  }
 0x26f   : > { %v4360_v3 = vpack.c.b16 %v9955_v12, %v4337_v5  ;;  %v8841_v59 = vsel %vm772_vm1, %v4366_v62, %v4446_v15  ;;  %v9956_v5 = vunpack.c.l.b16 %v8411_v0  ;;  %v4734_v45 = vunpack.c.l.b16 %v4061_v33  ;;  %4861 = vrot.lane.b32.xlu0 %v4838_v44, %s5912_s28  ;;  %v9957_v44 = vld [vmem:[#allocation92_spill] sm:$0xff] }
 0x270   : > { %3572 = vmatpush.bf16.xpose.msra.mxu3 %v3536_v21  ;;  %v4909_v27 = vunpack.c.l.b16 %v4283_v14  ;;  %v4910_v9 = vunpack.c.l.b16 %v4286_v11  ;;  %v5822_v34 = vrot.slane %v4109_v4, 10  ;;  %v4229_v62 = vrot.slane %v4110_v54, 6 }
 0x271   : > { %v4742_v56 = vpack.c.b16 %v4726_v52, %v9956_v5  ;;  %v4036_v31 = vrot.slane %v4034_v48, 4  ;;  %v5068_v18 = vsel %vm772_vm1, %v4360_v3, %v8740_v40  ;;  %v4514_v12 = vpop.permute.xlu2 %4513  ;;  %v5813_v20 = vrot.slane %v3882_v38, 10 }
 0x272   : > { %v4037_v15 = vrot.slane %v3883_v57, 6  ;;  %v8853_v0 = vsel %vm3278_vm13, %v5068_v18, %v4514_v12  ;;  %v4504_v52 = vpop.permute.xlu0 %4503  ;;  %v9958_v14 = vunpack.c.l.b16 %v8532_v35  ;;  %v4829_v4 = vunpack.c.h.b16 %v8848_v46  ;;  %v8886_v18 = vld [vmem:[#allocation2 + $0x10c] sm:$0xf] }
 0x273   : > { %4765 = vrot.lane.b32.xlu1 %v4742_v56, %s5911_s23  ;;  %v8858_v33 = vsel %vm3278_vm13, %v9957_v44, %v4504_v52  ;;  %v4830_v40 = vunpack.c.l.b16 %v8777_v32  ;;  %v4926_v3 = vpack.c.b16 %v4910_v9, %v4909_v27  ;;  %v4227_v54 = vsel %vm6015_vm4, %v5822_v34, %v4226_v28  ;;  %v9959_v27 = vld [vmem:[#allocation81_spill] sm:$0xff]  ;;  %v4302_v44 = vld [vmem:[#allocation2 + $0x11c] sm:$0xf] }
 0x274   : > { %v4750_v11 = vpack.c.b16 %v4734_v45, %v9958_v14  ;;  %v4230_v38 = vsel %vm6015_vm4, %v4228_v30, %v4229_v62  ;;  %v4329_v57 = vunpack.c.l.b16 %v3592_v26  ;;  %v4500_v21 = vpop.permute.xlu1 %4499  ;;  %v4035_v5 = vsel %vm6015_vm4, %v5813_v20, %v4034_v48  ;;  %v4294_v48 = vld [vmem:[#allocation2 + $0xbc] sm:$0xf] }
 0x275   : > { %v4038_v35 = vsel %vm6015_vm4, %v4036_v31, %v4037_v15  ;;  %v8874_v56 = vsel %vm3278_vm13, %v8567_v29, %v4500_v21  ;;  %v4846_v32 = vpack.c.b16 %v4830_v40, %v4829_v4  ;;  %v4893_v28 = vunpack.c.l.b16 %v4227_v54  ;;  %v3598_v31 = vld [vmem:[#allocation2 + $0x60] sm:$0xf] }
 0x276   : > { %4781 = vrot.lane.b32.xlu2 %v4750_v11, %s5911_s23  ;;  %v4894_v30 = vunpack.c.l.b16 %v4230_v38  ;;  %v4651_v26 = vunpack.c.l.b16 %v4035_v5  ;;  %v4652_v45 = vunpack.c.l.b16 %v4038_v35  ;;  %v9960_v9 = vunpack.c.l.b16 %v9959_v27 }
 0x277   : > { %5782 = vmatmul.msk.bf16.vlgmr.msra.gmra.mxu3 %vm3516_vm6, %v8764_v55  ;;  %4957 = vrot.lane.b32.xlu0 %v4926_v3, %s5913_s29  ;;  %v4982_v15 = vunpack.c.l.b16 %v4294_v48  ;;  %v4335_v11 = vunpack.c.l.b16 %v3598_v31  ;;  %v8897_v3 = vld [vmem:[#allocation2 + $0xac] sm:$0xf]  ;;  %v4275_v54 = vrot.slane %v8886_v18, 6  ;;  %v4990_v5 = vunpack.c.l.b16 %v4302_v44  ;;  %v4107_v44 = vld [vmem:[#allocation2 + $0xa8] sm:$0xc] }
 0x278   : > { %v4356_v34 = vpack.c.b16 %v9960_v9, %v4329_v57  ;;  %v4918_v20 = vpack.c.b16 %v4894_v30, %v4893_v28  ;;  %v4669_v52 = vpack.c.b16 %v4652_v45, %v4651_v26  ;;  %v4124_v57 = vld [vmem:[#allocation2 + $0x110] sm:$0x3]  ;;  %v4812_v35 = vunpack.c.l.b16 %v8897_v3 }
 0x279   : > { %v4520_v62 = vpop.permute.xlu2 %4519  ;;  %v4998_v21 = vpack.c.b16 %v4982_v15, %v4814_v49  ;;  %v4277_v48 = vrot.slane %v4275_v54, 4  ;;  %v4278_v27 = vrot.slane %v4124_v57, 6  ;;  %v4725_v31 = vunpack.c.l.b16 %v8654_v41 }
 0x27a   : > { %v8884_v29 = vsel %vm3278_vm13, %v8804_v19, %v4520_v62  ;;  %v4510_v55 = vpop.permute.xlu0 %4509  ;;  %v5056_v14 = vsel %vm772_vm1, %v4356_v34, %v8619_v58  ;;  %v8895_v19 = vld [vmem:[#allocation2 + $0xa4] sm:$0xff]   ;;  %v5006_v34 = vpack.c.b16 %v4990_v5, %v4830_v40  ;;  %v4219_v62 = vrot.slane %v8897_v3, 6 }
 0x27b   : > { %4877 = vrot.lane.b32.xlu1 %v4846_v32, %s5912_s28  ;;  %v8891_v12 = vsel %vm3278_vm13, %v8562_v23, %v4510_v55  ;;  %v4123_v23 = vld [vmem:[#allocation2 + $0x108] sm:$0xc]  ;;  %v4811_v58 = vunpack.c.h.b16 %v8895_v19  ;;  %v4279_v40 = vsel %vm6015_vm4, %v4277_v48, %v4278_v27  ;;  %v9963_v57 = vunpack.c.l.b16 %v8313_v36 }
 0x27c   : > { %v4506_v4 = vpop.permute.xlu1 %4505  ;;  %v9961_v32 = vld [vmem:[#allocation88_spill] sm:$0xff]  ;;  %v5829_v45 = vrot.slane %v4123_v23, 10  ;;  %v4221_v23 = vrot.slane %v4219_v62, 4  ;;  %v4908_v5 = vunpack.c.l.b16 %v4279_v40 }
 0x27d   : > { %v8901_v38 = vsel %vm3278_vm13, %v5056_v14, %v4506_v4  ;;  %v9962_v28 = vunpack.c.l.b16 %v9961_v32  ;;  %v4837_v55 = vpack.c.b16 %v4812_v35, %v4811_v58  ;;  %v4108_v14 = vld [vmem:[#allocation2 + $0xb0] sm:$0x3]  ;;  %v3881_v4 = vld [vmem:[#allocation2 + $0xd4] sm:$0x3]  ;;  %v8941_v58 = vld [vmem:[#allocation2 + $0x104] sm:$0xff]   ;;  %v5821_v32 = vrot.slane %v4107_v44, 10 }
 0x27e   : > { %4941 = vrot.lane.b32.xlu2 %v4918_v20, %s5913_s29  ;;  %v8924_v20 = vld [vmem:[#allocation2 + $0xe0] sm:$0xff]   ;;  %v4030_v48 = vrot.slane %v3881_v4, 6  ;;  %v3610_v27 = vld [vmem:[#allocation2 + $0xa8] sm:$0xf] }
 0x27f   : > { %4699 = vrot.lane.b32.xlu0 %v4669_v52, %s5910_s22  ;;  %v4359_v30 = vpack.c.b16 %v9962_v28, %v4335_v11  ;;  %v3880_v11 = vld [vmem:[#allocation2 + $0xcc] sm:$0xc]  ;;  %v4222_v28 = vrot.slane %v4108_v14, 6  ;;  %v4347_v40 = vunpack.c.l.b16 %v3610_v27 }
 0x281   : > { %v4526_v26 = vpop.permute.xlu2 %4525  ;;  %v5065_v15 = vsel %vm772_vm1, %v4359_v30, %v8667_v17  ;;  %v4741_v17 = vpack.c.b16 %v4725_v31, %v9963_v57 }
 0x282   : > { %v8913_v9 = vsel %vm3278_vm13, %v8841_v59, %v4526_v26  ;;  %v4516_v6 = vpop.permute.xlu0 %4515  ;;  %v4027_v59 = vrot.slane %v8550_v25, 6 }
 0x283   : > { %5021 = vrot.lane.b32.xlu1 %v4998_v21, %s5914_s10  ;;  %v8918_v49 = vsel %vm3278_vm13, %v8617_v37, %v4516_v6  ;;  %v4276_v37 = vsel %vm6015_vm4, %v5829_v45, %v4275_v54  ;;  %v4733_v21 = vunpack.c.l.b16 %v8924_v20  ;;  %v5812_v45 = vrot.slane %v3880_v11, 10 }
 0x284   : > { %v4512_v52 = vpop.permute.xlu1 %4511  ;;  %v4907_v54 = vunpack.c.l.b16 %v4276_v37  ;;  %v4029_v30 = vrot.slane %v4027_v59, 4  ;;  %v4220_v37 = vsel %vm6015_vm4, %v5821_v32, %v4219_v62 }
 0x285   : > { %v8934_v41 = vsel %vm3278_vm13, %v5065_v15, %v4512_v52  ;;  %v4749_v31 = vpack.c.b16 %v4733_v21, %v4572_v10  ;;  %v4828_v15 = vunpack.c.l.b16 %v8886_v18  ;;  %v4891_v14 = vunpack.c.l.b16 %v4220_v37  ;;  %v9001_v37 = vld [vmem:[#allocation2 + $0x74] sm:$0xff]  }
 0x286   : > { %5037 = vrot.lane.b32.xlu2 %v5006_v34, %s5914_s10  ;;  %v4925_v52 = vpack.c.b16 %v4908_v5, %v4907_v54  ;;  %v4031_v42 = vsel %vm6015_vm4, %v4029_v30, %v4030_v48  ;;  %v8986_v48 = vld [vmem:[#allocation2 + $0x98] sm:$0xff]  }
 0x287   : > { %4859 = vrot.lane.b32.xlu0 %v4837_v55, %s5912_s28  ;;  %v4827_v55 = vunpack.c.h.b16 %v8941_v58  ;;  %v4650_v4 = vunpack.c.l.b16 %v4031_v42 }
 0x289   : > { %v4596_v26 = vpop.permute.xlu2 %4595  ;;  %v4845_v18 = vpack.c.b16 %v4828_v15, %v4827_v55  ;;  %v4989_v55 = vunpack.c.l.b16 %v8848_v46 }
 0x28a   : > { %v8945_v6 = vsel %vm3311_vm14, %v8874_v56, %v4596_v26  ;;  %v4522_v36 = vpop.permute.xlu0 %4521  ;;  %v4223_v56 = vsel %vm6015_vm4, %v4221_v23, %v4222_v28  ;;  %v9964_v23 = vld [vmem:[#allocation97_spill] sm:$0xff]  ;;  %v4981_v28 = vunpack.c.l.b16 %v8782_v53 }
 0x28b   : > { %4763 = vrot.lane.b32.xlu1 %v4741_v17, %s5911_s23  ;;  %v8950_v34 = vsel %vm3278_vm13, %v8665_v13, %v4522_v36  ;;  %v4028_v13 = vsel %vm6015_vm4, %v5812_v45, %v4027_v59  ;;  %v4892_v62 = vunpack.c.l.b16 %v4223_v56  ;;  %v9965_v57 = vunpack.c.l.b16 %v9964_v23 }
 0x28c   : > { %v4518_v44 = vpop.permute.xlu1 %4517  ;;  %v4649_v11 = vunpack.c.l.b16 %v4028_v13  ;;  %v4997_v53 = vpack.c.b16 %v4981_v28, %v4812_v35  ;;  %v5005_v35 = vpack.c.b16 %v4989_v55, %v4828_v15  ;;  %v4106_v15 = vld [vmem:[#allocation2 + $0xa4] sm:$0x3] }
 0x28d   : > { %v8966_v10 = vsel %vm3278_vm13, %v8719_v8, %v4518_v44  ;;  %v4365_v17 = vpack.c.b16 %v9965_v57, %v4347_v40  ;;  %v8976_v8 = vld [vmem:[#allocation2 + $0x100] sm:$0xf]  ;;  %v4917_v32 = vpack.c.b16 %v4892_v62, %v4891_v14  ;;  %v4724_v14 = vunpack.c.l.b16 %v9001_v37 }
 0x28e   : > { %4779 = vrot.lane.b32.xlu2 %v4749_v31, %s5911_s23  ;;  %v4668_v30 = vpack.c.b16 %v4650_v4, %v4649_v11  ;;  %v4268_v27 = vrot.slane %v8976_v8, 6  ;;  %v4121_v31 = vld [vmem:[#allocation2 + $0xfc] sm:$0xc]  ;;  %v9016_v11 = vld [vmem:[#allocation2 + $0xd4] sm:$0xff]   ;;  %v4215_v55 = vrot.slane %v4106_v15, 6 }
 0x28f   : > { %4955 = vrot.lane.b32.xlu0 %v4925_v52, %s5913_s29  ;;  %v5083_v26 = vsel %vm772_vm1, %v4365_v17, %v8773_v7  ;;  %v4809_v7 = vunpack.c.h.b16 %v8986_v48  ;;  %v5828_v40 = vrot.slane %v4121_v31, 10  ;;  %v9966_v4 = vld [vmem:[#allocation10_spill] sm:$0xff] }
 0x290   : > { %v4270_v44 = vrot.slane %v4268_v27, 4  ;;  %v4105_v17 = vld [vmem:[#allocation2 + $0x9c] sm:$0xc] }
 0x291   : > { %v4602_v59 = vpop.permute.xlu2 %4601  ;;  %v4269_v57 = vsel %vm6015_vm4, %v5828_v40, %v4268_v27 }
 0x292   : > { %v8974_v21 = vsel %vm3311_vm14, %v8901_v38, %v4602_v59  ;;  %v4592_v54 = vpop.permute.xlu0 %4591  ;;  %v8988_v38 = vld [vmem:[#allocation2 + $0xa0] sm:$0xf]  ;;  %v4905_v27 = vunpack.c.l.b16 %v4269_v57 }
 0x293   : > { %4875 = vrot.lane.b32.xlu1 %v4845_v18, %s5912_s28  ;;  %v8981_v5 = vsel %vm3311_vm14, %v8715_v22, %v4592_v54  ;;  %v4122_v22 = vld [vmem:[#allocation2 + $0x104] sm:$0x3]  ;;  %v4810_v52 = vunpack.c.l.b16 %v8988_v38  ;;  %v4212_v18 = vrot.slane %v8988_v38, 6  ;;  %v3878_v54 = vld [vmem:[#allocation2 + $0xc0] sm:$0xc] }
 0x294   : > { %v4524_v45 = vpop.permute.xlu1 %4523  ;;  %v4271_v13 = vrot.slane %v4122_v22, 6  ;;  %v9032_v22 = vld [vmem:[#allocation2 + $0xf8] sm:$0xff]  }
 0x295   : > { %v8992_v36 = vsel %vm3278_vm13, %v5083_v26, %v4524_v45  ;;  %v4836_v62 = vpack.c.b16 %v4810_v52, %v4809_v7  ;;  %v4214_v28 = vrot.slane %v4212_v18, 4  ;;  %v4732_v45 = vunpack.c.l.b16 %v9016_v11 }
 0x296   : > { %4939 = vrot.lane.b32.xlu2 %v4917_v32, %s5913_s29  ;;  %v3879_v32 = vld [vmem:[#allocation2 + $0xc8] sm:$0x3] }
 0x297   : > { %4697 = vrot.lane.b32.xlu0 %v4668_v30, %s5910_s22  ;;  %v9967_v30 = vunpack.c.l.b16 %v8373_v24  ;;  %v4023_v40 = vrot.slane %v3879_v32, 6 }
 0x299   : > { %v4608_v56 = vpop.permute.xlu2 %4607  ;;  %v4740_v26 = vpack.c.b16 %v4724_v14, %v9967_v30  ;;  %v4825_v14 = vunpack.c.h.b16 %v9032_v22 }
 0x29a   : > { %v9005_v42 = vsel %vm3311_vm14, %v8934_v41, %v4608_v56  ;;  %v4598_v3 = vpop.permute.xlu0 %4597  ;;  %v4020_v41 = vrot.slane %v9966_v4, 6  ;;  %v5811_v56 = vrot.slane %v3878_v54, 10 }
 0x29b   : > { %5019 = vrot.lane.b32.xlu1 %v4997_v53, %s5914_s10  ;;  %v9010_v46 = vsel %vm3311_vm14, %v8771_v1, %v4598_v3  ;;  %v4272_v1 = vsel %vm6015_vm4, %v4270_v44, %v4271_v13  ;;  %v5820_v53 = vrot.slane %v4105_v17, 10  ;;  %v9968_v3 = vunpack.c.l.b16 %v8550_v25 }
 0x29c   : > { %v4594_v23 = vpop.permute.xlu1 %4593  ;;  %v4906_v31 = vunpack.c.l.b16 %v4272_v1  ;;  %v4021_v17 = vsel %vm6015_vm4, %v5811_v56, %v4020_v41  ;;  %v4119_v56 = vld [vmem:[#allocation2 + $0xf0] sm:$0xc] }
 0x29d   : > { %v9025_v59 = vsel %vm3311_vm14, %v8825_v63, %v4594_v23  ;;  %v4022_v63 = vrot.slane %v4020_v41, 4  ;;  %v4213_v57 = vsel %vm6015_vm4, %v5820_v53, %v4212_v18  ;;  %v4647_v18 = vunpack.c.l.b16 %v4021_v17 }
 0x29e   : > { %5035 = vrot.lane.b32.xlu2 %v5005_v35, %s5914_s10  ;;  %v4748_v35 = vpack.c.b16 %v4732_v45, %v9968_v3  ;;  %v4924_v23 = vpack.c.b16 %v4906_v31, %v4905_v27  ;;  %v4889_v15 = vunpack.c.l.b16 %v4213_v57  ;;  %v4980_v27 = vunpack.c.l.b16 %v8895_v19 }
 0x29f   : > { %4857 = vrot.lane.b32.xlu0 %v4836_v62, %s5912_s28  ;;  %v4826_v62 = vunpack.c.l.b16 %v8976_v8  ;;  %v4988_v19 = vunpack.c.l.b16 %v8941_v58 }
 0x2a1   : > { %v4614_v7 = vpop.permute.xlu2 %4613  ;;  %v4844_v8 = vpack.c.b16 %v4826_v62, %v4825_v14 }
 0x2a2   : > { %v9036_v44 = vsel %vm3311_vm14, %v8966_v10, %v4614_v7  ;;  %v4604_v24 = vpop.permute.xlu0 %4603  ;;  %v4216_v10 = vsel %vm6015_vm4, %v4214_v28, %v4215_v55  ;;  %v9073_v55 = vld [vmem:[#allocation2 + $0x8c] sm:$0xff]  }
 0x2a3   : > { %4761 = vrot.lane.b32.xlu1 %v4740_v26, %s5911_s23  ;;  %v9041_v13 = vsel %vm3311_vm14, %v8818_v2, %v4604_v24  ;;  %v4024_v2 = vsel %vm6015_vm4, %v4022_v63, %v4023_v40  ;;  %v4890_v54 = vunpack.c.l.b16 %v4216_v10  ;;  %v9065_v26 = vld [vmem:[#allocation2 + $0xf4] sm:$0xf]  ;;  %v4120_v40 = vld [vmem:[#allocation2 + $0xf8] sm:$0x3]  ;;  %v4807_v24 = vunpack.c.h.b16 %v9073_v55 }
 0x2a4   : > { %v4600_v1 = vpop.permute.xlu1 %4599  ;;  %v4648_v32 = vunpack.c.l.b16 %v4024_v2  ;;  %v9075_v63 = vld [vmem:[#allocation2 + $0x94] sm:$0xf]  ;;  %v4264_v57 = vrot.slane %v4120_v40, 6 }
 0x2a5   : > { %v9057_v25 = vsel %vm3311_vm14, %v8858_v33, %v4600_v1  ;;  %v4916_v45 = vpack.c.b16 %v4890_v54, %v4889_v15  ;;  %v4808_v3 = vunpack.c.l.b16 %v9075_v63  ;;  %v4205_v1 = vrot.slane %v9075_v63, 6  ;;  %v5897_v15 = vld [vmem:[#allocation2 + $0xb8] sm:$0xf] }
 0x2a6   : > { %4777 = vrot.lane.b32.xlu2 %v4748_v35, %s5911_s23  ;;  %v4667_v31 = vpack.c.b16 %v4648_v32, %v4647_v18  ;;  %v9089_v35 = vld [vmem:[#allocation2 + $0x68] sm:$0xff]   ;;  %v4103_v32 = vld [vmem:[#allocation2 + $0x90] sm:$0xc] }
 0x2a7   : > { %4953 = vrot.lane.b32.xlu0 %v4924_v23, %s5913_s29  ;;  %v4723_v17 = vunpack.c.l.b16 %v9089_v35  ;;  %v4835_v2 = vpack.c.b16 %v4808_v3, %v4807_v24 }
 0x2a9   : > { %v4620_v28 = vpop.permute.xlu2 %4619 }
 0x2aa   : > { %v9063_v41 = vsel %vm3311_vm14, %v8992_v36, %v4620_v28  ;;  %v4610_v30 = vpop.permute.xlu0 %4609  ;;  %v4261_v36 = vrot.slane %v9065_v26, 6 }
 0x2ab   : > { %4873 = vrot.lane.b32.xlu1 %v4844_v8, %s5912_s28  ;;  %v9070_v33 = vsel %vm3311_vm14, %v8853_v0, %v4610_v30  ;;  %v4996_v0 = vpack.c.b16 %v4980_v27, %v4810_v52  ;;  %v5004_v52 = vpack.c.b16 %v4988_v19, %v4826_v62  ;;  %v9104_v8 = vld [vmem:[#allocation2 + $0xc8] sm:$0xff]   ;;  %v4104_v62 = vld [vmem:[#allocation2 + $0x98] sm:$0x3]  ;;  %v3876_v30 = vld [vmem:[#allocation2 + $0xb4] sm:$0xc]  ;;  %v4207_v27 = vrot.slane %v4205_v1, 4 }
 0x2ac   : > { %v4606_v53 = vpop.permute.xlu1 %4605  ;;  %v4263_v23 = vrot.slane %v4261_v36, 4  ;;  %v5819_v19 = vrot.slane %v4103_v32, 10  ;;  %v4208_v24 = vrot.slane %v4104_v62, 6 }
 0x2ad   : > { %v9080_v7 = vsel %vm3311_vm14, %v8891_v12, %v4606_v53  ;;  %v5827_v12 = vrot.slane %v4119_v56, 10  ;;  %v4731_v56 = vunpack.c.l.b16 %v9104_v8 }
 0x2ae   : > { %4937 = vrot.lane.b32.xlu2 %v4916_v45, %s5913_s29  ;;  %v3877_v45 = vld [vmem:[#allocation2 + $0xbc] sm:$0x3] }
 0x2af   : > { %4695 = vrot.lane.b32.xlu0 %v4667_v31, %s5910_s22  ;;  %v4262_v18 = vsel %vm6015_vm4, %v5827_v12, %v4261_v36  ;;  %v9969_v31 = vunpack.c.l.b16 %v8337_v43  ;;  %v5810_v12 = vrot.slane %v3876_v30, 10 }
 0x2b0   : > { %v4903_v36 = vunpack.c.l.b16 %v4262_v18  ;;  %v4209_v18 = vsel %vm6015_vm4, %v4207_v27, %v4208_v24  ;;  %v9158_v24 = vld [vmem:[#allocation2 + $0x88] sm:$0xf] }
 0x2b1   : > { %v4674_v14 = vpop.permute.xlu2 %4673  ;;  %v4739_v53 = vpack.c.b16 %v4723_v17, %v9969_v31  ;;  %v4888_v30 = vunpack.c.l.b16 %v4209_v18 }
 0x2b2   : > { %v9093_v10 = vsel %vm3344_vm15, %v9025_v59, %v4674_v14  ;;  %v4616_v38 = vpop.permute.xlu0 %4615  ;;  %v4013_v59 = vrot.slane %v5897_v15, 6 }
 0x2b3   : > { %5017 = vrot.lane.b32.xlu1 %v4996_v0, %s5914_s10  ;;  %v9098_v58 = vsel %vm3311_vm14, %v8884_v29, %v4616_v38  ;;  %v4265_v29 = vsel %vm6015_vm4, %v4263_v23, %v4264_v57  ;;  %v9119_v0 = vld [vmem:[#allocation2 + $0xec] sm:$0xff]   ;;  %v4016_v23 = vrot.slane %v3877_v45, 6  ;;  %v9970_v38 = vunpack.c.l.b16 %v9966_v4 }
 0x2b4   : > { %v4612_v54 = vpop.permute.xlu1 %4611  ;;  %v4904_v40 = vunpack.c.l.b16 %v4265_v29  ;;  %v4823_v17 = vunpack.c.h.b16 %v9119_v0  ;;  %v4014_v29 = vsel %vm6015_vm4, %v5810_v12, %v4013_v59  ;;  %v4117_v12 = vld [vmem:[#allocation2 + $0xe4] sm:$0xc] }
 0x2b5   : > { %v9112_v28 = vsel %vm3311_vm14, %v8918_v49, %v4612_v54  ;;  %v4015_v49 = vrot.slane %v4013_v59, 4  ;;  %v4206_v54 = vsel %vm6015_vm4, %v5819_v19, %v4205_v1  ;;  %v4645_v1 = vunpack.c.l.b16 %v4014_v29  ;;  %v9148_v59 = vld [vmem:[#allocation2 + $0xe8] sm:$0xf]  ;;  %v9156_v19 = vld [vmem:[#allocation2 + $0x80] sm:$0xff]  }
 0x2b6   : > { %5033 = vrot.lane.b32.xlu2 %v5004_v52, %s5914_s10  ;;  %v4747_v52 = vpack.c.b16 %v4731_v56, %v9970_v38  ;;  %v4923_v15 = vpack.c.b16 %v4904_v40, %v4903_v36  ;;  %v4887_v62 = vunpack.c.l.b16 %v4206_v54  ;;  %v4979_v56 = vunpack.c.l.b16 %v8986_v48 }
 0x2b7   : > { %4855 = vrot.lane.b32.xlu0 %v4835_v2, %s5912_s28  ;;  %v4824_v2 = vunpack.c.l.b16 %v9065_v26  ;;  %v4017_v32 = vsel %vm6015_vm4, %v4015_v49, %v4016_v23  ;;  %v4254_v49 = vrot.slane %v9148_v59, 6  ;;  %v4118_v23 = vld [vmem:[#allocation2 + $0xec] sm:$0x3]  ;;  %v4987_v48 = vunpack.c.l.b16 %v9032_v22 }
 0x2b8   : > { %v4646_v45 = vunpack.c.l.b16 %v4017_v32  ;;  %v4805_v38 = vunpack.c.h.b16 %v9156_v19  ;;  %v4257_v18 = vrot.slane %v4118_v23, 6  ;;  %v4198_v29 = vrot.slane %v9158_v24, 6 }
 0x2b9   : > { %v4680_v14 = vpop.permute.xlu2 %4679  ;;  %v4843_v26 = vpack.c.b16 %v4824_v2, %v4823_v17  ;;  %v9172_v17 = vld [vmem:[#allocation2 + $0x5c] sm:$0xff]   ;;  %v4256_v54 = vrot.slane %v4254_v49, 4 }
 0x2ba   : > { %v9123_v57 = vsel %vm3344_vm15, %v9057_v25, %v4680_v14  ;;  %v9125_v43 = vpop.permute.xlu0 %4621  ;;  %v4666_v36 = vpack.c.b16 %v4646_v45, %v4645_v1  ;;  %v4722_v32 = vunpack.c.l.b16 %v9172_v17  ;;  %v4101_v45 = vld [vmem:[#allocation2 + $0x84] sm:$0xc] }
 0x2bb   : > { %4759 = vrot.lane.b32.xlu1 %v4739_v53, %s5911_s23  ;;  %v4915_v53 = vpack.c.b16 %v4888_v30, %v4887_v62  ;;  %v9187_v62 = vld [vmem:[#allocation2 + $0xbc] sm:$0xff]   ;;  %v4258_v1 = vsel %vm6015_vm4, %v4256_v54, %v4257_v18  ;;  %v4822_v54 = vunpack.c.l.b16 %v9148_v59 }
 0x2bc   : > { %v4618_v25 = vpop.permute.xlu1 %4617  ;;  %v9223_v59 = vld [vmem:[#allocation2 + $0x7c] sm:$0xf] }
 0x2bd   : > { %v9142_v4 = vsel %vm3311_vm14, %v8950_v34, %v4618_v25 }
 0x2be   : > { %4775 = vrot.lane.b32.xlu2 %v4747_v52, %s5911_s23  ;;  %v4806_v52 = vunpack.c.l.b16 %v9158_v24 }
 0x2bf   : > { %4951 = vrot.lane.b32.xlu0 %v4923_v15, %s5913_s29 }
 0x2c1   : > { %v9146_v27 = vpop.permute.xlu2 %4685 }
 0x2c2   : > { %v4676_v31 = vpop.permute.xlu0 %4675 }
 0x2c3   : > { %4871 = vrot.lane.b32.xlu1 %v4843_v26, %s5912_s28  ;;  %v9153_v34 = vsel %vm3344_vm15, %v8945_v6, %v4676_v31  ;;  %v4995_v6 = vpack.c.b16 %v4979_v56, %v4808_v3  ;;  %v5003_v3 = vpack.c.b16 %v4987_v48, %v4824_v2  ;;  %v4834_v26 = vpack.c.b16 %v4806_v52, %v4805_v38  ;;  %v9974_v38 = vld [vmem:[#allocation13_spill] sm:$0xff] }
 0x2c4   : > { %v4672_v40 = vpop.permute.xlu1 %4671  ;;  %v4200_v31 = vrot.slane %v4198_v29, 4 }
 0x2c5   : > { %v9163_v14 = vsel %vm3344_vm15, %v8981_v5, %v4672_v40  ;;  %v5826_v5 = vrot.slane %v4117_v12, 10  ;;  %v5818_v12 = vrot.slane %v4101_v45, 10 }
 0x2c6   : > { %9971 = vst [vmem:[#allocation15_spill] sm:$0xff] %v9163_v14  ;;  %4935 = vrot.lane.b32.xlu2 %v4915_v53, %s5913_s29  ;;  %v9972_v53 = vunpack.c.l.b16 %v8252_v50  ;;  %v9975_v50 = vunpack.c.l.b16 %v9974_v38 }
 0x2c7   : > { %4693 = vrot.lane.b32.xlu0 %v4666_v36, %s5910_s22  ;;  %v4730_v36 = vunpack.c.l.b16 %v9187_v62 }
 0x2c8   : > { %v4738_v56 = vpack.c.b16 %v4722_v32, %v9972_v53  ;;  %v9976_v53 = vld [vmem:[#allocation6_spill] sm:$0xff] }
 0x2c9   : > { %v4692_v15 = vpop.permute.xlu2 %4691 }
 0x2ca   : > { %v9176_v25 = vsel %vm3344_vm15, %v9112_v28, %v4692_v15  ;;  %v4682_v63 = vpop.permute.xlu0 %4681  ;;  %v4255_v28 = vsel %vm6015_vm4, %v5826_v5, %v4254_v49  ;;  %v4902_v49 = vunpack.c.l.b16 %v4258_v1  ;;  %v4746_v15 = vpack.c.b16 %v4730_v36, %v9975_v50 }
 0x2cb   : > { %5015 = vrot.lane.b32.xlu1 %v4995_v6, %s5914_s10  ;;  %v9181_v22 = vsel %vm3344_vm15, %v8974_v21, %v4682_v63  ;;  %v4102_v21 = vld [vmem:[#allocation2 + $0x8c] sm:$0x3]  ;;  %v4901_v40 = vunpack.c.l.b16 %v4255_v28  ;;  %v4821_v5 = vunpack.c.h.b16 %v8924_v20  ;;  %v4199_v63 = vsel %vm6015_vm4, %v5818_v12, %v4198_v29 }
 0x2cc   : > { %v4678_v30 = vpop.permute.xlu1 %4677  ;;  %v4201_v23 = vrot.slane %v4102_v21, 6  ;;  %v4978_v21 = vunpack.c.l.b16 %v9073_v55  ;;  %v4819_v55 = vunpack.c.h.b16 %v9016_v11 }
 0x2cd   : > { %v9195_v2 = vsel %vm3344_vm15, %v9010_v46, %v4678_v30  ;;  %v4922_v18 = vpack.c.b16 %v4902_v49, %v4901_v40  ;;  %v4885_v30 = vunpack.c.l.b16 %v4199_v63  ;;  %v4191_v40 = vrot.slane %v9223_v59, 6  ;;  %v4099_v49 = vld [vmem:[#allocation2 + $0x78] sm:$0xc] }
 0x2ce   : > { %5031 = vrot.lane.b32.xlu2 %v5003_v3, %s5914_s10  ;;  %v4202_v3 = vsel %vm6015_vm4, %v4200_v31, %v4201_v23  ;;  %v9229_v31 = vld [vmem:[#allocation2 + $0xdc] sm:$0xf]  ;;  %v4986_v23 = vunpack.c.l.b16 %v9119_v0  ;;  %v5817_v63 = vrot.slane %v4099_v49, 10 }
 0x2cf   : > { %4853 = vrot.lane.b32.xlu0 %v4834_v26, %s5912_s28  ;;  %v4048_v26 = vld [vmem:[#allocation2 + $0x50] sm:$0xf]  ;;  %v4886_v28 = vunpack.c.l.b16 %v4202_v3  ;;  %v4247_v50 = vrot.slane %v9229_v31, 6  ;;  %v4193_v0 = vrot.slane %v4191_v40, 4 }
 0x2d0   : > { %v4721_v20 = vunpack.c.l.b16 %v4048_v26 }
 0x2d1   : > { %v9202_v6 = vpop.permute.xlu2 %4781  ;;  %v4914_v29 = vpack.c.b16 %v4886_v28, %v4885_v30  ;;  %v5002_v28 = vpack.c.b16 %v4986_v23, %v4822_v54  ;;  %v4804_v23 = vunpack.c.l.b16 %v9223_v59 }
 0x2d2   : > { %v4688_v48 = vpop.permute.xlu0 %4687 }
 0x2d3   : > { %4757 = vrot.lane.b32.xlu1 %v4738_v56, %s5911_s23  ;;  %v9207_v46 = vsel %vm3344_vm15, %v9005_v42, %v4688_v48  ;;  %v4842_v42 = vpack.c.b16 %v4822_v54, %v4821_v5  ;;  %v9977_v56 = vunpack.c.l.b16 %v9976_v53  ;;  %v4100_v48 = vld [vmem:[#allocation2 + $0x80] sm:$0x3]  ;;  %v4994_v5 = vpack.c.b16 %v4978_v21, %v4806_v52  ;;  %v655_v53 = vld [vmem:[%s5994_s16 + $0x8] sm:$0xff]  }
 0x2d4   : > { %9973 = vst [vmem:[#allocation14_spill] sm:$0xff] %v9207_v46  ;;  %v9217_v32 = vpop.permute.xlu1 %4683  ;;  %v4194_v3 = vrot.slane %v4100_v48, 6  ;;  %v4116_v21 = vld [vmem:[#allocation2 + $0xe0] sm:$0x3]  ;;  %v4803_v54 = vunpack.c.h.b16 %v9001_v37  ;;  %v657_v46 = vld [vmem:[%s5994_s16 + $0x10] sm:$0xff]  }
 0x2d5   : > { %v4737_v36 = vpack.c.b16 %v4721_v20, %v9977_v56  ;;  %v4249_v20 = vrot.slane %v4247_v50, 4  ;;  %v4192_v56 = vsel %vm6015_vm4, %v5817_v63, %v4191_v40  ;;  %v9978_v63 = vunpack.c.l.b16 %v8482_v60 }
 0x2d6   : > { %4773 = vrot.lane.b32.xlu2 %v4746_v15, %s5911_s23  ;;  %v9628_v15 = vunpack.c.l.b16 %v9229_v31  ;;  %v4195_v48 = vsel %vm6015_vm4, %v4193_v0, %v4194_v3  ;;  %v5387_v0 = vunpack.c.l.bf16 %v657_v46 }
 0x2d7   : > { %4949 = vrot.lane.b32.xlu0 %v4922_v18, %s5913_s29  ;;  %v4056_v18 = vld [vmem:[#allocation2 + $0xb0] sm:$0xf]  ;;  %v4884_v59 = vunpack.c.l.b16 %v4195_v48  ;;  %v4055_v48 = vld [vmem:[#allocation2 + $0xa4] sm:$0xf] }
 0x2d8   : > { %v4841_v24 = vpack.c.b16 %v9628_v15, %v4819_v55  ;;  %v4729_v52 = vunpack.c.l.b16 %v4056_v18  ;;  %v5386_v15 = vunpack.c.h.bf16 %v655_v53 }
 0x2d9   : > { %v9221_v1 = vpop.permute.xlu2 %4941 }
 0x2da   : > { %v9225_v45 = vpop.permute.xlu0 %4701  ;;  %v4745_v14 = vpack.c.b16 %v4729_v52, %v9978_v63 }
 0x2db   : > { %4869 = vrot.lane.b32.xlu1 %v4842_v42, %s5912_s28 }
 0x2dc   : > { %v4690_v12 = vpop.permute.xlu1 %4689 }
 0x2dd   : > { %v9237_v38 = vsel %vm3344_vm15, %v9070_v33, %v4690_v12  ;;  %v653_v33 = vld [vmem:[%s5994_s16] sm:$0xff]  }
 0x2de   : > { %4933 = vrot.lane.b32.xlu2 %v4914_v29, %s5913_s29  ;;  %v5383_v42 = vunpack.c.l.bf16 %v653_v33  ;;  %v5384_v30 = vunpack.c.h.bf16 %v653_v33  ;;  %v4115_v29 = vld [vmem:[#allocation2 + $0xd8] sm:$0xc] }
 0x2df   : > { %4755 = vrot.lane.b32.xlu0 %v4737_v36, %s5911_s23  ;;  %v5385_v36 = vunpack.c.l.bf16 %v655_v53  ;;  %v5825_v33 = vrot.slane %v4115_v29, 10  ;;  %v5420_v29 = vsel %vm772_vm1, %v5386_v15, 0.0  ;;  %v9979_v53 = vld [vmem:[#allocation12_spill] sm:$0xff] }
 0x2e0   : > { %v5415_v49 = vsel %vm772_vm1, %v5383_v42, 0.0  ;;  %v5416_v12 = vsel %vm772_vm1, %v5384_v30, 0.0  ;;  %v4977_v42 = vunpack.c.l.b16 %v9156_v19  ;;  %v4883_v30 = vunpack.c.l.b16 %v4192_v56 }
 0x2e1   : > { %v9247_v26 = vpop.permute.xlu2 %5037  ;;  %v5417_v55 = vadd.f32 %v5416_v12, %v5415_v49  ;;  %v5418_v40 = vsel %vm772_vm1, %v5385_v36, 0.0  ;;  %v5166_v19 = vsel %vm3344_vm15, %v9080_v7, %v9146_v27  ;;  %v4248_v56 = vsel %vm6015_vm4, %v5825_v33, %v4247_v50  ;;  %v9284_v36 = vld [vmem:[#allocation2 + $0x70] sm:$0xf]  ;;  %v659_v49 = vld [vmem:[%s5994_s16 + $0x18] sm:$0xff]   ;;  %v4097_v50 = vld [vmem:[#allocation2 + $0x6c] sm:$0xc] }
 0x2e2   : > { %v9249_v11 = vpop.permute.xlu0 %4861  ;;  %v5388_v12 = vunpack.c.h.bf16 %v657_v46  ;;  %v4993_v27 = vpack.c.b16 %v4977_v42, %v4804_v23  ;;  %v4899_v33 = vunpack.c.l.b16 %v4248_v56  ;;  %v5390_v42 = vunpack.c.h.bf16 %v659_v49  ;;  %v4297_v56 = vld [vmem:[#allocation2 + $0xe0] sm:$0xf] }
 0x2e3   : > { %5013 = vrot.lane.b32.xlu1 %v4994_v5, %s5914_s10  ;;  %v4250_v5 = vrot.slane %v4116_v21, 6  ;;  %v5419_v3 = vadd.f32 %v5418_v40, %v5417_v55  ;;  %v5150_v21 = vsel %vm3311_vm14, %v8913_v9, %v9125_v43  ;;  %v5389_v55 = vunpack.c.l.bf16 %v659_v49 }
 0x2e4   : > { %v5182_v9 = vsel %vm3344_vm15, %v5150_v21, %v9225_v45  ;;  %v5424_v40 = vsel %vm772_vm1, %v5388_v12, 0.0 }
 0x2e5   : > { %v4766_v18 = vpop.permute.xlu1 %4765  ;;  %v4251_v15 = vsel %vm6015_vm4, %v4249_v20, %v4250_v5  ;;  %v5421_v7 = vadd.f32 %v5420_v29, %v5419_v3  ;;  %v5422_v20 = vsel %vm772_vm1, %v5387_v0, 0.0  ;;  %v4184_v5 = vrot.slane %v9284_v36, 6  ;;  %v661_v3 = vld [vmem:[%s5994_s16 + $0x20] sm:$0xff]  }
 0x2e6   : > { %v3561_v37 = vpop.f32.mrf.mxu2  ;;  %5029 = vrot.lane.b32.xlu2 %v5002_v28, %s5914_s10  ;;  %v4833_v28 = vpack.c.b16 %v4804_v23, %v4803_v54  ;;  %v4913_v54 = vpack.c.b16 %v4884_v59, %v4883_v30  ;;  %v5214_v46 = vsel %vm3377_vm0, %v5182_v9, %v9202_v6  ;;  %v4098_v23 = vld [vmem:[#allocation2 + $0x74] sm:$0x3]  ;;  %v5426_v30 = vsel %vm772_vm1, %v5389_v55, 0.0 }
 0x2e7   : > { %v3562_v60 = vadd.f32 %v3561_v37, %v9979_v53  ;;  %4867 = vrot.lane.b32.xlu0 %v4841_v24, %s5912_s28  ;;  %v5423_v45 = vadd.f32 %v5422_v20, %v5421_v7  ;;  %v4728_v59 = vunpack.c.l.b16 %v4055_v48  ;;  %v5816_v0 = vrot.slane %v4097_v50, 10 }
 0x2e8   : > { %v5198_v21 = vsel %vm3377_vm0, %v5166_v19, %v4766_v18  ;;  %v5391_v6 = vunpack.c.l.bf16 %v661_v3  ;;  %v4186_v49 = vrot.slane %v4184_v5, 4  ;;  %v4187_v12 = vrot.slane %v4098_v23, 6  ;;  %v4047_v23 = vld [vmem:[#allocation2 + $0x44] sm:$0xf] }
 0x2e9   : > { %v9278_v52 = vpop.permute.xlu2 %4779  ;;  %v3578_v43 = vmax.f32 %v3562_v60, 0.0  ;;  %v5425_v29 = vadd.f32 %v5424_v40, %v5423_v45  ;;  %v5230_v48 = vsel %vm3410_vm2, %v5198_v21, %v9249_v11  ;;  %v4985_v55 = vunpack.c.l.b16 %v4297_v56  ;;  %v665_v21 = vld [vmem:[%s5994_s16 + $0x30] sm:$0xff]  }
 0x2ea   : > { %v4958_v24 = vpop.permute.xlu0 %4957  ;;  %v9980_v40 = vunpack.c.l.b16 %v8385_v51  ;;  %v4188_v11 = vsel %vm6015_vm4, %v4186_v49, %v4187_v12 }
 0x2eb   : > { %4771 = vrot.lane.b32.xlu1 %v4745_v14, %s5911_s23  ;;  %3580 = vst [vmem:[%s7120_s27 + $0x10] sm:$0xff] %v3578_v43  ;;  %v4900_v14 = vunpack.c.l.b16 %v4251_v15  ;;  %v5428_v15 = vsel %vm772_vm1, %v5390_v42, 0.0  ;;  %v5427_v7 = vadd.f32 %v5426_v30, %v5425_v29 }
 0x2ed   : > { %v4878_v63 = vpop.permute.xlu1 %4877  ;;  %v5429_v20 = vadd.f32 %v5428_v15, %v5427_v7  ;;  %v4921_v45 = vpack.c.b16 %v4900_v14, %v4899_v33  ;;  %v4113_v33 = vld [vmem:[#allocation2 + $0xcc] sm:$0xc]  ;;  %v4114_v14 = vld [vmem:[#allocation2 + $0xd4] sm:$0x3]  ;;  %v4720_v15 = vunpack.c.l.b16 %v4047_v23 }
 0x2ee   : > { %v5246_v37 = vsel %vm3410_vm2, %v5214_v46, %v4878_v63  ;;  %4851 = vrot.lane.b32.xlu2 %v4833_v28, %s5912_s28  ;;  %v3563_v9 = vpop.f32.mrf.mxu2  ;;  %v5392_v28 = vunpack.c.h.bf16 %v661_v3  ;;  %v4744_v46 = vpack.c.b16 %v4728_v59, %v9980_v40  ;;  %v4185_v63 = vsel %vm6015_vm4, %v5816_v0, %v4184_v5 }
 0x2ef   : > { %v5278_v60 = vsel %vm3443_vm3, %v5246_v37, %v4958_v24  ;;  %5011 = vrot.lane.b32.xlu0 %v4993_v27, %s5914_s10  ;;  %v9309_v24 = vld [vmem:[#allocation2 + $0xd0] sm:$0xf]  ;;  %v5430_v27 = vsel %vm772_vm1, %v5391_v6, 0.0  ;;  %v9981_v5 = vunpack.c.l.b16 %v9229_v31  ;;  %v4882_v9 = vunpack.c.l.b16 %v4188_v11 }
 0x2f0   : > { %v5310_v43 = vsel %vm3476_vm5, %v5278_v60, %v9247_v26  ;;  %v663_v26 = vld [vmem:[%s5994_s16 + $0x28] sm:$0xff]   ;;  %v4240_v42 = vrot.slane %v9309_v24, 6  ;;  %v5431_v37 = vadd.f32 %v5430_v27, %v5429_v20  ;;  %v5432_v59 = vsel %vm772_vm1, %v5392_v28, 0.0 }
 0x2f1   : > { %v5351_v18 = vsel %vm3516_vm6, %v5310_v43, 0  ;;  %v9307_v19 = vpop.permute.xlu2 %4939  ;;  %v5393_v30 = vunpack.c.l.bf16 %v663_v26  ;;  %v5394_v51 = vunpack.c.h.bf16 %v663_v26  ;;  %v5001_v0 = vpack.c.b16 %v4985_v55, %v9981_v5  ;;  %v669_v5 = vld [vmem:[%s5994_s16 + $0x40] sm:$0xff]  }
 0x2f2   : > { %5366 = vmatpush.bf16.xpose.msrb.mxu1 %v5351_v18  ;;  %v9313_v50 = vpop.permute.xlu0 %4699  ;;  %v5433_v60 = vadd.f32 %v5432_v59, %v5431_v37  ;;  %v4242_v43 = vrot.slane %v4240_v42, 4  ;;  %v5824_v49 = vrot.slane %v4113_v33, 10  ;;  %v4243_v12 = vrot.slane %v4114_v14, 6  ;;  %v4296_v33 = vld [vmem:[#allocation2 + $0xd4] sm:$0xf] }
 0x2f3   : > { %4931 = vrot.lane.b32.xlu1 %v4913_v54, %s5913_s29  ;;  %v5262_v54 = vsel %vm3443_vm3, %v5230_v48, %v9221_v1  ;;  %v5434_v56 = vsel %vm772_vm1, %v5393_v30, 0.0  ;;  %v4881_v1 = vunpack.c.l.b16 %v4185_v63  ;;  %v5395_v31 = vunpack.c.l.bf16 %v665_v21 }
 0x2f4   : > { %v5396_v18 = vunpack.c.h.bf16 %v665_v21  ;;  %v5435_v28 = vadd.f32 %v5434_v56, %v5433_v60  ;;  %v5436_v48 = vsel %vm772_vm1, %v5394_v51, 0.0  ;;  %v4801_v20 = vunpack.c.h.b16 %v9089_v35 }
 0x2f5   : > { %v5022_v3 = vpop.permute.xlu1 %5021  ;;  %v4802_v27 = vunpack.c.l.b16 %v9284_v36  ;;  %v5438_v11 = vsel %vm772_vm1, %v5395_v31, 0.0  ;;  %v4912_v30 = vpack.c.b16 %v4882_v9, %v4881_v1  ;;  %v4241_v37 = vsel %vm6015_vm4, %v5824_v49, %v4240_v42  ;;  %v9365_v9 = vld [vmem:[#allocation2 + $0xc4] sm:$0xf] }
 0x2f6   : > { %v5294_v29 = vsel %vm3476_vm5, %v5262_v54, %v5022_v3  ;;  %4947 = vrot.lane.b32.xlu2 %v4921_v45, %s5913_s29  ;;  %v667_v45 = vld [vmem:[%s5994_s16 + $0x38] sm:$0xff]   ;;  %v4244_v35 = vsel %vm6015_vm4, %v4242_v43, %v4243_v12  ;;  %v5437_v3 = vadd.f32 %v5436_v48, %v5435_v28  ;;  %v4817_v59 = vunpack.c.h.b16 %v9104_v8  ;;  %v4288_v8 = vld [vmem:[#allocation2 + $0x74] sm:$0xf]  ;;  %v671_v28 = vld [vmem:[%s5994_s16 + $0x48] sm:$0xff]  }
 0x2f7   : > { %v5335_v6 = vsel %vm3516_vm6, %v5294_v29, 0  ;;  %4769 = vrot.lane.b32.xlu0 %v4744_v46, %s5911_s23  ;;  %v9982_v46 = vunpack.c.l.b16 %v8274_v16  ;;  %v5397_v23 = vunpack.c.l.bf16 %v667_v45  ;;  %v5398_v14 = vunpack.c.h.bf16 %v667_v45 }
 0x2f8   : > { %5353 = vmatpush.bf16.xpose.msrb.mxu0 %v5335_v6  ;;  %v5440_v16 = vsel %vm772_vm1, %v5396_v18, 0.0  ;;  %v4832_v51 = vpack.c.b16 %v4802_v27, %v4801_v20  ;;  %v4818_v29 = vunpack.c.l.b16 %v9309_v24  ;;  %v4897_v42 = vunpack.c.l.b16 %v4241_v37  ;;  %v4046_v18 = vld [vmem:[#allocation2 + $0x38] sm:$0xf]  ;;  %v4111_v37 = vld [vmem:[#allocation2 + $0xc0] sm:$0xc] }
 0x2f9   : > { %v9336_v7 = vpop.permute.xlu2 %5035  ;;  %v4736_v63 = vpack.c.b16 %v4720_v15, %v9982_v46  ;;  %v4898_v21 = vunpack.c.l.b16 %v4244_v35  ;;  %v5399_v60 = vunpack.c.l.bf16 %v669_v5  ;;  %v5442_v56 = vsel %vm772_vm1, %v5397_v23, 0.0 }
 0x2fa   : > { %v3574_v55 = vpop.f32.mrf.mxu3  ;;  %v9339_v26 = vpop.permute.xlu0 %4859  ;;  %v4984_v6 = vunpack.c.l.b16 %v4296_v33  ;;  %v5400_v24 = vunpack.c.h.bf16 %v669_v5  ;;  %v5444_v43 = vsel %vm772_vm1, %v5398_v14, 0.0  ;;  %v5164_v49 = vsel %vm3344_vm15, %v9041_v13, %v9217_v32 }
 0x2fb   : > { %v3575_v40 = vadd.f32 %v3574_v55, %v9979_v53  ;;  %5027 = vrot.lane.b32.xlu1 %v5001_v0, %s5914_s10  ;;  %v5439_v0 = vadd.f32 %v5438_v11, %v5437_v3  ;;  %v5180_v12 = vsel %vm3344_vm15, %v9063_v41, %v9313_v50  ;;  %v4840_v20 = vpack.c.b16 %v4818_v29, %v4817_v59 }
 0x2fc   : > { %v4920_v45 = vpack.c.b16 %v4898_v21, %v4897_v42  ;;  %v5401_v46 = vunpack.c.l.bf16 %v671_v28  ;;  %v5000_v13 = vpack.c.b16 %v4984_v6, %v4818_v29  ;;  %v4976_v32 = vunpack.c.l.b16 %v4288_v8 }
 0x2fd   : > { %v3579_v54 = vmax.f32 %v3575_v40, 0.0  ;;  %v4764_v53 = vpop.permute.xlu1 %4763  ;;  %v5441_v15 = vadd.f32 %v5440_v16, %v5439_v0  ;;  %v9376_v40 = vld [vmem:[#allocation2 + $0x64] sm:$0xf]  ;;  %v4233_v23 = vrot.slane %v9365_v9, 6  ;;  %v5212_v50 = vsel %vm3377_vm0, %v5180_v12, %v9278_v52  ;;  %v4112_v16 = vld [vmem:[#allocation2 + $0xc8] sm:$0x3] }
 0x2fe   : > { %4753 = vrot.lane.b32.xlu2 %v4736_v63, %s5911_s23  ;;  %v5446_v63 = vsel %vm772_vm1, %v5399_v60, 0.0  ;;  %v5402_v35 = vunpack.c.h.bf16 %v671_v28  ;;  %v5448_v3 = vsel %vm772_vm1, %v5400_v24, 0.0  ;;  %v4799_v33 = vunpack.c.h.b16 %v9172_v17 }
 0x2ff   : > { %3581 = vst [vmem:[%s7120_s27 + $0x18] sm:$0xff] %v3579_v54  ;;  %4929 = vrot.lane.b32.xlu0 %v4912_v30, %s5913_s29  ;;  %v5443_v48 = vadd.f32 %v5442_v56, %v5441_v15  ;;  %v4719_v30 = vunpack.c.l.b16 %v4046_v18  ;;  %v4800_v14 = vunpack.c.l.b16 %v9376_v40  ;;  %v5196_v29 = vsel %vm3377_vm0, %v5164_v49, %v4764_v53  ;;  %v675_v49 = vld [vmem:[%s5994_s16 + $0x58] sm:$0xff]  }
 0x300   : > { %v5450_v0 = vsel %vm772_vm1, %v5401_v46, 0.0  ;;  %v4235_v17 = vrot.slane %v4233_v23, 4  ;;  %v5823_v21 = vrot.slane %v4111_v37, 10  ;;  %v4236_v53 = vrot.slane %v4112_v16, 6  ;;  %v4054_v18 = vld [vmem:[#allocation2 + $0x98] sm:$0xf] }
 0x301   : > { %v9363_v1 = vpop.permute.xlu2 %4777  ;;  %v5445_v41 = vadd.f32 %v5444_v43, %v5443_v48  ;;  %v5452_v8 = vsel %vm772_vm1, %v5402_v35, 0.0  ;;  %v5228_v24 = vsel %vm3410_vm2, %v5196_v29, %v9339_v26  ;;  %v5405_v28 = vunpack.c.l.bf16 %v675_v49  ;;  %v677_v37 = vld [vmem:[%s5994_s16 + $0x60] sm:$0xff]  }
 0x302   : > { %v4956_v31 = vpop.permute.xlu0 %4955  ;;  %v3576_v55 = vpop.f32.mrf.mxu3  ;;  %v4234_v46 = vsel %vm6015_vm4, %v5823_v21, %v4233_v23  ;;  %v5260_v36 = vsel %vm3443_vm3, %v5228_v24, %v9307_v19  ;;  %v679_v21 = vld [vmem:[%s5994_s16 + $0x68] sm:$0xff]  }
 0x303   : > { %4849 = vrot.lane.b32.xlu1 %v4832_v51, %s5912_s28  ;;  %v673_v51 = vld [vmem:[%s5994_s16 + $0x50] sm:$0xff]   ;;  %v5447_v59 = vadd.f32 %v5446_v63, %v5445_v41  ;;  %v9983_v55 = vunpack.c.l.b16 %v8170_v39  ;;  %v5406_v41 = vunpack.c.h.bf16 %v675_v49  ;;  %v4895_v19 = vunpack.c.l.b16 %v4234_v46 }
 0x304   : > { %v5403_v52 = vunpack.c.l.bf16 %v673_v51  ;;  %v5404_v15 = vunpack.c.h.bf16 %v673_v51 }
 0x305   : > { %v4876_v11 = vpop.permute.xlu1 %4875  ;;  %v5449_v60 = vadd.f32 %v5448_v3, %v5447_v59  ;;  %v4735_v26 = vpack.c.b16 %v4719_v30, %v9983_v55  ;;  %v4727_v30 = vunpack.c.l.b16 %v4054_v18  ;;  %v5407_v3 = vunpack.c.l.bf16 %v677_v37 }
 0x306   : > { %v5244_v54 = vsel %vm3410_vm2, %v5212_v50, %v4876_v11  ;;  %4865 = vrot.lane.b32.xlu2 %v4840_v20, %s5912_s28  ;;  %v5454_v48 = vsel %vm772_vm1, %v5403_v52, 0.0  ;;  %v4831_v20 = vpack.c.b16 %v4800_v14, %v4799_v33  ;;  %v5456_v39 = vsel %vm772_vm1, %v5404_v15, 0.0 }
 0x307   : > { %v5276_v5 = vsel %vm3443_vm3, %v5244_v54, %v4956_v31  ;;  %5025 = vrot.lane.b32.xlu0 %v5000_v13, %s5914_s10  ;;  %v5451_v12 = vadd.f32 %v5450_v0, %v5449_v60  ;;  %v4992_v31 = vpack.c.b16 %v4976_v32, %v4802_v27  ;;  %v4237_v27 = vsel %vm6015_vm4, %v4235_v17, %v4236_v53  ;;  %v4096_v32 = vld [vmem:[#allocation2 + $0x68] sm:$0x3] }
 0x308   : > { %v5308_v42 = vsel %vm3476_vm5, %v5276_v5, %v9336_v7  ;;  %v4177_v7 = vrot.slane %v9376_v40, 6  ;;  %v5458_v54 = vsel %vm772_vm1, %v5405_v28, 0.0  ;;  %v4896_v33 = vunpack.c.l.b16 %v4237_v27 }
 0x309   : > { %v5349_v56 = vsel %vm3516_vm6, %v5308_v42, 0  ;;  %v9395_v6 = vpop.permute.xlu2 %4937  ;;  %v5453_v63 = vadd.f32 %v5452_v8, %v5451_v12  ;;  %v4180_v51 = vrot.slane %v4096_v32, 6  ;;  %v5408_v5 = vunpack.c.h.bf16 %v677_v37 }
 0x30a   : > { %5367 = vmatpush.bf16.xpose.msrb.mxu1 %v5349_v56  ;;  %v9400_v43 = vpop.permute.xlu0 %4697  ;;  %v4179_v11 = vrot.slane %v4177_v7, 4  ;;  %v5460_v52 = vsel %vm772_vm1, %v5406_v41, 0.0  ;;  %v4815_v42 = vunpack.c.h.b16 %v9187_v62  ;;  %v4816_v17 = vunpack.c.l.b16 %v9365_v9 }
 0x30b   : > { %4945 = vrot.lane.b32.xlu1 %v4920_v45, %s5913_s29  ;;  %v4095_v45 = vld [vmem:[#allocation2 + $0x60] sm:$0xc]  ;;  %v5455_v35 = vadd.f32 %v5454_v48, %v5453_v63  ;;  %v9984_v56 = vunpack.c.l.b16 %v8447_v47  ;;  %v5409_v15 = vunpack.c.l.bf16 %v679_v21  ;;  %v5462_v8 = vsel %vm772_vm1, %v5407_v3, 0.0  ;;  %v681_v47 = vld [vmem:[%s5994_s16 + $0x70] sm:$0xff]  }
 0x30c   : > { %v5815_v16 = vrot.slane %v4095_v45, 10  ;;  %v4919_v24 = vpack.c.b16 %v4896_v33, %v4895_v19  ;;  %v4181_v62 = vsel %vm6015_vm4, %v4179_v11, %v4180_v51  ;;  %v5410_v18 = vunpack.c.h.bf16 %v679_v21 }
 0x30d   : > { %v5020_v13 = vpop.permute.xlu1 %5019  ;;  %v5457_v59 = vadd.f32 %v5456_v39, %v5455_v35  ;;  %v4743_v53 = vpack.c.b16 %v4727_v30, %v9984_v56  ;;  %v5464_v28 = vsel %vm772_vm1, %v5408_v5, 0.0  ;;  %v4839_v48 = vpack.c.b16 %v4816_v17, %v4815_v42  ;;  %v683_v39 = vld [vmem:[%s5994_s16 + $0x78] sm:$0xff]   ;;  %v4295_v35 = vld [vmem:[#allocation2 + $0xc8] sm:$0xf] }
 0x30e   : > { %v5292_v50 = vsel %vm3476_vm5, %v5260_v36, %v5020_v13  ;;  %5009 = vrot.lane.b32.xlu2 %v4992_v31, %s5914_s10  ;;  %v4178_v49 = vsel %vm6015_vm4, %v5815_v16, %v4177_v7  ;;  %v4880_v46 = vunpack.c.l.b16 %v4181_v62  ;;  %v5411_v7 = vunpack.c.l.bf16 %v681_v47 }
 0x30f   : > { %v5333_v23 = vsel %vm3516_vm6, %v5292_v50, 0  ;;  %4847 = vrot.lane.b32.xlu0 %v4831_v20, %s5912_s28  ;;  %v5459_v60 = vadd.f32 %v5458_v54, %v5457_v59  ;;  %v4879_v20 = vunpack.c.l.b16 %v4178_v49  ;;  %v5466_v61 = vsel %vm772_vm1, %v5409_v15, 0.0 }
 0x310   : > { %5354 = vmatpush.bf16.xpose.msrb.mxu0 %v5333_v23  ;;  %v5412_v36 = vunpack.c.h.bf16 %v681_v47  ;;  %v5468_v27 = vsel %vm772_vm1, %v5410_v18, 0.0  ;;  %v5178_v45 = vsel %vm3344_vm15, %v9142_v4, %v9400_v43  ;;  %v5413_v30 = vunpack.c.l.bf16 %v683_v39 }
 0x311   : > { %v5034_v29 = vpop.permute.xlu2 %5033  ;;  %v5461_v12 = vadd.f32 %v5460_v52, %v5459_v60  ;;  %v4911_v11 = vpack.c.b16 %v4880_v46, %v4879_v20  ;;  %v5470_v37 = vsel %vm772_vm1, %v5411_v7, 0.0  ;;  %v5210_v19 = vsel %vm3377_vm0, %v5178_v45, %v9363_v1 }
 0x312   : > { %v4858_v0 = vpop.permute.xlu0 %4857  ;;  %v5414_v54 = vunpack.c.h.bf16 %v683_v39  ;;  %v5472_v33 = vsel %vm772_vm1, %v5412_v36, 0.0  ;;  %v5915_v51 = vmov 256.0   ;;  %v4983_v1 = vunpack.c.l.b16 %v4295_v35 }
 0x313   : > { %4751 = vrot.lane.b32.xlu1 %v4735_v26, %s5911_s23  ;;  %v5463_v55 = vadd.f32 %v5462_v8, %v5461_v12  ;;  %v4287_v26 = vld [vmem:[#allocation2 + $0x68] sm:$0xf]  ;;  %5874 = vrcp.f32 %v5915_v51  ;;  %v5474_v52 = vsel %vm772_vm1, %v5413_v30, 0.0 }
 0x314   : > { %v4975_v41 = vunpack.c.l.b16 %v4287_v26  ;;  %v4999_v15 = vpack.c.b16 %v4983_v1, %v4816_v17 }
 0x315   : > { %v4762_v31 = vpop.permute.xlu1 %4761  ;;  %v5465_v63 = vadd.f32 %v5464_v28, %v5463_v55 }
 0x316   : > { %4767 = vrot.lane.b32.xlu2 %v4743_v53, %s5911_s23  ;;  %v4991_v43 = vpack.c.b16 %v4975_v41, %v4800_v14  ;;  %v5194_v59 = vsel %vm3377_vm0, %v9181_v22, %v4762_v31  ;;  %v5476_v14 = vsel %vm772_vm1, %v5414_v54, 0.0 }
 0x317   : > { %4943 = vrot.lane.b32.xlu0 %v4919_v24, %s5913_s29  ;;  %v5467_v50 = vadd.f32 %v5466_v61, %v5465_v63  ;;  %v5226_v56 = vsel %vm3410_vm2, %v5194_v59, %v4858_v0 }
 0x319   : > { %v9444_v13 = vpop.permute.xlu2 %4775  ;;  %v5469_v23 = vadd.f32 %v5468_v27, %v5467_v50  ;;  %v5875_v8 = vpop.eup %5874 }
 0x31a   : > { %v4954_v32 = vpop.permute.xlu0 %4953  ;;  %v5485_v62 = vmul.f32 256.0, %v5875_v8  ;;  %vm5489_vm4 = vweird.f32 %v5875_v8 }
 0x31b   : > { %4863 = vrot.lane.b32.xlu1 %v4839_v48, %s5912_s28  ;;  %v5471_v16 = vadd.f32 %v5470_v37, %v5469_v23 }
 0x31c   : > { %v5486_v28 = vsub.f32 1.0, %v5485_v62 }
 0x31d   : > { %v4874_v3 = vpop.permute.xlu1 %4873  ;;  %v5473_v21 = vadd.f32 %v5472_v33, %v5471_v16 }
 0x31e   : > { %v5242_v4 = vsel %vm3410_vm2, %v5210_v19, %v4874_v3  ;;  %4927 = vrot.lane.b32.xlu2 %v4911_v11, %s5913_s29  ;;  %v5487_v55 = vmul.f32 %v5875_v8, %v5486_v28 }
 0x31f   : > { %v5274_v5 = vsel %vm3443_vm3, %v5242_v4, %v4954_v32  ;;  %v5475_v22 = vadd.f32 %v5474_v52, %v5473_v21 }
 0x320   : > { %v5306_v42 = vsel %vm3476_vm5, %v5274_v5, %v5034_v29  ;;  %v5258_v29 = vsel %vm3443_vm3, %v5226_v56, %v9395_v6  ;;  %v5488_v46 = vadd.f32 %v5875_v8, %v5487_v55 }
 0x321   : > { %v5347_v60 = vsel %vm3516_vm6, %v5306_v42, 0  ;;  %v4936_v40 = vpop.permute.xlu2 %4935  ;;  %v5477_v24 = vadd.f32 %v5476_v14, %v5475_v22 }
 0x322   : > { %5368 = vmatpush.bf16.xpose.msrb.mxu1 %v5347_v60  ;;  %v4696_v53 = vpop.permute.xlu0 %4695  ;;  %v5490_v36 = vsel %vm5489_vm4, %v5875_v8, %v5488_v46 }
 0x323   : > { %5007 = vrot.lane.b32.xlu1 %v4991_v43, %s5914_s10  ;;  %v5478_v31 = vrot.slane %v5477_v24, 4  ;;  %v5176_v7 = vsel %vm3344_vm15, %v9098_v58, %v4696_v53  ;;  %v5492_v58 = vld [vmem:[%s9568_s7] sm:$0xff] }
 0x324   : > { %v5208_v27 = vsel %vm3377_vm0, %v5176_v7, %v9444_v13 }
 0x325   : > { %v5018_v49 = vpop.permute.xlu1 %5017  ;;  %v5479_v18 = vadd.f32 %v5478_v31, %v5477_v24 }
 0x326   : > { %v5290_v12 = vsel %vm3476_vm5, %v5258_v29, %v5018_v49  ;;  %5023 = vrot.lane.b32.xlu2 %v4999_v15, %s5914_s10 }
 0x327   : > { %v5331_v0 = vsel %vm3516_vm6, %v5290_v12, 0  ;;  %v5480_v17 = vrot.slane %v5479_v18, 2 }
 0x328   : > { %5355 = vmatpush.bf16.xpose.msrb.mxu0 %v5331_v0 }
 0x329   : > { %v5032_v48 = vpop.permute.xlu2 %5031  ;;  %v5481_v47 = vadd.f32 %v5480_v17, %v5479_v18 }
 0x32a   : > { %v4856_v9 = vpop.permute.xlu0 %4855 }
 0x32b   : > { %v5482_v20 = vrot.slane %v5481_v47, 1 }
 0x32d   : > { %v4760_v26 = vpop.permute.xlu1 %4759  ;;  %v5483_v63 = vadd.f32 %v5482_v20, %v5481_v47 }
 0x32e   : > { %v5192_v41 = vsel %vm3377_vm0, %v9123_v57, %v4760_v26 }
 0x32f   : > { %v5491_v50 = vmul.f32 %v5490_v36, %v5483_v63  ;;  %v5224_v13 = vsel %vm3410_vm2, %v5192_v41, %v4856_v9 }
 0x330   : > { %v5256_v57 = vsel %vm3443_vm3, %v5224_v13, %v4936_v40 }
 0x331   : > { %v4774_v6 = vpop.permute.xlu2 %4773  ;;  %v5493_v23 = vmul.f32 %v5492_v58, %v5491_v50 }
 0x332   : > { %v4952_v61 = vpop.permute.xlu0 %4951 }
 0x333   : > { %v5494_v33 = vsel %vm772_vm1, %v5493_v23, 0.0 }
 0x335   : > { %v4872_v45 = vpop.permute.xlu1 %4871 }
 0x336   : > { %v5240_v32 = vsel %vm3410_vm2, %v5208_v27, %v4872_v45 }
 0x337   : > { %v5272_v39 = vsel %vm3443_vm3, %v5240_v32, %v4952_v61 }
 0x338   : > { %v5304_v11 = vsel %vm3476_vm5, %v5272_v39, %v5032_v48 }
 0x339   : > { %v5345_v30 = vsel %vm3516_vm6, %v5304_v11, 0  ;;  %v4934_v37 = vpop.permute.xlu2 %4933 }
 0x33a   : > { %5369 = vmatpush.bf16.xpose.msrb.mxu1 %v5345_v30  ;;  %v4694_v35 = vpop.permute.xlu0 %4693  ;;  %v5312_v30 = vld [vmem:[%s9567_s6] sm:$0xff] }
 0x33b   : > { %v5174_v59 = vsel %vm3344_vm15, %v9036_v44, %v4694_v35  ;;  %5315 = vperm.xlu1 %5872, %v5312_v30  }
 0x33c   : > { %v5206_v1 = vsel %vm3377_vm0, %v5174_v59, %v4774_v6 }
 0x33d   : > { %v5016_v19 = vpop.permute.xlu1 %5015 }
 0x33e   : > { %v5288_v3 = vsel %vm3476_vm5, %v5256_v57, %v5016_v19  ;;  %v9985_v19 = vld [vmem:[#allocation14_spill] sm:$0xff] }
 0x33f   : > { %v5329_v54 = vsel %vm3516_vm6, %v5288_v3, 0 }
 0x340   : > { %5356 = vmatpush.bf16.xpose.msrb.mxu0 %v5329_v54 }
 0x341   : > { %v5030_v4 = vpop.permute.xlu2 %5029  ;;  %5495 = vadd.xlane.f32.xlu0 %v5494_v33 }
 0x342   : > { %v4854_v43 = vpop.permute.xlu0 %4853 }
 0x345   : > { %v4758_v16 = vpop.permute.xlu1 %4757 }
 0x346   : > { %v5190_v21 = vsel %vm3377_vm0, %v9195_v2, %v4758_v16 }
 0x347   : > { %v5222_v56 = vsel %vm3410_vm2, %v5190_v21, %v4854_v43  ;;  %v5311_v21 = vld [vmem:[%s9566_s5] sm:$0xf] }
 0x348   : > { %v5254_v15 = vsel %vm3443_vm3, %v5222_v56, %v4934_v37 }
 0x349   : > { %v4852_v51 = vpop.permute.xlu2 %4851 }
 0x34a   : > { %v4950_v5 = vpop.permute.xlu0 %4949 }
 0x34d   : > { %v4870_v52 = vpop.permute.xlu1 %4869 }
 0x34e   : > { %v5238_v42 = vsel %vm3410_vm2, %v5206_v1, %v4870_v52 }
 0x34f   : > { %v5270_v60 = vsel %vm3443_vm3, %v5238_v42, %v4950_v5 }
 0x350   : > { %v5302_v40 = vsel %vm3476_vm5, %v5270_v60, %v5030_v4  ;;  %v9986_v4 = vld [vmem:[#allocation15_spill] sm:$0xff] }
 0x351   : > { %v5343_v14 = vsel %vm3516_vm6, %v5302_v40, 0  ;;  %v4948_v44 = vpop.permute.xlu2 %4947  ;;  %v5497_v40 = vld [vmem:[%s9569_s8] sm:$0xff] }
 0x352   : > { %5370 = vmatpush.bf16.xpose.msrb.mxu1 %v5343_v14  ;;  %v4756_v53 = vpop.permute.xlu0 %4755 }
 0x353   : > { %v5188_v62 = vsel %vm3377_vm0, %v9153_v34, %v4756_v53 }
 0x354   : > { %v5220_v31 = vsel %vm3410_vm2, %v5188_v62, %v4852_v51 }
 0x355   : > { %v5014_v22 = vpop.permute.xlu1 %5013 }
 0x356   : > { %v5286_v8 = vsel %vm3476_vm5, %v5254_v15, %v5014_v22 }
 0x357   : > { %v5327_v24 = vsel %vm3516_vm6, %v5286_v8, 0 }
 0x358   : > { %5357 = vmatpush.bf16.xpose.msrb.mxu0 %v5327_v24 }
 0x359   : > { %v4754_v49 = vpop.permute.xlu2 %4753 }
 0x35a   : > { %v4868_v2 = vpop.permute.xlu0 %4867 }
 0x35d   : > { %v4772_v29 = vpop.permute.xlu1 %4771 }
 0x35e   : > { %v5204_v28 = vsel %vm3377_vm0, %v9176_v25, %v4772_v29  ;;  %v5186_v25 = vsel %vm3377_vm0, %v9093_v10, %v4754_v49 }
 0x35f   : > { %v5236_v47 = vsel %vm3410_vm2, %v5204_v28, %v4868_v2 }
 0x360   : > { %v5268_v34 = vsel %vm3443_vm3, %v5236_v47, %v4948_v44 }
 0x361   : > { %v4866_v48 = vpop.permute.xlu2 %4865 }
 0x362   : > { %v5012_v12 = vpop.permute.xlu0 %5011 }
 0x365   : > { %v4932_v0 = vpop.permute.xlu1 %4931 }
 0x366   : > { %v5252_v18 = vsel %vm3443_vm3, %v5220_v31, %v4932_v0 }
 0x367   : > { %v5284_v9 = vsel %vm3476_vm5, %v5252_v18, %v5012_v12 }
 0x368   : > { %v5325_v17 = vsel %vm3516_vm6, %v5284_v9, 0 }
 0x369   : > { %5358 = vmatpush.bf16.xpose.msrb.mxu0 %v5325_v17  ;;  %v5010_v6 = vpop.permute.xlu2 %5009 }
 0x36a   : > { %v4770_v55 = vpop.permute.xlu0 %4769 }
 0x36b   : > { %v5202_v32 = vsel %vm3377_vm0, %v9237_v38, %v4770_v55 }
 0x36c   : > { %v5234_v50 = vsel %vm3410_vm2, %v5202_v32, %v4866_v48 }
 0x36d   : > { %v5028_v26 = vpop.permute.xlu1 %5027 }
 0x36e   : > { %v5300_v20 = vsel %vm3476_vm5, %v5268_v34, %v5028_v26 }
 0x36f   : > { %v5341_v46 = vsel %vm3516_vm6, %v5300_v20, 0 }
 0x370   : > { %5371 = vmatpush.bf16.xpose.msrb.mxu1 %v5341_v46 }
 0x371   : > { %v4768_v39 = vpop.permute.xlu2 %4767 }
 0x372   : > { %v4930_v7 = vpop.permute.xlu0 %4929  ;;  %v5200_v57 = vsel %vm3377_vm0, %v9985_v19, %v4768_v39 }
 0x375   : > { %v4850_v61 = vpop.permute.xlu1 %4849 }
 0x376   : > { %v5218_v63 = vsel %vm3410_vm2, %v5186_v25, %v4850_v61 }
 0x377   : > { %v5250_v36 = vsel %vm3443_vm3, %v5218_v63, %v4930_v7 }
 0x378   : > { %v5282_v27 = vsel %vm3476_vm5, %v5250_v36, %v5010_v6 }
 0x379   : > { %v5323_v45 = vsel %vm3516_vm6, %v5282_v27, 0  ;;  %v4928_v38 = vpop.permute.xlu2 %4927 }
 0x37a   : > { %5359 = vmatpush.bf16.xpose.msrb.mxu0 %v5323_v45  ;;  %v5026_v41 = vpop.permute.xlu0 %5025 }
 0x37d   : > { %v4946_v11 = vpop.permute.xlu1 %4945 }
 0x37e   : > { %v5266_v10 = vsel %vm3443_vm3, %v5234_v50, %v4946_v11 }
 0x37f   : > { %v5298_v58 = vsel %vm3476_vm5, %v5266_v10, %v5026_v41 }
 0x380   : > { %v5339_v37 = vsel %vm3516_vm6, %v5298_v58, 0 }
 0x381   : > { %5372 = vmatpush.bf16.xpose.msrb.mxu1 %v5339_v37  ;;  %v5024_v54 = vpop.permute.xlu2 %5023 }
 0x382   : > { %v4848_v13 = vpop.permute.xlu0 %4847 }
 0x385   : > { %v4752_v35 = vpop.permute.xlu1 %4751 }
 0x386   : > { %v5184_v43 = vsel %vm3377_vm0, %v9986_v4, %v4752_v35 }
 0x387   : > { %v5216_v5 = vsel %vm3410_vm2, %v5184_v43, %v4848_v13 }
 0x388   : > { %v5248_v1 = vsel %vm3443_vm3, %v5216_v5, %v4928_v38 }
 0x38a   : > { %v4944_v23 = vpop.permute.xlu0 %4943 }
 0x38d   : > { %v4864_v3 = vpop.permute.xlu1 %4863 }
 0x38e   : > { %v5232_v33 = vsel %vm3410_vm2, %v5200_v57, %v4864_v3 }
 0x38f   : > { %v5264_v16 = vsel %vm3443_vm3, %v5232_v33, %v4944_v23 }
 0x390   : > { %v5296_v51 = vsel %vm3476_vm5, %v5264_v16, %v5024_v54 }
 0x391   : > { %v5337_v59 = vsel %vm3516_vm6, %v5296_v51, 0 }
 0x392   : > { %5373 = vmatpush.bf16.xpose.msrb.mxu1 %v5337_v59 }
 0x395   : > { %v5008_v52 = vpop.permute.xlu1 %5007 }
 0x396   : > { %v5280_v42 = vsel %vm3476_vm5, %v5248_v1, %v5008_v52 }
 0x397   : > { %v5321_v60 = vsel %vm3516_vm6, %v5280_v42, 0 }
 0x398   : > { %5360 = vmatpush.bf16.xpose.msrb.mxu0 %v5321_v60 }
 0x399   : > { %5832 = vmatmul.msk.bf16.vlgmr.msrb.gmra.mxu1 %vm3516_vm6, %v5311_v21 }
 0x39f   : > { %5831 = vmatmul.msk.bf16.vlgmr.msrb.gmra.mxu0 %vm3516_vm6, %v5311_v21 }
 0x3ad   : > { %v5316_v44 = vpop.permute.xlu1 %5315 }
 0x3b4   : > { %v5496_v14 = vpop.xlane.xlu0 %5495 }
 0x3b5   : > { %v5498_v56 = vadd.f32 %v5497_v40, %v5496_v14 }
 0x3b7   : > { %v5499_v53 = vmax.f32 %v5498_v56, 0.0 }
 0x3b9   : > { %5502 = vperm.xlu2 %5873, %v5499_v53  }
 0x413   : > { %v5503_v22 = vpop.permute.xlu2 %5502 }
 0x414   : > { %5505 = vst [vmem:[%s7120_s27 + $0x30] sm:$0xff] %v5503_v22 }
 0x415   : > { %5506 = vst [vmem:[%s7120_s27 + $0x38] sm:$0xff] %v5503_v22 }
 0x416   : > { %v5375_v15 = vpop.f32.mrf.mxu1 }
 0x417   : > { %v5376_v8 = vadd.f32 %v5375_v15, %v5316_v44 }
 0x419   : > { %v5380_v24 = vmax.f32 %v5376_v8, 0.0 }
 0x41b   : > { %5382 = vst [vmem:[%s7120_s27 + $0x28] sm:$0xff] %v5380_v24 }
 0x41c   : > { %v5362_v2 = vpop.f32.mrf.mxu0 }
 0x41d   : > { %v5363_v49 = vadd.f32 %v5362_v2, %v5316_v44 }
 0x41e   : > { %v5377_v29 = vpop.f32.mrf.mxu1 }
 0x41f   : > { %v5379_v62 = vmax.f32 %v5363_v49, 0.0 }
 0x421   : > { %5381 = vst [vmem:[%s7120_s27 + $0x20] sm:$0xff] %v5379_v62 }
 0x424   : > { %v5364_v12 = vpop.f32.mrf.mxu0 }
 0x425 PF: > { %s19_s30 = sadd.s32 1, %s5904_s30  }
 0x426   : > { %p16_p4 = scmp.ge.s32.totalorder %s19_s30, 4  }
 0x428   :  { %18 = sbr.rel (!%p16_p4) target bundleno = 1 (0x1), region = 90 }

</bundles_post_ra>
